<compile_context>
chip_gen: v7x
topology: tpu7x:2x2x1
jax: 0.10.0
libtpu: 0.0.40
codegen_flags: <defaults>
</compile_context>

<pallas_src>
import functools

import jax
import jax.numpy as jnp
from jax import lax
from jax.experimental import pallas as pl
from jax.experimental.pallas import tpu as pltpu

_EPS = 1e-5  # PyTorch InstanceNorm2d default


# ----------------------------------------------------------------------------
# Kernel 1: fused  (im2col-GEMM conv) + bias + ReLU + InstanceNorm   per image
# ----------------------------------------------------------------------------
def _conv_block_kernel(p_ref, w_ref, b_ref, o_ref):
    p = p_ref[0]                                                     # [M, K*K*Cin]
    y = jnp.dot(p, w_ref[...], preferred_element_type=jnp.float32)   # MXU -> [M, Cout]
    y = jnp.maximum(y + b_ref[...], 0.0)                             # bias + ReLU (VPU)
    # InstanceNorm2d(affine=False): normalize over spatial (M) per channel.
    mean = jnp.mean(y, axis=0, keepdims=True)                        # [1, Cout]
    var = jnp.mean(jnp.square(y - mean), axis=0, keepdims=True)      # biased var
    o_ref[0] = ((y - mean) * lax.rsqrt(var + _EPS)).astype(o_ref.dtype)


def _im2col(x, k):
    """x: [N, Hp, Wp, Cin] (already padded) -> [N, Ho*Wo, k*k*Cin]."""
    n, hp, wp, cin = x.shape
    ho, wo = hp - k + 1, wp - k + 1
    taps = [x[:, dy:dy + ho, dx:dx + wo, :] for dy in range(k) for dx in range(k)]
    p = jnp.stack(taps, axis=3)                                      # [N,Ho,Wo,k*k,Cin]
    return p.reshape(n, ho * wo, k * k * cin), (ho, wo)


def conv_relu_instnorm(x, w, b):
    """x: [N, Hp, Wp, Cin] padded NHWC; w: [k, k, Cin, Cout] (HWIO); b: [Cout]."""
    k, _, cin, cout = w.shape
    patches, (ho, wo) = _im2col(x, k)
    n, m, kc = patches.shape
    wmat = w.reshape(kc, cout)
    bmat = b.reshape(1, cout)

    cost = pl.CostEstimate(
        flops=2 * n * m * kc * cout,
        transcendentals=n * cout,
        bytes_accessed=4 * (n * m * kc + kc * cout + cout + n * m * cout),
    )

    y = pl.pallas_call(
        _conv_block_kernel,
        out_shape=jax.ShapeDtypeStruct((n, m, cout), jnp.float32),
        grid=(n,),
        in_specs=[
            pl.BlockSpec((1, m, kc), lambda i: (i, 0, 0)),    # per-image patches
            pl.BlockSpec((kc, cout), lambda i: (0, 0)),       # weights VMEM-resident
            pl.BlockSpec((1, cout), lambda i: (0, 0)),        # bias VMEM-resident
        ],
        out_specs=pl.BlockSpec((1, m, cout), lambda i: (i, 0, 0)),
        compiler_params=pltpu.CompilerParams(
            dimension_semantics=("parallel",)),               # megacore split on v7x
        cost_estimate=cost,
    )(patches, wmat, bmat)
    return y.reshape(n, ho, wo, cout)


# ----------------------------------------------------------------------------
# Kernel 2: MaxPool2d(2, stride=2, return_indices=True)
# ----------------------------------------------------------------------------
def _maxpool_kernel(a_ref, b_ref, c_ref, d_ref, v_ref, i_ref, *, w_in):
    a = a_ref[0]; b = b_ref[0]; c = c_ref[0]; d = d_ref[0]           # [Ho, Wo, C]
    shape = a.shape
    hi = lax.broadcasted_iota(jnp.int32, shape, 0) * 2               # 2*ho
    wi = lax.broadcasted_iota(jnp.int32, shape, 1) * 2               # 2*wo
    base = hi * w_in + wi                                            # flat idx of TL elem
    # First-occurrence argmax over the window, scan order (0,0),(0,1),(1,0),(1,1).
    v, idx = a, base
    sel = b > v
    v = jnp.where(sel, b, v); idx = jnp.where(sel, base + 1, idx)
    sel = c > v
    v = jnp.where(sel, c, v); idx = jnp.where(sel, base + w_in, idx)
    sel = d > v
    v = jnp.where(sel, d, v); idx = jnp.where(sel, base + w_in + 1, idx)
    v_ref[0] = v.astype(v_ref.dtype)
    i_ref[0] = idx


def maxpool2x2(x):
    """x: [N, H, W, C] -> (values [N,H/2,W/2,C], int32 indices = h*W + w)."""
    n, h, w, c = x.shape
    ho, wo = h // 2, w // 2
    shards = (x[:, 0::2, 0::2, :], x[:, 0::2, 1::2, :],
              x[:, 1::2, 0::2, :], x[:, 1::2, 1::2, :])
    spec = pl.BlockSpec((1, ho, wo, c), lambda i: (i, 0, 0, 0))
    vals, idx = pl.pallas_call(
        functools.partial(_maxpool_kernel, w_in=w),
        out_shape=(jax.ShapeDtypeStruct((n, ho, wo, c), x.dtype),
                   jax.ShapeDtypeStruct((n, ho, wo, c), jnp.int32)),
        grid=(n,),
        in_specs=[spec, spec, spec, spec],
        out_specs=(spec, spec),
        compiler_params=pltpu.CompilerParams(
            dimension_semantics=("parallel",)),
    )(*shards)
    return vals, idx


# ----------------------------------------------------------------------------
# Encoder forward (Pallas path) — NCHW at the boundary, NHWC inside.
# ----------------------------------------------------------------------------
def _reflect_pad(x, p):
    return jnp.pad(x, ((0, 0), (p, p), (p, p), (0, 0)), mode="reflect")


def _zero_pad(x, p):
    return jnp.pad(x, ((0, 0), (p, p), (p, p), (0, 0)))


def encoder_forward(x_nchw, params):
    (w1, b1), (w2, b2), (w3, b3), (w4, b4), (w5, b5), (w6, b6) = params
    x = jnp.transpose(x_nchw, (0, 2, 3, 1)).astype(jnp.float32)      # NHWC

    out = conv_relu_instnorm(_reflect_pad(x, 3), w1, b1)             # cnn1 (7x7, valid)
    out, ind1 = maxpool2x2(out)
    out = conv_relu_instnorm(_zero_pad(out, 1), w2, b2)              # cnn2 (3x3, pad 1)
    out, ind2 = maxpool2x2(out)
    out = conv_relu_instnorm(_zero_pad(out, 1), w3, b3)              # cnn3
    out, ind3 = maxpool2x2(out)
    out = conv_relu_instnorm(_zero_pad(out, 1), w4, b4)              # cnn4
    out, ind4 = maxpool2x2(out)
    out = conv_relu_instnorm(_zero_pad(out, 1), w5, b5)              # cnn5
    out = conv_relu_instnorm(_reflect_pad(out, 1), w6, b6)           # pad2 + cnn6 (valid)

    to_nchw = lambda t: jnp.transpose(t, (0, 3, 1, 2))
    return to_nchw(out), [to_nchw(i) for i in (ind1, ind2, ind3, ind4)]


# ----------------------------------------------------------------------------
# Pure-JAX reference (independent compute path: lax.conv + jnp argmax pooling)
# ----------------------------------------------------------------------------
def reference_forward(x_nchw, params):
    x = jnp.transpose(x_nchw, (0, 2, 3, 1)).astype(jnp.float32)

    def conv(x, w, b, padding):
        y = lax.conv_general_dilated(
            x, w, window_strides=(1, 1), padding=padding,
            dimension_numbers=("NHWC", "HWIO", "NHWC"))
        y = jnp.maximum(y + b.reshape(1, 1, 1, -1), 0.0)
        mean = jnp.mean(y, axis=(1, 2), keepdims=True)
        var = jnp.mean(jnp.square(y - mean), axis=(1, 2), keepdims=True)
        return (y - mean) * lax.rsqrt(var + _EPS)

    def pool(x):
        n, h, w, c = x.shape
        cand = jnp.stack([x[:, 0::2, 0::2, :], x[:, 0::2, 1::2, :],
                          x[:, 1::2, 0::2, :], x[:, 1::2, 1::2, :]], axis=0)
        k = jnp.argmax(cand, axis=0)
        v = jnp.max(cand, axis=0)
        ho = jnp.arange(h // 2, dtype=jnp.int32)[None, :, None, None]
        wo = jnp.arange(w // 2, dtype=jnp.int32)[None, None, :, None]
        idx = (2 * ho + (k // 2).astype(jnp.int32)) * w + 2 * wo + (k % 2).astype(jnp.int32)
        return v, idx.astype(jnp.int32)

    (w1, b1), (w2, b2), (w3, b3), (w4, b4), (w5, b5), (w6, b6) = params
    out = conv(_reflect_pad(x, 3), w1, b1, "VALID")
    out, i1 = pool(out)
    out = conv(out, w2, b2, ((1, 1), (1, 1)))
    out, i2 = pool(out)
    out = conv(out, w3, b3, ((1, 1), (1, 1)))
    out, i3 = pool(out)
    out = conv(out, w4, b4, ((1, 1), (1, 1)))
    out, i4 = pool(out)
    out = conv(out, w5, b5, ((1, 1), (1, 1)))
    out = conv(_reflect_pad(out, 1), w6, b6, "VALID")

    to_nchw = lambda t: jnp.transpose(t, (0, 3, 1, 2))
    return to_nchw(out), [to_nchw(i) for i in (i1, i2, i3, i4)]


# ----------------------------------------------------------------------------
# Parameter construction (HWIO conv weights + biases)
# ----------------------------------------------------------------------------
def make_params(key, input_dim, filters, c_bottleneck):
    layer_defs = [(input_dim, filters[0], 7),
                  (filters[0], filters[1], 3),
                  (filters[1], filters[2], 3),
                  (filters[2], filters[3], 3),
                  (filters[3], filters[4], 3),
                  (filters[4], c_bottleneck, 3)]
    keys = jax.random.split(key, 2 * len(layer_defs))
    params = []
    for i, (cin, cout, k) in enumerate(layer_defs):
        fan_in = cin * k * k
        w = jax.random.normal(keys[2 * i], (k, k, cin, cout), jnp.float32) / jnp.sqrt(fan_in)
        b = 0.1 * jax.random.normal(keys[2 * i + 1], (cout,), jnp.float32)
        params.append((w, b))
    return tuple(params)


if __name__ == "__main__":
    # Small config consistent with the module (filters are a ctor argument).
    N, CIN, H, W = 2, 4, 32, 32
    FILTERS = [16, 32, 32, 64, 64]
    C_BOTTLENECK = 16

    key = jax.random.PRNGKey(0)
    kx, kp = jax.random.split(key)
    x = jax.random.normal(kx, (N, CIN, H, W), jnp.float32)
    params = make_params(kp, CIN, FILTERS, C_BOTTLENECK)

    fwd = jax.jit(encoder_forward)
    out, inds = fwd(x, params)
    out = jax.block_until_ready(out)

    ref_out, ref_inds = jax.jit(reference_forward)(x, params)

    assert out.shape == (N, C_BOTTLENECK, H // 16, W // 16), out.shape
    max_err = float(jnp.max(jnp.abs(out - ref_out)))
    assert jnp.allclose(out, ref_out, atol=2e-3, rtol=2e-3), max_err

    # Indices: int32, PyTorch-style flat h*W+w per (n, c) plane.  Allow a
    # vanishing fraction of near-tie argmax flips from fp summation reordering.
    for got, want in zip(inds, ref_inds):
        assert got.shape == want.shape, (got.shape, want.shape)
        match = float(jnp.mean((got == want).astype(jnp.float32)))
        assert match > 0.999, match

    print("KERNEL_OK")
</pallas_src>

<mosaic_0001>
module attributes {stable_mosaic.version = 11 : i64} {
  func.func @_conv_block_kernel(%arg0: i32, %arg1: memref<1x1024x196xf32, #tpu.memory_space<vmem>>, %arg2: memref<196x16xf32, #tpu.memory_space<vmem>>, %arg3: memref<1x16xf32, #tpu.memory_space<vmem>>, %arg4: memref<1x1024x16xf32, #tpu.memory_space<vmem>>) attributes {dimension_semantics = [#tpu.dimension_semantics<parallel>], iteration_bounds = array<i64: 2>, scalar_prefetch = 0 : i64, scratch_operands = 0 : i64, tpu.core_type = #tpu.core_type<tc>, window_params = [{transform_indices = @transform_0, window_bounds = array<i64: 1, 1024, 196>}, {pipeline_mode = #tpu.pipeline_mode<synchronous>, transform_indices = @transform_1, window_bounds = array<i64: 196, 16>}, {pipeline_mode = #tpu.pipeline_mode<synchronous>, transform_indices = @transform_2, window_bounds = array<i64: 1, 16>}, {transform_indices = @transform_3, window_bounds = array<i64: 1, 1024, 16>}]} {
    %c0 = arith.constant 0 : index
    %c0_0 = arith.constant 0 : index
    %c0_1 = arith.constant 0 : index
    %0 = vector.load %arg1[%c0, %c0_0, %c0_1] : memref<1x1024x196xf32, #tpu.memory_space<vmem>>, vector<1x1024x196xf32>
    %1 = vector.shape_cast %0 : vector<1x1024x196xf32> to vector<1024x196xf32>
    %c0_2 = arith.constant 0 : index
    %c0_3 = arith.constant 0 : index
    %2 = vector.load %arg2[%c0_2, %c0_3] : memref<196x16xf32, #tpu.memory_space<vmem>>, vector<196x16xf32>
    %cst = arith.constant dense<0.000000e+00> : vector<1024x16xf32>
    %3 = tpu.matmul %1, %2, %cst {dimension_numbers = #tpu.dot_dimension_numbers<[1], [0], [0], [1], [0, 0, 1, 1], [], []>} : vector<1024x196xf32>, vector<196x16xf32>, vector<1024x16xf32> -> vector<1024x16xf32>
    %c0_4 = arith.constant 0 : index
    %c0_5 = arith.constant 0 : index
    %4 = vector.load %arg3[%c0_4, %c0_5] : memref<1x16xf32, #tpu.memory_space<vmem>>, vector<1x16xf32>
    %5 = vector.broadcast %4 : vector<1x16xf32> to vector<1024x16xf32>
    %6 = arith.addf %3, %5 : vector<1024x16xf32>
    %cst_6 = arith.constant 0.000000e+00 : f32
    %7 = vector.broadcast %cst_6 : f32 to vector<1024x16xf32>
    %8 = arith.maximumf %6, %7 : vector<1024x16xf32>
    %cst_7 = arith.constant dense<0.000000e+00> : vector<16xf32>
    %9 = vector.multi_reduction <add>, %8, %cst_7 [0] : vector<1024x16xf32> to vector<16xf32>
    %10 = vector.shape_cast %9 : vector<16xf32> to vector<1x16xf32>
    %cst_8 = arith.constant 1.024000e+03 : f32
    %11 = vector.broadcast %cst_8 : f32 to vector<1x16xf32>
    %12 = arith.divf %10, %11 : vector<1x16xf32>
    %13 = vector.broadcast %12 : vector<1x16xf32> to vector<1024x16xf32>
    %14 = arith.subf %8, %13 : vector<1024x16xf32>
    %15 = arith.mulf %14, %14 : vector<1024x16xf32>
    %cst_9 = arith.constant dense<0.000000e+00> : vector<16xf32>
    %16 = vector.multi_reduction <add>, %15, %cst_9 [0] : vector<1024x16xf32> to vector<16xf32>
    %17 = vector.shape_cast %16 : vector<16xf32> to vector<1x16xf32>
    %cst_10 = arith.constant 1.024000e+03 : f32
    %18 = vector.broadcast %cst_10 : f32 to vector<1x16xf32>
    %19 = arith.divf %17, %18 : vector<1x16xf32>
    %20 = vector.broadcast %12 : vector<1x16xf32> to vector<1024x16xf32>
    %21 = arith.subf %8, %20 : vector<1024x16xf32>
    %cst_11 = arith.constant 9.99999974E-6 : f32
    %22 = vector.broadcast %cst_11 : f32 to vector<1x16xf32>
    %23 = arith.addf %19, %22 : vector<1x16xf32>
    %24 = math.rsqrt %23 : vector<1x16xf32>
    %25 = vector.broadcast %24 : vector<1x16xf32> to vector<1024x16xf32>
    %26 = arith.mulf %21, %25 : vector<1024x16xf32>
    %c0_12 = arith.constant 0 : index
    %c0_13 = arith.constant 0 : index
    %c0_14 = arith.constant 0 : index
    %27 = vector.load %arg4[%c0_12, %c0_13, %c0_14] : memref<1x1024x16xf32, #tpu.memory_space<vmem>>, vector<1x1024x16xf32>
    %28 = vector.shape_cast %27 : vector<1x1024x16xf32> to vector<1024x16xf32>
    %29 = vector.shape_cast %26 : vector<1024x16xf32> to vector<1x1024x16xf32>
    tpu.vector_store %arg4[%c0_12, %c0_13, %c0_14], %29 {strides = array<i32>} : memref<1x1024x16xf32, #tpu.memory_space<vmem>>, vector<1x1024x16xf32>,
    return
  }
  func.func @transform_0(%arg0: i32) -> (i32, i32, i32) {
    %c0_i32 = arith.constant 0 : i32
    %c0_i32_0 = arith.constant 0 : i32
    %c0_i32_1 = arith.constant 0 : i32
    return %arg0, %c0_i32, %c0_i32_0 : i32, i32, i32
  }
  func.func @transform_1(%arg0: i32) -> (i32, i32) {
    %c0_i32 = arith.constant 0 : i32
    %c0_i32_0 = arith.constant 0 : i32
    %c0_i32_1 = arith.constant 0 : i32
    return %c0_i32, %c0_i32_0 : i32, i32
  }
  func.func @transform_2(%arg0: i32) -> (i32, i32) {
    %c0_i32 = arith.constant 0 : i32
    %c0_i32_0 = arith.constant 0 : i32
    %c0_i32_1 = arith.constant 0 : i32
    return %c0_i32, %c0_i32_0 : i32, i32
  }
  func.func @transform_3(%arg0: i32) -> (i32, i32, i32) {
    %c0_i32 = arith.constant 0 : i32
    %c0_i32_0 = arith.constant 0 : i32
    %c0_i32_1 = arith.constant 0 : i32
    return %arg0, %c0_i32, %c0_i32_0 : i32, i32, i32
  }
}

module attributes {stable_mosaic.version = 11 : i64} {
  func.func @_maxpool_kernel(%arg0: i32, %arg1: memref<1x16x16x16xf32, #tpu.memory_space<vmem>>, %arg2: memref<1x16x16x16xf32, #tpu.memory_space<vmem>>, %arg3: memref<1x16x16x16xf32, #tpu.memory_space<vmem>>, %arg4: memref<1x16x16x16xf32, #tpu.memory_space<vmem>>, %arg5: memref<1x16x16x16xf32, #tpu.memory_space<vmem>>, %arg6: memref<1x16x16x16xi32, #tpu.memory_space<vmem>>) attributes {dimension_semantics = [#tpu.dimension_semantics<parallel>], iteration_bounds = array<i64: 2>, scalar_prefetch = 0 : i64, scratch_operands = 0 : i64, tpu.core_type = #tpu.core_type<tc>, window_params = [{transform_indices = @transform_0, window_bounds = array<i64: 1, 16, 16, 16>}, {transform_indices = @transform_1, window_bounds = array<i64: 1, 16, 16, 16>}, {transform_indices = @transform_2, window_bounds = array<i64: 1, 16, 16, 16>}, {transform_indices = @transform_3, window_bounds = array<i64: 1, 16, 16, 16>}, {transform_indices = @transform_4, window_bounds = array<i64: 1, 16, 16, 16>}, {transform_indices = @transform_5, window_bounds = array<i64: 1, 16, 16, 16>}]} {
    %c0 = arith.constant 0 : index
    %c0_0 = arith.constant 0 : index
    %c0_1 = arith.constant 0 : index
    %c0_2 = arith.constant 0 : index
    %0 = vector.load %arg1[%c0, %c0_0, %c0_1, %c0_2] : memref<1x16x16x16xf32, #tpu.memory_space<vmem>>, vector<1x16x16x16xf32>
    %1 = vector.shape_cast %0 : vector<1x16x16x16xf32> to vector<16x16x16xf32>
    %c0_3 = arith.constant 0 : index
    %c0_4 = arith.constant 0 : index
    %c0_5 = arith.constant 0 : index
    %c0_6 = arith.constant 0 : index
    %2 = vector.load %arg2[%c0_3, %c0_4, %c0_5, %c0_6] : memref<1x16x16x16xf32, #tpu.memory_space<vmem>>, vector<1x16x16x16xf32>
    %3 = vector.shape_cast %2 : vector<1x16x16x16xf32> to vector<16x16x16xf32>
    %c0_7 = arith.constant 0 : index
    %c0_8 = arith.constant 0 : index
    %c0_9 = arith.constant 0 : index
    %c0_10 = arith.constant 0 : index
    %4 = vector.load %arg3[%c0_7, %c0_8, %c0_9, %c0_10] : memref<1x16x16x16xf32, #tpu.memory_space<vmem>>, vector<1x16x16x16xf32>
    %5 = vector.shape_cast %4 : vector<1x16x16x16xf32> to vector<16x16x16xf32>
    %c0_11 = arith.constant 0 : index
    %c0_12 = arith.constant 0 : index
    %c0_13 = arith.constant 0 : index
    %c0_14 = arith.constant 0 : index
    %6 = vector.load %arg4[%c0_11, %c0_12, %c0_13, %c0_14] : memref<1x16x16x16xf32, #tpu.memory_space<vmem>>, vector<1x16x16x16xf32>
    %7 = vector.shape_cast %6 : vector<1x16x16x16xf32> to vector<16x16x16xf32>
    %8 = tpu.iota {dimensions = array<i32: 0>} : vector<16x16x16xi32>
    %c2_i32 = arith.constant 2 : i32
    %9 = vector.broadcast %c2_i32 : i32 to vector<16x16x16xi32>
    %10 = arith.muli %8, %9 : vector<16x16x16xi32>
    %11 = tpu.iota {dimensions = array<i32: 1>} : vector<16x16x16xi32>
    %c2_i32_15 = arith.constant 2 : i32
    %12 = vector.broadcast %c2_i32_15 : i32 to vector<16x16x16xi32>
    %13 = arith.muli %11, %12 : vector<16x16x16xi32>
    %c32_i32 = arith.constant 32 : i32
    %14 = vector.broadcast %c32_i32 : i32 to vector<16x16x16xi32>
    %15 = arith.muli %10, %14 : vector<16x16x16xi32>
    %16 = arith.addi %15, %13 : vector<16x16x16xi32>
    %17 = arith.cmpf ogt, %3, %1 : vector<16x16x16xf32>
    %18 = arith.select %17, %3, %1 : vector<16x16x16xi1>, vector<16x16x16xf32>
    %c1_i32 = arith.constant 1 : i32
    %19 = vector.broadcast %c1_i32 : i32 to vector<16x16x16xi32>
    %20 = arith.addi %16, %19 : vector<16x16x16xi32>
    %21 = arith.select %17, %20, %16 : vector<16x16x16xi1>, vector<16x16x16xi32>
    %22 = arith.cmpf ogt, %5, %18 : vector<16x16x16xf32>
    %23 = arith.select %22, %5, %18 : vector<16x16x16xi1>, vector<16x16x16xf32>
    %c32_i32_16 = arith.constant 32 : i32
    %24 = vector.broadcast %c32_i32_16 : i32 to vector<16x16x16xi32>
    %25 = arith.addi %16, %24 : vector<16x16x16xi32>
    %26 = arith.select %22, %25, %21 : vector<16x16x16xi1>, vector<16x16x16xi32>
    %27 = arith.cmpf ogt, %7, %23 : vector<16x16x16xf32>
    %28 = arith.select %27, %7, %23 : vector<16x16x16xi1>, vector<16x16x16xf32>
    %c32_i32_17 = arith.constant 32 : i32
    %29 = vector.broadcast %c32_i32_17 : i32 to vector<16x16x16xi32>
    %30 = arith.addi %16, %29 : vector<16x16x16xi32>
    %c1_i32_18 = arith.constant 1 : i32
    %31 = vector.broadcast %c1_i32_18 : i32 to vector<16x16x16xi32>
    %32 = arith.addi %30, %31 : vector<16x16x16xi32>
    %33 = arith.select %27, %32, %26 : vector<16x16x16xi1>, vector<16x16x16xi32>
    %c0_19 = arith.constant 0 : index
    %c0_20 = arith.constant 0 : index
    %c0_21 = arith.constant 0 : index
    %c0_22 = arith.constant 0 : index
    %34 = vector.load %arg5[%c0_19, %c0_20, %c0_21, %c0_22] : memref<1x16x16x16xf32, #tpu.memory_space<vmem>>, vector<1x16x16x16xf32>
    %35 = vector.shape_cast %34 : vector<1x16x16x16xf32> to vector<16x16x16xf32>
    %36 = vector.shape_cast %28 : vector<16x16x16xf32> to vector<1x16x16x16xf32>
    tpu.vector_store %arg5[%c0_19, %c0_20, %c0_21, %c0_22], %36 {strides = array<i32>} : memref<1x16x16x16xf32, #tpu.memory_space<vmem>>, vector<1x16x16x16xf32>,
    %c0_23 = arith.constant 0 : index
    %c0_24 = arith.constant 0 : index
    %c0_25 = arith.constant 0 : index
    %c0_26 = arith.constant 0 : index
    %37 = vector.load %arg6[%c0_23, %c0_24, %c0_25, %c0_26] : memref<1x16x16x16xi32, #tpu.memory_space<vmem>>, vector<1x16x16x16xi32>
    %38 = vector.shape_cast %37 : vector<1x16x16x16xi32> to vector<16x16x16xi32>
    %39 = vector.shape_cast %33 : vector<16x16x16xi32> to vector<1x16x16x16xi32>
    tpu.vector_store %arg6[%c0_23, %c0_24, %c0_25, %c0_26], %39 {strides = array<i32>} : memref<1x16x16x16xi32, #tpu.memory_space<vmem>>, vector<1x16x16x16xi32>,
    return
  }
  func.func @transform_0(%arg0: i32) -> (i32, i32, i32, i32) {
    %c0_i32 = arith.constant 0 : i32
    %c0_i32_0 = arith.constant 0 : i32
    %c0_i32_1 = arith.constant 0 : i32
    %c0_i32_2 = arith.constant 0 : i32
    return %arg0, %c0_i32, %c0_i32_0, %c0_i32_1 : i32, i32, i32, i32
  }
  func.func @transform_1(%arg0: i32) -> (i32, i32, i32, i32) {
    %c0_i32 = arith.constant 0 : i32
    %c0_i32_0 = arith.constant 0 : i32
    %c0_i32_1 = arith.constant 0 : i32
    %c0_i32_2 = arith.constant 0 : i32
    return %arg0, %c0_i32, %c0_i32_0, %c0_i32_1 : i32, i32, i32, i32
  }
  func.func @transform_2(%arg0: i32) -> (i32, i32, i32, i32) {
    %c0_i32 = arith.constant 0 : i32
    %c0_i32_0 = arith.constant 0 : i32
    %c0_i32_1 = arith.constant 0 : i32
    %c0_i32_2 = arith.constant 0 : i32
    return %arg0, %c0_i32, %c0_i32_0, %c0_i32_1 : i32, i32, i32, i32
  }
  func.func @transform_3(%arg0: i32) -> (i32, i32, i32, i32) {
    %c0_i32 = arith.constant 0 : i32
    %c0_i32_0 = arith.constant 0 : i32
    %c0_i32_1 = arith.constant 0 : i32
    %c0_i32_2 = arith.constant 0 : i32
    return %arg0, %c0_i32, %c0_i32_0, %c0_i32_1 : i32, i32, i32, i32
  }
  func.func @transform_4(%arg0: i32) -> (i32, i32, i32, i32) {
    %c0_i32 = arith.constant 0 : i32
    %c0_i32_0 = arith.constant 0 : i32
    %c0_i32_1 = arith.constant 0 : i32
    %c0_i32_2 = arith.constant 0 : i32
    return %arg0, %c0_i32, %c0_i32_0, %c0_i32_1 : i32, i32, i32, i32
  }
  func.func @transform_5(%arg0: i32) -> (i32, i32, i32, i32) {
    %c0_i32 = arith.constant 0 : i32
    %c0_i32_0 = arith.constant 0 : i32
    %c0_i32_1 = arith.constant 0 : i32
    %c0_i32_2 = arith.constant 0 : i32
    return %arg0, %c0_i32, %c0_i32_0, %c0_i32_1 : i32, i32, i32, i32
  }
}

module attributes {stable_mosaic.version = 11 : i64} {
  func.func @_conv_block_kernel(%arg0: i32, %arg1: memref<1x256x144xf32, #tpu.memory_space<vmem>>, %arg2: memref<144x32xf32, #tpu.memory_space<vmem>>, %arg3: memref<1x32xf32, #tpu.memory_space<vmem>>, %arg4: memref<1x256x32xf32, #tpu.memory_space<vmem>>) attributes {dimension_semantics = [#tpu.dimension_semantics<parallel>], iteration_bounds = array<i64: 2>, scalar_prefetch = 0 : i64, scratch_operands = 0 : i64, tpu.core_type = #tpu.core_type<tc>, window_params = [{transform_indices = @transform_0, window_bounds = array<i64: 1, 256, 144>}, {pipeline_mode = #tpu.pipeline_mode<synchronous>, transform_indices = @transform_1, window_bounds = array<i64: 144, 32>}, {pipeline_mode = #tpu.pipeline_mode<synchronous>, transform_indices = @transform_2, window_bounds = array<i64: 1, 32>}, {transform_indices = @transform_3, window_bounds = array<i64: 1, 256, 32>}]} {
    %c0 = arith.constant 0 : index
    %c0_0 = arith.constant 0 : index
    %c0_1 = arith.constant 0 : index
    %0 = vector.load %arg1[%c0, %c0_0, %c0_1] : memref<1x256x144xf32, #tpu.memory_space<vmem>>, vector<1x256x144xf32>
    %1 = vector.shape_cast %0 : vector<1x256x144xf32> to vector<256x144xf32>
    %c0_2 = arith.constant 0 : index
    %c0_3 = arith.constant 0 : index
    %2 = vector.load %arg2[%c0_2, %c0_3] : memref<144x32xf32, #tpu.memory_space<vmem>>, vector<144x32xf32>
    %cst = arith.constant dense<0.000000e+00> : vector<256x32xf32>
    %3 = tpu.matmul %1, %2, %cst {dimension_numbers = #tpu.dot_dimension_numbers<[1], [0], [0], [1], [0, 0, 1, 1], [], []>} : vector<256x144xf32>, vector<144x32xf32>, vector<256x32xf32> -> vector<256x32xf32>
    %c0_4 = arith.constant 0 : index
    %c0_5 = arith.constant 0 : index
    %4 = vector.load %arg3[%c0_4, %c0_5] : memref<1x32xf32, #tpu.memory_space<vmem>>, vector<1x32xf32>
    %5 = vector.broadcast %4 : vector<1x32xf32> to vector<256x32xf32>
    %6 = arith.addf %3, %5 : vector<256x32xf32>
    %cst_6 = arith.constant 0.000000e+00 : f32
    %7 = vector.broadcast %cst_6 : f32 to vector<256x32xf32>
    %8 = arith.maximumf %6, %7 : vector<256x32xf32>
    %cst_7 = arith.constant dense<0.000000e+00> : vector<32xf32>
    %9 = vector.multi_reduction <add>, %8, %cst_7 [0] : vector<256x32xf32> to vector<32xf32>
    %10 = vector.shape_cast %9 : vector<32xf32> to vector<1x32xf32>
    %cst_8 = arith.constant 2.560000e+02 : f32
    %11 = vector.broadcast %cst_8 : f32 to vector<1x32xf32>
    %12 = arith.divf %10, %11 : vector<1x32xf32>
    %13 = vector.broadcast %12 : vector<1x32xf32> to vector<256x32xf32>
    %14 = arith.subf %8, %13 : vector<256x32xf32>
    %15 = arith.mulf %14, %14 : vector<256x32xf32>
    %cst_9 = arith.constant dense<0.000000e+00> : vector<32xf32>
    %16 = vector.multi_reduction <add>, %15, %cst_9 [0] : vector<256x32xf32> to vector<32xf32>
    %17 = vector.shape_cast %16 : vector<32xf32> to vector<1x32xf32>
    %cst_10 = arith.constant 2.560000e+02 : f32
    %18 = vector.broadcast %cst_10 : f32 to vector<1x32xf32>
    %19 = arith.divf %17, %18 : vector<1x32xf32>
    %20 = vector.broadcast %12 : vector<1x32xf32> to vector<256x32xf32>
    %21 = arith.subf %8, %20 : vector<256x32xf32>
    %cst_11 = arith.constant 9.99999974E-6 : f32
    %22 = vector.broadcast %cst_11 : f32 to vector<1x32xf32>
    %23 = arith.addf %19, %22 : vector<1x32xf32>
    %24 = math.rsqrt %23 : vector<1x32xf32>
    %25 = vector.broadcast %24 : vector<1x32xf32> to vector<256x32xf32>
    %26 = arith.mulf %21, %25 : vector<256x32xf32>
    %c0_12 = arith.constant 0 : index
    %c0_13 = arith.constant 0 : index
    %c0_14 = arith.constant 0 : index
    %27 = vector.load %arg4[%c0_12, %c0_13, %c0_14] : memref<1x256x32xf32, #tpu.memory_space<vmem>>, vector<1x256x32xf32>
    %28 = vector.shape_cast %27 : vector<1x256x32xf32> to vector<256x32xf32>
    %29 = vector.shape_cast %26 : vector<256x32xf32> to vector<1x256x32xf32>
    tpu.vector_store %arg4[%c0_12, %c0_13, %c0_14], %29 {strides = array<i32>} : memref<1x256x32xf32, #tpu.memory_space<vmem>>, vector<1x256x32xf32>,
    return
  }
  func.func @transform_0(%arg0: i32) -> (i32, i32, i32) {
    %c0_i32 = arith.constant 0 : i32
    %c0_i32_0 = arith.constant 0 : i32
    %c0_i32_1 = arith.constant 0 : i32
    return %arg0, %c0_i32, %c0_i32_0 : i32, i32, i32
  }
  func.func @transform_1(%arg0: i32) -> (i32, i32) {
    %c0_i32 = arith.constant 0 : i32
    %c0_i32_0 = arith.constant 0 : i32
    %c0_i32_1 = arith.constant 0 : i32
    return %c0_i32, %c0_i32_0 : i32, i32
  }
  func.func @transform_2(%arg0: i32) -> (i32, i32) {
    %c0_i32 = arith.constant 0 : i32
    %c0_i32_0 = arith.constant 0 : i32
    %c0_i32_1 = arith.constant 0 : i32
    return %c0_i32, %c0_i32_0 : i32, i32
  }
  func.func @transform_3(%arg0: i32) -> (i32, i32, i32) {
    %c0_i32 = arith.constant 0 : i32
    %c0_i32_0 = arith.constant 0 : i32
    %c0_i32_1 = arith.constant 0 : i32
    return %arg0, %c0_i32, %c0_i32_0 : i32, i32, i32
  }
}

module attributes {stable_mosaic.version = 11 : i64} {
  func.func @_maxpool_kernel(%arg0: i32, %arg1: memref<1x8x8x32xf32, #tpu.memory_space<vmem>>, %arg2: memref<1x8x8x32xf32, #tpu.memory_space<vmem>>, %arg3: memref<1x8x8x32xf32, #tpu.memory_space<vmem>>, %arg4: memref<1x8x8x32xf32, #tpu.memory_space<vmem>>, %arg5: memref<1x8x8x32xf32, #tpu.memory_space<vmem>>, %arg6: memref<1x8x8x32xi32, #tpu.memory_space<vmem>>) attributes {dimension_semantics = [#tpu.dimension_semantics<parallel>], iteration_bounds = array<i64: 2>, scalar_prefetch = 0 : i64, scratch_operands = 0 : i64, tpu.core_type = #tpu.core_type<tc>, window_params = [{transform_indices = @transform_0, window_bounds = array<i64: 1, 8, 8, 32>}, {transform_indices = @transform_1, window_bounds = array<i64: 1, 8, 8, 32>}, {transform_indices = @transform_2, window_bounds = array<i64: 1, 8, 8, 32>}, {transform_indices = @transform_3, window_bounds = array<i64: 1, 8, 8, 32>}, {transform_indices = @transform_4, window_bounds = array<i64: 1, 8, 8, 32>}, {transform_indices = @transform_5, window_bounds = array<i64: 1, 8, 8, 32>}]} {
    %c0 = arith.constant 0 : index
    %c0_0 = arith.constant 0 : index
    %c0_1 = arith.constant 0 : index
    %c0_2 = arith.constant 0 : index
    %0 = vector.load %arg1[%c0, %c0_0, %c0_1, %c0_2] : memref<1x8x8x32xf32, #tpu.memory_space<vmem>>, vector<1x8x8x32xf32>
    %1 = vector.shape_cast %0 : vector<1x8x8x32xf32> to vector<8x8x32xf32>
    %c0_3 = arith.constant 0 : index
    %c0_4 = arith.constant 0 : index
    %c0_5 = arith.constant 0 : index
    %c0_6 = arith.constant 0 : index
    %2 = vector.load %arg2[%c0_3, %c0_4, %c0_5, %c0_6] : memref<1x8x8x32xf32, #tpu.memory_space<vmem>>, vector<1x8x8x32xf32>
    %3 = vector.shape_cast %2 : vector<1x8x8x32xf32> to vector<8x8x32xf32>
    %c0_7 = arith.constant 0 : index
    %c0_8 = arith.constant 0 : index
    %c0_9 = arith.constant 0 : index
    %c0_10 = arith.constant 0 : index
    %4 = vector.load %arg3[%c0_7, %c0_8, %c0_9, %c0_10] : memref<1x8x8x32xf32, #tpu.memory_space<vmem>>, vector<1x8x8x32xf32>
    %5 = vector.shape_cast %4 : vector<1x8x8x32xf32> to vector<8x8x32xf32>
    %c0_11 = arith.constant 0 : index
    %c0_12 = arith.constant 0 : index
    %c0_13 = arith.constant 0 : index
    %c0_14 = arith.constant 0 : index
    %6 = vector.load %arg4[%c0_11, %c0_12, %c0_13, %c0_14] : memref<1x8x8x32xf32, #tpu.memory_space<vmem>>, vector<1x8x8x32xf32>
    %7 = vector.shape_cast %6 : vector<1x8x8x32xf32> to vector<8x8x32xf32>
    %8 = tpu.iota {dimensions = array<i32: 0>} : vector<8x8x32xi32>
    %c2_i32 = arith.constant 2 : i32
    %9 = vector.broadcast %c2_i32 : i32 to vector<8x8x32xi32>
    %10 = arith.muli %8, %9 : vector<8x8x32xi32>
    %11 = tpu.iota {dimensions = array<i32: 1>} : vector<8x8x32xi32>
    %c2_i32_15 = arith.constant 2 : i32
    %12 = vector.broadcast %c2_i32_15 : i32 to vector<8x8x32xi32>
    %13 = arith.muli %11, %12 : vector<8x8x32xi32>
    %c16_i32 = arith.constant 16 : i32
    %14 = vector.broadcast %c16_i32 : i32 to vector<8x8x32xi32>
    %15 = arith.muli %10, %14 : vector<8x8x32xi32>
    %16 = arith.addi %15, %13 : vector<8x8x32xi32>
    %17 = arith.cmpf ogt, %3, %1 : vector<8x8x32xf32>
    %18 = arith.select %17, %3, %1 : vector<8x8x32xi1>, vector<8x8x32xf32>
    %c1_i32 = arith.constant 1 : i32
    %19 = vector.broadcast %c1_i32 : i32 to vector<8x8x32xi32>
    %20 = arith.addi %16, %19 : vector<8x8x32xi32>
    %21 = arith.select %17, %20, %16 : vector<8x8x32xi1>, vector<8x8x32xi32>
    %22 = arith.cmpf ogt, %5, %18 : vector<8x8x32xf32>
    %23 = arith.select %22, %5, %18 : vector<8x8x32xi1>, vector<8x8x32xf32>
    %c16_i32_16 = arith.constant 16 : i32
    %24 = vector.broadcast %c16_i32_16 : i32 to vector<8x8x32xi32>
    %25 = arith.addi %16, %24 : vector<8x8x32xi32>
    %26 = arith.select %22, %25, %21 : vector<8x8x32xi1>, vector<8x8x32xi32>
    %27 = arith.cmpf ogt, %7, %23 : vector<8x8x32xf32>
    %28 = arith.select %27, %7, %23 : vector<8x8x32xi1>, vector<8x8x32xf32>
    %c16_i32_17 = arith.constant 16 : i32
    %29 = vector.broadcast %c16_i32_17 : i32 to vector<8x8x32xi32>
    %30 = arith.addi %16, %29 : vector<8x8x32xi32>
    %c1_i32_18 = arith.constant 1 : i32
    %31 = vector.broadcast %c1_i32_18 : i32 to vector<8x8x32xi32>
    %32 = arith.addi %30, %31 : vector<8x8x32xi32>
    %33 = arith.select %27, %32, %26 : vector<8x8x32xi1>, vector<8x8x32xi32>
    %c0_19 = arith.constant 0 : index
    %c0_20 = arith.constant 0 : index
    %c0_21 = arith.constant 0 : index
    %c0_22 = arith.constant 0 : index
    %34 = vector.load %arg5[%c0_19, %c0_20, %c0_21, %c0_22] : memref<1x8x8x32xf32, #tpu.memory_space<vmem>>, vector<1x8x8x32xf32>
    %35 = vector.shape_cast %34 : vector<1x8x8x32xf32> to vector<8x8x32xf32>
    %36 = vector.shape_cast %28 : vector<8x8x32xf32> to vector<1x8x8x32xf32>
    tpu.vector_store %arg5[%c0_19, %c0_20, %c0_21, %c0_22], %36 {strides = array<i32>} : memref<1x8x8x32xf32, #tpu.memory_space<vmem>>, vector<1x8x8x32xf32>,
    %c0_23 = arith.constant 0 : index
    %c0_24 = arith.constant 0 : index
    %c0_25 = arith.constant 0 : index
    %c0_26 = arith.constant 0 : index
    %37 = vector.load %arg6[%c0_23, %c0_24, %c0_25, %c0_26] : memref<1x8x8x32xi32, #tpu.memory_space<vmem>>, vector<1x8x8x32xi32>
    %38 = vector.shape_cast %37 : vector<1x8x8x32xi32> to vector<8x8x32xi32>
    %39 = vector.shape_cast %33 : vector<8x8x32xi32> to vector<1x8x8x32xi32>
    tpu.vector_store %arg6[%c0_23, %c0_24, %c0_25, %c0_26], %39 {strides = array<i32>} : memref<1x8x8x32xi32, #tpu.memory_space<vmem>>, vector<1x8x8x32xi32>,
    return
  }
  func.func @transform_0(%arg0: i32) -> (i32, i32, i32, i32) {
    %c0_i32 = arith.constant 0 : i32
    %c0_i32_0 = arith.constant 0 : i32
    %c0_i32_1 = arith.constant 0 : i32
    %c0_i32_2 = arith.constant 0 : i32
    return %arg0, %c0_i32, %c0_i32_0, %c0_i32_1 : i32, i32, i32, i32
  }
  func.func @transform_1(%arg0: i32) -> (i32, i32, i32, i32) {
    %c0_i32 = arith.constant 0 : i32
    %c0_i32_0 = arith.constant 0 : i32
    %c0_i32_1 = arith.constant 0 : i32
    %c0_i32_2 = arith.constant 0 : i32
    return %arg0, %c0_i32, %c0_i32_0, %c0_i32_1 : i32, i32, i32, i32
  }
  func.func @transform_2(%arg0: i32) -> (i32, i32, i32, i32) {
    %c0_i32 = arith.constant 0 : i32
    %c0_i32_0 = arith.constant 0 : i32
    %c0_i32_1 = arith.constant 0 : i32
    %c0_i32_2 = arith.constant 0 : i32
    return %arg0, %c0_i32, %c0_i32_0, %c0_i32_1 : i32, i32, i32, i32
  }
  func.func @transform_3(%arg0: i32) -> (i32, i32, i32, i32) {
    %c0_i32 = arith.constant 0 : i32
    %c0_i32_0 = arith.constant 0 : i32
    %c0_i32_1 = arith.constant 0 : i32
    %c0_i32_2 = arith.constant 0 : i32
    return %arg0, %c0_i32, %c0_i32_0, %c0_i32_1 : i32, i32, i32, i32
  }
  func.func @transform_4(%arg0: i32) -> (i32, i32, i32, i32) {
    %c0_i32 = arith.constant 0 : i32
    %c0_i32_0 = arith.constant 0 : i32
    %c0_i32_1 = arith.constant 0 : i32
    %c0_i32_2 = arith.constant 0 : i32
    return %arg0, %c0_i32, %c0_i32_0, %c0_i32_1 : i32, i32, i32, i32
  }
  func.func @transform_5(%arg0: i32) -> (i32, i32, i32, i32) {
    %c0_i32 = arith.constant 0 : i32
    %c0_i32_0 = arith.constant 0 : i32
    %c0_i32_1 = arith.constant 0 : i32
    %c0_i32_2 = arith.constant 0 : i32
    return %arg0, %c0_i32, %c0_i32_0, %c0_i32_1 : i32, i32, i32, i32
  }
}

module attributes {stable_mosaic.version = 11 : i64} {
  func.func @_conv_block_kernel(%arg0: i32, %arg1: memref<1x64x288xf32, #tpu.memory_space<vmem>>, %arg2: memref<288x32xf32, #tpu.memory_space<vmem>>, %arg3: memref<1x32xf32, #tpu.memory_space<vmem>>, %arg4: memref<1x64x32xf32, #tpu.memory_space<vmem>>) attributes {dimension_semantics = [#tpu.dimension_semantics<parallel>], iteration_bounds = array<i64: 2>, scalar_prefetch = 0 : i64, scratch_operands = 0 : i64, tpu.core_type = #tpu.core_type<tc>, window_params = [{transform_indices = @transform_0, window_bounds = array<i64: 1, 64, 288>}, {pipeline_mode = #tpu.pipeline_mode<synchronous>, transform_indices = @transform_1, window_bounds = array<i64: 288, 32>}, {pipeline_mode = #tpu.pipeline_mode<synchronous>, transform_indices = @transform_2, window_bounds = array<i64: 1, 32>}, {transform_indices = @transform_3, window_bounds = array<i64: 1, 64, 32>}]} {
    %c0 = arith.constant 0 : index
    %c0_0 = arith.constant 0 : index
    %c0_1 = arith.constant 0 : index
    %0 = vector.load %arg1[%c0, %c0_0, %c0_1] : memref<1x64x288xf32, #tpu.memory_space<vmem>>, vector<1x64x288xf32>
    %1 = vector.shape_cast %0 : vector<1x64x288xf32> to vector<64x288xf32>
    %c0_2 = arith.constant 0 : index
    %c0_3 = arith.constant 0 : index
    %2 = vector.load %arg2[%c0_2, %c0_3] : memref<288x32xf32, #tpu.memory_space<vmem>>, vector<288x32xf32>
    %cst = arith.constant dense<0.000000e+00> : vector<64x32xf32>
    %3 = tpu.matmul %1, %2, %cst {dimension_numbers = #tpu.dot_dimension_numbers<[1], [0], [0], [1], [0, 0, 1, 1], [], []>} : vector<64x288xf32>, vector<288x32xf32>, vector<64x32xf32> -> vector<64x32xf32>
    %c0_4 = arith.constant 0 : index
    %c0_5 = arith.constant 0 : index
    %4 = vector.load %arg3[%c0_4, %c0_5] : memref<1x32xf32, #tpu.memory_space<vmem>>, vector<1x32xf32>
    %5 = vector.broadcast %4 : vector<1x32xf32> to vector<64x32xf32>
    %6 = arith.addf %3, %5 : vector<64x32xf32>
    %cst_6 = arith.constant 0.000000e+00 : f32
    %7 = vector.broadcast %cst_6 : f32 to vector<64x32xf32>
    %8 = arith.maximumf %6, %7 : vector<64x32xf32>
    %cst_7 = arith.constant dense<0.000000e+00> : vector<32xf32>
    %9 = vector.multi_reduction <add>, %8, %cst_7 [0] : vector<64x32xf32> to vector<32xf32>
    %10 = vector.shape_cast %9 : vector<32xf32> to vector<1x32xf32>
    %cst_8 = arith.constant 6.400000e+01 : f32
    %11 = vector.broadcast %cst_8 : f32 to vector<1x32xf32>
    %12 = arith.divf %10, %11 : vector<1x32xf32>
    %13 = vector.broadcast %12 : vector<1x32xf32> to vector<64x32xf32>
    %14 = arith.subf %8, %13 : vector<64x32xf32>
    %15 = arith.mulf %14, %14 : vector<64x32xf32>
    %cst_9 = arith.constant dense<0.000000e+00> : vector<32xf32>
    %16 = vector.multi_reduction <add>, %15, %cst_9 [0] : vector<64x32xf32> to vector<32xf32>
    %17 = vector.shape_cast %16 : vector<32xf32> to vector<1x32xf32>
    %cst_10 = arith.constant 6.400000e+01 : f32
    %18 = vector.broadcast %cst_10 : f32 to vector<1x32xf32>
    %19 = arith.divf %17, %18 : vector<1x32xf32>
    %20 = vector.broadcast %12 : vector<1x32xf32> to vector<64x32xf32>
    %21 = arith.subf %8, %20 : vector<64x32xf32>
    %cst_11 = arith.constant 9.99999974E-6 : f32
    %22 = vector.broadcast %cst_11 : f32 to vector<1x32xf32>
    %23 = arith.addf %19, %22 : vector<1x32xf32>
    %24 = math.rsqrt %23 : vector<1x32xf32>
    %25 = vector.broadcast %24 : vector<1x32xf32> to vector<64x32xf32>
    %26 = arith.mulf %21, %25 : vector<64x32xf32>
    %c0_12 = arith.constant 0 : index
    %c0_13 = arith.constant 0 : index
    %c0_14 = arith.constant 0 : index
    %27 = vector.load %arg4[%c0_12, %c0_13, %c0_14] : memref<1x64x32xf32, #tpu.memory_space<vmem>>, vector<1x64x32xf32>
    %28 = vector.shape_cast %27 : vector<1x64x32xf32> to vector<64x32xf32>
    %29 = vector.shape_cast %26 : vector<64x32xf32> to vector<1x64x32xf32>
    tpu.vector_store %arg4[%c0_12, %c0_13, %c0_14], %29 {strides = array<i32>} : memref<1x64x32xf32, #tpu.memory_space<vmem>>, vector<1x64x32xf32>,
    return
  }
  func.func @transform_0(%arg0: i32) -> (i32, i32, i32) {
    %c0_i32 = arith.constant 0 : i32
    %c0_i32_0 = arith.constant 0 : i32
    %c0_i32_1 = arith.constant 0 : i32
    return %arg0, %c0_i32, %c0_i32_0 : i32, i32, i32
  }
  func.func @transform_1(%arg0: i32) -> (i32, i32) {
    %c0_i32 = arith.constant 0 : i32
    %c0_i32_0 = arith.constant 0 : i32
    %c0_i32_1 = arith.constant 0 : i32
    return %c0_i32, %c0_i32_0 : i32, i32
  }
  func.func @transform_2(%arg0: i32) -> (i32, i32) {
    %c0_i32 = arith.constant 0 : i32
    %c0_i32_0 = arith.constant 0 : i32
    %c0_i32_1 = arith.constant 0 : i32
    return %c0_i32, %c0_i32_0 : i32, i32
  }
  func.func @transform_3(%arg0: i32) -> (i32, i32, i32) {
    %c0_i32 = arith.constant 0 : i32
    %c0_i32_0 = arith.constant 0 : i32
    %c0_i32_1 = arith.constant 0 : i32
    return %arg0, %c0_i32, %c0_i32_0 : i32, i32, i32
  }
}

module attributes {stable_mosaic.version = 11 : i64} {
  func.func @_maxpool_kernel(%arg0: i32, %arg1: memref<1x4x4x32xf32, #tpu.memory_space<vmem>>, %arg2: memref<1x4x4x32xf32, #tpu.memory_space<vmem>>, %arg3: memref<1x4x4x32xf32, #tpu.memory_space<vmem>>, %arg4: memref<1x4x4x32xf32, #tpu.memory_space<vmem>>, %arg5: memref<1x4x4x32xf32, #tpu.memory_space<vmem>>, %arg6: memref<1x4x4x32xi32, #tpu.memory_space<vmem>>) attributes {dimension_semantics = [#tpu.dimension_semantics<parallel>], iteration_bounds = array<i64: 2>, scalar_prefetch = 0 : i64, scratch_operands = 0 : i64, tpu.core_type = #tpu.core_type<tc>, window_params = [{transform_indices = @transform_0, window_bounds = array<i64: 1, 4, 4, 32>}, {transform_indices = @transform_1, window_bounds = array<i64: 1, 4, 4, 32>}, {transform_indices = @transform_2, window_bounds = array<i64: 1, 4, 4, 32>}, {transform_indices = @transform_3, window_bounds = array<i64: 1, 4, 4, 32>}, {transform_indices = @transform_4, window_bounds = array<i64: 1, 4, 4, 32>}, {transform_indices = @transform_5, window_bounds = array<i64: 1, 4, 4, 32>}]} {
    %c0 = arith.constant 0 : index
    %c0_0 = arith.constant 0 : index
    %c0_1 = arith.constant 0 : index
    %c0_2 = arith.constant 0 : index
    %0 = vector.load %arg1[%c0, %c0_0, %c0_1, %c0_2] : memref<1x4x4x32xf32, #tpu.memory_space<vmem>>, vector<1x4x4x32xf32>
    %1 = vector.shape_cast %0 : vector<1x4x4x32xf32> to vector<4x4x32xf32>
    %c0_3 = arith.constant 0 : index
    %c0_4 = arith.constant 0 : index
    %c0_5 = arith.constant 0 : index
    %c0_6 = arith.constant 0 : index
    %2 = vector.load %arg2[%c0_3, %c0_4, %c0_5, %c0_6] : memref<1x4x4x32xf32, #tpu.memory_space<vmem>>, vector<1x4x4x32xf32>
    %3 = vector.shape_cast %2 : vector<1x4x4x32xf32> to vector<4x4x32xf32>
    %c0_7 = arith.constant 0 : index
    %c0_8 = arith.constant 0 : index
    %c0_9 = arith.constant 0 : index
    %c0_10 = arith.constant 0 : index
    %4 = vector.load %arg3[%c0_7, %c0_8, %c0_9, %c0_10] : memref<1x4x4x32xf32, #tpu.memory_space<vmem>>, vector<1x4x4x32xf32>
    %5 = vector.shape_cast %4 : vector<1x4x4x32xf32> to vector<4x4x32xf32>
    %c0_11 = arith.constant 0 : index
    %c0_12 = arith.constant 0 : index
    %c0_13 = arith.constant 0 : index
    %c0_14 = arith.constant 0 : index
    %6 = vector.load %arg4[%c0_11, %c0_12, %c0_13, %c0_14] : memref<1x4x4x32xf32, #tpu.memory_space<vmem>>, vector<1x4x4x32xf32>
    %7 = vector.shape_cast %6 : vector<1x4x4x32xf32> to vector<4x4x32xf32>
    %8 = tpu.iota {dimensions = array<i32: 0>} : vector<4x4x32xi32>
    %c2_i32 = arith.constant 2 : i32
    %9 = vector.broadcast %c2_i32 : i32 to vector<4x4x32xi32>
    %10 = arith.muli %8, %9 : vector<4x4x32xi32>
    %11 = tpu.iota {dimensions = array<i32: 1>} : vector<4x4x32xi32>
    %c2_i32_15 = arith.constant 2 : i32
    %12 = vector.broadcast %c2_i32_15 : i32 to vector<4x4x32xi32>
    %13 = arith.muli %11, %12 : vector<4x4x32xi32>
    %c8_i32 = arith.constant 8 : i32
    %14 = vector.broadcast %c8_i32 : i32 to vector<4x4x32xi32>
    %15 = arith.muli %10, %14 : vector<4x4x32xi32>
    %16 = arith.addi %15, %13 : vector<4x4x32xi32>
    %17 = arith.cmpf ogt, %3, %1 : vector<4x4x32xf32>
    %18 = arith.select %17, %3, %1 : vector<4x4x32xi1>, vector<4x4x32xf32>
    %c1_i32 = arith.constant 1 : i32
    %19 = vector.broadcast %c1_i32 : i32 to vector<4x4x32xi32>
    %20 = arith.addi %16, %19 : vector<4x4x32xi32>
    %21 = arith.select %17, %20, %16 : vector<4x4x32xi1>, vector<4x4x32xi32>
    %22 = arith.cmpf ogt, %5, %18 : vector<4x4x32xf32>
    %23 = arith.select %22, %5, %18 : vector<4x4x32xi1>, vector<4x4x32xf32>
    %c8_i32_16 = arith.constant 8 : i32
    %24 = vector.broadcast %c8_i32_16 : i32 to vector<4x4x32xi32>
    %25 = arith.addi %16, %24 : vector<4x4x32xi32>
    %26 = arith.select %22, %25, %21 : vector<4x4x32xi1>, vector<4x4x32xi32>
    %27 = arith.cmpf ogt, %7, %23 : vector<4x4x32xf32>
    %28 = arith.select %27, %7, %23 : vector<4x4x32xi1>, vector<4x4x32xf32>
    %c8_i32_17 = arith.constant 8 : i32
    %29 = vector.broadcast %c8_i32_17 : i32 to vector<4x4x32xi32>
    %30 = arith.addi %16, %29 : vector<4x4x32xi32>
    %c1_i32_18 = arith.constant 1 : i32
    %31 = vector.broadcast %c1_i32_18 : i32 to vector<4x4x32xi32>
    %32 = arith.addi %30, %31 : vector<4x4x32xi32>
    %33 = arith.select %27, %32, %26 : vector<4x4x32xi1>, vector<4x4x32xi32>
    %c0_19 = arith.constant 0 : index
    %c0_20 = arith.constant 0 : index
    %c0_21 = arith.constant 0 : index
    %c0_22 = arith.constant 0 : index
    %34 = vector.load %arg5[%c0_19, %c0_20, %c0_21, %c0_22] : memref<1x4x4x32xf32, #tpu.memory_space<vmem>>, vector<1x4x4x32xf32>
    %35 = vector.shape_cast %34 : vector<1x4x4x32xf32> to vector<4x4x32xf32>
    %36 = vector.shape_cast %28 : vector<4x4x32xf32> to vector<1x4x4x32xf32>
    tpu.vector_store %arg5[%c0_19, %c0_20, %c0_21, %c0_22], %36 {strides = array<i32>} : memref<1x4x4x32xf32, #tpu.memory_space<vmem>>, vector<1x4x4x32xf32>,
    %c0_23 = arith.constant 0 : index
    %c0_24 = arith.constant 0 : index
    %c0_25 = arith.constant 0 : index
    %c0_26 = arith.constant 0 : index
    %37 = vector.load %arg6[%c0_23, %c0_24, %c0_25, %c0_26] : memref<1x4x4x32xi32, #tpu.memory_space<vmem>>, vector<1x4x4x32xi32>
    %38 = vector.shape_cast %37 : vector<1x4x4x32xi32> to vector<4x4x32xi32>
    %39 = vector.shape_cast %33 : vector<4x4x32xi32> to vector<1x4x4x32xi32>
    tpu.vector_store %arg6[%c0_23, %c0_24, %c0_25, %c0_26], %39 {strides = array<i32>} : memref<1x4x4x32xi32, #tpu.memory_space<vmem>>, vector<1x4x4x32xi32>,
    return
  }
  func.func @transform_0(%arg0: i32) -> (i32, i32, i32, i32) {
    %c0_i32 = arith.constant 0 : i32
    %c0_i32_0 = arith.constant 0 : i32
    %c0_i32_1 = arith.constant 0 : i32
    %c0_i32_2 = arith.constant 0 : i32
    return %arg0, %c0_i32, %c0_i32_0, %c0_i32_1 : i32, i32, i32, i32
  }
  func.func @transform_1(%arg0: i32) -> (i32, i32, i32, i32) {
    %c0_i32 = arith.constant 0 : i32
    %c0_i32_0 = arith.constant 0 : i32
    %c0_i32_1 = arith.constant 0 : i32
    %c0_i32_2 = arith.constant 0 : i32
    return %arg0, %c0_i32, %c0_i32_0, %c0_i32_1 : i32, i32, i32, i32
  }
  func.func @transform_2(%arg0: i32) -> (i32, i32, i32, i32) {
    %c0_i32 = arith.constant 0 : i32
    %c0_i32_0 = arith.constant 0 : i32
    %c0_i32_1 = arith.constant 0 : i32
    %c0_i32_2 = arith.constant 0 : i32
    return %arg0, %c0_i32, %c0_i32_0, %c0_i32_1 : i32, i32, i32, i32
  }
  func.func @transform_3(%arg0: i32) -> (i32, i32, i32, i32) {
    %c0_i32 = arith.constant 0 : i32
    %c0_i32_0 = arith.constant 0 : i32
    %c0_i32_1 = arith.constant 0 : i32
    %c0_i32_2 = arith.constant 0 : i32
    return %arg0, %c0_i32, %c0_i32_0, %c0_i32_1 : i32, i32, i32, i32
  }
  func.func @transform_4(%arg0: i32) -> (i32, i32, i32, i32) {
    %c0_i32 = arith.constant 0 : i32
    %c0_i32_0 = arith.constant 0 : i32
    %c0_i32_1 = arith.constant 0 : i32
    %c0_i32_2 = arith.constant 0 : i32
    return %arg0, %c0_i32, %c0_i32_0, %c0_i32_1 : i32, i32, i32, i32
  }
  func.func @transform_5(%arg0: i32) -> (i32, i32, i32, i32) {
    %c0_i32 = arith.constant 0 : i32
    %c0_i32_0 = arith.constant 0 : i32
    %c0_i32_1 = arith.constant 0 : i32
    %c0_i32_2 = arith.constant 0 : i32
    return %arg0, %c0_i32, %c0_i32_0, %c0_i32_1 : i32, i32, i32, i32
  }
}

module attributes {stable_mosaic.version = 11 : i64} {
  func.func @_conv_block_kernel(%arg0: i32, %arg1: memref<1x16x288xf32, #tpu.memory_space<vmem>>, %arg2: memref<288x64xf32, #tpu.memory_space<vmem>>, %arg3: memref<1x64xf32, #tpu.memory_space<vmem>>, %arg4: memref<1x16x64xf32, #tpu.memory_space<vmem>>) attributes {dimension_semantics = [#tpu.dimension_semantics<parallel>], iteration_bounds = array<i64: 2>, scalar_prefetch = 0 : i64, scratch_operands = 0 : i64, tpu.core_type = #tpu.core_type<tc>, window_params = [{transform_indices = @transform_0, window_bounds = array<i64: 1, 16, 288>}, {pipeline_mode = #tpu.pipeline_mode<synchronous>, transform_indices = @transform_1, window_bounds = array<i64: 288, 64>}, {pipeline_mode = #tpu.pipeline_mode<synchronous>, transform_indices = @transform_2, window_bounds = array<i64: 1, 64>}, {transform_indices = @transform_3, window_bounds = array<i64: 1, 16, 64>}]} {
    %c0 = arith.constant 0 : index
    %c0_0 = arith.constant 0 : index
    %c0_1 = arith.constant 0 : index
    %0 = vector.load %arg1[%c0, %c0_0, %c0_1] : memref<1x16x288xf32, #tpu.memory_space<vmem>>, vector<1x16x288xf32>
    %1 = vector.shape_cast %0 : vector<1x16x288xf32> to vector<16x288xf32>
    %c0_2 = arith.constant 0 : index
    %c0_3 = arith.constant 0 : index
    %2 = vector.load %arg2[%c0_2, %c0_3] : memref<288x64xf32, #tpu.memory_space<vmem>>, vector<288x64xf32>
    %cst = arith.constant dense<0.000000e+00> : vector<16x64xf32>
    %3 = tpu.matmul %1, %2, %cst {dimension_numbers = #tpu.dot_dimension_numbers<[1], [0], [0], [1], [0, 0, 1, 1], [], []>} : vector<16x288xf32>, vector<288x64xf32>, vector<16x64xf32> -> vector<16x64xf32>
    %c0_4 = arith.constant 0 : index
    %c0_5 = arith.constant 0 : index
    %4 = vector.load %arg3[%c0_4, %c0_5] : memref<1x64xf32, #tpu.memory_space<vmem>>, vector<1x64xf32>
    %5 = vector.broadcast %4 : vector<1x64xf32> to vector<16x64xf32>
    %6 = arith.addf %3, %5 : vector<16x64xf32>
    %cst_6 = arith.constant 0.000000e+00 : f32
    %7 = vector.broadcast %cst_6 : f32 to vector<16x64xf32>
    %8 = arith.maximumf %6, %7 : vector<16x64xf32>
    %cst_7 = arith.constant dense<0.000000e+00> : vector<64xf32>
    %9 = vector.multi_reduction <add>, %8, %cst_7 [0] : vector<16x64xf32> to vector<64xf32>
    %10 = vector.shape_cast %9 : vector<64xf32> to vector<1x64xf32>
    %cst_8 = arith.constant 1.600000e+01 : f32
    %11 = vector.broadcast %cst_8 : f32 to vector<1x64xf32>
    %12 = arith.divf %10, %11 : vector<1x64xf32>
    %13 = vector.broadcast %12 : vector<1x64xf32> to vector<16x64xf32>
    %14 = arith.subf %8, %13 : vector<16x64xf32>
    %15 = arith.mulf %14, %14 : vector<16x64xf32>
    %cst_9 = arith.constant dense<0.000000e+00> : vector<64xf32>
    %16 = vector.multi_reduction <add>, %15, %cst_9 [0] : vector<16x64xf32> to vector<64xf32>
    %17 = vector.shape_cast %16 : vector<64xf32> to vector<1x64xf32>
    %cst_10 = arith.constant 1.600000e+01 : f32
    %18 = vector.broadcast %cst_10 : f32 to vector<1x64xf32>
    %19 = arith.divf %17, %18 : vector<1x64xf32>
    %20 = vector.broadcast %12 : vector<1x64xf32> to vector<16x64xf32>
    %21 = arith.subf %8, %20 : vector<16x64xf32>
    %cst_11 = arith.constant 9.99999974E-6 : f32
    %22 = vector.broadcast %cst_11 : f32 to vector<1x64xf32>
    %23 = arith.addf %19, %22 : vector<1x64xf32>
    %24 = math.rsqrt %23 : vector<1x64xf32>
    %25 = vector.broadcast %24 : vector<1x64xf32> to vector<16x64xf32>
    %26 = arith.mulf %21, %25 : vector<16x64xf32>
    %c0_12 = arith.constant 0 : index
    %c0_13 = arith.constant 0 : index
    %c0_14 = arith.constant 0 : index
    %27 = vector.load %arg4[%c0_12, %c0_13, %c0_14] : memref<1x16x64xf32, #tpu.memory_space<vmem>>, vector<1x16x64xf32>
    %28 = vector.shape_cast %27 : vector<1x16x64xf32> to vector<16x64xf32>
    %29 = vector.shape_cast %26 : vector<16x64xf32> to vector<1x16x64xf32>
    tpu.vector_store %arg4[%c0_12, %c0_13, %c0_14], %29 {strides = array<i32>} : memref<1x16x64xf32, #tpu.memory_space<vmem>>, vector<1x16x64xf32>,
    return
  }
  func.func @transform_0(%arg0: i32) -> (i32, i32, i32) {
    %c0_i32 = arith.constant 0 : i32
    %c0_i32_0 = arith.constant 0 : i32
    %c0_i32_1 = arith.constant 0 : i32
    return %arg0, %c0_i32, %c0_i32_0 : i32, i32, i32
  }
  func.func @transform_1(%arg0: i32) -> (i32, i32) {
    %c0_i32 = arith.constant 0 : i32
    %c0_i32_0 = arith.constant 0 : i32
    %c0_i32_1 = arith.constant 0 : i32
    return %c0_i32, %c0_i32_0 : i32, i32
  }
  func.func @transform_2(%arg0: i32) -> (i32, i32) {
    %c0_i32 = arith.constant 0 : i32
    %c0_i32_0 = arith.constant 0 : i32
    %c0_i32_1 = arith.constant 0 : i32
    return %c0_i32, %c0_i32_0 : i32, i32
  }
  func.func @transform_3(%arg0: i32) -> (i32, i32, i32) {
    %c0_i32 = arith.constant 0 : i32
    %c0_i32_0 = arith.constant 0 : i32
    %c0_i32_1 = arith.constant 0 : i32
    return %arg0, %c0_i32, %c0_i32_0 : i32, i32, i32
  }
}

module attributes {stable_mosaic.version = 11 : i64} {
  func.func @_maxpool_kernel(%arg0: i32, %arg1: memref<1x2x2x64xf32, #tpu.memory_space<vmem>>, %arg2: memref<1x2x2x64xf32, #tpu.memory_space<vmem>>, %arg3: memref<1x2x2x64xf32, #tpu.memory_space<vmem>>, %arg4: memref<1x2x2x64xf32, #tpu.memory_space<vmem>>, %arg5: memref<1x2x2x64xf32, #tpu.memory_space<vmem>>, %arg6: memref<1x2x2x64xi32, #tpu.memory_space<vmem>>) attributes {dimension_semantics = [#tpu.dimension_semantics<parallel>], iteration_bounds = array<i64: 2>, scalar_prefetch = 0 : i64, scratch_operands = 0 : i64, tpu.core_type = #tpu.core_type<tc>, window_params = [{transform_indices = @transform_0, window_bounds = array<i64: 1, 2, 2, 64>}, {transform_indices = @transform_1, window_bounds = array<i64: 1, 2, 2, 64>}, {transform_indices = @transform_2, window_bounds = array<i64: 1, 2, 2, 64>}, {transform_indices = @transform_3, window_bounds = array<i64: 1, 2, 2, 64>}, {transform_indices = @transform_4, window_bounds = array<i64: 1, 2, 2, 64>}, {transform_indices = @transform_5, window_bounds = array<i64: 1, 2, 2, 64>}]} {
    %c0 = arith.constant 0 : index
    %c0_0 = arith.constant 0 : index
    %c0_1 = arith.constant 0 : index
    %c0_2 = arith.constant 0 : index
    %0 = vector.load %arg1[%c0, %c0_0, %c0_1, %c0_2] : memref<1x2x2x64xf32, #tpu.memory_space<vmem>>, vector<1x2x2x64xf32>
    %1 = vector.shape_cast %0 : vector<1x2x2x64xf32> to vector<2x2x64xf32>
    %c0_3 = arith.constant 0 : index
    %c0_4 = arith.constant 0 : index
    %c0_5 = arith.constant 0 : index
    %c0_6 = arith.constant 0 : index
    %2 = vector.load %arg2[%c0_3, %c0_4, %c0_5, %c0_6] : memref<1x2x2x64xf32, #tpu.memory_space<vmem>>, vector<1x2x2x64xf32>
    %3 = vector.shape_cast %2 : vector<1x2x2x64xf32> to vector<2x2x64xf32>
    %c0_7 = arith.constant 0 : index
    %c0_8 = arith.constant 0 : index
    %c0_9 = arith.constant 0 : index
    %c0_10 = arith.constant 0 : index
    %4 = vector.load %arg3[%c0_7, %c0_8, %c0_9, %c0_10] : memref<1x2x2x64xf32, #tpu.memory_space<vmem>>, vector<1x2x2x64xf32>
    %5 = vector.shape_cast %4 : vector<1x2x2x64xf32> to vector<2x2x64xf32>
    %c0_11 = arith.constant 0 : index
    %c0_12 = arith.constant 0 : index
    %c0_13 = arith.constant 0 : index
    %c0_14 = arith.constant 0 : index
    %6 = vector.load %arg4[%c0_11, %c0_12, %c0_13, %c0_14] : memref<1x2x2x64xf32, #tpu.memory_space<vmem>>, vector<1x2x2x64xf32>
    %7 = vector.shape_cast %6 : vector<1x2x2x64xf32> to vector<2x2x64xf32>
    %8 = tpu.iota {dimensions = array<i32: 0>} : vector<2x2x64xi32>
    %c2_i32 = arith.constant 2 : i32
    %9 = vector.broadcast %c2_i32 : i32 to vector<2x2x64xi32>
    %10 = arith.muli %8, %9 : vector<2x2x64xi32>
    %11 = tpu.iota {dimensions = array<i32: 1>} : vector<2x2x64xi32>
    %c2_i32_15 = arith.constant 2 : i32
    %12 = vector.broadcast %c2_i32_15 : i32 to vector<2x2x64xi32>
    %13 = arith.muli %11, %12 : vector<2x2x64xi32>
    %c4_i32 = arith.constant 4 : i32
    %14 = vector.broadcast %c4_i32 : i32 to vector<2x2x64xi32>
    %15 = arith.muli %10, %14 : vector<2x2x64xi32>
    %16 = arith.addi %15, %13 : vector<2x2x64xi32>
    %17 = arith.cmpf ogt, %3, %1 : vector<2x2x64xf32>
    %18 = arith.select %17, %3, %1 : vector<2x2x64xi1>, vector<2x2x64xf32>
    %c1_i32 = arith.constant 1 : i32
    %19 = vector.broadcast %c1_i32 : i32 to vector<2x2x64xi32>
    %20 = arith.addi %16, %19 : vector<2x2x64xi32>
    %21 = arith.select %17, %20, %16 : vector<2x2x64xi1>, vector<2x2x64xi32>
    %22 = arith.cmpf ogt, %5, %18 : vector<2x2x64xf32>
    %23 = arith.select %22, %5, %18 : vector<2x2x64xi1>, vector<2x2x64xf32>
    %c4_i32_16 = arith.constant 4 : i32
    %24 = vector.broadcast %c4_i32_16 : i32 to vector<2x2x64xi32>
    %25 = arith.addi %16, %24 : vector<2x2x64xi32>
    %26 = arith.select %22, %25, %21 : vector<2x2x64xi1>, vector<2x2x64xi32>
    %27 = arith.cmpf ogt, %7, %23 : vector<2x2x64xf32>
    %28 = arith.select %27, %7, %23 : vector<2x2x64xi1>, vector<2x2x64xf32>
    %c4_i32_17 = arith.constant 4 : i32
    %29 = vector.broadcast %c4_i32_17 : i32 to vector<2x2x64xi32>
    %30 = arith.addi %16, %29 : vector<2x2x64xi32>
    %c1_i32_18 = arith.constant 1 : i32
    %31 = vector.broadcast %c1_i32_18 : i32 to vector<2x2x64xi32>
    %32 = arith.addi %30, %31 : vector<2x2x64xi32>
    %33 = arith.select %27, %32, %26 : vector<2x2x64xi1>, vector<2x2x64xi32>
    %c0_19 = arith.constant 0 : index
    %c0_20 = arith.constant 0 : index
    %c0_21 = arith.constant 0 : index
    %c0_22 = arith.constant 0 : index
    %34 = vector.load %arg5[%c0_19, %c0_20, %c0_21, %c0_22] : memref<1x2x2x64xf32, #tpu.memory_space<vmem>>, vector<1x2x2x64xf32>
    %35 = vector.shape_cast %34 : vector<1x2x2x64xf32> to vector<2x2x64xf32>
    %36 = vector.shape_cast %28 : vector<2x2x64xf32> to vector<1x2x2x64xf32>
    tpu.vector_store %arg5[%c0_19, %c0_20, %c0_21, %c0_22], %36 {strides = array<i32>} : memref<1x2x2x64xf32, #tpu.memory_space<vmem>>, vector<1x2x2x64xf32>,
    %c0_23 = arith.constant 0 : index
    %c0_24 = arith.constant 0 : index
    %c0_25 = arith.constant 0 : index
    %c0_26 = arith.constant 0 : index
    %37 = vector.load %arg6[%c0_23, %c0_24, %c0_25, %c0_26] : memref<1x2x2x64xi32, #tpu.memory_space<vmem>>, vector<1x2x2x64xi32>
    %38 = vector.shape_cast %37 : vector<1x2x2x64xi32> to vector<2x2x64xi32>
    %39 = vector.shape_cast %33 : vector<2x2x64xi32> to vector<1x2x2x64xi32>
    tpu.vector_store %arg6[%c0_23, %c0_24, %c0_25, %c0_26], %39 {strides = array<i32>} : memref<1x2x2x64xi32, #tpu.memory_space<vmem>>, vector<1x2x2x64xi32>,
    return
  }
  func.func @transform_0(%arg0: i32) -> (i32, i32, i32, i32) {
    %c0_i32 = arith.constant 0 : i32
    %c0_i32_0 = arith.constant 0 : i32
    %c0_i32_1 = arith.constant 0 : i32
    %c0_i32_2 = arith.constant 0 : i32
    return %arg0, %c0_i32, %c0_i32_0, %c0_i32_1 : i32, i32, i32, i32
  }
  func.func @transform_1(%arg0: i32) -> (i32, i32, i32, i32) {
    %c0_i32 = arith.constant 0 : i32
    %c0_i32_0 = arith.constant 0 : i32
    %c0_i32_1 = arith.constant 0 : i32
    %c0_i32_2 = arith.constant 0 : i32
    return %arg0, %c0_i32, %c0_i32_0, %c0_i32_1 : i32, i32, i32, i32
  }
  func.func @transform_2(%arg0: i32) -> (i32, i32, i32, i32) {
    %c0_i32 = arith.constant 0 : i32
    %c0_i32_0 = arith.constant 0 : i32
    %c0_i32_1 = arith.constant 0 : i32
    %c0_i32_2 = arith.constant 0 : i32
    return %arg0, %c0_i32, %c0_i32_0, %c0_i32_1 : i32, i32, i32, i32
  }
  func.func @transform_3(%arg0: i32) -> (i32, i32, i32, i32) {
    %c0_i32 = arith.constant 0 : i32
    %c0_i32_0 = arith.constant 0 : i32
    %c0_i32_1 = arith.constant 0 : i32
    %c0_i32_2 = arith.constant 0 : i32
    return %arg0, %c0_i32, %c0_i32_0, %c0_i32_1 : i32, i32, i32, i32
  }
  func.func @transform_4(%arg0: i32) -> (i32, i32, i32, i32) {
    %c0_i32 = arith.constant 0 : i32
    %c0_i32_0 = arith.constant 0 : i32
    %c0_i32_1 = arith.constant 0 : i32
    %c0_i32_2 = arith.constant 0 : i32
    return %arg0, %c0_i32, %c0_i32_0, %c0_i32_1 : i32, i32, i32, i32
  }
  func.func @transform_5(%arg0: i32) -> (i32, i32, i32, i32) {
    %c0_i32 = arith.constant 0 : i32
    %c0_i32_0 = arith.constant 0 : i32
    %c0_i32_1 = arith.constant 0 : i32
    %c0_i32_2 = arith.constant 0 : i32
    return %arg0, %c0_i32, %c0_i32_0, %c0_i32_1 : i32, i32, i32, i32
  }
}

module attributes {stable_mosaic.version = 11 : i64} {
  func.func @_conv_block_kernel(%arg0: i32, %arg1: memref<1x4x576xf32, #tpu.memory_space<vmem>>, %arg2: memref<576x64xf32, #tpu.memory_space<vmem>>, %arg3: memref<1x64xf32, #tpu.memory_space<vmem>>, %arg4: memref<1x4x64xf32, #tpu.memory_space<vmem>>) attributes {dimension_semantics = [#tpu.dimension_semantics<parallel>], iteration_bounds = array<i64: 2>, scalar_prefetch = 0 : i64, scratch_operands = 0 : i64, tpu.core_type = #tpu.core_type<tc>, window_params = [{transform_indices = @transform_0, window_bounds = array<i64: 1, 4, 576>}, {pipeline_mode = #tpu.pipeline_mode<synchronous>, transform_indices = @transform_1, window_bounds = array<i64: 576, 64>}, {pipeline_mode = #tpu.pipeline_mode<synchronous>, transform_indices = @transform_2, window_bounds = array<i64: 1, 64>}, {transform_indices = @transform_3, window_bounds = array<i64: 1, 4, 64>}]} {
    %c0 = arith.constant 0 : index
    %c0_0 = arith.constant 0 : index
    %c0_1 = arith.constant 0 : index
    %0 = vector.load %arg1[%c0, %c0_0, %c0_1] : memref<1x4x576xf32, #tpu.memory_space<vmem>>, vector<1x4x576xf32>
    %1 = vector.shape_cast %0 : vector<1x4x576xf32> to vector<4x576xf32>
    %c0_2 = arith.constant 0 : index
    %c0_3 = arith.constant 0 : index
    %2 = vector.load %arg2[%c0_2, %c0_3] : memref<576x64xf32, #tpu.memory_space<vmem>>, vector<576x64xf32>
    %cst = arith.constant dense<0.000000e+00> : vector<4x64xf32>
    %3 = tpu.matmul %1, %2, %cst {dimension_numbers = #tpu.dot_dimension_numbers<[1], [0], [0], [1], [0, 0, 1, 1], [], []>} : vector<4x576xf32>, vector<576x64xf32>, vector<4x64xf32> -> vector<4x64xf32>
    %c0_4 = arith.constant 0 : index
    %c0_5 = arith.constant 0 : index
    %4 = vector.load %arg3[%c0_4, %c0_5] : memref<1x64xf32, #tpu.memory_space<vmem>>, vector<1x64xf32>
    %5 = vector.broadcast %4 : vector<1x64xf32> to vector<4x64xf32>
    %6 = arith.addf %3, %5 : vector<4x64xf32>
    %cst_6 = arith.constant 0.000000e+00 : f32
    %7 = vector.broadcast %cst_6 : f32 to vector<4x64xf32>
    %8 = arith.maximumf %6, %7 : vector<4x64xf32>
    %cst_7 = arith.constant dense<0.000000e+00> : vector<64xf32>
    %9 = vector.multi_reduction <add>, %8, %cst_7 [0] : vector<4x64xf32> to vector<64xf32>
    %10 = vector.shape_cast %9 : vector<64xf32> to vector<1x64xf32>
    %cst_8 = arith.constant 4.000000e+00 : f32
    %11 = vector.broadcast %cst_8 : f32 to vector<1x64xf32>
    %12 = arith.divf %10, %11 : vector<1x64xf32>
    %13 = vector.broadcast %12 : vector<1x64xf32> to vector<4x64xf32>
    %14 = arith.subf %8, %13 : vector<4x64xf32>
    %15 = arith.mulf %14, %14 : vector<4x64xf32>
    %cst_9 = arith.constant dense<0.000000e+00> : vector<64xf32>
    %16 = vector.multi_reduction <add>, %15, %cst_9 [0] : vector<4x64xf32> to vector<64xf32>
    %17 = vector.shape_cast %16 : vector<64xf32> to vector<1x64xf32>
    %cst_10 = arith.constant 4.000000e+00 : f32
    %18 = vector.broadcast %cst_10 : f32 to vector<1x64xf32>
    %19 = arith.divf %17, %18 : vector<1x64xf32>
    %20 = vector.broadcast %12 : vector<1x64xf32> to vector<4x64xf32>
    %21 = arith.subf %8, %20 : vector<4x64xf32>
    %cst_11 = arith.constant 9.99999974E-6 : f32
    %22 = vector.broadcast %cst_11 : f32 to vector<1x64xf32>
    %23 = arith.addf %19, %22 : vector<1x64xf32>
    %24 = math.rsqrt %23 : vector<1x64xf32>
    %25 = vector.broadcast %24 : vector<1x64xf32> to vector<4x64xf32>
    %26 = arith.mulf %21, %25 : vector<4x64xf32>
    %c0_12 = arith.constant 0 : index
    %c0_13 = arith.constant 0 : index
    %c0_14 = arith.constant 0 : index
    %27 = vector.load %arg4[%c0_12, %c0_13, %c0_14] : memref<1x4x64xf32, #tpu.memory_space<vmem>>, vector<1x4x64xf32>
    %28 = vector.shape_cast %27 : vector<1x4x64xf32> to vector<4x64xf32>
    %29 = vector.shape_cast %26 : vector<4x64xf32> to vector<1x4x64xf32>
    tpu.vector_store %arg4[%c0_12, %c0_13, %c0_14], %29 {strides = array<i32>} : memref<1x4x64xf32, #tpu.memory_space<vmem>>, vector<1x4x64xf32>,
    return
  }
  func.func @transform_0(%arg0: i32) -> (i32, i32, i32) {
    %c0_i32 = arith.constant 0 : i32
    %c0_i32_0 = arith.constant 0 : i32
    %c0_i32_1 = arith.constant 0 : i32
    return %arg0, %c0_i32, %c0_i32_0 : i32, i32, i32
  }
  func.func @transform_1(%arg0: i32) -> (i32, i32) {
    %c0_i32 = arith.constant 0 : i32
    %c0_i32_0 = arith.constant 0 : i32
    %c0_i32_1 = arith.constant 0 : i32
    return %c0_i32, %c0_i32_0 : i32, i32
  }
  func.func @transform_2(%arg0: i32) -> (i32, i32) {
    %c0_i32 = arith.constant 0 : i32
    %c0_i32_0 = arith.constant 0 : i32
    %c0_i32_1 = arith.constant 0 : i32
    return %c0_i32, %c0_i32_0 : i32, i32
  }
  func.func @transform_3(%arg0: i32) -> (i32, i32, i32) {
    %c0_i32 = arith.constant 0 : i32
    %c0_i32_0 = arith.constant 0 : i32
    %c0_i32_1 = arith.constant 0 : i32
    return %arg0, %c0_i32, %c0_i32_0 : i32, i32, i32
  }
}

module attributes {stable_mosaic.version = 11 : i64} {
  func.func @_conv_block_kernel(%arg0: i32, %arg1: memref<1x4x576xf32, #tpu.memory_space<vmem>>, %arg2: memref<576x16xf32, #tpu.memory_space<vmem>>, %arg3: memref<1x16xf32, #tpu.memory_space<vmem>>, %arg4: memref<1x4x16xf32, #tpu.memory_space<vmem>>) attributes {dimension_semantics = [#tpu.dimension_semantics<parallel>], iteration_bounds = array<i64: 2>, scalar_prefetch = 0 : i64, scratch_operands = 0 : i64, tpu.core_type = #tpu.core_type<tc>, window_params = [{transform_indices = @transform_0, window_bounds = array<i64: 1, 4, 576>}, {pipeline_mode = #tpu.pipeline_mode<synchronous>, transform_indices = @transform_1, window_bounds = array<i64: 576, 16>}, {pipeline_mode = #tpu.pipeline_mode<synchronous>, transform_indices = @transform_2, window_bounds = array<i64: 1, 16>}, {transform_indices = @transform_3, window_bounds = array<i64: 1, 4, 16>}]} {
    %c0 = arith.constant 0 : index
    %c0_0 = arith.constant 0 : index
    %c0_1 = arith.constant 0 : index
    %0 = vector.load %arg1[%c0, %c0_0, %c0_1] : memref<1x4x576xf32, #tpu.memory_space<vmem>>, vector<1x4x576xf32>
    %1 = vector.shape_cast %0 : vector<1x4x576xf32> to vector<4x576xf32>
    %c0_2 = arith.constant 0 : index
    %c0_3 = arith.constant 0 : index
    %2 = vector.load %arg2[%c0_2, %c0_3] : memref<576x16xf32, #tpu.memory_space<vmem>>, vector<576x16xf32>
    %cst = arith.constant dense<0.000000e+00> : vector<4x16xf32>
    %3 = tpu.matmul %1, %2, %cst {dimension_numbers = #tpu.dot_dimension_numbers<[1], [0], [0], [1], [0, 0, 1, 1], [], []>} : vector<4x576xf32>, vector<576x16xf32>, vector<4x16xf32> -> vector<4x16xf32>
    %c0_4 = arith.constant 0 : index
    %c0_5 = arith.constant 0 : index
    %4 = vector.load %arg3[%c0_4, %c0_5] : memref<1x16xf32, #tpu.memory_space<vmem>>, vector<1x16xf32>
    %5 = vector.broadcast %4 : vector<1x16xf32> to vector<4x16xf32>
    %6 = arith.addf %3, %5 : vector<4x16xf32>
    %cst_6 = arith.constant 0.000000e+00 : f32
    %7 = vector.broadcast %cst_6 : f32 to vector<4x16xf32>
    %8 = arith.maximumf %6, %7 : vector<4x16xf32>
    %cst_7 = arith.constant dense<0.000000e+00> : vector<16xf32>
    %9 = vector.multi_reduction <add>, %8, %cst_7 [0] : vector<4x16xf32> to vector<16xf32>
    %10 = vector.shape_cast %9 : vector<16xf32> to vector<1x16xf32>
    %cst_8 = arith.constant 4.000000e+00 : f32
    %11 = vector.broadcast %cst_8 : f32 to vector<1x16xf32>
    %12 = arith.divf %10, %11 : vector<1x16xf32>
    %13 = vector.broadcast %12 : vector<1x16xf32> to vector<4x16xf32>
    %14 = arith.subf %8, %13 : vector<4x16xf32>
    %15 = arith.mulf %14, %14 : vector<4x16xf32>
    %cst_9 = arith.constant dense<0.000000e+00> : vector<16xf32>
    %16 = vector.multi_reduction <add>, %15, %cst_9 [0] : vector<4x16xf32> to vector<16xf32>
    %17 = vector.shape_cast %16 : vector<16xf32> to vector<1x16xf32>
    %cst_10 = arith.constant 4.000000e+00 : f32
    %18 = vector.broadcast %cst_10 : f32 to vector<1x16xf32>
    %19 = arith.divf %17, %18 : vector<1x16xf32>
    %20 = vector.broadcast %12 : vector<1x16xf32> to vector<4x16xf32>
    %21 = arith.subf %8, %20 : vector<4x16xf32>
    %cst_11 = arith.constant 9.99999974E-6 : f32
    %22 = vector.broadcast %cst_11 : f32 to vector<1x16xf32>
    %23 = arith.addf %19, %22 : vector<1x16xf32>
    %24 = math.rsqrt %23 : vector<1x16xf32>
    %25 = vector.broadcast %24 : vector<1x16xf32> to vector<4x16xf32>
    %26 = arith.mulf %21, %25 : vector<4x16xf32>
    %c0_12 = arith.constant 0 : index
    %c0_13 = arith.constant 0 : index
    %c0_14 = arith.constant 0 : index
    %27 = vector.load %arg4[%c0_12, %c0_13, %c0_14] : memref<1x4x16xf32, #tpu.memory_space<vmem>>, vector<1x4x16xf32>
    %28 = vector.shape_cast %27 : vector<1x4x16xf32> to vector<4x16xf32>
    %29 = vector.shape_cast %26 : vector<4x16xf32> to vector<1x4x16xf32>
    tpu.vector_store %arg4[%c0_12, %c0_13, %c0_14], %29 {strides = array<i32>} : memref<1x4x16xf32, #tpu.memory_space<vmem>>, vector<1x4x16xf32>,
    return
  }
  func.func @transform_0(%arg0: i32) -> (i32, i32, i32) {
    %c0_i32 = arith.constant 0 : i32
    %c0_i32_0 = arith.constant 0 : i32
    %c0_i32_1 = arith.constant 0 : i32
    return %arg0, %c0_i32, %c0_i32_0 : i32, i32, i32
  }
  func.func @transform_1(%arg0: i32) -> (i32, i32) {
    %c0_i32 = arith.constant 0 : i32
    %c0_i32_0 = arith.constant 0 : i32
    %c0_i32_1 = arith.constant 0 : i32
    return %c0_i32, %c0_i32_0 : i32, i32
  }
  func.func @transform_2(%arg0: i32) -> (i32, i32) {
    %c0_i32 = arith.constant 0 : i32
    %c0_i32_0 = arith.constant 0 : i32
    %c0_i32_1 = arith.constant 0 : i32
    return %c0_i32, %c0_i32_0 : i32, i32
  }
  func.func @transform_3(%arg0: i32) -> (i32, i32, i32) {
    %c0_i32 = arith.constant 0 : i32
    %c0_i32_0 = arith.constant 0 : i32
    %c0_i32_1 = arith.constant 0 : i32
    return %arg0, %c0_i32, %c0_i32_0 : i32, i32, i32
  }
}

</mosaic_0001>

<bundles_post_ra>
// kernel: encoder_forward.11
= control target key start
LH: loop header
LB: loop body
LE: loop exit
PB: predicated region body
PF: predicated region fallthrough
CT: control target
= control target key end

     0   :  { %s1105_s18 = smov 0   ;;  %s2794_s0 = inlined_call_operand.vmem [shape: f32[2,16,16,16], index: 0, kind: input, shape index: {}]   ;;  %s2795_s1 = inlined_call_operand.vmem [shape: f32[2,16,16,16], index: 1, kind: input, shape index: {}]   ;;  %s2796_s2 = inlined_call_operand.vmem [shape: f32[2,16,16,16], index: 2, kind: input, shape index: {}]   ;;  %s2797_s3 = inlined_call_operand.vmem [shape: f32[2,16,16,16], index: 3, kind: input, shape index: {}]   ;;  %s2798_s4 = inlined_call_operand.vmem [shape: f32[2,16,16,16], index: 4, kind: output, shape index: {0}]   ;;  %s2799_s5 = inlined_call_operand.vmem [shape: s32[2,16,16,16], index: 5, kind: output, shape index: {1}]  }
   0x1 LB: > { %s1034_s19 = sadd.s32 4294967295, %s1073_s18   ;;  %p1038_p0 = scmp.ge.s32.totalorder %s1073_s18, 1  ;;  %s1073_s18 = sphi %s1105_s18, %s16_s18  }
   0x2   : > { %p220_p1 = scmp.lt.s32.totalorder %s1073_s18, 3 }
   0x4   : > { %p221_p2 = pnand %p1038_p0, %p220_p1 }
   0x6   : > { %224 = sbr.rel (%p221_p2) target bundleno = 184 (0xb8), region = 36 }
   0xd   : > { %p268_p3 = scmp.lt.s32.totalorder %s1034_s19, 1  ;;  %v426_v0 = vlaneseq  ;;  %vm845_vm0 = vcmask 130048  }
   0xf   : > { %s3362_s19 = smov (!%p268_p3, %s1034_s19), 1  ;;  %v427_v1 = vshrl.u32 %v426_v0, 7 }
  0x10   : > { %s1113_s20 = sshll.u32 %s3362_s19, 8 }
  0x11   : > { %v1115_v2 = vmul.u32 2, %v427_v1  ;;  %v428_v3 = vadd.s32 8, %v427_v1  ;;  %s1121_s23 = scalar_lea.vmem %s2794_s0, %s1113_s20  ;;  %s1127_s26 = scalar_lea.vmem %s2795_s1, %s1113_s20 }
  0x12   : > { %s1133_s29 = scalar_lea.vmem %s2796_s2, %s1113_s20  ;;  %s1139_s7 = scalar_lea.vmem %s2797_s3, %s1113_s20  ;;  %v298_v4 = vld [vmem:[%s1121_s23] sm:$0xff]  ;;  %v1144_v6 = vld [vmem:[%s1121_s23 + $0x8] sm:$0xff]  ;;  %v1172_v18 = vld [vmem:[%s1121_s23 + $0x10] sm:$0xff] }
  0x13   : > { %v330_v5 = vld [vmem:[%s1127_s26] sm:$0xff]  ;;  %v525_v7 = vadd.s32 1, %v1115_v2  ;;  %v653_v8 = vadd.s32 32, %v1115_v2  ;;  %v1148_v9 = vmul.u32 2, %v428_v3  ;;  %v1152_v11 = vld [vmem:[%s1127_s26 + $0x8] sm:$0xff]  ;;  %v1155_v12 = vadd.s32 64, %v1115_v2  ;;  %s1203_s10 = scalar_lea.vmem %s2798_s4, %s1113_s20  ;;  %s2339_s13 = scalar_lea.vmem %s2799_s5, %s1113_s20 }
  0x14   : > { %v362_v10 = vld [vmem:[%s1133_s29] sm:$0xff]  ;;  %vm461_vm1 = vcmp.gt.f32.partialorder %v330_v5, %v298_v4  ;;  %v1158_v13 = vadd.s32 128, %v1115_v2  ;;  %v1161_v14 = vadd.s32 192, %v1115_v2  ;;  %v1167_v17 = vld [vmem:[%s1133_s29 + $0x8] sm:$0xff]  ;;  %vm462_vm2 = vcmp.gt.f32.partialorder %v1152_v11, %v1144_v6  ;;  %v1188_v23 = vld [vmem:[%s1127_s26 + $0x10] sm:$0xff] }
  0x15   : > { %v1164_v15 = vld [vmem:[%s1139_s7] sm:$0xff]  ;;  %v493_v16 = vsel %vm461_vm1, %v330_v5, %v298_v4  ;;  %v557_v19 = vsel %vm461_vm1, %v525_v7, %v1115_v2  ;;  %v1175_v20 = vadd.s32 1, %v653_v8  ;;  %v1178_v21 = vld [vmem:[%s1139_s7 + $0x8] sm:$0xff]  ;;  %v1185_v22 = vsel %vm462_vm2, %v1152_v11, %v1144_v6  ;;  %v1191_v24 = vld [vmem:[%s1133_s29 + $0x10] sm:$0xff] }
  0x16   : > { %vm589_vm3 = vcmp.gt.f32.partialorder %v362_v10, %v493_v16  ;;  %v1194_v25 = vadd.s32 1, %v1148_v9  ;;  %v1197_v26 = vadd.s32 32, %v1148_v9  ;;  %vm590_vm4 = vcmp.gt.f32.partialorder %v1167_v17, %v1185_v22  ;;  %v1212_v28 = vld [vmem:[%s1121_s23 + $0x18] sm:$0xff]  ;;  %v1232_v33 = vld [vmem:[%s1139_s7 + $0x10] sm:$0xff]  ;;  %v1244_v35 = vld [vmem:[%s1121_s23 + $0x20] sm:$0xff] }
  0x17   : > { %v1205_v27 = vsel %vm589_vm3, %v362_v10, %v493_v16  ;;  %vm463_vm5 = vcmp.gt.f32.partialorder %v1188_v23, %v1172_v18  ;;  %v1215_v29 = vld [vmem:[%s1127_s26 + $0x18] sm:$0xff]  ;;  %v1220_v31 = vsel %vm589_vm3, %v653_v8, %v557_v19  ;;  %v1229_v32 = vsel %vm590_vm4, %v1167_v17, %v1185_v22  ;;  %v1247_v36 = vld [vmem:[%s1127_s26 + $0x20] sm:$0xff]  ;;  %v1272_v41 = vld [vmem:[%s1121_s23 + $0x28] sm:$0xff] }
  0x18   : > { %v1218_v30 = vld [vmem:[%s1133_s29 + $0x18] sm:$0xff]  ;;  %vm717_vm6 = vcmp.gt.f32.partialorder %v1164_v15, %v1205_v27  ;;  %v1239_v34 = vsel %vm463_vm5, %v1188_v23, %v1172_v18  ;;  %vm464_vm7 = vcmp.gt.f32.partialorder %v1215_v29, %v1212_v28  ;;  %vm718_vm8 = vcmp.gt.f32.partialorder %v1178_v21, %v1229_v32  ;;  %v1269_v40 = vld [vmem:[%s1133_s29 + $0x20] sm:$0xff]  ;;  %v1296_v45 = vld [vmem:[%s1127_s26 + $0x28] sm:$0xff] }
  0x19   : > { %v749_v37 = vsel %vm717_vm6, %v1164_v15, %v1205_v27  ;;  %vm591_vm9 = vcmp.gt.f32.partialorder %v1191_v24, %v1239_v34  ;;  %v1259_v38 = vld [vmem:[%s1139_s7 + $0x18] sm:$0xff]  ;;  %v1266_v39 = vsel %vm464_vm7, %v1215_v29, %v1212_v28  ;;  %v750_v42 = vsel %vm718_vm8, %v1178_v21, %v1229_v32  ;;  %v1291_v44 = vld [vmem:[%s1139_s7 + $0x20] sm:$0xff]  ;;  %v1299_v46 = vld [vmem:[%s1133_s29 + $0x28] sm:$0xff] }
  0x1a   : > { %846 = vst.msk [vmem:[%s1203_s10] sm:$0xff] %vm845_vm0, %v749_v37  ;;  %v1286_v43 = vsel %vm591_vm9, %v1191_v24, %v1239_v34  ;;  %vm592_vm10 = vcmp.gt.f32.partialorder %v1218_v30, %v1266_v39  ;;  %vm465_vm11 = vcmp.gt.f32.partialorder %v1247_v36, %v1244_v35  ;;  %847 = vst.msk [vmem:[%s1203_s10 + $0x8] sm:$0xff] %vm845_vm0, %v750_v42  ;;  %v1320_v49 = vld [vmem:[%s1139_s7 + $0x28] sm:$0xff]  ;;  %v1325_v50 = vld [vmem:[%s1121_s23 + $0x30] sm:$0xff]  ;;  %v529_v22 = vadd.s32 1, %v1158_v13 }
  0x1b   : > { %vm719_vm12 = vcmp.gt.f32.partialorder %v1232_v33, %v1286_v43  ;;  %v1310_v47 = vsel %vm592_vm10, %v1218_v30, %v1266_v39  ;;  %v1317_v48 = vsel %vm465_vm11, %v1247_v36, %v1244_v35  ;;  %vm2801_vm13 = vcmp.gt.f32.partialorder %v1296_v45, %v1272_v41  ;;  %v1328_v51 = vld [vmem:[%s1127_s26 + $0x30] sm:$0xff]  ;;  %v1350_v55 = vld [vmem:[%s1121_s23 + $0x38] sm:$0xff]  ;;  %v1377_v60 = vld [vmem:[%s1121_s23 + $0x40] sm:$0xff] }
  0x1c   : > { %v751_v52 = vsel %vm719_vm12, %v1232_v33, %v1286_v43  ;;  %vm2800_vm14 = vcmp.gt.f32.partialorder %v1259_v38, %v1310_v47  ;;  %vm593_vm15 = vcmp.gt.f32.partialorder %v1269_v40, %v1317_v48  ;;  %v1344_v53 = vsel %vm2801_vm13, %v1296_v45, %v1272_v41  ;;  %v1347_v54 = vld [vmem:[%s1133_s29 + $0x30] sm:$0xff]  ;;  %3013 = vst [vmem:[#allocation2_spill] sm:$0xff] %v1350_v55  ;;  %v1353_v56 = vld [vmem:[%s1127_s26 + $0x38] sm:$0xff]  ;;  %v1406_v1 = vld [vmem:[%s1127_s26 + $0x40] sm:$0xff] }
  0x1d   : > { %3014 = vst [vmem:[#allocation3_spill] sm:$0xff] %v1353_v56  ;;  %848 = vst.msk [vmem:[%s1203_s10 + $0x10] sm:$0xff] %vm845_vm0, %v751_v52  ;;  %v752_v57 = vsel %vm2800_vm14, %v1259_v38, %v1310_v47  ;;  %v1367_v58 = vsel %vm593_vm15, %v1269_v40, %v1317_v48  ;;  %vm2803_vm1 = vcmp.gt.f32.partialorder %v1299_v46, %v1344_v53  ;;  %v1374_v59 = vld [vmem:[%s1133_s29 + $0x38] sm:$0xff]  ;;  %v1391_v62 = vld [vmem:[%s1139_s7 + $0x30] sm:$0xff]  ;;  %v434_v21 = vadd.s32 128, %v1148_v9 }
  0x1e   : > { %vm2802_vm3 = vcmp.gt.f32.partialorder %v1328_v51, %v1325_v50  ;;  %3015 = vst [vmem:[#allocation4_spill] sm:$0xff] %v1374_v59  ;;  %3016 = vst [vmem:[#allocation5_spill] sm:$0xff] %v1377_v60  ;;  %vm2805_vm14 = vcmp.gt.f32.partialorder %v1291_v44, %v1367_v58  ;;  %v1388_v61 = vsel %vm2803_vm1, %v1299_v46, %v1344_v53  ;;  %v1401_v0 = vld [vmem:[%s1139_s7 + $0x38] sm:$0xff]  ;;  %v1425_v5 = vld [vmem:[%s1133_s29 + $0x40] sm:$0xff]  ;;  %v531_v36 = vadd.s32 1, %v1161_v14 }
  0x1f   : > { %849 = vst.msk [vmem:[%s1203_s10 + $0x18] sm:$0xff] %vm845_vm0, %v752_v57  ;;  %v1398_v63 = vsel %vm2802_vm3, %v1328_v51, %v1325_v50  ;;  %3017 = vst [vmem:[#allocation6_spill] sm:$0xff] %v1401_v0  ;;  %vm2804_vm13 = vcmp.gt.f32.partialorder %v1353_v56, %v1350_v55  ;;  %v753_v3 = vsel %vm2805_vm14, %v1291_v44, %v1367_v58  ;;  %v1428_v7 = vld [vmem:[%s1121_s23 + $0x48] sm:$0xff]  ;;  %v1455_v37 = vld [vmem:[%s1121_s23 + $0x50] sm:$0xff]  ;;  %v530_v23 = vadd.s32 1, %v434_v21 }
  0x20   : > { %3018 = vst [vmem:[#allocation7_spill] sm:$0xff] %v1406_v1  ;;  %vm2807_vm3 = vcmp.gt.f32.partialorder %v1320_v49, %v1388_v61  ;;  %vm2806_vm1 = vcmp.gt.f32.partialorder %v1347_v54, %v1398_v63  ;;  %v1422_v4 = vsel %vm2804_vm13, %v1353_v56, %v1350_v55  ;;  %3020 = vst [vmem:[#allocation9_spill] sm:$0xff] %v1425_v5  ;;  %v1431_v8 = vld [vmem:[%s1127_s26 + $0x48] sm:$0xff]  ;;  %v1458_v42 = vld [vmem:[%s1127_s26 + $0x50] sm:$0xff]  ;;  %v659_v39 = vadd.s32 32, %v1161_v14 }
  0x21   : > { %3019 = vst [vmem:[#allocation8_spill] sm:$0xff] %v1422_v4  ;;  %3021 = vst [vmem:[#allocation10_spill] sm:$0xff] %v1428_v7  ;;  %v754_v10 = vsel %vm2807_vm3, %v1320_v49, %v1388_v61  ;;  %v1445_v16 = vsel %vm2806_vm1, %v1347_v54, %v1398_v63  ;;  %vm2809_vm13 = vcmp.gt.f32.partialorder %v1374_v59, %v1422_v4  ;;  %v1452_v19 = vld [vmem:[%s1133_s29 + $0x48] sm:$0xff]  ;;  %v1472_v57 = vld [vmem:[%s1139_s7 + $0x40] sm:$0xff]  ;;  %v438_v43 = vadd.s32 256, %v1148_v9 }
  0x22   : > { %3022 = vst [vmem:[#allocation11_spill] sm:$0xff] %v1431_v8  ;;  %850 = vst.msk [vmem:[%s1203_s10 + $0x20] sm:$0xff] %vm845_vm0, %v753_v3  ;;  %vm2810_vm14 = vcmp.gt.f32.partialorder %v1406_v1, %v1377_v60  ;;  %vm2818_vm1 = vcmp.gt.f32.partialorder %v1391_v62, %v1445_v16  ;;  %v1469_v52 = vsel %vm2809_vm13, %v1374_v59, %v1422_v4  ;;  %v1496_v59 = vld [vmem:[%s1139_s7 + $0x48] sm:$0xff]  ;;  %v1509_v55 = vld [vmem:[%s1127_s26 + $0x58] sm:$0xff] }
  0x23   : > { %3023 = vst [vmem:[#allocation12_spill] sm:$0xff] %v1445_v16  ;;  %3024 = vst [vmem:[#allocation13_spill] sm:$0xff] %v1452_v19  ;;  %v1479_v3 = vsel %vm2810_vm14, %v1406_v1, %v1377_v60  ;;  %vm2817_vm3 = vcmp.gt.f32.partialorder %v1431_v8, %v1428_v7  ;;  %v755_v4 = vsel %vm2818_vm1, %v1391_v62, %v1445_v16  ;;  %v1506_v1 = vld [vmem:[%s1133_s29 + $0x50] sm:$0xff]  ;;  %v1587_v16 = vld [vmem:[%s1133_s29 + $0x60] sm:$0xff] }
  0x24   : > { %3025 = vst [vmem:[#allocation14_spill] sm:$0xff] %v1455_v37  ;;  %3026 = vst [vmem:[#allocation15_spill] sm:$0xff] %v1458_v42  ;;  %vm2821_vm13 = vcmp.gt.f32.partialorder %v1401_v0, %v1469_v52  ;;  %vm2825_vm14 = vcmp.gt.f32.partialorder %v1425_v5, %v1479_v3  ;;  %v1503_v60 = vsel %vm2817_vm3, %v1431_v8, %v1428_v7  ;;  %v1533_v8 = vld [vmem:[%s1121_s23 + $0x60] sm:$0xff] }
  0x25   : > { %851 = vst.msk [vmem:[%s1203_s10 + $0x28] sm:$0xff] %vm845_vm0, %v754_v10  ;;  %3027 = vst [vmem:[#allocation16_spill] sm:$0xff] %v1469_v52  ;;  %v1484_v10 = vld [vmem:[%s1121_s23 + $0x58] sm:$0xff]  ;;  %v756_v56 = vsel %vm2821_vm13, %v1401_v0, %v1469_v52  ;;  %v1523_v7 = vsel %vm2825_vm14, %v1425_v5, %v1479_v3  ;;  %vm2829_vm3 = vcmp.gt.f32.partialorder %v1452_v19, %v1503_v60  ;;  %v1536_v52 = vld [vmem:[%s1127_s26 + $0x60] sm:$0xff] }
  0x26   : > { %3028 = vst [vmem:[#allocation17_spill] sm:$0xff] %v1472_v57  ;;  %3029 = vst [vmem:[#allocation18_spill] sm:$0xff] %v1479_v3  ;;  %vm2828_vm1 = vcmp.gt.f32.partialorder %v1458_v42, %v1455_v37  ;;  %vm2836_vm13 = vcmp.gt.f32.partialorder %v1472_v57, %v1523_v7  ;;  %v1547_v0 = vsel %vm2829_vm3, %v1452_v19, %v1503_v60  ;;  %v1550_v3 = vld [vmem:[%s1139_s7 + $0x50] sm:$0xff] }
  0x27   : > { %3030 = vst [vmem:[#allocation19_spill] sm:$0xff] %v1484_v10  ;;  %3031 = vst [vmem:[#allocation20_spill] sm:$0xff] %v1496_v59  ;;  %v1557_v5 = vsel %vm2828_vm1, %v1458_v42, %v1455_v37  ;;  %vm2835_vm14 = vcmp.gt.f32.partialorder %v1509_v55, %v1484_v10  ;;  %v757_v19 = vsel %vm2836_vm13, %v1472_v57, %v1523_v7  ;;  %v1577_v37 = vld [vmem:[%s1139_s7 + $0x58] sm:$0xff] }
  0x28   : > { %3032 = vst [vmem:[#allocation21_spill] sm:$0xff] %v1503_v60  ;;  %3033 = vst [vmem:[#allocation22_spill] sm:$0xff] %v1506_v1  ;;  %v1565_v60 = vld [vmem:[%s1127_s26 + $0x68] sm:$0xff]  ;;  %vm2843_vm1 = vcmp.gt.f32.partialorder %v1496_v59, %v1547_v0  ;;  %vm2839_vm3 = vcmp.gt.f32.partialorder %v1506_v1, %v1557_v5  ;;  %v1584_v42 = vsel %vm2835_vm14, %v1509_v55, %v1484_v10  ;;  %v1611_v10 = vld [vmem:[%s1121_s23 + $0x70] sm:$0xff] }
  0x29   : > { %3034 = vst [vmem:[#allocation23_spill] sm:$0xff] %v1509_v55  ;;  %852 = vst.msk [vmem:[%s1203_s10 + $0x30] sm:$0xff] %vm845_vm0, %v755_v4  ;;  %v1530_v4 = vld [vmem:[%s1133_s29 + $0x58] sm:$0xff]  ;;  %v1601_v57 = vsel %vm2839_vm3, %v1506_v1, %v1557_v5  ;;  %vm2846_vm13 = vcmp.gt.f32.partialorder %v1536_v52, %v1533_v8  ;;  %v1614_v55 = vld [vmem:[%s1127_s26 + $0x70] sm:$0xff]  ;;  %v558_v15 = vsel %vm462_vm2, %v1194_v25, %v1148_v9  ;;  %v655_v25 = vadd.s32 32, %v1155_v12 }
  0x2a   : > { %3035 = vst [vmem:[#allocation24_spill] sm:$0xff] %v1523_v7  ;;  %3036 = vst [vmem:[#allocation25_spill] sm:$0xff] %v1530_v4  ;;  %v758_v7 = vsel %vm2843_vm1, %v1496_v59, %v1547_v0  ;;  %vm2847_vm14 = vcmp.gt.f32.partialorder %v1530_v4, %v1584_v42  ;;  %vm2854_vm3 = vcmp.gt.f32.partialorder %v1550_v3, %v1601_v57  ;;  %v1628_v1 = vld [vmem:[%s1139_s7 + $0x60] sm:$0xff]  ;;  %v1665_v59 = vld [vmem:[%s1133_s29 + $0x70] sm:$0xff] }
  0x2b   : > { %3037 = vst [vmem:[#allocation26_spill] sm:$0xff] %v1533_v8  ;;  %3038 = vst [vmem:[#allocation27_spill] sm:$0xff] %v1536_v52  ;;  %vm3148_vm2 = vcmp.gt.f32.partialorder %v1291_v44, %v1367_v58 }
  0x2c   : > { %853 = vst.msk [vmem:[%s1203_s10 + $0x38] sm:$0xff] %vm845_vm0, %v756_v56  ;;  %3039 = vst [vmem:[#allocation28_spill] sm:$0xff] %v1547_v0  ;;  %v1562_v56 = vld [vmem:[%s1121_s23 + $0x68] sm:$0xff]  ;;  %v1635_v0 = vsel %vm2846_vm13, %v1536_v52, %v1533_v8 }
  0x2d   : > { %3040 = vst [vmem:[#allocation29_spill] sm:$0xff] %v1550_v3  ;;  %3041 = vst [vmem:[#allocation30_spill] sm:$0xff] %v1557_v5  ;;  %v1625_v5 = vsel %vm2847_vm14, %v1530_v4, %v1584_v42  ;;  %vm2853_vm1 = vcmp.gt.f32.partialorder %v1565_v60, %v1562_v56  ;;  %v759_v4 = vsel %vm2854_vm3, %v1550_v3, %v1601_v57  ;;  %v1655_v8 = vld [vmem:[%s1139_s7 + $0x68] sm:$0xff] }
  0x2e   : > { %3042 = vst [vmem:[#allocation31_spill] sm:$0xff] %v1562_v56  ;;  %3043 = vst [vmem:[#allocation32_spill] sm:$0xff] %v1565_v60  ;;  %vm2861_vm13 = vcmp.gt.f32.partialorder %v1577_v37, %v1625_v5  ;;  %vm2857_vm14 = vcmp.gt.f32.partialorder %v1587_v16, %v1635_v0  ;;  %v1662_v52 = vsel %vm2853_vm1, %v1565_v60, %v1562_v56  ;;  %v1689_v56 = vld [vmem:[%s1121_s23 + $0x80] sm:$0xff] }
  0x2f   : > { %3044 = vst [vmem:[#allocation33_spill] sm:$0xff] %v1577_v37  ;;  %3045 = vst [vmem:[#allocation34_spill] sm:$0xff] %v1584_v42  ;;  %v1643_v42 = vld [vmem:[%s1127_s26 + $0x78] sm:$0xff]  ;;  %v1679_v3 = vsel %vm2857_vm14, %v1587_v16, %v1635_v0  ;;  %vm2864_vm3 = vcmp.gt.f32.partialorder %v1614_v55, %v1611_v10  ;;  %v1692_v60 = vld [vmem:[%s1127_s26 + $0x80] sm:$0xff] }
  0x30   : > { %3046 = vst [vmem:[#allocation35_spill] sm:$0xff] %v1587_v16  ;;  %854 = vst.msk [vmem:[%s1203_s10 + $0x40] sm:$0xff] %vm845_vm0, %v757_v19  ;;  %v1608_v19 = vld [vmem:[%s1133_s29 + $0x68] sm:$0xff]  ;;  %vm2872_vm14 = vcmp.gt.f32.partialorder %v1628_v1, %v1679_v3  ;;  %v1706_v16 = vld [vmem:[%s1139_s7 + $0x70] sm:$0xff] }
  0x31   : > { %3047 = vst [vmem:[#allocation36_spill] sm:$0xff] %v1601_v57  ;;  %3048 = vst [vmem:[#allocation37_spill] sm:$0xff] %v1608_v19  ;;  %v760_v57 = vsel %vm2861_vm13, %v1577_v37, %v1625_v5  ;;  %vm2865_vm1 = vcmp.gt.f32.partialorder %v1608_v19, %v1662_v52  ;;  %v1743_v37 = vld [vmem:[%s1133_s29 + $0x80] sm:$0xff] }
  0x32   : > { %3049 = vst [vmem:[#allocation38_spill] sm:$0xff] %v1611_v10  ;;  %3050 = vst [vmem:[#allocation39_spill] sm:$0xff] %v1614_v55 }
  0x33   : > { %855 = vst.msk [vmem:[%s1203_s10 + $0x48] sm:$0xff] %vm845_vm0, %v758_v7  ;;  %3051 = vst [vmem:[#allocation40_spill] sm:$0xff] %v1625_v5  ;;  %v1640_v7 = vld [vmem:[%s1121_s23 + $0x78] sm:$0xff]  ;;  %v1713_v5 = vsel %vm2864_vm3, %v1614_v55, %v1611_v10 }
  0x34   : > { %3052 = vst [vmem:[#allocation41_spill] sm:$0xff] %v1628_v1  ;;  %3053 = vst [vmem:[#allocation42_spill] sm:$0xff] %v1635_v0  ;;  %v1703_v0 = vsel %vm2865_vm1, %v1608_v19, %v1662_v52  ;;  %vm2871_vm13 = vcmp.gt.f32.partialorder %v1643_v42, %v1640_v7  ;;  %v761_v19 = vsel %vm2872_vm14, %v1628_v1, %v1679_v3  ;;  %v1733_v10 = vld [vmem:[%s1139_s7 + $0x78] sm:$0xff] }
  0x35   : > { %3054 = vst [vmem:[#allocation43_spill] sm:$0xff] %v1640_v7  ;;  %3055 = vst [vmem:[#allocation44_spill] sm:$0xff] %v1643_v42  ;;  %vm2875_vm3 = vcmp.gt.f32.partialorder %v1655_v8, %v1703_v0  ;;  %vm2879_vm1 = vcmp.gt.f32.partialorder %v1665_v59, %v1713_v5  ;;  %v1740_v55 = vsel %vm2871_vm13, %v1643_v42, %v1640_v7  ;;  %v1767_v7 = vld [vmem:[%s1121_s23 + $0x90] sm:$0xff] }
  0x36   : > { %3056 = vst [vmem:[#allocation45_spill] sm:$0xff] %v1655_v8  ;;  %3057 = vst [vmem:[#allocation46_spill] sm:$0xff] %v1662_v52  ;;  %v1721_v52 = vld [vmem:[%s1127_s26 + $0x88] sm:$0xff]  ;;  %v1757_v1 = vsel %vm2879_vm1, %v1665_v59, %v1713_v5  ;;  %vm2882_vm14 = vcmp.gt.f32.partialorder %v1692_v60, %v1689_v56  ;;  %v1770_v42 = vld [vmem:[%s1127_s26 + $0x90] sm:$0xff] }
  0x37   : > { %3058 = vst [vmem:[#allocation47_spill] sm:$0xff] %v1665_v59  ;;  %856 = vst.msk [vmem:[%s1203_s10 + $0x50] sm:$0xff] %vm845_vm0, %v759_v4  ;;  %v1686_v4 = vld [vmem:[%s1133_s29 + $0x78] sm:$0xff]  ;;  %v1821_v59 = vld [vmem:[%s1133_s29 + $0x90] sm:$0xff] }
  0x38   : > { %3059 = vst [vmem:[#allocation48_spill] sm:$0xff] %v1679_v3  ;;  %3060 = vst [vmem:[#allocation49_spill] sm:$0xff] %v1686_v4  ;;  %v762_v3 = vsel %vm2875_vm3, %v1655_v8, %v1703_v0  ;;  %vm2883_vm13 = vcmp.gt.f32.partialorder %v1686_v4, %v1740_v55  ;;  %vm2890_vm3 = vcmp.gt.f32.partialorder %v1706_v16, %v1757_v1  ;;  %v1784_v8 = vld [vmem:[%s1139_s7 + $0x80] sm:$0xff] }
  0x39   : > { %3061 = vst [vmem:[#allocation50_spill] sm:$0xff] %v1689_v56  ;;  %3062 = vst [vmem:[#allocation51_spill] sm:$0xff] %v1692_v60 }
  0x3a   : > { %857 = vst.msk [vmem:[%s1203_s10 + $0x58] sm:$0xff] %vm845_vm0, %v760_v57  ;;  %3063 = vst [vmem:[#allocation52_spill] sm:$0xff] %v1703_v0  ;;  %v1718_v57 = vld [vmem:[%s1121_s23 + $0x88] sm:$0xff]  ;;  %v1781_v0 = vsel %vm2883_vm13, %v1686_v4, %v1740_v55  ;;  %v763_v4 = vsel %vm2890_vm3, %v1706_v16, %v1757_v1  ;;  %vm2900_vm3 = vcmp.gt.f32.partialorder %v1770_v42, %v1767_v7 }
  0x3b   : > { %3064 = vst [vmem:[#allocation53_spill] sm:$0xff] %v1706_v16  ;;  %3065 = vst [vmem:[#allocation54_spill] sm:$0xff] %v1713_v5  ;;  %v1791_v5 = vsel %vm2882_vm14, %v1692_v60, %v1689_v56  ;;  %vm2889_vm1 = vcmp.gt.f32.partialorder %v1721_v52, %v1718_v57  ;;  %vm2897_vm14 = vcmp.gt.f32.partialorder %v1733_v10, %v1781_v0  ;;  %v1811_v56 = vld [vmem:[%s1139_s7 + $0x88] sm:$0xff] }
  0x3c   : > { %3066 = vst [vmem:[#allocation55_spill] sm:$0xff] %v1718_v57  ;;  %3067 = vst [vmem:[#allocation56_spill] sm:$0xff] %v1721_v52  ;;  %vm2893_vm13 = vcmp.gt.f32.partialorder %v1743_v37, %v1791_v5  ;;  %v1818_v60 = vsel %vm2889_vm1, %v1721_v52, %v1718_v57  ;;  %v1845_v57 = vld [vmem:[%s1121_s23 + $0xa0] sm:$0xff] }
  0x3d   : > { %3068 = vst [vmem:[#allocation57_spill] sm:$0xff] %v1733_v10  ;;  %3069 = vst [vmem:[#allocation58_spill] sm:$0xff] %v1740_v55  ;;  %v1799_v55 = vld [vmem:[%s1127_s26 + $0x98] sm:$0xff]  ;;  %v1835_v16 = vsel %vm2893_vm13, %v1743_v37, %v1791_v5  ;;  %v1899_v52 = vld [vmem:[%s1133_s29 + $0xa0] sm:$0xff] }
  0x3e   : > { %3070 = vst [vmem:[#allocation59_spill] sm:$0xff] %v1743_v37  ;;  %858 = vst.msk [vmem:[%s1203_s10 + $0x60] sm:$0xff] %vm845_vm0, %v761_v19  ;;  %v1764_v19 = vld [vmem:[%s1133_s29 + $0x88] sm:$0xff]  ;;  %vm2908_vm13 = vcmp.gt.f32.partialorder %v1784_v8, %v1835_v16  ;;  %v1862_v37 = vld [vmem:[%s1139_s7 + $0x90] sm:$0xff] }
  0x3f   : > { %3071 = vst [vmem:[#allocation60_spill] sm:$0xff] %v1757_v1  ;;  %3072 = vst [vmem:[#allocation61_spill] sm:$0xff] %v1764_v19  ;;  %v764_v1 = vsel %vm2897_vm14, %v1733_v10, %v1781_v0  ;;  %vm2901_vm1 = vcmp.gt.f32.partialorder %v1764_v19, %v1818_v60  ;;  %v1869_v10 = vsel %vm2900_vm3, %v1770_v42, %v1767_v7 }
  0x40   : > { %3073 = vst [vmem:[#allocation62_spill] sm:$0xff] %v1767_v7  ;;  %3074 = vst [vmem:[#allocation63_spill] sm:$0xff] %v1770_v42  ;;  %v1889_v7 = vld [vmem:[%s1139_s7 + $0x98] sm:$0xff] }
  0x41   : > { %859 = vst.msk [vmem:[%s1203_s10 + $0x68] sm:$0xff] %vm845_vm0, %v762_v3  ;;  %3075 = vst [vmem:[#allocation64_spill] sm:$0xff] %v1781_v0  ;;  %v1796_v3 = vld [vmem:[%s1121_s23 + $0x98] sm:$0xff]  ;;  %v1848_v0 = vld [vmem:[%s1127_s26 + $0xa0] sm:$0xff] }
  0x42   : > { %3076 = vst [vmem:[#allocation65_spill] sm:$0xff] %v1784_v8  ;;  %3077 = vst [vmem:[#allocation66_spill] sm:$0xff] %v1791_v5  ;;  %v1859_v5 = vsel %vm2901_vm1, %v1764_v19, %v1818_v60  ;;  %vm2907_vm14 = vcmp.gt.f32.partialorder %v1799_v55, %v1796_v3  ;;  %v765_v19 = vsel %vm2908_vm13, %v1784_v8, %v1835_v16 }
  0x43   : > { %3078 = vst [vmem:[#allocation67_spill] sm:$0xff] %v1796_v3  ;;  %3079 = vst [vmem:[#allocation68_spill] sm:$0xff] %v1799_v55  ;;  %vm2915_vm3 = vcmp.gt.f32.partialorder %v1811_v56, %v1859_v5  ;;  %vm2911_vm1 = vcmp.gt.f32.partialorder %v1821_v59, %v1869_v10  ;;  %v1896_v42 = vsel %vm2907_vm14, %v1799_v55, %v1796_v3  ;;  %v1923_v3 = vld [vmem:[%s1121_s23 + $0xb0] sm:$0xff] }
  0x44   : > { %3080 = vst [vmem:[#allocation69_spill] sm:$0xff] %v1811_v56  ;;  %3081 = vst [vmem:[#allocation70_spill] sm:$0xff] %v1818_v60  ;;  %v1877_v60 = vld [vmem:[%s1127_s26 + $0xa8] sm:$0xff]  ;;  %v1913_v8 = vsel %vm2911_vm1, %v1821_v59, %v1869_v10  ;;  %vm2918_vm13 = vcmp.gt.f32.partialorder %v1848_v0, %v1845_v57  ;;  %v1926_v55 = vld [vmem:[%s1127_s26 + $0xb0] sm:$0xff] }
  0x45   : > { %3082 = vst [vmem:[#allocation71_spill] sm:$0xff] %v1821_v59  ;;  %860 = vst.msk [vmem:[%s1203_s10 + $0x70] sm:$0xff] %vm845_vm0, %v763_v4  ;;  %v1842_v4 = vld [vmem:[%s1133_s29 + $0x98] sm:$0xff]  ;;  %vm2926_vm1 = vcmp.gt.f32.partialorder %v1862_v37, %v1913_v8  ;;  %v1940_v59 = vld [vmem:[%s1139_s7 + $0xa0] sm:$0xff] }
  0x46   : > { %3083 = vst [vmem:[#allocation72_spill] sm:$0xff] %v1835_v16  ;;  %3084 = vst [vmem:[#allocation73_spill] sm:$0xff] %v1842_v4  ;;  %v766_v16 = vsel %vm2915_vm3, %v1811_v56, %v1859_v5  ;;  %vm2919_vm14 = vcmp.gt.f32.partialorder %v1842_v4, %v1896_v42  ;;  %v1977_v56 = vld [vmem:[%s1133_s29 + $0xb0] sm:$0xff] }
  0x47   : > { %3085 = vst [vmem:[#allocation74_spill] sm:$0xff] %v1845_v57  ;;  %3086 = vst [vmem:[#allocation75_spill] sm:$0xff] %v1848_v0 }
  0x48   : > { %861 = vst.msk [vmem:[%s1203_s10 + $0x78] sm:$0xff] %vm845_vm0, %v764_v1  ;;  %3087 = vst [vmem:[#allocation76_spill] sm:$0xff] %v1859_v5  ;;  %v1874_v1 = vld [vmem:[%s1121_s23 + $0xa8] sm:$0xff]  ;;  %v1947_v5 = vsel %vm2918_vm13, %v1848_v0, %v1845_v57 }
  0x49   : > { %3088 = vst [vmem:[#allocation77_spill] sm:$0xff] %v1862_v37  ;;  %3089 = vst [vmem:[#allocation78_spill] sm:$0xff] %v1869_v10  ;;  %v1937_v10 = vsel %vm2919_vm14, %v1842_v4, %v1896_v42  ;;  %vm2925_vm3 = vcmp.gt.f32.partialorder %v1877_v60, %v1874_v1  ;;  %v767_v4 = vsel %vm2926_vm1, %v1862_v37, %v1913_v8  ;;  %v1967_v57 = vld [vmem:[%s1139_s7 + $0xa8] sm:$0xff] }
  0x4a   : > { %3090 = vst [vmem:[#allocation79_spill] sm:$0xff] %v1874_v1  ;;  %3091 = vst [vmem:[#allocation80_spill] sm:$0xff] %v1877_v60  ;;  %vm2933_vm13 = vcmp.gt.f32.partialorder %v1889_v7, %v1937_v10  ;;  %vm2929_vm14 = vcmp.gt.f32.partialorder %v1899_v52, %v1947_v5  ;;  %v1974_v0 = vsel %vm2925_vm3, %v1877_v60, %v1874_v1  ;;  %v2001_v1 = vld [vmem:[%s1121_s23 + $0xc0] sm:$0xff] }
  0x4b   : > { %3092 = vst [vmem:[#allocation81_spill] sm:$0xff] %v1889_v7  ;;  %3093 = vst [vmem:[#allocation82_spill] sm:$0xff] %v1896_v42  ;;  %v1955_v42 = vld [vmem:[%s1127_s26 + $0xb8] sm:$0xff]  ;;  %v1991_v37 = vsel %vm2929_vm14, %v1899_v52, %v1947_v5  ;;  %vm2937_vm1 = vcmp.gt.f32.partialorder %v1926_v55, %v1923_v3  ;;  %v2004_v60 = vld [vmem:[%s1127_s26 + $0xc0] sm:$0xff] }
  0x4c   : > { %3094 = vst [vmem:[#allocation83_spill] sm:$0xff] %v1899_v52  ;;  %862 = vst.msk [vmem:[%s1203_s10 + $0x80] sm:$0xff] %vm845_vm0, %v765_v19  ;;  %v1920_v19 = vld [vmem:[%s1133_s29 + $0xa8] sm:$0xff]  ;;  %vm2944_vm14 = vcmp.gt.f32.partialorder %v1940_v59, %v1991_v37  ;;  %v2018_v52 = vld [vmem:[%s1139_s7 + $0xb0] sm:$0xff] }
  0x4d   : > { %3095 = vst [vmem:[#allocation84_spill] sm:$0xff] %v1913_v8  ;;  %3096 = vst [vmem:[#allocation85_spill] sm:$0xff] %v1920_v19  ;;  %v768_v8 = vsel %vm2933_vm13, %v1889_v7, %v1937_v10  ;;  %vm2936_vm3 = vcmp.gt.f32.partialorder %v1920_v19, %v1974_v0  ;;  %v2055_v7 = vld [vmem:[%s1133_s29 + $0xc0] sm:$0xff] }
  0x4e   : > { %3097 = vst [vmem:[#allocation86_spill] sm:$0xff] %v1923_v3  ;;  %3098 = vst [vmem:[#allocation87_spill] sm:$0xff] %v1926_v55 }
  0x4f   : > { %863 = vst.msk [vmem:[%s1203_s10 + $0x88] sm:$0xff] %vm845_vm0, %v766_v16  ;;  %3099 = vst [vmem:[#allocation88_spill] sm:$0xff] %v1937_v10  ;;  %v1952_v16 = vld [vmem:[%s1121_s23 + $0xb8] sm:$0xff]  ;;  %v2025_v10 = vsel %vm2937_vm1, %v1926_v55, %v1923_v3 }
  0x50   : > { %3100 = vst [vmem:[#allocation89_spill] sm:$0xff] %v1940_v59  ;;  %3101 = vst [vmem:[#allocation90_spill] sm:$0xff] %v1947_v5  ;;  %v2015_v5 = vsel %vm2936_vm3, %v1920_v19, %v1974_v0  ;;  %vm2943_vm13 = vcmp.gt.f32.partialorder %v1955_v42, %v1952_v16  ;;  %v769_v19 = vsel %vm2944_vm14, %v1940_v59, %v1991_v37  ;;  %v2045_v3 = vld [vmem:[%s1139_s7 + $0xb8] sm:$0xff] }
  0x51   : > { %3102 = vst [vmem:[#allocation91_spill] sm:$0xff] %v1952_v16  ;;  %3103 = vst [vmem:[#allocation92_spill] sm:$0xff] %v1955_v42  ;;  %vm2947_vm3 = vcmp.gt.f32.partialorder %v1967_v57, %v2015_v5  ;;  %vm2951_vm1 = vcmp.gt.f32.partialorder %v1977_v56, %v2025_v10  ;;  %v2052_v55 = vsel %vm2943_vm13, %v1955_v42, %v1952_v16  ;;  %v2079_v16 = vld [vmem:[%s1121_s23 + $0xd0] sm:$0xff] }
  0x52   : > { %3104 = vst [vmem:[#allocation93_spill] sm:$0xff] %v1967_v57  ;;  %3105 = vst [vmem:[#allocation94_spill] sm:$0xff] %v1974_v0  ;;  %v2033_v0 = vld [vmem:[%s1127_s26 + $0xc8] sm:$0xff]  ;;  %v2069_v59 = vsel %vm2951_vm1, %v1977_v56, %v2025_v10  ;;  %vm2954_vm14 = vcmp.gt.f32.partialorder %v2004_v60, %v2001_v1  ;;  %v2082_v42 = vld [vmem:[%s1127_s26 + $0xd0] sm:$0xff] }
  0x53   : > { %3106 = vst [vmem:[#allocation95_spill] sm:$0xff] %v1977_v56  ;;  %864 = vst.msk [vmem:[%s1203_s10 + $0x90] sm:$0xff] %vm845_vm0, %v767_v4  ;;  %v1998_v4 = vld [vmem:[%s1133_s29 + $0xb8] sm:$0xff]  ;;  %v2133_v56 = vld [vmem:[%s1133_s29 + $0xd0] sm:$0xff] }
  0x54   : > { %3107 = vst [vmem:[#allocation96_spill] sm:$0xff] %v1991_v37  ;;  %3108 = vst [vmem:[#allocation97_spill] sm:$0xff] %v1998_v4  ;;  %v770_v37 = vsel %vm2947_vm3, %v1967_v57, %v2015_v5  ;;  %vm2955_vm13 = vcmp.gt.f32.partialorder %v1998_v4, %v2052_v55  ;;  %vm2962_vm3 = vcmp.gt.f32.partialorder %v2018_v52, %v2069_v59  ;;  %v2096_v57 = vld [vmem:[%s1139_s7 + $0xc0] sm:$0xff] }
  0x55   : > { %3109 = vst [vmem:[#allocation98_spill] sm:$0xff] %v2001_v1  ;;  %3110 = vst [vmem:[#allocation99_spill] sm:$0xff] %v2004_v60 }
  0x56   : > { %865 = vst.msk [vmem:[%s1203_s10 + $0x98] sm:$0xff] %vm845_vm0, %v768_v8  ;;  %3111 = vst [vmem:[#allocation100_spill] sm:$0xff] %v2015_v5  ;;  %v2030_v8 = vld [vmem:[%s1121_s23 + $0xc8] sm:$0xff]  ;;  %v2093_v5 = vsel %vm2955_vm13, %v1998_v4, %v2052_v55  ;;  %v771_v4 = vsel %vm2962_vm3, %v2018_v52, %v2069_v59  ;;  %vm2973_vm3 = vcmp.gt.f32.partialorder %v2082_v42, %v2079_v16 }
  0x57   : > { %3112 = vst [vmem:[#allocation101_spill] sm:$0xff] %v2018_v52  ;;  %3113 = vst [vmem:[#allocation102_spill] sm:$0xff] %v2025_v10  ;;  %v2103_v10 = vsel %vm2954_vm14, %v2004_v60, %v2001_v1  ;;  %vm2961_vm1 = vcmp.gt.f32.partialorder %v2033_v0, %v2030_v8  ;;  %vm2969_vm14 = vcmp.gt.f32.partialorder %v2045_v3, %v2093_v5  ;;  %v2123_v1 = vld [vmem:[%s1139_s7 + $0xc8] sm:$0xff] }
  0x58   : > { %3114 = vst [vmem:[#allocation103_spill] sm:$0xff] %v2030_v8  ;;  %3115 = vst [vmem:[#allocation104_spill] sm:$0xff] %v2033_v0  ;;  %vm2965_vm13 = vcmp.gt.f32.partialorder %v2055_v7, %v2103_v10  ;;  %v2130_v60 = vsel %vm2961_vm1, %v2033_v0, %v2030_v8  ;;  %v2157_v8 = vld [vmem:[%s1121_s23 + $0xe0] sm:$0xff] }
  0x59   : > { %3116 = vst [vmem:[#allocation105_spill] sm:$0xff] %v2045_v3  ;;  %3117 = vst [vmem:[#allocation106_spill] sm:$0xff] %v2052_v55  ;;  %v2111_v55 = vld [vmem:[%s1127_s26 + $0xd8] sm:$0xff]  ;;  %v2147_v52 = vsel %vm2965_vm13, %v2055_v7, %v2103_v10  ;;  %v2160_v0 = vld [vmem:[%s1127_s26 + $0xe0] sm:$0xff] }
  0x5a   : > { %3118 = vst [vmem:[#allocation107_spill] sm:$0xff] %v2055_v7  ;;  %866 = vst.msk [vmem:[%s1203_s10 + $0xa0] sm:$0xff] %vm845_vm0, %v769_v19  ;;  %v2076_v19 = vld [vmem:[%s1133_s29 + $0xc8] sm:$0xff]  ;;  %vm2980_vm13 = vcmp.gt.f32.partialorder %v2096_v57, %v2147_v52  ;;  %v2174_v7 = vld [vmem:[%s1139_s7 + $0xd0] sm:$0xff] }
  0x5b   : > { %3119 = vst [vmem:[#allocation108_spill] sm:$0xff] %v2069_v59  ;;  %3120 = vst [vmem:[#allocation109_spill] sm:$0xff] %v2076_v19  ;;  %v772_v59 = vsel %vm2969_vm14, %v2045_v3, %v2093_v5  ;;  %vm2972_vm1 = vcmp.gt.f32.partialorder %v2076_v19, %v2130_v60  ;;  %v2211_v3 = vld [vmem:[%s1133_s29 + $0xe0] sm:$0xff] }
  0x5c   : > { %3121 = vst [vmem:[#allocation110_spill] sm:$0xff] %v2079_v16  ;;  %3122 = vst [vmem:[#allocation111_spill] sm:$0xff] %v2082_v42 }
  0x5d   : > { %867 = vst.msk [vmem:[%s1203_s10 + $0xa8] sm:$0xff] %vm845_vm0, %v770_v37  ;;  %3123 = vst [vmem:[#allocation112_spill] sm:$0xff] %v2093_v5  ;;  %v2108_v37 = vld [vmem:[%s1121_s23 + $0xd8] sm:$0xff]  ;;  %v2181_v5 = vsel %vm2973_vm3, %v2082_v42, %v2079_v16 }
  0x5e   : > { %3124 = vst [vmem:[#allocation113_spill] sm:$0xff] %v2096_v57  ;;  %3125 = vst [vmem:[#allocation114_spill] sm:$0xff] %v2103_v10  ;;  %v2171_v10 = vsel %vm2972_vm1, %v2076_v19, %v2130_v60  ;;  %vm2979_vm14 = vcmp.gt.f32.partialorder %v2111_v55, %v2108_v37  ;;  %v773_v19 = vsel %vm2980_vm13, %v2096_v57, %v2147_v52  ;;  %v2201_v16 = vld [vmem:[%s1139_s7 + $0xd8] sm:$0xff] }
  0x5f   : > { %3126 = vst [vmem:[#allocation115_spill] sm:$0xff] %v2108_v37  ;;  %3127 = vst [vmem:[#allocation116_spill] sm:$0xff] %v2111_v55  ;;  %vm2983_vm1 = vcmp.gt.f32.partialorder %v2123_v1, %v2171_v10  ;;  %vm2987_vm3 = vcmp.gt.f32.partialorder %v2133_v56, %v2181_v5  ;;  %v2208_v42 = vsel %vm2979_vm14, %v2111_v55, %v2108_v37  ;;  %v2235_v37 = vld [vmem:[%s1121_s23 + $0xf0] sm:$0xff] }
  0x60   : > { %3128 = vst [vmem:[#allocation117_spill] sm:$0xff] %v2123_v1  ;;  %3129 = vst [vmem:[#allocation118_spill] sm:$0xff] %v2130_v60  ;;  %v2189_v60 = vld [vmem:[%s1127_s26 + $0xe8] sm:$0xff]  ;;  %v2225_v57 = vsel %vm2987_vm3, %v2133_v56, %v2181_v5  ;;  %vm2991_vm13 = vcmp.gt.f32.partialorder %v2160_v0, %v2157_v8  ;;  %v2238_v55 = vld [vmem:[%s1127_s26 + $0xf0] sm:$0xff] }
  0x61   : > { %3130 = vst [vmem:[#allocation119_spill] sm:$0xff] %v2133_v56  ;;  %868 = vst.msk [vmem:[%s1203_s10 + $0xb0] sm:$0xff] %vm845_vm0, %v771_v4  ;;  %v2154_v4 = vld [vmem:[%s1133_s29 + $0xd8] sm:$0xff] }
  0x62   : > { %3131 = vst [vmem:[#allocation120_spill] sm:$0xff] %v2147_v52  ;;  %3132 = vst [vmem:[#allocation121_spill] sm:$0xff] %v2154_v4  ;;  %v774_v52 = vsel %vm2983_vm1, %v2123_v1, %v2171_v10  ;;  %vm2990_vm14 = vcmp.gt.f32.partialorder %v2154_v4, %v2208_v42  ;;  %vm2998_vm1 = vcmp.gt.f32.partialorder %v2174_v7, %v2225_v57  ;;  %v2252_v1 = vld [vmem:[%s1139_s7 + $0xe0] sm:$0xff]  ;;  %v2267_v56 = vld [vmem:[%s1127_s26 + $0xf8] sm:$0xff] }
  0x63   : > { %3133 = vst [vmem:[#allocation122_spill] sm:$0xff] %v2157_v8  ;;  %3134 = vst [vmem:[#allocation123_spill] sm:$0xff] %v2160_v0 }
  0x64   : > { %869 = vst.msk [vmem:[%s1203_s10 + $0xb8] sm:$0xff] %vm845_vm0, %v772_v59  ;;  %3135 = vst [vmem:[#allocation124_spill] sm:$0xff] %v2171_v10  ;;  %v2186_v59 = vld [vmem:[%s1121_s23 + $0xe8] sm:$0xff]  ;;  %v2249_v10 = vsel %vm2990_vm14, %v2154_v4, %v2208_v42  ;;  %v2289_v4 = vld [vmem:[%s1133_s29 + $0xf0] sm:$0xff] }
  0x65   : > { %3136 = vst [vmem:[#allocation125_spill] sm:$0xff] %v2174_v7  ;;  %3137 = vst [vmem:[#allocation126_spill] sm:$0xff] %v2181_v5  ;;  %v2259_v5 = vsel %vm2991_vm13, %v2160_v0, %v2157_v8  ;;  %vm2997_vm3 = vcmp.gt.f32.partialorder %v2189_v60, %v2186_v59  ;;  %vm2999_vm14 = vcmp.gt.f32.partialorder %v2201_v16, %v2249_v10  ;;  %v2279_v8 = vld [vmem:[%s1139_s7 + $0xe8] sm:$0xff] }
  0x66   : > { %3138 = vst [vmem:[#allocation127_spill] sm:$0xff] %v2186_v59  ;;  %3139 = vst [vmem:[#allocation128_spill] sm:$0xff] %v2189_v60  ;;  %vm3003_vm13 = vcmp.gt.f32.partialorder %v2211_v3, %v2259_v5  ;;  %v2286_v0 = vsel %vm2997_vm3, %v2189_v60, %v2186_v59  ;;  %v2324_v60 = vld [vmem:[%s1139_s7 + $0xf0] sm:$0xff] }
  0x67   : > { %3140 = vst [vmem:[#allocation129_spill] sm:$0xff] %v2208_v42  ;;  %870 = vst.msk [vmem:[%s1203_s10 + $0xc0] sm:$0xff] %vm845_vm0, %v773_v19  ;;  %v2232_v19 = vld [vmem:[%s1133_s29 + $0xe8] sm:$0xff]  ;;  %v775_v42 = vsel %vm2998_vm1, %v2174_v7, %v2225_v57  ;;  %v2303_v7 = vsel %vm3003_vm13, %v2211_v3, %v2259_v5  ;;  %vm3005_vm1 = vcmp.gt.f32.partialorder %v2238_v55, %v2235_v37 }
  0x68   : > { %3141 = vst [vmem:[#allocation130_spill] sm:$0xff] %v2225_v57  ;;  %3142 = vst [vmem:[#allocation131_spill] sm:$0xff] %v2232_v19  ;;  %v776_v57 = vsel %vm2999_vm14, %v2201_v16, %v2249_v10  ;;  %vm3004_vm3 = vcmp.gt.f32.partialorder %v2232_v19, %v2286_v0  ;;  %vm745_vm14 = vcmp.gt.f32.partialorder %v2252_v1, %v2303_v7 }
  0x69   : > { %871 = vst.msk [vmem:[%s1203_s10 + $0xc8] sm:$0xff] %vm845_vm0, %v774_v52  ;;  %3143 = vst [vmem:[#allocation132_spill] sm:$0xff] %v2252_v1  ;;  %v2264_v52 = vld [vmem:[%s1121_s23 + $0xf8] sm:$0xff]  ;;  %v2321_v59 = vsel %vm3004_vm3, %v2232_v19, %v2286_v0 }
  0x6a   : > { %3144 = vst [vmem:[#allocation133_spill] sm:$0xff] %v2259_v5  ;;  %3145 = vst [vmem:[#allocation134_spill] sm:$0xff] %v2264_v52  ;;  %v2331_v5 = vsel %vm3005_vm1, %v2238_v55, %v2235_v37  ;;  %vm3010_vm13 = vcmp.gt.f32.partialorder %v2267_v56, %v2264_v52  ;;  %vm3011_vm3 = vcmp.gt.f32.partialorder %v2279_v8, %v2321_v59 }
  0x6b   : > { %3146 = vst [vmem:[#allocation135_spill] sm:$0xff] %v2286_v0  ;;  %872 = vst.msk [vmem:[%s1203_s10 + $0xd0] sm:$0xff] %vm845_vm0, %v775_v42  ;;  %v2310_v42 = vld [vmem:[%s1133_s29 + $0xf8] sm:$0xff]  ;;  %vm619_vm1 = vcmp.gt.f32.partialorder %v2289_v4, %v2331_v5  ;;  %v2358_v19 = vsel %vm3010_vm13, %v2267_v56, %v2264_v52 }
  0x6c   : > { %3147 = vst [vmem:[#allocation136_spill] sm:$0xff] %v2303_v7  ;;  %873 = vst.msk [vmem:[%s1203_s10 + $0xd8] sm:$0xff] %vm845_vm0, %v776_v57  ;;  %v777_v57 = vsel %vm745_vm14, %v2252_v1, %v2303_v7  ;;  %v2351_v0 = vld [vmem:[%s1139_s7 + $0xf8] sm:$0xff]  ;;  %v778_v7 = vsel %vm3011_vm3, %v2279_v8, %v2321_v59  ;;  %v2372_v1 = vsel %vm619_vm1, %v2289_v4, %v2331_v5 }
  0x6d   : > { %874 = vst.msk [vmem:[%s1203_s10 + $0xe0] sm:$0xff] %vm845_vm0, %v777_v57  ;;  %vm620_vm13 = vcmp.gt.f32.partialorder %v2310_v42, %v2358_v19  ;;  %v813_v57 = vsel %vm717_vm6, %v1175_v20, %v1220_v31  ;;  %875 = vst.msk [vmem:[%s1203_s10 + $0xe8] sm:$0xff] %vm845_vm0, %v778_v7  ;;  %vm747_vm3 = vcmp.gt.f32.partialorder %v2324_v60, %v2372_v1  ;;  %v782_v20 = vadd.s32 1, %v1197_v26 }
  0x6e   : > { %v2390_v52 = vsel %vm620_vm13, %v2310_v42, %v2358_v19  ;;  %878 = vst.msk [vmem:[%s2339_s13] sm:$0xff] %vm845_vm0, %v813_v57  ;;  %v779_v27 = vsel %vm747_vm3, %v2324_v60, %v2372_v1  ;;  %v686_v31 = vsel %vm590_vm4, %v1197_v26, %v558_v15  ;;  %v527_v7 = vadd.s32 1, %v1155_v12 }
  0x6f   : > { %vm748_vm6 = vcmp.gt.f32.partialorder %v2351_v0, %v2390_v52  ;;  %876 = vst.msk [vmem:[%s1203_s10 + $0xf0] sm:$0xff] %vm845_vm0, %v779_v27  ;;  %v814_v11 = vsel %vm718_vm8, %v782_v20, %v686_v31  ;;  %v432_v57 = vadd.s32 64, %v1148_v9  ;;  %v657_v26 = vadd.s32 32, %v1158_v13 }
  0x70   : > { %v780_v6 = vsel %vm748_vm6, %v2351_v0, %v2390_v52  ;;  %879 = vst.msk [vmem:[%s2339_s13 + $0x8] sm:$0xff] %vm845_vm0, %v814_v11  ;;  %v559_v17 = vsel %vm463_vm5, %v527_v7, %v1155_v12  ;;  %v783_v15 = vadd.s32 1, %v655_v25  ;;  %v561_v12 = vsel %vm465_vm11, %v529_v22, %v1158_v13 }
  0x71   : > { %877 = vst.msk [vmem:[%s1203_s10 + $0xf8] sm:$0xff] %vm845_vm0, %v780_v6  ;;  %v687_v32 = vsel %vm591_vm9, %v655_v25, %v559_v17  ;;  %v528_v20 = vadd.s32 1, %v432_v57  ;;  %v656_v27 = vadd.s32 32, %v432_v57  ;;  %v785_v18 = vadd.s32 1, %v657_v26  ;;  %v3359_v5 = vld [vmem:[#allocation134_spill] sm:$0xff] }
  0x72   : > { %v658_v31 = vadd.s32 32, %v434_v21  ;;  %v815_v7 = vsel %vm719_vm12, %v783_v15, %v687_v32  ;;  %v689_v6 = vsel %vm593_vm15, %v657_v26, %v561_v12  ;;  %vm3149_vm4 = vcmp.gt.f32.partialorder %v1296_v45, %v1272_v41  ;;  %v3163_v32 = vld [vmem:[#allocation4_spill] sm:$0xff] }
  0x73   : > { %v560_v24 = vsel %vm464_vm7, %v528_v20, %v432_v57  ;;  %v784_v34 = vadd.s32 1, %v656_v27  ;;  %880 = vst.msk [vmem:[%s2339_s13 + $0x10] sm:$0xff] %vm845_vm0, %v815_v7  ;;  %v817_v33 = vsel %vm3148_vm2, %v785_v18, %v689_v6  ;;  %v562_v28 = vsel %vm3149_vm4, %v530_v23, %v434_v21  ;;  %v3158_v57 = vld [vmem:[#allocation2_spill] sm:$0xff]  ;;  %v3166_v20 = vld [vmem:[#allocation9_spill] sm:$0xff]  ;;  %v3169_v23 = vld [vmem:[#allocation11_spill] sm:$0xff] }
  0x74   : > { %v688_v13 = vsel %vm592_vm10, %v656_v27, %v560_v24  ;;  %v786_v29 = vadd.s32 1, %v658_v31  ;;  %vm3150_vm5 = vcmp.gt.f32.partialorder %v1259_v38, %v1310_v47  ;;  %882 = vst.msk [vmem:[%s2339_s13 + $0x20] sm:$0xff] %vm845_vm0, %v817_v33  ;;  %vm3151_vm7 = vcmp.gt.f32.partialorder %v1299_v46, %v1344_v53  ;;  %v3167_v27 = vld [vmem:[#allocation18_spill] sm:$0xff]  ;;  %v3176_v33 = vld [vmem:[#allocation21_spill] sm:$0xff] }
  0x75   : > { %v816_v35 = vsel %vm3150_vm5, %v784_v34, %v688_v13  ;;  %v690_v30 = vsel %vm3151_vm7, %v658_v31, %v562_v28  ;;  %vm3152_vm8 = vcmp.gt.f32.partialorder %v1320_v49, %v1388_v61  ;;  %v436_v41 = vadd.s32 192, %v1148_v9  ;;  %v3155_v61 = vld [vmem:[#allocation12_spill] sm:$0xff]  ;;  %v3170_v31 = vld [vmem:[#allocation10_spill] sm:$0xff]  ;;  %v3175_v13 = vld [vmem:[#allocation13_spill] sm:$0xff] }
  0x76   : > { %881 = vst.msk [vmem:[%s2339_s13 + $0x18] sm:$0xff] %vm845_vm0, %v816_v35  ;;  %v818_v40 = vsel %vm3152_vm8, %v786_v29, %v690_v30  ;;  %v437_v38 = vadd.s32 256, %v1115_v2  ;;  %vm3153_vm9 = vcmp.gt.f32.partialorder %v1328_v51, %v1325_v50  ;;  %v787_v45 = vadd.s32 1, %v659_v39  ;;  %v3157_v51 = vld [vmem:[#allocation3_spill] sm:$0xff]  ;;  %v3172_v24 = vld [vmem:[#allocation6_spill] sm:$0xff]  ;;  %v3173_v34 = vld [vmem:[#allocation16_spill] sm:$0xff] }
  0x77   : > { %883 = vst.msk [vmem:[%s2339_s13 + $0x28] sm:$0xff] %vm845_vm0, %v818_v40  ;;  %v563_v44 = vsel %vm3153_vm9, %v531_v36, %v1161_v14  ;;  %v439_v46 = vadd.s32 320, %v1115_v2  ;;  %v440_v47 = vadd.s32 320, %v1148_v9  ;;  %vm3154_vm10 = vcmp.gt.f32.partialorder %v1347_v54, %v1398_v63  ;;  %v3160_v54 = vld [vmem:[#allocation7_spill] sm:$0xff]  ;;  %v3161_v63 = vld [vmem:[#allocation5_spill] sm:$0xff]  ;;  %v3179_v30 = vld [vmem:[#allocation14_spill] sm:$0xff] }
  0x78   : > { %v691_v48 = vsel %vm3154_vm10, %v659_v39, %v563_v44  ;;  %v532_v49 = vadd.s32 1, %v436_v41  ;;  %v660_v53 = vadd.s32 32, %v436_v41  ;;  %v533_v58 = vadd.s32 1, %v437_v38  ;;  %v3178_v35 = vld [vmem:[#allocation15_spill] sm:$0xff]  ;;  %v3181_v39 = vld [vmem:[#allocation17_spill] sm:$0xff]  ;;  %v3182_v40 = vld [vmem:[#allocation24_spill] sm:$0xff] }
  0x79   : > { %vm3156_vm11 = vcmp.gt.f32.partialorder %v1391_v62, %v3155_v61  ;;  %v661_v25 = vadd.s32 32, %v437_v38  ;;  %v534_v50 = vadd.s32 1, %v438_v43  ;;  %v662_v14 = vadd.s32 32, %v438_v43  ;;  %v3164_v62 = vld [vmem:[#allocation8_spill] sm:$0xff] }
  0x7a   : > { %v819_v11 = vsel %vm3156_vm11, %v787_v45, %v691_v48  ;;  %vm3159_vm12 = vcmp.gt.f32.partialorder %v3157_v51, %v3158_v57  ;;  %v788_v22 = vadd.s32 1, %v660_v53  ;;  %vm3162_vm15 = vcmp.gt.f32.partialorder %v3160_v54, %v3161_v63  ;;  %v3184_v45 = vld [vmem:[#allocation20_spill] sm:$0xff]  ;;  %v3191_v51 = vld [vmem:[#allocation19_spill] sm:$0xff]  ;;  %v3194_v54 = vld [vmem:[#allocation34_spill] sm:$0xff] }
  0x7b   : > { %884 = vst.msk [vmem:[%s2339_s13 + $0x30] sm:$0xff] %vm845_vm0, %v819_v11  ;;  %v564_v17 = vsel %vm3159_vm12, %v532_v49, %v436_v41  ;;  %v565_v26 = vsel %vm3162_vm15, %v533_v58, %v437_v38  ;;  %v535_v21 = vadd.s32 1, %v439_v46  ;;  %vm3165_vm2 = vcmp.gt.f32.partialorder %v3163_v32, %v3164_v62  ;;  %v3185_v48 = vld [vmem:[#allocation28_spill] sm:$0xff]  ;;  %v3187_v11 = vld [vmem:[#allocation22_spill] sm:$0xff]  ;;  %v3196_v62 = vld [vmem:[#allocation29_spill] sm:$0xff] }
  0x7c   : > { %v692_v15 = vsel %vm3165_vm2, %v660_v53, %v564_v17  ;;  %vm3168_vm4 = vcmp.gt.f32.partialorder %v3166_v20, %v3167_v27  ;;  %v789_v18 = vadd.s32 1, %v661_v25  ;;  %vm3171_vm5 = vcmp.gt.f32.partialorder %v3169_v23, %v3170_v31  ;;  %v3199_v27 = vld [vmem:[#allocation33_spill] sm:$0xff] }
  0x7d   : > { %v693_v12 = vsel %vm3168_vm4, %v661_v25, %v565_v26  ;;  %v566_v7 = vsel %vm3171_vm5, %v534_v50, %v438_v43  ;;  %vm3174_vm7 = vcmp.gt.f32.partialorder %v3172_v24, %v3173_v34  ;;  %vm3177_vm8 = vcmp.gt.f32.partialorder %v3175_v13, %v3176_v33  ;;  %v3206_v13 = vld [vmem:[#allocation31_spill] sm:$0xff] }
  0x7e   : > { %v820_v6 = vsel %vm3174_vm7, %v788_v22, %v692_v15  ;;  %v694_v28 = vsel %vm3177_vm8, %v662_v14, %v566_v7  ;;  %v790_v29 = vadd.s32 1, %v662_v14  ;;  %vm3180_vm9 = vcmp.gt.f32.partialorder %v3178_v35, %v3179_v30  ;;  %v3190_v14 = vld [vmem:[#allocation23_spill] sm:$0xff]  ;;  %v3193_v22 = vld [vmem:[#allocation25_spill] sm:$0xff]  ;;  %v3197_v15 = vld [vmem:[#allocation36_spill] sm:$0xff] }
  0x7f   : > { %v567_v36 = vsel %vm3180_vm9, %v535_v21, %v439_v46  ;;  %885 = vst.msk [vmem:[%s2339_s13 + $0x38] sm:$0xff] %vm845_vm0, %v820_v6  ;;  %vm3183_vm10 = vcmp.gt.f32.partialorder %v3181_v39, %v3182_v40  ;;  %v663_v38 = vadd.s32 32, %v439_v46  ;;  %v536_v43 = vadd.s32 1, %v440_v47  ;;  %v3188_v46 = vld [vmem:[#allocation30_spill] sm:$0xff]  ;;  %v3205_v6 = vld [vmem:[#allocation32_spill] sm:$0xff] }
  0x80   : > { %v821_v41 = vsel %vm3183_vm10, %v789_v18, %v693_v12  ;;  %v664_v44 = vadd.s32 32, %v440_v47  ;;  %vm3186_vm11 = vcmp.gt.f32.partialorder %v3184_v45, %v3185_v48  ;;  %v441_v53 = vadd.s32 384, %v1115_v2  ;;  %v3200_v12 = vld [vmem:[#allocation40_spill] sm:$0xff]  ;;  %v3203_v7 = vld [vmem:[#allocation26_spill] sm:$0xff]  ;;  %v3217_v45 = vld [vmem:[#allocation41_spill] sm:$0xff] }
  0x81   : > { %886 = vst.msk [vmem:[%s2339_s13 + $0x40] sm:$0xff] %vm845_vm0, %v821_v41  ;;  %v822_v49 = vsel %vm3186_vm11, %v790_v29, %v694_v28  ;;  %v442_v58 = vadd.s32 384, %v1148_v9  ;;  %v443_v61 = vadd.s32 448, %v1115_v2  ;;  %vm3189_vm12 = vcmp.gt.f32.partialorder %v3187_v11, %v3188_v46  ;;  %v3208_v29 = vld [vmem:[#allocation35_spill] sm:$0xff]  ;;  %v3209_v35 = vld [vmem:[#allocation42_spill] sm:$0xff]  ;;  %v3218_v48 = vld [vmem:[#allocation48_spill] sm:$0xff] }
  0x82   : > { %887 = vst.msk [vmem:[%s2339_s13 + $0x48] sm:$0xff] %vm845_vm0, %v822_v49  ;;  %v695_v25 = vsel %vm3189_vm12, %v663_v38, %v567_v36  ;;  %v791_v50 = vadd.s32 1, %v663_v38  ;;  %vm3192_vm15 = vcmp.gt.f32.partialorder %v3190_v14, %v3191_v51  ;;  %v792_v17 = vadd.s32 1, %v664_v44  ;;  %v3211_v36 = vld [vmem:[#allocation37_spill] sm:$0xff]  ;;  %v3212_v39 = vld [vmem:[#allocation46_spill] sm:$0xff]  ;;  %v3214_v38 = vld [vmem:[#allocation39_spill] sm:$0xff] }
  0x83   : > { %v568_v57 = vsel %vm3192_vm15, %v536_v43, %v440_v47  ;;  %vm3195_vm2 = vcmp.gt.f32.partialorder %v3193_v22, %v3194_v54  ;;  %v537_v26 = vadd.s32 1, %v441_v53  ;;  %v665_v21 = vadd.s32 32, %v441_v53  ;;  %v3202_v47 = vld [vmem:[#allocation27_spill] sm:$0xff]  ;;  %v3215_v43 = vld [vmem:[#allocation38_spill] sm:$0xff]  ;;  %v3224_v14 = vld [vmem:[#allocation52_spill] sm:$0xff] }
  0x84   : > { %v696_v63 = vsel %vm3195_vm2, %v664_v44, %v568_v57  ;;  %v538_v32 = vadd.s32 1, %v442_v58  ;;  %vm3198_vm4 = vcmp.gt.f32.partialorder %v3196_v62, %v3197_v15  ;;  %vm3201_vm5 = vcmp.gt.f32.partialorder %v3199_v27, %v3200_v12  ;;  %v3226_v22 = vld [vmem:[#allocation53_spill] sm:$0xff]  ;;  %v3227_v54 = vld [vmem:[#allocation60_spill] sm:$0xff] }
  0x85   : > { %v823_v20 = vsel %vm3198_vm4, %v791_v50, %v695_v25  ;;  %v824_v18 = vsel %vm3201_vm5, %v792_v17, %v696_v63  ;;  %v666_v23 = vadd.s32 32, %v442_v58  ;;  %v539_v31 = vadd.s32 1, %v443_v61  ;;  %v3223_v50 = vld [vmem:[#allocation45_spill] sm:$0xff]  ;;  %v3229_v12 = vld [vmem:[#allocation44_spill] sm:$0xff] }
  0x86   : > { %888 = vst.msk [vmem:[%s2339_s13 + $0x50] sm:$0xff] %vm845_vm0, %v823_v20  ;;  %889 = vst.msk [vmem:[%s2339_s13 + $0x58] sm:$0xff] %vm845_vm0, %v824_v18  ;;  %vm3204_vm7 = vcmp.gt.f32.partialorder %v3202_v47, %v3203_v7  ;;  %v793_v34 = vadd.s32 1, %v665_v21  ;;  %vm3207_vm8 = vcmp.gt.f32.partialorder %v3205_v6, %v3206_v13  ;;  %v667_v28 = vadd.s32 32, %v443_v61  ;;  %v3230_v18 = vld [vmem:[#allocation43_spill] sm:$0xff] }
  0x87   : > { %v569_v24 = vsel %vm3204_vm7, %v537_v26, %v441_v53  ;;  %v570_v33 = vsel %vm3207_vm8, %v538_v32, %v442_v58  ;;  %vm3210_vm9 = vcmp.gt.f32.partialorder %v3208_v29, %v3209_v35  ;;  %vm3213_vm10 = vcmp.gt.f32.partialorder %v3211_v36, %v3212_v39  ;;  %v3220_v53 = vld [vmem:[#allocation47_spill] sm:$0xff]  ;;  %v3221_v58 = vld [vmem:[#allocation54_spill] sm:$0xff]  ;;  %v3238_v35 = vld [vmem:[#allocation56_spill] sm:$0xff] }
  0x88   : > { %v697_v30 = vsel %vm3210_vm9, %v665_v21, %v569_v24  ;;  %v698_v40 = vsel %vm3213_vm10, %v666_v23, %v570_v33  ;;  %v794_v41 = vadd.s32 1, %v666_v23  ;;  %vm3216_vm11 = vcmp.gt.f32.partialorder %v3214_v38, %v3215_v43  ;;  %v3232_v24 = vld [vmem:[#allocation49_spill] sm:$0xff]  ;;  %v3235_v13 = vld [vmem:[#allocation51_spill] sm:$0xff]  ;;  %v3236_v33 = vld [vmem:[#allocation50_spill] sm:$0xff] }
  0x89   : > { %v571_v44 = vsel %vm3216_vm11, %v539_v31, %v443_v61  ;;  %vm3219_vm12 = vcmp.gt.f32.partialorder %v3217_v45, %v3218_v48  ;;  %vm3222_vm15 = vcmp.gt.f32.partialorder %v3220_v53, %v3221_v58  ;;  %v795_v46 = vadd.s32 1, %v667_v28  ;;  %v3241_v39 = vld [vmem:[#allocation57_spill] sm:$0xff]  ;;  %v3244_v38 = vld [vmem:[#allocation59_spill] sm:$0xff]  ;;  %v3245_v43 = vld [vmem:[#allocation66_spill] sm:$0xff] }
  0x8a   : > { %v825_v49 = vsel %vm3219_vm12, %v793_v34, %v697_v30  ;;  %v699_v11 = vsel %vm3222_vm15, %v667_v28, %v571_v44  ;;  %v444_v25 = vadd.s32 448, %v1148_v9  ;;  %vm3225_vm2 = vcmp.gt.f32.partialorder %v3223_v50, %v3224_v14  ;;  %v3233_v34 = vld [vmem:[#allocation58_spill] sm:$0xff]  ;;  %v3239_v30 = vld [vmem:[#allocation55_spill] sm:$0xff]  ;;  %v3247_v45 = vld [vmem:[#allocation61_spill] sm:$0xff] }
  0x8b   : > { %890 = vst.msk [vmem:[%s2339_s13 + $0x60] sm:$0xff] %vm845_vm0, %v825_v49  ;;  %v826_v51 = vsel %vm3225_vm2, %v794_v41, %v698_v40  ;;  %v445_v57 = vadd.s32 512, %v1115_v2  ;;  %v446_v61 = vadd.s32 512, %v1148_v9  ;;  %v447_v17 = vadd.s32 576, %v1115_v2  ;;  %v3242_v40 = vld [vmem:[#allocation64_spill] sm:$0xff]  ;;  %v3248_v48 = vld [vmem:[#allocation70_spill] sm:$0xff] }
  0x8c   : > { %891 = vst.msk [vmem:[%s2339_s13 + $0x68] sm:$0xff] %vm845_vm0, %v826_v51  ;;  %vm3228_vm4 = vcmp.gt.f32.partialorder %v3226_v22, %v3227_v54  ;;  %v540_v26 = vadd.s32 1, %v444_v25  ;;  %v668_v21 = vadd.s32 32, %v444_v25  ;;  %v448_v32 = vadd.s32 576, %v1148_v9  ;;  %v3250_v58 = vld [vmem:[#allocation65_spill] sm:$0xff]  ;;  %v3254_v50 = vld [vmem:[#allocation62_spill] sm:$0xff] }
  0x8d   : > { %v827_v63 = vsel %vm3228_vm4, %v795_v46, %v699_v11  ;;  %v541_v62 = vadd.s32 1, %v445_v57  ;;  %v669_v15 = vadd.s32 32, %v445_v57  ;;  %v542_v20 = vadd.s32 1, %v446_v61  ;;  %v3251_v11 = vld [vmem:[#allocation72_spill] sm:$0xff] }
  0x8e   : > { %892 = vst.msk [vmem:[%s2339_s13 + $0x70] sm:$0xff] %vm845_vm0, %v827_v63  ;;  %v670_v27 = vadd.s32 32, %v446_v61  ;;  %vm3231_vm5 = vcmp.gt.f32.partialorder %v3229_v12, %v3230_v18  ;;  %v796_v31 = vadd.s32 1, %v668_v21  ;;  %v543_v47 = vadd.s32 1, %v447_v17  ;;  %v3257_v22 = vld [vmem:[#allocation76_spill] sm:$0xff]  ;;  %v3259_v63 = vld [vmem:[#allocation71_spill] sm:$0xff] }
  0x8f   : > { %v572_v23 = vsel %vm3231_vm5, %v540_v26, %v444_v25  ;;  %v671_v7 = vadd.s32 32, %v447_v17  ;;  %vm3234_vm7 = vcmp.gt.f32.partialorder %v3232_v24, %v3233_v34  ;;  %vm3237_vm8 = vcmp.gt.f32.partialorder %v3235_v13, %v3236_v33  ;;  %v3253_v25 = vld [vmem:[#allocation63_spill] sm:$0xff]  ;;  %v3260_v26 = vld [vmem:[#allocation78_spill] sm:$0xff]  ;;  %v3265_v12 = vld [vmem:[#allocation68_spill] sm:$0xff] }
  0x90   : > { %v700_v6 = vsel %vm3234_vm7, %v668_v21, %v572_v23  ;;  %v573_v28 = vsel %vm3237_vm8, %v541_v62, %v445_v57  ;;  %v797_v29 = vadd.s32 1, %v669_v15  ;;  %vm3240_vm9 = vcmp.gt.f32.partialorder %v3238_v35, %v3239_v30  ;;  %v3266_v18 = vld [vmem:[#allocation67_spill] sm:$0xff]  ;;  %v3269_v24 = vld [vmem:[#allocation82_spill] sm:$0xff] }
  0x91   : > { %v574_v36 = vsel %vm3240_vm9, %v542_v20, %v446_v61  ;;  %vm3243_vm10 = vcmp.gt.f32.partialorder %v3241_v39, %v3242_v40  ;;  %vm3246_vm11 = vcmp.gt.f32.partialorder %v3244_v38, %v3245_v43  ;;  %vm3249_vm12 = vcmp.gt.f32.partialorder %v3247_v45, %v3248_v48  ;;  %v3256_v61 = vld [vmem:[#allocation69_spill] sm:$0xff]  ;;  %v3274_v40 = vld [vmem:[#allocation75_spill] sm:$0xff]  ;;  %v3278_v48 = vld [vmem:[#allocation90_spill] sm:$0xff] }
  0x92   : > { %v828_v41 = vsel %vm3243_vm10, %v796_v31, %v700_v6  ;;  %v701_v44 = vsel %vm3246_vm11, %v669_v15, %v573_v28  ;;  %v702_v49 = vsel %vm3249_vm12, %v670_v27, %v574_v36  ;;  %v798_v53 = vadd.s32 1, %v670_v27  ;;  %v3262_v20 = vld [vmem:[#allocation77_spill] sm:$0xff]  ;;  %v3263_v27 = vld [vmem:[#allocation84_spill] sm:$0xff]  ;;  %v3277_v45 = vld [vmem:[#allocation83_spill] sm:$0xff] }
  0x93   : > { %893 = vst.msk [vmem:[%s2339_s13 + $0x78] sm:$0xff] %vm845_vm0, %v828_v41  ;;  %vm3252_vm15 = vcmp.gt.f32.partialorder %v3250_v58, %v3251_v11  ;;  %vm3255_vm2 = vcmp.gt.f32.partialorder %v3253_v25, %v3254_v50  ;;  %v799_v51 = vadd.s32 1, %v671_v7  ;;  %v544_v57 = vadd.s32 1, %v448_v32  ;;  %v3272_v36 = vld [vmem:[#allocation88_spill] sm:$0xff]  ;;  %v3275_v41 = vld [vmem:[#allocation74_spill] sm:$0xff]  ;;  %v3281_v58 = vld [vmem:[#allocation79_spill] sm:$0xff] }
  0x94   : > { %v829_v46 = vsel %vm3252_vm15, %v797_v29, %v701_v44  ;;  %v575_v14 = vsel %vm3255_vm2, %v543_v47, %v447_v17  ;;  %vm3258_vm4 = vcmp.gt.f32.partialorder %v3256_v61, %v3257_v22  ;;  %vm3261_vm5 = vcmp.gt.f32.partialorder %v3259_v63, %v3260_v26  ;;  %v3283_v25 = vld [vmem:[#allocation87_spill] sm:$0xff]  ;;  %v3284_v50 = vld [vmem:[#allocation86_spill] sm:$0xff]  ;;  %v3289_v22 = vld [vmem:[#allocation85_spill] sm:$0xff] }
  0x95   : > { %894 = vst.msk [vmem:[%s2339_s13 + $0x80] sm:$0xff] %vm845_vm0, %v829_v46  ;;  %v830_v54 = vsel %vm3258_vm4, %v798_v53, %v702_v49  ;;  %v703_v21 = vsel %vm3261_vm5, %v671_v7, %v575_v14  ;;  %v672_v62 = vadd.s32 32, %v448_v32  ;;  %v449_v15 = vadd.s32 640, %v1115_v2  ;;  %v3268_v7 = vld [vmem:[#allocation73_spill] sm:$0xff]  ;;  %v3280_v53 = vld [vmem:[#allocation80_spill] sm:$0xff]  ;;  %v3292_v26 = vld [vmem:[#allocation95_spill] sm:$0xff] }
  0x96   : > { %895 = vst.msk [vmem:[%s2339_s13 + $0x88] sm:$0xff] %vm845_vm0, %v830_v54  ;;  %vm3264_vm7 = vcmp.gt.f32.partialorder %v3262_v20, %v3263_v27  ;;  %vm3267_vm8 = vcmp.gt.f32.partialorder %v3265_v12, %v3266_v18  ;;  %v450_v31 = vadd.s32 640, %v1148_v9  ;;  %v451_v47 = vadd.s32 704, %v1115_v2  ;;  %v3290_v54 = vld [vmem:[#allocation94_spill] sm:$0xff]  ;;  %v3295_v20 = vld [vmem:[#allocation93_spill] sm:$0xff]  ;;  %v3296_v27 = vld [vmem:[#allocation100_spill] sm:$0xff] }
  0x97   : > { %v831_v17 = vsel %vm3264_vm7, %v799_v51, %v703_v21  ;;  %v576_v23 = vsel %vm3267_vm8, %v544_v57, %v448_v32  ;;  %vm3270_vm9 = vcmp.gt.f32.partialorder %v3268_v7, %v3269_v24  ;;  %v800_v6 = vadd.s32 1, %v672_v62  ;;  %v3271_v32 = vld [vmem:[#allocation81_spill] sm:$0xff]  ;;  %v3287_v57 = vld [vmem:[#allocation96_spill] sm:$0xff]  ;;  %v3293_v21 = vld [vmem:[#allocation102_spill] sm:$0xff] }
  0x98   : > { %896 = vst.msk [vmem:[%s2339_s13 + $0x90] sm:$0xff] %vm845_vm0, %v831_v17  ;;  %v704_v34 = vsel %vm3270_vm9, %v672_v62, %v576_v23  ;;  %v545_v13 = vadd.s32 1, %v449_v15  ;;  %v673_v33 = vadd.s32 32, %v449_v15  ;;  %v546_v28 = vadd.s32 1, %v450_v31  ;;  %v3286_v51 = vld [vmem:[#allocation89_spill] sm:$0xff] }
  0x99   : > { %v674_v29 = vadd.s32 32, %v450_v31  ;;  %v547_v35 = vadd.s32 1, %v451_v47  ;;  %v675_v30 = vadd.s32 32, %v451_v47  ;;  %vm3273_vm10 = vcmp.gt.f32.partialorder %v3271_v32, %v3272_v36  ;;  %v3304_v32 = vld [vmem:[#allocation97_spill] sm:$0xff]  ;;  %v3305_v36 = vld [vmem:[#allocation106_spill] sm:$0xff] }
  0x9a   : > { %v832_v39 = vsel %vm3273_vm10, %v800_v6, %v704_v34  ;;  %vm3276_vm11 = vcmp.gt.f32.partialorder %v3274_v40, %v3275_v41  ;;  %v801_v43 = vadd.s32 1, %v673_v33  ;;  %v452_v44 = vadd.s32 704, %v1148_v9 }
  0x9b   : > { %v577_v38 = vsel %vm3276_vm11, %v545_v13, %v449_v15  ;;  %897 = vst.msk [vmem:[%s2339_s13 + $0x98] sm:$0xff] %vm845_vm0, %v832_v39  ;;  %vm3279_vm12 = vcmp.gt.f32.partialorder %v3277_v45, %v3278_v48  ;;  %vm3282_vm15 = vcmp.gt.f32.partialorder %v3280_v53, %v3281_v58  ;;  %v802_v46 = vadd.s32 1, %v674_v29  ;;  %v3301_v13 = vld [vmem:[#allocation92_spill] sm:$0xff]  ;;  %v3311_v53 = vld [vmem:[#allocation98_spill] sm:$0xff] }
  0x9c   : > { %v705_v49 = vsel %vm3279_vm12, %v673_v33, %v577_v38  ;;  %v578_v11 = vsel %vm3282_vm15, %v546_v28, %v450_v31  ;;  %vm3285_vm2 = vcmp.gt.f32.partialorder %v3283_v25, %v3284_v50  ;;  %vm3288_vm4 = vcmp.gt.f32.partialorder %v3286_v51, %v3287_v57  ;;  %v3298_v31 = vld [vmem:[#allocation101_spill] sm:$0xff]  ;;  %v3302_v33 = vld [vmem:[#allocation91_spill] sm:$0xff]  ;;  %v3308_v45 = vld [vmem:[#allocation112_spill] sm:$0xff] }
  0x9d   : > { %v579_v14 = vsel %vm3285_vm2, %v547_v35, %v451_v47  ;;  %v833_v61 = vsel %vm3288_vm4, %v801_v43, %v705_v49  ;;  %vm3291_vm5 = vcmp.gt.f32.partialorder %v3289_v22, %v3290_v54  ;;  %vm3294_vm7 = vcmp.gt.f32.partialorder %v3292_v26, %v3293_v21  ;;  %v3299_v47 = vld [vmem:[#allocation108_spill] sm:$0xff]  ;;  %v3307_v43 = vld [vmem:[#allocation105_spill] sm:$0xff]  ;;  %v3310_v49 = vld [vmem:[#allocation99_spill] sm:$0xff] }
  0x9e   : > { %v706_v63 = vsel %vm3291_vm5, %v674_v29, %v578_v11  ;;  %v707_v62 = vsel %vm3294_vm7, %v675_v30, %v579_v14  ;;  %v803_v15 = vadd.s32 1, %v675_v30  ;;  %898 = vst.msk [vmem:[%s2339_s13 + $0xa0] sm:$0xff] %vm845_vm0, %v833_v61  ;;  %vm3297_vm8 = vcmp.gt.f32.partialorder %v3295_v20, %v3296_v27  ;;  %v3314_v25 = vld [vmem:[#allocation114_spill] sm:$0xff]  ;;  %v3316_v14 = vld [vmem:[#allocation104_spill] sm:$0xff]  ;;  %v3317_v51 = vld [vmem:[#allocation103_spill] sm:$0xff] }
  0x9f   : > { %v834_v17 = vsel %vm3297_vm8, %v802_v46, %v706_v63  ;;  %v548_v12 = vadd.s32 1, %v452_v44  ;;  %v676_v18 = vadd.s32 32, %v452_v44  ;;  %v453_v23 = vadd.s32 768, %v1115_v2  ;;  %v3313_v46 = vld [vmem:[#allocation107_spill] sm:$0xff]  ;;  %v3320_v54 = vld [vmem:[#allocation110_spill] sm:$0xff]  ;;  %v3322_v26 = vld [vmem:[#allocation113_spill] sm:$0xff] }
  0xa0   : > { %899 = vst.msk [vmem:[%s2339_s13 + $0xa8] sm:$0xff] %vm845_vm0, %v834_v17  ;;  %vm3300_vm9 = vcmp.gt.f32.partialorder %v3298_v31, %v3299_v47  ;;  %v454_v24 = vadd.s32 768, %v1148_v9  ;;  %v455_v34 = vadd.s32 832, %v1115_v2  ;;  %v456_v6 = vadd.s32 832, %v1148_v9  ;;  %v3319_v22 = vld [vmem:[#allocation111_spill] sm:$0xff]  ;;  %v3323_v21 = vld [vmem:[#allocation120_spill] sm:$0xff] }
  0xa1   : > { %v835_v7 = vsel %vm3300_vm9, %v803_v15, %v707_v62  ;;  %vm3303_vm10 = vcmp.gt.f32.partialorder %v3301_v13, %v3302_v33  ;;  %v804_v29 = vadd.s32 1, %v676_v18  ;;  %v549_v35 = vadd.s32 1, %v453_v23  ;;  %v3325_v15 = vld [vmem:[#allocation109_spill] sm:$0xff]  ;;  %v3326_v20 = vld [vmem:[#allocation118_spill] sm:$0xff]  ;;  %v3328_v17 = vld [vmem:[#allocation119_spill] sm:$0xff] }
  0xa2   : > { %900 = vst.msk [vmem:[%s2339_s13 + $0xb0] sm:$0xff] %vm845_vm0, %v835_v7  ;;  %v580_v28 = vsel %vm3303_vm10, %v548_v12, %v452_v44  ;;  %v677_v30 = vadd.s32 32, %v453_v23  ;;  %vm3306_vm11 = vcmp.gt.f32.partialorder %v3304_v32, %v3305_v36  ;;  %v550_v40 = vadd.s32 1, %v454_v24  ;;  %v3329_v12 = vld [vmem:[#allocation126_spill] sm:$0xff]  ;;  %v3331_v31 = vld [vmem:[#allocation117_spill] sm:$0xff]  ;;  %v3332_v47 = vld [vmem:[#allocation124_spill] sm:$0xff] }
  0xa3   : > { %v708_v39 = vsel %vm3306_vm11, %v676_v18, %v580_v28  ;;  %v678_v41 = vadd.s32 32, %v454_v24  ;;  %v551_v38 = vadd.s32 1, %v455_v34  ;;  %vm3309_vm12 = vcmp.gt.f32.partialorder %v3307_v43, %v3308_v45  ;;  %v3334_v33 = vld [vmem:[#allocation125_spill] sm:$0xff]  ;;  %v3335_v28 = vld [vmem:[#allocation130_spill] sm:$0xff]  ;;  %v3337_v36 = vld [vmem:[#allocation116_spill] sm:$0xff] }
  0xa4   : > { %v836_v48 = vsel %vm3309_vm12, %v804_v29, %v708_v39  ;;  %vm3312_vm15 = vcmp.gt.f32.partialorder %v3310_v49, %v3311_v53  ;;  %v805_v44 = vadd.s32 1, %v677_v30  ;;  %v679_v11 = vadd.s32 32, %v455_v34  ;;  %v3338_v39 = vld [vmem:[#allocation115_spill] sm:$0xff]  ;;  %v3340_v45 = vld [vmem:[#allocation121_spill] sm:$0xff] }
  0xa5   : > { %v581_v58 = vsel %vm3312_vm15, %v549_v35, %v453_v23  ;;  %901 = vst.msk [vmem:[%s2339_s13 + $0xb8] sm:$0xff] %vm845_vm0, %v836_v48  ;;  %vm3315_vm2 = vcmp.gt.f32.partialorder %v3313_v46, %v3314_v25  ;;  %vm3318_vm4 = vcmp.gt.f32.partialorder %v3316_v14, %v3317_v51  ;;  %v806_v61 = vadd.s32 1, %v678_v41  ;;  %v3341_v48 = vld [vmem:[#allocation129_spill] sm:$0xff]  ;;  %v3349_v51 = vld [vmem:[#allocation128_spill] sm:$0xff] }
  0xa6   : > { %v709_v50 = vsel %vm3315_vm2, %v677_v30, %v581_v58  ;;  %v582_v57 = vsel %vm3318_vm4, %v550_v40, %v454_v24  ;;  %vm3321_vm5 = vcmp.gt.f32.partialorder %v3319_v22, %v3320_v54  ;;  %vm3324_vm7 = vcmp.gt.f32.partialorder %v3322_v26, %v3323_v21  ;;  %v3355_v26 = vld [vmem:[#allocation131_spill] sm:$0xff] }
  0xa7   : > { %v583_v63 = vsel %vm3321_vm5, %v551_v38, %v455_v34  ;;  %v837_v62 = vsel %vm3324_vm7, %v805_v44, %v709_v50  ;;  %vm3327_vm8 = vcmp.gt.f32.partialorder %v3325_v15, %v3326_v20  ;;  %vm3330_vm9 = vcmp.gt.f32.partialorder %v3328_v17, %v3329_v12  ;;  %v3347_v50 = vld [vmem:[#allocation133_spill] sm:$0xff]  ;;  %v3356_v21 = vld [vmem:[#allocation135_spill] sm:$0xff] }
  0xa8   : > { %v710_v27 = vsel %vm3327_vm8, %v678_v41, %v582_v57  ;;  %v711_v18 = vsel %vm3330_vm9, %v679_v11, %v583_v63  ;;  %v807_v23 = vadd.s32 1, %v679_v11  ;;  %902 = vst.msk [vmem:[%s2339_s13 + $0xc0] sm:$0xff] %vm845_vm0, %v837_v62  ;;  %vm3333_vm10 = vcmp.gt.f32.partialorder %v3331_v31, %v3332_v47  ;;  %v3345_v11 = vld [vmem:[#allocation122_spill] sm:$0xff]  ;;  %v3350_v57 = vld [vmem:[#allocation127_spill] sm:$0xff] }
  0xa9   : > { %v838_v7 = vsel %vm3333_vm10, %v806_v61, %v710_v27  ;;  %v552_v24 = vadd.s32 1, %v456_v6  ;;  %v680_v34 = vadd.s32 32, %v456_v6  ;;  %v457_v13 = vadd.s32 896, %v1115_v2 }
  0xaa   : > { %903 = vst.msk [vmem:[%s2339_s13 + $0xc8] sm:$0xff] %vm845_vm0, %v838_v7  ;;  %vm3336_vm11 = vcmp.gt.f32.partialorder %v3334_v33, %v3335_v28  ;;  %v458_v35 = vadd.s32 896, %v1148_v9  ;;  %v459_v30 = vadd.s32 960, %v1115_v2  ;;  %v460_v32 = vadd.s32 960, %v1148_v9  ;;  %v3344_v9 = vld [vmem:[#allocation123_spill] sm:$0xff] }
  0xab   : > { %v839_v29 = vsel %vm3336_vm11, %v807_v23, %v711_v18  ;;  %vm3339_vm12 = vcmp.gt.f32.partialorder %v3337_v36, %v3338_v39  ;;  %v808_v41 = vadd.s32 1, %v680_v34  ;;  %v553_v38 = vadd.s32 1, %v457_v13 }
  0xac   : > { %904 = vst.msk [vmem:[%s2339_s13 + $0xd0] sm:$0xff] %vm845_vm0, %v839_v29  ;;  %v584_v40 = vsel %vm3339_vm12, %v552_v24, %v456_v6  ;;  %v681_v43 = vadd.s32 32, %v457_v13  ;;  %vm3342_vm15 = vcmp.gt.f32.partialorder %v3340_v45, %v3341_v48  ;;  %v554_v53 = vadd.s32 1, %v458_v35 }
  0xad   : > { %v712_v49 = vsel %vm3342_vm15, %v680_v34, %v584_v40  ;;  %v682_v58 = vadd.s32 32, %v458_v35  ;;  %v555_v44 = vadd.s32 1, %v459_v30  ;;  %vm3343_vm2 = vcmp.gt.f32.partialorder %v2201_v16, %v2249_v10 }
  0xae   : > { %v840_v2 = vsel %vm3343_vm2, %v808_v41, %v712_v49  ;;  %vm3346_vm4 = vcmp.gt.f32.partialorder %v3344_v9, %v3345_v11  ;;  %v809_v6 = vadd.s32 1, %v681_v43  ;;  %v683_v25 = vadd.s32 32, %v459_v30 }
  0xaf   : > { %v585_v46 = vsel %vm3346_vm4, %v553_v38, %v457_v13  ;;  %905 = vst.msk [vmem:[%s2339_s13 + $0xd8] sm:$0xff] %vm845_vm0, %v840_v2  ;;  %vm3348_vm5 = vcmp.gt.f32.partialorder %v2211_v3, %v3347_v50  ;;  %vm3351_vm7 = vcmp.gt.f32.partialorder %v3349_v51, %v3350_v57  ;;  %v810_v10 = vadd.s32 1, %v682_v58 }
  0xb0   : > { %v713_v14 = vsel %vm3348_vm5, %v681_v43, %v585_v46  ;;  %v586_v61 = vsel %vm3351_vm7, %v554_v53, %v458_v35  ;;  %vm3352_vm8 = vcmp.gt.f32.partialorder %v2238_v55, %v2235_v37  ;;  %vm3357_vm9 = vcmp.gt.f32.partialorder %v3355_v26, %v3356_v21 }
  0xb1   : > { %v587_v16 = vsel %vm3352_vm8, %v555_v44, %v459_v30  ;;  %v841_v63 = vsel %vm745_vm14, %v809_v6, %v713_v14  ;;  %v714_v62 = vsel %vm3357_vm9, %v682_v58, %v586_v61  ;;  %v811_v15 = vadd.s32 1, %v683_v25 }
  0xb2   : > { %v715_v3 = vsel %vm619_vm1, %v683_v25, %v587_v16  ;;  %906 = vst.msk [vmem:[%s2339_s13 + $0xe0] sm:$0xff] %vm845_vm0, %v841_v63  ;;  %vm3358_vm10 = vcmp.gt.f32.partialorder %v2279_v8, %v2321_v59  ;;  %v556_v37 = vadd.s32 1, %v460_v32  ;;  %v684_v20 = vadd.s32 32, %v460_v32 }
  0xb3   : > { %v842_v55 = vsel %vm3358_vm10, %v810_v10, %v714_v62  ;;  %v843_v27 = vsel %vm747_vm3, %v811_v15, %v715_v3  ;;  %vm3360_vm14 = vcmp.gt.f32.partialorder %v2267_v56, %v3359_v5 }
  0xb4   : > { %907 = vst.msk [vmem:[%s2339_s13 + $0xe8] sm:$0xff] %vm845_vm0, %v842_v55  ;;  %908 = vst.msk [vmem:[%s2339_s13 + $0xf0] sm:$0xff] %vm845_vm0, %v843_v27  ;;  %v588_v4 = vsel %vm3360_vm14, %v556_v37, %v460_v32  ;;  %v812_v17 = vadd.s32 1, %v684_v20 }
  0xb5   : > { %v716_v8 = vsel %vm620_vm13, %v684_v20, %v588_v4 }
  0xb6   : > { %v844_v59 = vsel %vm748_vm6, %v812_v17, %v716_v8 }
  0xb7   : > { %909 = vst.msk [vmem:[%s2339_s13 + $0xf8] sm:$0xff] %vm845_vm0, %v844_v59 }
  0xb8 PF: > { %s16_s18 = sadd.s32 1, %s1073_s18  }
  0xb9   : > { %p13_p4 = scmp.ge.s32.totalorder %s16_s18, 4  }
  0xbb   :  { %15 = sbr.rel (!%p13_p4) target bundleno = 1 (0x1), region = 87 }

// kernel: encoder_forward.10
= control target key start
LH: loop header
LB: loop body
LE: loop exit
PB: predicated region body
PF: predicated region fallthrough
CT: control target
= control target key end

     0   :  { %s3024_s12 = smov 0   ;;  %s6323_s0 = inlined_call_operand.vmem [shape: f32[2,1024,196], index: 0, kind: input, shape index: {}]   ;;  %s6324_s1 = inlined_call_operand.vmem [shape: f32[196,16], index: 1, kind: input, shape index: {}]   ;;  %s6325_s2 = inlined_call_operand.vmem [shape: f32[1,16], index: 2, kind: input, shape index: {}]   ;;  %s6326_s3 = inlined_call_operand.vmem [shape: f32[2,1024,16], index: 3, kind: output, shape index: {}]  }
   0x1 LB: > { %s2776_s13 = sadd.s32 4294967295, %s3000_s12   ;;  %p2780_p0 = scmp.ge.s32.totalorder %s3000_s12, 1  ;;  %s3000_s12 = sphi %s3024_s12, %s13_s12  }
   0x2   : > { %p137_p1 = scmp.lt.s32.totalorder %s3000_s12, 3 }
   0x4   : > { %p138_p2 = pnand %p2780_p0, %p137_p1 }
   0x6   : > { %141 = sbr.rel (%p138_p2) target bundleno = 1031 (0x407), region = 32 }
   0xd   : > { %v427_v0 = vld [vmem:[%s6324_s1] sm:$0xff]  ;;  %v428_v1 = vld [vmem:[%s6324_s1 + $0x8] sm:$0xff]  ;;  %v429_v2 = vld [vmem:[%s6324_s1 + $0x10] sm:$0xff]  ;;  %v3002_v3 = vmov 0.0|0.0   ;;  %p161_p3 = scmp.lt.s32.totalorder %s2776_s13, 1  ;;  %vm459_vm0 = vcmask 556032  }
   0xe   : > { %2919 = vmatprep.subr.bf16.mxu0 %v3002_v3  ;;  %v2920_v4 = vpack.c.bf16 %v428_v1, %v427_v0  ;;  %v430_v5 = vld [vmem:[%s6324_s1 + $0x18] sm:$0xff]  ;;  %2955 = vmatprep.subr.bf16.mxu1 %v3002_v3  ;;  %v431_v7 = vld [vmem:[%s6324_s1 + $0x20] sm:$0xff]  ;;  %v432_v8 = vld [vmem:[%s6324_s1 + $0x28] sm:$0xff]  ;;  %v3003_v38 = vmov 0.0   ;;  %vm844_vm1 = vcmask 1043456   ;;  %vm1681_vm2 = vcmask 130048  }
   0xf   : > { %v2923_v6 = vpack.c.bf16 %v430_v5, %v429_v2  ;;  %s7121_s13 = smov (!%p161_p3, %s2776_s13), 1  ;;  %v2926_v9 = vpack.c.bf16 %v432_v8, %v431_v7  ;;  %v433_v10 = vld [vmem:[%s6324_s1 + $0x30] sm:$0xff]  ;;  %v434_v11 = vld [vmem:[%s6324_s1 + $0x38] sm:$0xff]  ;;  %v435_v14 = vld [vmem:[%s6324_s1 + $0x40] sm:$0xff] }
  0x10   : > { %2921 = vmatpush1.bf16.msra.mxu0 %v2920_v4  ;;  %2968 = vmatpush1.bf16.msra.mxu1 %v2920_v4  ;;  %s2917_s26 = sshll.u32 %s7121_s13, 11  ;;  %v2929_v13 = vpack.c.bf16 %v434_v11, %v433_v10  ;;  %v436_v15 = vld [vmem:[%s6324_s1 + $0x48] sm:$0xff]  ;;  %v437_v17 = vld [vmem:[%s6324_s1 + $0x50] sm:$0xff]  ;;  %v438_v18 = vld [vmem:[%s6324_s1 + $0x58] sm:$0xff]  ;;  %s2918_s22 = sshll.u32 %s7121_s13, 10 }
  0x11   : > { %2922 = vmatprep.subr.bf16.mxu0 %v3002_v3  ;;  %2956 = vmatprep.subr.bf16.mxu1 %v3002_v3  ;;  %s3060_s29 = scalar_lea.vmem %s6323_s0, %s2917_s26  ;;  %v2932_v16 = vpack.c.bf16 %v436_v15, %v435_v14  ;;  %v2935_v19 = vpack.c.bf16 %v438_v18, %v437_v17  ;;  %v439_v20 = vld [vmem:[%s6324_s1 + $0x60] sm:$0xff]  ;;  %v440_v21 = vld [vmem:[%s6324_s1 + $0x68] sm:$0xff]  ;;  %v441_v23 = vld [vmem:[%s6324_s1 + $0x70] sm:$0xff]  ;;  %s5806_s25 = scalar_lea.vmem %s6326_s3, %s2918_s22 }
  0x12   : > { %v172_v12 = vld [vmem:[%s3060_s29 + $0x8] sm:$0xff]  ;;  %v2938_v22 = vpack.c.bf16 %v440_v21, %v439_v20  ;;  %v442_v24 = vld [vmem:[%s6324_s1 + $0x78] sm:$0xff]  ;;  %v443_v26 = vld [vmem:[%s6324_s1 + $0x80] sm:$0xff] }
  0x13   : > { %2787 = vmatprep.mubr.msk.f32.mxu0 %vm459_vm0, %v172_v12  ;;  %v2941_v25 = vpack.c.bf16 %v442_v24, %v441_v23  ;;  %v444_v27 = vld [vmem:[%s6324_s1 + $0x88] sm:$0xff]  ;;  %v445_v29 = vld [vmem:[%s6324_s1 + $0x90] sm:$0xff]  ;;  %v446_v30 = vld [vmem:[%s6324_s1 + $0x98] sm:$0xff] }
  0x14   : > { %2924 = vmatpush1.bf16.msra.mxu0 %v2923_v6  ;;  %2969 = vmatpush1.bf16.msra.mxu1 %v2923_v6  ;;  %v2944_v28 = vpack.c.bf16 %v444_v27, %v443_v26  ;;  %v2947_v31 = vpack.c.bf16 %v446_v30, %v445_v29  ;;  %v447_v32 = vld [vmem:[%s6324_s1 + $0xa0] sm:$0xff]  ;;  %v448_v33 = vld [vmem:[%s6324_s1 + $0xa8] sm:$0xff]  ;;  %v449_v35 = vld [vmem:[%s6324_s1 + $0xb0] sm:$0xff] }
  0x15   : > { %2925 = vmatprep.subr.bf16.mxu0 %v3002_v3  ;;  %2957 = vmatprep.subr.bf16.mxu1 %v3002_v3  ;;  %v2950_v34 = vpack.c.bf16 %v448_v33, %v447_v32  ;;  %v450_v36 = vld [vmem:[%s6324_s1 + $0xb8] sm:$0xff]  ;;  %v451_v39 = vld [vmem:[%s6324_s1 + $0xc0] sm:$0xf]  ;;  %v300_v40 = vld [vmem:[%s3060_s29 + $0x408] sm:$0xff] }
  0x16   : > { %v2953_v37 = vpack.c.bf16 %v450_v36, %v449_v35  ;;  %v171_v41 = vld [vmem:[%s3060_s29] sm:$0xff]  ;;  %2851 = vmatprep.mubr.msk.f32.mxu1 %vm459_vm0, %v300_v40  ;;  %v174_v43 = vld [vmem:[%s3060_s29 + $0x18] sm:$0xff]  ;;  %v173_v45 = vld [vmem:[%s3060_s29 + $0x10] sm:$0xff] }
  0x17   : > { %v299_v42 = vld [vmem:[%s3060_s29 + $0x400] sm:$0xff]  ;;  %v302_v44 = vld [vmem:[%s3060_s29 + $0x418] sm:$0xff]  ;;  %v301_v46 = vld [vmem:[%s3060_s29 + $0x410] sm:$0xff] }
  0x18   : > { %2927 = vmatpush1.bf16.msra.mxu0 %v2926_v9  ;;  %2970 = vmatpush1.bf16.msra.mxu1 %v2926_v9  ;;  %v176_v47 = vld [vmem:[%s3060_s29 + $0x28] sm:$0xff]  ;;  %v175_v49 = vld [vmem:[%s3060_s29 + $0x20] sm:$0xff]  ;;  %v178_v51 = vld [vmem:[%s3060_s29 + $0x38] sm:$0xff] }
  0x19   : > { %2928 = vmatprep.subr.bf16.mxu0 %v3002_v3  ;;  %2958 = vmatprep.subr.bf16.mxu1 %v3002_v3  ;;  %v304_v48 = vld [vmem:[%s3060_s29 + $0x428] sm:$0xff]  ;;  %v303_v50 = vld [vmem:[%s3060_s29 + $0x420] sm:$0xff]  ;;  %v306_v52 = vld [vmem:[%s3060_s29 + $0x438] sm:$0xff] }
  0x1a   : > { %v177_v53 = vld [vmem:[%s3060_s29 + $0x30] sm:$0xff]  ;;  %v180_v55 = vld [vmem:[%s3060_s29 + $0x48] sm:$0xff]  ;;  %v179_v57 = vld [vmem:[%s3060_s29 + $0x40] sm:$0xff] }
  0x1b   : > { %v305_v54 = vld [vmem:[%s3060_s29 + $0x430] sm:$0xff]  ;;  %v308_v56 = vld [vmem:[%s3060_s29 + $0x448] sm:$0xff]  ;;  %v307_v58 = vld [vmem:[%s3060_s29 + $0x440] sm:$0xff] }
  0x1c   : > { %2930 = vmatpush1.bf16.msra.mxu0 %v2929_v13  ;;  %2971 = vmatpush1.bf16.msra.mxu1 %v2929_v13  ;;  %v182_v59 = vld [vmem:[%s3060_s29 + $0x58] sm:$0xff]  ;;  %v181_v61 = vld [vmem:[%s3060_s29 + $0x50] sm:$0xff]  ;;  %v184_v63 = vld [vmem:[%s3060_s29 + $0x68] sm:$0xff] }
  0x1d   : > { %2931 = vmatprep.subr.bf16.mxu0 %v3002_v3  ;;  %2959 = vmatprep.subr.bf16.mxu1 %v3002_v3  ;;  %v310_v60 = vld [vmem:[%s3060_s29 + $0x458] sm:$0xff]  ;;  %v309_v62 = vld [vmem:[%s3060_s29 + $0x450] sm:$0xff]  ;;  %v312_v0 = vld [vmem:[%s3060_s29 + $0x468] sm:$0xff] }
  0x1e   : > { %v183_v1 = vld [vmem:[%s3060_s29 + $0x60] sm:$0xff]  ;;  %v314_v4 = vld [vmem:[%s3060_s29 + $0x478] sm:$0xff]  ;;  %v185_v5 = vld [vmem:[%s3060_s29 + $0x70] sm:$0xff] }
  0x1f   : > { %v311_v2 = vld [vmem:[%s3060_s29 + $0x460] sm:$0xff]  ;;  %v313_v6 = vld [vmem:[%s3060_s29 + $0x470] sm:$0xff]  ;;  %v188_v7 = vld [vmem:[%s3060_s29 + $0x88] sm:$0xff] }
  0x20   : > { %2933 = vmatpush1.bf16.msra.mxu0 %v2932_v16  ;;  %2972 = vmatpush1.bf16.msra.mxu1 %v2932_v16  ;;  %v316_v8 = vld [vmem:[%s3060_s29 + $0x488] sm:$0xff]  ;;  %v187_v9 = vld [vmem:[%s3060_s29 + $0x80] sm:$0xff]  ;;  %v190_v11 = vld [vmem:[%s3060_s29 + $0x98] sm:$0xff] }
  0x21   : > { %2934 = vmatprep.subr.bf16.mxu0 %v3002_v3  ;;  %2960 = vmatprep.subr.bf16.mxu1 %v3002_v3  ;;  %v315_v10 = vld [vmem:[%s3060_s29 + $0x480] sm:$0xff]  ;;  %v318_v12 = vld [vmem:[%s3060_s29 + $0x498] sm:$0xff]  ;;  %v189_v13 = vld [vmem:[%s3060_s29 + $0x90] sm:$0xff] }
  0x22   : > { %v317_v14 = vld [vmem:[%s3060_s29 + $0x490] sm:$0xff]  ;;  %v192_v15 = vld [vmem:[%s3060_s29 + $0xa8] sm:$0xff]  ;;  %v191_v17 = vld [vmem:[%s3060_s29 + $0xa0] sm:$0xff] }
  0x23   : > { %v320_v16 = vld [vmem:[%s3060_s29 + $0x4a8] sm:$0xff]  ;;  %v319_v18 = vld [vmem:[%s3060_s29 + $0x4a0] sm:$0xff]  ;;  %v322_v20 = vld [vmem:[%s3060_s29 + $0x4b8] sm:$0xff] }
  0x24   : > { %2936 = vmatpush1.bf16.msra.mxu0 %v2935_v19  ;;  %2973 = vmatpush1.bf16.msra.mxu1 %v2935_v19  ;;  %v194_v19 = vld [vmem:[%s3060_s29 + $0xb8] sm:$0xff]  ;;  %v193_v21 = vld [vmem:[%s3060_s29 + $0xb0] sm:$0xff]  ;;  %v196_v23 = vld [vmem:[%s3060_s29 + $0xc8] sm:$0xff] }
  0x25   : > { %2937 = vmatprep.subr.bf16.mxu0 %v3002_v3  ;;  %2961 = vmatprep.subr.bf16.mxu1 %v3002_v3  ;;  %v324_v24 = vld [vmem:[%s3060_s29 + $0x4c8] sm:$0xff]  ;;  %v323_v26 = vld [vmem:[%s3060_s29 + $0x4c0] sm:$0xff]  ;;  %v198_v27 = vld [vmem:[%s3060_s29 + $0xd8] sm:$0xff] }
  0x26   : > { %v197_v29 = vld [vmem:[%s3060_s29 + $0xd0] sm:$0xff]  ;;  %v328_v32 = vld [vmem:[%s3060_s29 + $0x4e8] sm:$0xff]  ;;  %v199_v33 = vld [vmem:[%s3060_s29 + $0xe0] sm:$0xff] }
  0x27   : > { %v325_v30 = vld [vmem:[%s3060_s29 + $0x4d0] sm:$0xff]  ;;  %v202_v35 = vld [vmem:[%s3060_s29 + $0xf8] sm:$0xff]  ;;  %v332_v40 = vld [vmem:[%s3060_s29 + $0x508] sm:$0xff] }
  0x28   : > { %2939 = vmatpush1.bf16.msra.mxu0 %v2938_v22  ;;  %2974 = vmatpush1.bf16.msra.mxu1 %v2938_v22  ;;  %v321_v22 = vld [vmem:[%s3060_s29 + $0x4b0] sm:$0xff]  ;;  %v330_v36 = vld [vmem:[%s3060_s29 + $0x4f8] sm:$0xff] }
  0x29   : > { %2940 = vmatprep.subr.bf16.mxu0 %v3002_v3  ;;  %2962 = vmatprep.subr.bf16.mxu1 %v3002_v3 }
  0x2c   : > { %2942 = vmatpush1.bf16.msra.mxu0 %v2941_v25  ;;  %2975 = vmatpush1.bf16.msra.mxu1 %v2941_v25  ;;  %v195_v25 = vld [vmem:[%s3060_s29 + $0xc0] sm:$0xff] }
  0x2d   : > { %2943 = vmatprep.subr.bf16.mxu0 %v3002_v3  ;;  %2963 = vmatprep.subr.bf16.mxu1 %v3002_v3 }
  0x30   : > { %2945 = vmatpush1.bf16.msra.mxu0 %v2944_v28  ;;  %2976 = vmatpush1.bf16.msra.mxu1 %v2944_v28  ;;  %v326_v28 = vld [vmem:[%s3060_s29 + $0x4d8] sm:$0xff] }
  0x31   : > { %2946 = vmatprep.subr.bf16.mxu0 %v3002_v3  ;;  %2964 = vmatprep.subr.bf16.mxu1 %v3002_v3 }
  0x34   : > { %2948 = vmatpush1.bf16.msra.mxu0 %v2947_v31  ;;  %2977 = vmatpush1.bf16.msra.mxu1 %v2947_v31  ;;  %v200_v31 = vld [vmem:[%s3060_s29 + $0xe8] sm:$0xff] }
  0x35   : > { %2949 = vmatprep.subr.bf16.mxu0 %v3002_v3  ;;  %2965 = vmatprep.subr.bf16.mxu1 %v3002_v3 }
  0x38   : > { %2951 = vmatpush1.bf16.msra.mxu0 %v2950_v34  ;;  %2978 = vmatpush1.bf16.msra.mxu1 %v2950_v34  ;;  %v327_v34 = vld [vmem:[%s3060_s29 + $0x4e0] sm:$0xff] }
  0x39   : > { %2952 = vmatprep.subr.bf16.mxu0 %v3002_v3  ;;  %2966 = vmatprep.subr.bf16.mxu1 %v3002_v3  ;;  %v186_v3 = vld [vmem:[%s3060_s29 + $0x78] sm:$0xff] }
  0x3c   : > { %2954 = vmatpush1.bf16.msra.mxu0 %v2953_v37  ;;  %2979 = vmatpush1.bf16.msra.mxu1 %v2953_v37  ;;  %v201_v37 = vld [vmem:[%s3060_s29 + $0xf0] sm:$0xff] }
  0x3d   : > { %896 = vmatprep.subr.mxu0 %v3003_v38  ;;  %2967 = vmatprep.subr.mxu1 %v3003_v38  ;;  %v329_v38 = vld [vmem:[%s3060_s29 + $0x4f0] sm:$0xff] }
  0x40   : > { %2786 = vmatpush1.msk.msra.mxu0 %vm844_vm1, %v451_v39  ;;  %2980 = vmatpush1.msk.msra.mxu1 %vm844_vm1, %v451_v39  ;;  %v204_v39 = vld [vmem:[%s3060_s29 + $0x108] sm:$0xff] }
  0x41   : > { %913 = vmatmul.mubr.f32.vlgmr.msra.gmra.mrb[0].mxu0 %v171_v41  ;;  %1233 = vmatmul.mubr.f32.vlgmr.msra.gmra.mrb[0].mxu1 %v299_v42  ;;  %v203_v41 = vld [vmem:[%s3060_s29 + $0x100] sm:$0xff] }
  0x42   : > { %2788 = vmatprep.mubr.msk.f32.mxu0 %vm459_vm0, %v174_v43  ;;  %2852 = vmatprep.mubr.msk.f32.mxu1 %vm459_vm0, %v302_v44  ;;  %v331_v42 = vld [vmem:[%s3060_s29 + $0x500] sm:$0xff]  ;;  %v206_v43 = vld [vmem:[%s3060_s29 + $0x118] sm:$0xff] }
  0x43   : > { %v334_v44 = vld [vmem:[%s3060_s29 + $0x518] sm:$0xff] }
  0x45   : > { %918 = vmatmul.mubr.f32.gmra.mrb[2].mxu0 %v173_v45  ;;  %1238 = vmatmul.mubr.f32.gmra.mrb[2].mxu1 %v301_v46  ;;  %v205_v45 = vld [vmem:[%s3060_s29 + $0x110] sm:$0xff] }
  0x46   : > { %2789 = vmatprep.mubr.msk.f32.mxu0 %vm459_vm0, %v176_v47  ;;  %2853 = vmatprep.mubr.msk.f32.mxu1 %vm459_vm0, %v304_v48  ;;  %v333_v46 = vld [vmem:[%s3060_s29 + $0x510] sm:$0xff]  ;;  %v208_v47 = vld [vmem:[%s3060_s29 + $0x128] sm:$0xff] }
  0x47   : > { %v336_v48 = vld [vmem:[%s3060_s29 + $0x528] sm:$0xff] }
  0x49   : > { %923 = vmatmul.mubr.f32.gmra.mrb[4].mxu0 %v175_v49  ;;  %1243 = vmatmul.mubr.f32.gmra.mrb[4].mxu1 %v303_v50  ;;  %v207_v49 = vld [vmem:[%s3060_s29 + $0x120] sm:$0xff] }
  0x4a   : > { %2790 = vmatprep.mubr.msk.f32.mxu0 %vm459_vm0, %v178_v51  ;;  %2854 = vmatprep.mubr.msk.f32.mxu1 %vm459_vm0, %v306_v52  ;;  %v335_v50 = vld [vmem:[%s3060_s29 + $0x520] sm:$0xff]  ;;  %v210_v51 = vld [vmem:[%s3060_s29 + $0x138] sm:$0xff] }
  0x4b   : > { %v338_v52 = vld [vmem:[%s3060_s29 + $0x538] sm:$0xff] }
  0x4d   : > { %928 = vmatmul.mubr.f32.gmra.mrb[6].mxu0 %v177_v53  ;;  %1248 = vmatmul.mubr.f32.gmra.mrb[6].mxu1 %v305_v54  ;;  %v209_v53 = vld [vmem:[%s3060_s29 + $0x130] sm:$0xff] }
  0x4e   : > { %2791 = vmatprep.mubr.msk.f32.mxu0 %vm459_vm0, %v180_v55  ;;  %2855 = vmatprep.mubr.msk.f32.mxu1 %vm459_vm0, %v308_v56  ;;  %v337_v54 = vld [vmem:[%s3060_s29 + $0x530] sm:$0xff]  ;;  %v212_v55 = vld [vmem:[%s3060_s29 + $0x148] sm:$0xff] }
  0x4f   : > { %v340_v56 = vld [vmem:[%s3060_s29 + $0x548] sm:$0xff] }
  0x51   : > { %933 = vmatmul.mubr.f32.gmra.mrb[8].mxu0 %v179_v57  ;;  %1253 = vmatmul.mubr.f32.gmra.mrb[8].mxu1 %v307_v58  ;;  %v211_v57 = vld [vmem:[%s3060_s29 + $0x140] sm:$0xff] }
  0x52   : > { %2792 = vmatprep.mubr.msk.f32.mxu0 %vm459_vm0, %v182_v59  ;;  %2856 = vmatprep.mubr.msk.f32.mxu1 %vm459_vm0, %v310_v60  ;;  %v339_v58 = vld [vmem:[%s3060_s29 + $0x540] sm:$0xff]  ;;  %v214_v59 = vld [vmem:[%s3060_s29 + $0x158] sm:$0xff] }
  0x53   : > { %v342_v60 = vld [vmem:[%s3060_s29 + $0x558] sm:$0xff] }
  0x55   : > { %938 = vmatmul.mubr.f32.gmra.mrb[10].mxu0 %v181_v61  ;;  %1258 = vmatmul.mubr.f32.gmra.mrb[10].mxu1 %v309_v62  ;;  %v213_v61 = vld [vmem:[%s3060_s29 + $0x150] sm:$0xff]  ;;  %v216_v62 = vld [vmem:[%s3060_s29 + $0x168] sm:$0xff] }
  0x56   : > { %2793 = vmatprep.mubr.msk.f32.mxu0 %vm459_vm0, %v184_v63  ;;  %2857 = vmatprep.mubr.msk.f32.mxu1 %vm459_vm0, %v312_v0  ;;  %v341_v63 = vld [vmem:[%s3060_s29 + $0x550] sm:$0xff]  ;;  %v215_v0 = vld [vmem:[%s3060_s29 + $0x160] sm:$0xff] }
  0x59   : > { %943 = vmatmul.mubr.f32.gmra.mrb[12].mxu0 %v183_v1  ;;  %1263 = vmatmul.mubr.f32.gmra.mrb[12].mxu1 %v311_v2  ;;  %v344_v1 = vld [vmem:[%s3060_s29 + $0x568] sm:$0xff]  ;;  %v218_v2 = vld [vmem:[%s3060_s29 + $0x178] sm:$0xff] }
  0x5a   : > { %2794 = vmatprep.mubr.msk.f32.mxu0 %vm459_vm0, %v186_v3  ;;  %2858 = vmatprep.mubr.msk.f32.mxu1 %vm459_vm0, %v314_v4  ;;  %v343_v3 = vld [vmem:[%s3060_s29 + $0x560] sm:$0xff]  ;;  %v217_v4 = vld [vmem:[%s3060_s29 + $0x170] sm:$0xff] }
  0x5d   : > { %948 = vmatmul.mubr.f32.gmra.mrb[14].mxu0 %v185_v5  ;;  %1268 = vmatmul.mubr.f32.gmra.mrb[14].mxu1 %v313_v6  ;;  %v346_v5 = vld [vmem:[%s3060_s29 + $0x578] sm:$0xff]  ;;  %v220_v6 = vld [vmem:[%s3060_s29 + $0x188] sm:$0xff] }
  0x5e   : > { %2795 = vmatprep.mubr.msk.f32.mxu0 %vm459_vm0, %v188_v7  ;;  %2859 = vmatprep.mubr.msk.f32.mxu1 %vm459_vm0, %v316_v8  ;;  %v345_v7 = vld [vmem:[%s3060_s29 + $0x570] sm:$0xff]  ;;  %v219_v8 = vld [vmem:[%s3060_s29 + $0x180] sm:$0xff] }
  0x61   : > { %953 = vmatmul.mubr.f32.gmra.mrb[16].mxu0 %v187_v9  ;;  %1273 = vmatmul.mubr.f32.gmra.mrb[16].mxu1 %v315_v10  ;;  %v348_v9 = vld [vmem:[%s3060_s29 + $0x588] sm:$0xff]  ;;  %v222_v10 = vld [vmem:[%s3060_s29 + $0x198] sm:$0xff] }
  0x62   : > { %2796 = vmatprep.mubr.msk.f32.mxu0 %vm459_vm0, %v190_v11  ;;  %2860 = vmatprep.mubr.msk.f32.mxu1 %vm459_vm0, %v318_v12  ;;  %v347_v11 = vld [vmem:[%s3060_s29 + $0x580] sm:$0xff]  ;;  %v221_v12 = vld [vmem:[%s3060_s29 + $0x190] sm:$0xff] }
  0x65   : > { %958 = vmatmul.mubr.f32.gmra.mrb[18].mxu0 %v189_v13  ;;  %1278 = vmatmul.mubr.f32.gmra.mrb[18].mxu1 %v317_v14  ;;  %v350_v13 = vld [vmem:[%s3060_s29 + $0x598] sm:$0xff]  ;;  %v224_v14 = vld [vmem:[%s3060_s29 + $0x1a8] sm:$0xff] }
  0x66   : > { %2797 = vmatprep.mubr.msk.f32.mxu0 %vm459_vm0, %v192_v15  ;;  %2861 = vmatprep.mubr.msk.f32.mxu1 %vm459_vm0, %v320_v16  ;;  %v349_v15 = vld [vmem:[%s3060_s29 + $0x590] sm:$0xff]  ;;  %v223_v16 = vld [vmem:[%s3060_s29 + $0x1a0] sm:$0xff] }
  0x69   : > { %963 = vmatmul.mubr.f32.gmra.mrb[20].mxu0 %v191_v17  ;;  %1283 = vmatmul.mubr.f32.gmra.mrb[20].mxu1 %v319_v18  ;;  %v352_v17 = vld [vmem:[%s3060_s29 + $0x5a8] sm:$0xff]  ;;  %v226_v18 = vld [vmem:[%s3060_s29 + $0x1b8] sm:$0xff] }
  0x6a   : > { %2798 = vmatprep.mubr.msk.f32.mxu0 %vm459_vm0, %v194_v19  ;;  %2862 = vmatprep.mubr.msk.f32.mxu1 %vm459_vm0, %v322_v20  ;;  %v351_v19 = vld [vmem:[%s3060_s29 + $0x5a0] sm:$0xff]  ;;  %v225_v20 = vld [vmem:[%s3060_s29 + $0x1b0] sm:$0xff] }
  0x6d   : > { %968 = vmatmul.mubr.f32.gmra.mrb[22].mxu0 %v193_v21  ;;  %1288 = vmatmul.mubr.f32.gmra.mrb[22].mxu1 %v321_v22  ;;  %v354_v21 = vld [vmem:[%s3060_s29 + $0x5b8] sm:$0xff]  ;;  %v228_v22 = vld [vmem:[%s3060_s29 + $0x1c8] sm:$0xff] }
  0x6e   : > { %2799 = vmatprep.mubr.msk.f32.mxu0 %vm459_vm0, %v196_v23  ;;  %2863 = vmatprep.mubr.msk.f32.mxu1 %vm459_vm0, %v324_v24  ;;  %v353_v23 = vld [vmem:[%s3060_s29 + $0x5b0] sm:$0xff]  ;;  %v227_v24 = vld [vmem:[%s3060_s29 + $0x1c0] sm:$0xff] }
  0x71   : > { %973 = vmatmul.mubr.f32.gmra.mrb[24].mxu0 %v195_v25  ;;  %1293 = vmatmul.mubr.f32.gmra.mrb[24].mxu1 %v323_v26  ;;  %v356_v25 = vld [vmem:[%s3060_s29 + $0x5c8] sm:$0xff]  ;;  %v230_v26 = vld [vmem:[%s3060_s29 + $0x1d8] sm:$0xff] }
  0x72   : > { %2800 = vmatprep.mubr.msk.f32.mxu0 %vm459_vm0, %v198_v27  ;;  %2864 = vmatprep.mubr.msk.f32.mxu1 %vm459_vm0, %v326_v28  ;;  %v355_v27 = vld [vmem:[%s3060_s29 + $0x5c0] sm:$0xff]  ;;  %v229_v28 = vld [vmem:[%s3060_s29 + $0x1d0] sm:$0xff] }
  0x75   : > { %978 = vmatmul.mubr.f32.gmra.mrb[26].mxu0 %v197_v29  ;;  %1298 = vmatmul.mubr.f32.gmra.mrb[26].mxu1 %v325_v30  ;;  %v358_v29 = vld [vmem:[%s3060_s29 + $0x5d8] sm:$0xff]  ;;  %v232_v30 = vld [vmem:[%s3060_s29 + $0x1e8] sm:$0xff] }
  0x76   : > { %2801 = vmatprep.mubr.msk.f32.mxu0 %vm459_vm0, %v200_v31  ;;  %2865 = vmatprep.mubr.msk.f32.mxu1 %vm459_vm0, %v328_v32  ;;  %v357_v31 = vld [vmem:[%s3060_s29 + $0x5d0] sm:$0xff]  ;;  %v231_v32 = vld [vmem:[%s3060_s29 + $0x1e0] sm:$0xff] }
  0x79   : > { %983 = vmatmul.mubr.f32.gmra.mrb[28].mxu0 %v199_v33  ;;  %1303 = vmatmul.mubr.f32.gmra.mrb[28].mxu1 %v327_v34  ;;  %v360_v33 = vld [vmem:[%s3060_s29 + $0x5e8] sm:$0xff]  ;;  %v234_v34 = vld [vmem:[%s3060_s29 + $0x1f8] sm:$0xff] }
  0x7a   : > { %2802 = vmatprep.mubr.msk.f32.mxu0 %vm459_vm0, %v202_v35  ;;  %2866 = vmatprep.mubr.msk.f32.mxu1 %vm459_vm0, %v330_v36  ;;  %v359_v35 = vld [vmem:[%s3060_s29 + $0x5e0] sm:$0xff]  ;;  %v233_v36 = vld [vmem:[%s3060_s29 + $0x1f0] sm:$0xff] }
  0x7d   : > { %988 = vmatmul.mubr.f32.gmra.mrb[30].mxu0 %v201_v37  ;;  %1308 = vmatmul.mubr.f32.gmra.mrb[30].mxu1 %v329_v38  ;;  %v362_v37 = vld [vmem:[%s3060_s29 + $0x5f8] sm:$0xff]  ;;  %v236_v38 = vld [vmem:[%s3060_s29 + $0x208] sm:$0xff] }
  0x7e   : > { %2803 = vmatprep.mubr.msk.f32.mxu0 %vm459_vm0, %v204_v39  ;;  %2867 = vmatprep.mubr.msk.f32.mxu1 %vm459_vm0, %v332_v40  ;;  %v361_v39 = vld [vmem:[%s3060_s29 + $0x5f0] sm:$0xff]  ;;  %v235_v40 = vld [vmem:[%s3060_s29 + $0x200] sm:$0xff] }
  0x81   : > { %993 = vmatmul.mubr.f32.gmra.mrb[32].mxu0 %v203_v41  ;;  %1313 = vmatmul.mubr.f32.gmra.mrb[32].mxu1 %v331_v42  ;;  %v364_v41 = vld [vmem:[%s3060_s29 + $0x608] sm:$0xff]  ;;  %v238_v42 = vld [vmem:[%s3060_s29 + $0x218] sm:$0xff] }
  0x82   : > { %2804 = vmatprep.mubr.msk.f32.mxu0 %vm459_vm0, %v206_v43  ;;  %2868 = vmatprep.mubr.msk.f32.mxu1 %vm459_vm0, %v334_v44  ;;  %v363_v43 = vld [vmem:[%s3060_s29 + $0x600] sm:$0xff]  ;;  %v237_v44 = vld [vmem:[%s3060_s29 + $0x210] sm:$0xff] }
  0x85   : > { %998 = vmatmul.mubr.f32.gmra.mrb[34].mxu0 %v205_v45  ;;  %1318 = vmatmul.mubr.f32.gmra.mrb[34].mxu1 %v333_v46  ;;  %v366_v45 = vld [vmem:[%s3060_s29 + $0x618] sm:$0xff]  ;;  %v240_v46 = vld [vmem:[%s3060_s29 + $0x228] sm:$0xff] }
  0x86   : > { %2805 = vmatprep.mubr.msk.f32.mxu0 %vm459_vm0, %v208_v47  ;;  %2869 = vmatprep.mubr.msk.f32.mxu1 %vm459_vm0, %v336_v48  ;;  %v365_v47 = vld [vmem:[%s3060_s29 + $0x610] sm:$0xff]  ;;  %v239_v48 = vld [vmem:[%s3060_s29 + $0x220] sm:$0xff] }
  0x89   : > { %1003 = vmatmul.mubr.f32.gmra.mrb[36].mxu0 %v207_v49  ;;  %1323 = vmatmul.mubr.f32.gmra.mrb[36].mxu1 %v335_v50  ;;  %v368_v49 = vld [vmem:[%s3060_s29 + $0x628] sm:$0xff]  ;;  %v242_v50 = vld [vmem:[%s3060_s29 + $0x238] sm:$0xff] }
  0x8a   : > { %2806 = vmatprep.mubr.msk.f32.mxu0 %vm459_vm0, %v210_v51  ;;  %2870 = vmatprep.mubr.msk.f32.mxu1 %vm459_vm0, %v338_v52  ;;  %v367_v51 = vld [vmem:[%s3060_s29 + $0x620] sm:$0xff]  ;;  %v241_v52 = vld [vmem:[%s3060_s29 + $0x230] sm:$0xff] }
  0x8d   : > { %1008 = vmatmul.mubr.f32.gmra.mrb[38].mxu0 %v209_v53  ;;  %1328 = vmatmul.mubr.f32.gmra.mrb[38].mxu1 %v337_v54  ;;  %v370_v53 = vld [vmem:[%s3060_s29 + $0x638] sm:$0xff]  ;;  %v244_v54 = vld [vmem:[%s3060_s29 + $0x248] sm:$0xff] }
  0x8e   : > { %2807 = vmatprep.mubr.msk.f32.mxu0 %vm459_vm0, %v212_v55  ;;  %2871 = vmatprep.mubr.msk.f32.mxu1 %vm459_vm0, %v340_v56  ;;  %v369_v55 = vld [vmem:[%s3060_s29 + $0x630] sm:$0xff]  ;;  %v243_v56 = vld [vmem:[%s3060_s29 + $0x240] sm:$0xff] }
  0x91   : > { %1013 = vmatmul.mubr.f32.gmra.mrb[40].mxu0 %v211_v57  ;;  %1333 = vmatmul.mubr.f32.gmra.mrb[40].mxu1 %v339_v58  ;;  %v372_v57 = vld [vmem:[%s3060_s29 + $0x648] sm:$0xff]  ;;  %v246_v58 = vld [vmem:[%s3060_s29 + $0x258] sm:$0xff] }
  0x92   : > { %2808 = vmatprep.mubr.msk.f32.mxu0 %vm459_vm0, %v214_v59  ;;  %2872 = vmatprep.mubr.msk.f32.mxu1 %vm459_vm0, %v342_v60  ;;  %v371_v59 = vld [vmem:[%s3060_s29 + $0x640] sm:$0xff]  ;;  %v245_v60 = vld [vmem:[%s3060_s29 + $0x250] sm:$0xff] }
  0x95   : > { %1018 = vmatmul.mubr.f32.gmra.mrb[42].mxu0 %v213_v61  ;;  %1338 = vmatmul.mubr.f32.gmra.mrb[42].mxu1 %v341_v63  ;;  %v374_v61 = vld [vmem:[%s3060_s29 + $0x658] sm:$0xff]  ;;  %v373_v63 = vld [vmem:[%s3060_s29 + $0x650] sm:$0xff] }
  0x96   : > { %2809 = vmatprep.mubr.msk.f32.mxu0 %vm459_vm0, %v216_v62  ;;  %2873 = vmatprep.mubr.msk.f32.mxu1 %vm459_vm0, %v344_v1  ;;  %v248_v62 = vld [vmem:[%s3060_s29 + $0x268] sm:$0xff] }
  0x97   : > { %v376_v1 = vld [vmem:[%s3060_s29 + $0x668] sm:$0xff] }
  0x99   : > { %1023 = vmatmul.mubr.f32.gmra.mrb[44].mxu0 %v215_v0  ;;  %1343 = vmatmul.mubr.f32.gmra.mrb[44].mxu1 %v343_v3  ;;  %v247_v0 = vld [vmem:[%s3060_s29 + $0x260] sm:$0xff] }
  0x9a   : > { %2810 = vmatprep.mubr.msk.f32.mxu0 %vm459_vm0, %v218_v2  ;;  %2874 = vmatprep.mubr.msk.f32.mxu1 %vm459_vm0, %v346_v5  ;;  %v250_v2 = vld [vmem:[%s3060_s29 + $0x278] sm:$0xff]  ;;  %v375_v3 = vld [vmem:[%s3060_s29 + $0x660] sm:$0xff] }
  0x9b   : > { %v378_v5 = vld [vmem:[%s3060_s29 + $0x678] sm:$0xff] }
  0x9d   : > { %1028 = vmatmul.mubr.f32.gmra.mrb[46].mxu0 %v217_v4  ;;  %1348 = vmatmul.mubr.f32.gmra.mrb[46].mxu1 %v345_v7  ;;  %v249_v4 = vld [vmem:[%s3060_s29 + $0x270] sm:$0xff] }
  0x9e   : > { %2811 = vmatprep.mubr.msk.f32.mxu0 %vm459_vm0, %v220_v6  ;;  %2875 = vmatprep.mubr.msk.f32.mxu1 %vm459_vm0, %v348_v9  ;;  %v252_v6 = vld [vmem:[%s3060_s29 + $0x288] sm:$0xff]  ;;  %v377_v7 = vld [vmem:[%s3060_s29 + $0x670] sm:$0xff] }
  0x9f   : > { %v380_v9 = vld [vmem:[%s3060_s29 + $0x688] sm:$0xff] }
  0xa1   : > { %1033 = vmatmul.mubr.f32.gmra.mrb[48].mxu0 %v219_v8  ;;  %1353 = vmatmul.mubr.f32.gmra.mrb[48].mxu1 %v347_v11  ;;  %v251_v8 = vld [vmem:[%s3060_s29 + $0x280] sm:$0xff] }
  0xa2   : > { %2812 = vmatprep.mubr.msk.f32.mxu0 %vm459_vm0, %v222_v10  ;;  %2876 = vmatprep.mubr.msk.f32.mxu1 %vm459_vm0, %v350_v13  ;;  %v254_v10 = vld [vmem:[%s3060_s29 + $0x298] sm:$0xff]  ;;  %v379_v11 = vld [vmem:[%s3060_s29 + $0x680] sm:$0xff] }
  0xa3   : > { %v382_v13 = vld [vmem:[%s3060_s29 + $0x698] sm:$0xff] }
  0xa5   : > { %1038 = vmatmul.mubr.f32.gmra.mrb[50].mxu0 %v221_v12  ;;  %1358 = vmatmul.mubr.f32.gmra.mrb[50].mxu1 %v349_v15  ;;  %v253_v12 = vld [vmem:[%s3060_s29 + $0x290] sm:$0xff] }
  0xa6   : > { %2813 = vmatprep.mubr.msk.f32.mxu0 %vm459_vm0, %v224_v14  ;;  %2877 = vmatprep.mubr.msk.f32.mxu1 %vm459_vm0, %v352_v17  ;;  %v256_v14 = vld [vmem:[%s3060_s29 + $0x2a8] sm:$0xff]  ;;  %v381_v15 = vld [vmem:[%s3060_s29 + $0x690] sm:$0xff] }
  0xa7   : > { %v384_v17 = vld [vmem:[%s3060_s29 + $0x6a8] sm:$0xff] }
  0xa9   : > { %1043 = vmatmul.mubr.f32.gmra.mrb[52].mxu0 %v223_v16  ;;  %1363 = vmatmul.mubr.f32.gmra.mrb[52].mxu1 %v351_v19  ;;  %v255_v16 = vld [vmem:[%s3060_s29 + $0x2a0] sm:$0xff] }
  0xaa   : > { %2814 = vmatprep.mubr.msk.f32.mxu0 %vm459_vm0, %v226_v18  ;;  %2878 = vmatprep.mubr.msk.f32.mxu1 %vm459_vm0, %v354_v21  ;;  %v258_v18 = vld [vmem:[%s3060_s29 + $0x2b8] sm:$0xff]  ;;  %v383_v19 = vld [vmem:[%s3060_s29 + $0x6a0] sm:$0xff] }
  0xab   : > { %v386_v21 = vld [vmem:[%s3060_s29 + $0x6b8] sm:$0xff] }
  0xad   : > { %1048 = vmatmul.mubr.f32.gmra.mrb[54].mxu0 %v225_v20  ;;  %1368 = vmatmul.mubr.f32.gmra.mrb[54].mxu1 %v353_v23  ;;  %v257_v20 = vld [vmem:[%s3060_s29 + $0x2b0] sm:$0xff] }
  0xae   : > { %2815 = vmatprep.mubr.msk.f32.mxu0 %vm459_vm0, %v228_v22  ;;  %2879 = vmatprep.mubr.msk.f32.mxu1 %vm459_vm0, %v356_v25  ;;  %v260_v22 = vld [vmem:[%s3060_s29 + $0x2c8] sm:$0xff]  ;;  %v385_v23 = vld [vmem:[%s3060_s29 + $0x6b0] sm:$0xff] }
  0xaf   : > { %v388_v25 = vld [vmem:[%s3060_s29 + $0x6c8] sm:$0xff] }
  0xb1   : > { %1053 = vmatmul.mubr.f32.gmra.mrb[56].mxu0 %v227_v24  ;;  %1373 = vmatmul.mubr.f32.gmra.mrb[56].mxu1 %v355_v27  ;;  %v259_v24 = vld [vmem:[%s3060_s29 + $0x2c0] sm:$0xff] }
  0xb2   : > { %2816 = vmatprep.mubr.msk.f32.mxu0 %vm459_vm0, %v230_v26  ;;  %2880 = vmatprep.mubr.msk.f32.mxu1 %vm459_vm0, %v358_v29  ;;  %v262_v26 = vld [vmem:[%s3060_s29 + $0x2d8] sm:$0xff]  ;;  %v387_v27 = vld [vmem:[%s3060_s29 + $0x6c0] sm:$0xff] }
  0xb3   : > { %v390_v29 = vld [vmem:[%s3060_s29 + $0x6d8] sm:$0xff] }
  0xb5   : > { %1058 = vmatmul.mubr.f32.gmra.mrb[58].mxu0 %v229_v28  ;;  %1378 = vmatmul.mubr.f32.gmra.mrb[58].mxu1 %v357_v31  ;;  %v261_v28 = vld [vmem:[%s3060_s29 + $0x2d0] sm:$0xff] }
  0xb6   : > { %2817 = vmatprep.mubr.msk.f32.mxu0 %vm459_vm0, %v232_v30  ;;  %2881 = vmatprep.mubr.msk.f32.mxu1 %vm459_vm0, %v360_v33  ;;  %v264_v30 = vld [vmem:[%s3060_s29 + $0x2e8] sm:$0xff]  ;;  %v389_v31 = vld [vmem:[%s3060_s29 + $0x6d0] sm:$0xff] }
  0xb7   : > { %v392_v33 = vld [vmem:[%s3060_s29 + $0x6e8] sm:$0xff] }
  0xb9   : > { %1063 = vmatmul.mubr.f32.gmra.mrb[60].mxu0 %v231_v32  ;;  %1383 = vmatmul.mubr.f32.gmra.mrb[60].mxu1 %v359_v35  ;;  %v263_v32 = vld [vmem:[%s3060_s29 + $0x2e0] sm:$0xff] }
  0xba   : > { %2818 = vmatprep.mubr.msk.f32.mxu0 %vm459_vm0, %v234_v34  ;;  %2882 = vmatprep.mubr.msk.f32.mxu1 %vm459_vm0, %v362_v37  ;;  %v266_v34 = vld [vmem:[%s3060_s29 + $0x2f8] sm:$0xff]  ;;  %v391_v35 = vld [vmem:[%s3060_s29 + $0x6e0] sm:$0xff] }
  0xbb   : > { %v394_v37 = vld [vmem:[%s3060_s29 + $0x6f8] sm:$0xff] }
  0xbd   : > { %1068 = vmatmul.mubr.f32.gmra.mrb[62].mxu0 %v233_v36  ;;  %1388 = vmatmul.mubr.f32.gmra.mrb[62].mxu1 %v361_v39  ;;  %v265_v36 = vld [vmem:[%s3060_s29 + $0x2f0] sm:$0xff] }
  0xbe   : > { %2819 = vmatprep.mubr.msk.f32.mxu0 %vm459_vm0, %v236_v38  ;;  %2883 = vmatprep.mubr.msk.f32.mxu1 %vm459_vm0, %v364_v41  ;;  %v268_v38 = vld [vmem:[%s3060_s29 + $0x308] sm:$0xff]  ;;  %v393_v39 = vld [vmem:[%s3060_s29 + $0x6f0] sm:$0xff] }
  0xbf   : > { %v396_v41 = vld [vmem:[%s3060_s29 + $0x708] sm:$0xff] }
  0xc1   : > { %1073 = vmatmul.mubr.f32.gmra.mrb[64].mxu0 %v235_v40  ;;  %1393 = vmatmul.mubr.f32.gmra.mrb[64].mxu1 %v363_v43  ;;  %v267_v40 = vld [vmem:[%s3060_s29 + $0x300] sm:$0xff] }
  0xc2   : > { %2820 = vmatprep.mubr.msk.f32.mxu0 %vm459_vm0, %v238_v42  ;;  %2884 = vmatprep.mubr.msk.f32.mxu1 %vm459_vm0, %v366_v45  ;;  %v270_v42 = vld [vmem:[%s3060_s29 + $0x318] sm:$0xff]  ;;  %v395_v43 = vld [vmem:[%s3060_s29 + $0x700] sm:$0xff] }
  0xc3   : > { %v398_v45 = vld [vmem:[%s3060_s29 + $0x718] sm:$0xff] }
  0xc5   : > { %1078 = vmatmul.mubr.f32.gmra.mrb[66].mxu0 %v237_v44  ;;  %1398 = vmatmul.mubr.f32.gmra.mrb[66].mxu1 %v365_v47  ;;  %v269_v44 = vld [vmem:[%s3060_s29 + $0x310] sm:$0xff] }
  0xc6   : > { %2821 = vmatprep.mubr.msk.f32.mxu0 %vm459_vm0, %v240_v46  ;;  %2885 = vmatprep.mubr.msk.f32.mxu1 %vm459_vm0, %v368_v49  ;;  %v272_v46 = vld [vmem:[%s3060_s29 + $0x328] sm:$0xff]  ;;  %v397_v47 = vld [vmem:[%s3060_s29 + $0x710] sm:$0xff] }
  0xc7   : > { %v400_v49 = vld [vmem:[%s3060_s29 + $0x728] sm:$0xff] }
  0xc9   : > { %1083 = vmatmul.mubr.f32.gmra.mrb[68].mxu0 %v239_v48  ;;  %1403 = vmatmul.mubr.f32.gmra.mrb[68].mxu1 %v367_v51  ;;  %v271_v48 = vld [vmem:[%s3060_s29 + $0x320] sm:$0xff] }
  0xca   : > { %2822 = vmatprep.mubr.msk.f32.mxu0 %vm459_vm0, %v242_v50  ;;  %2886 = vmatprep.mubr.msk.f32.mxu1 %vm459_vm0, %v370_v53  ;;  %v274_v50 = vld [vmem:[%s3060_s29 + $0x338] sm:$0xff]  ;;  %v399_v51 = vld [vmem:[%s3060_s29 + $0x720] sm:$0xff] }
  0xcb   : > { %v402_v53 = vld [vmem:[%s3060_s29 + $0x738] sm:$0xff] }
  0xcd   : > { %1088 = vmatmul.mubr.f32.gmra.mrb[70].mxu0 %v241_v52  ;;  %1408 = vmatmul.mubr.f32.gmra.mrb[70].mxu1 %v369_v55  ;;  %v273_v52 = vld [vmem:[%s3060_s29 + $0x330] sm:$0xff] }
  0xce   : > { %2823 = vmatprep.mubr.msk.f32.mxu0 %vm459_vm0, %v244_v54  ;;  %2887 = vmatprep.mubr.msk.f32.mxu1 %vm459_vm0, %v372_v57  ;;  %v276_v54 = vld [vmem:[%s3060_s29 + $0x348] sm:$0xff]  ;;  %v401_v55 = vld [vmem:[%s3060_s29 + $0x730] sm:$0xff] }
  0xcf   : > { %v404_v57 = vld [vmem:[%s3060_s29 + $0x748] sm:$0xff] }
  0xd1   : > { %1093 = vmatmul.mubr.f32.gmra.mrb[72].mxu0 %v243_v56  ;;  %1413 = vmatmul.mubr.f32.gmra.mrb[72].mxu1 %v371_v59  ;;  %v275_v56 = vld [vmem:[%s3060_s29 + $0x340] sm:$0xff] }
  0xd2   : > { %2824 = vmatprep.mubr.msk.f32.mxu0 %vm459_vm0, %v246_v58  ;;  %2888 = vmatprep.mubr.msk.f32.mxu1 %vm459_vm0, %v374_v61  ;;  %v278_v58 = vld [vmem:[%s3060_s29 + $0x358] sm:$0xff]  ;;  %v403_v59 = vld [vmem:[%s3060_s29 + $0x740] sm:$0xff] }
  0xd3   : > { %v406_v61 = vld [vmem:[%s3060_s29 + $0x758] sm:$0xff] }
  0xd5   : > { %1098 = vmatmul.mubr.f32.gmra.mrb[74].mxu0 %v245_v60  ;;  %1418 = vmatmul.mubr.f32.gmra.mrb[74].mxu1 %v373_v63  ;;  %v277_v60 = vld [vmem:[%s3060_s29 + $0x350] sm:$0xff] }
  0xd6   : > { %2825 = vmatprep.mubr.msk.f32.mxu0 %vm459_vm0, %v248_v62  ;;  %2889 = vmatprep.mubr.msk.f32.mxu1 %vm459_vm0, %v376_v1  ;;  %v280_v62 = vld [vmem:[%s3060_s29 + $0x368] sm:$0xff]  ;;  %v405_v63 = vld [vmem:[%s3060_s29 + $0x750] sm:$0xff] }
  0xd9   : > { %1103 = vmatmul.mubr.f32.gmra.mrb[76].mxu0 %v247_v0  ;;  %1423 = vmatmul.mubr.f32.gmra.mrb[76].mxu1 %v375_v3 }
  0xda   : > { %2826 = vmatprep.mubr.msk.f32.mxu0 %vm459_vm0, %v250_v2  ;;  %2890 = vmatprep.mubr.msk.f32.mxu1 %vm459_vm0, %v378_v5  ;;  %v408_v5 = vld [vmem:[%s3060_s29 + $0x768] sm:$0xff] }
  0xdd   : > { %1108 = vmatmul.mubr.f32.gmra.mrb[78].mxu0 %v249_v4  ;;  %1428 = vmatmul.mubr.f32.gmra.mrb[78].mxu1 %v377_v7  ;;  %v279_v4 = vld [vmem:[%s3060_s29 + $0x360] sm:$0xff] }
  0xde   : > { %2827 = vmatprep.mubr.msk.f32.mxu0 %vm459_vm0, %v252_v6  ;;  %2891 = vmatprep.mubr.msk.f32.mxu1 %vm459_vm0, %v380_v9  ;;  %v282_v6 = vld [vmem:[%s3060_s29 + $0x378] sm:$0xff]  ;;  %v407_v7 = vld [vmem:[%s3060_s29 + $0x760] sm:$0xff] }
  0xe1   : > { %1113 = vmatmul.mubr.f32.gmra.mrb[80].mxu0 %v251_v8  ;;  %1433 = vmatmul.mubr.f32.gmra.mrb[80].mxu1 %v379_v11 }
  0xe2   : > { %2828 = vmatprep.mubr.msk.f32.mxu0 %vm459_vm0, %v254_v10  ;;  %2892 = vmatprep.mubr.msk.f32.mxu1 %vm459_vm0, %v382_v13  ;;  %v410_v13 = vld [vmem:[%s3060_s29 + $0x778] sm:$0xff] }
  0xe5   : > { %1118 = vmatmul.mubr.f32.gmra.mrb[82].mxu0 %v253_v12  ;;  %1438 = vmatmul.mubr.f32.gmra.mrb[82].mxu1 %v381_v15  ;;  %v281_v12 = vld [vmem:[%s3060_s29 + $0x370] sm:$0xff] }
  0xe6   : > { %2829 = vmatprep.mubr.msk.f32.mxu0 %vm459_vm0, %v256_v14  ;;  %2893 = vmatprep.mubr.msk.f32.mxu1 %vm459_vm0, %v384_v17  ;;  %v284_v14 = vld [vmem:[%s3060_s29 + $0x388] sm:$0xff]  ;;  %v409_v15 = vld [vmem:[%s3060_s29 + $0x770] sm:$0xff] }
  0xe9   : > { %1123 = vmatmul.mubr.f32.gmra.mrb[84].mxu0 %v255_v16  ;;  %1443 = vmatmul.mubr.f32.gmra.mrb[84].mxu1 %v383_v19 }
  0xea   : > { %2830 = vmatprep.mubr.msk.f32.mxu0 %vm459_vm0, %v258_v18  ;;  %2894 = vmatprep.mubr.msk.f32.mxu1 %vm459_vm0, %v386_v21  ;;  %v412_v21 = vld [vmem:[%s3060_s29 + $0x788] sm:$0xff] }
  0xed   : > { %1128 = vmatmul.mubr.f32.gmra.mrb[86].mxu0 %v257_v20  ;;  %1448 = vmatmul.mubr.f32.gmra.mrb[86].mxu1 %v385_v23  ;;  %v283_v20 = vld [vmem:[%s3060_s29 + $0x380] sm:$0xff] }
  0xee   : > { %2831 = vmatprep.mubr.msk.f32.mxu0 %vm459_vm0, %v260_v22  ;;  %2895 = vmatprep.mubr.msk.f32.mxu1 %vm459_vm0, %v388_v25  ;;  %v286_v22 = vld [vmem:[%s3060_s29 + $0x398] sm:$0xff]  ;;  %v411_v23 = vld [vmem:[%s3060_s29 + $0x780] sm:$0xff] }
  0xf1   : > { %1133 = vmatmul.mubr.f32.gmra.mrb[88].mxu0 %v259_v24  ;;  %1453 = vmatmul.mubr.f32.gmra.mrb[88].mxu1 %v387_v27 }
  0xf2   : > { %2832 = vmatprep.mubr.msk.f32.mxu0 %vm459_vm0, %v262_v26  ;;  %2896 = vmatprep.mubr.msk.f32.mxu1 %vm459_vm0, %v390_v29  ;;  %v414_v29 = vld [vmem:[%s3060_s29 + $0x798] sm:$0xff] }
  0xf5   : > { %1138 = vmatmul.mubr.f32.gmra.mrb[90].mxu0 %v261_v28  ;;  %1458 = vmatmul.mubr.f32.gmra.mrb[90].mxu1 %v389_v31  ;;  %v285_v28 = vld [vmem:[%s3060_s29 + $0x390] sm:$0xff] }
  0xf6   : > { %2833 = vmatprep.mubr.msk.f32.mxu0 %vm459_vm0, %v264_v30  ;;  %2897 = vmatprep.mubr.msk.f32.mxu1 %vm459_vm0, %v392_v33  ;;  %v288_v30 = vld [vmem:[%s3060_s29 + $0x3a8] sm:$0xff]  ;;  %v413_v31 = vld [vmem:[%s3060_s29 + $0x790] sm:$0xff] }
  0xf9   : > { %1143 = vmatmul.mubr.f32.gmra.mrb[92].mxu0 %v263_v32  ;;  %1463 = vmatmul.mubr.f32.gmra.mrb[92].mxu1 %v391_v35 }
  0xfa   : > { %2834 = vmatprep.mubr.msk.f32.mxu0 %vm459_vm0, %v266_v34  ;;  %2898 = vmatprep.mubr.msk.f32.mxu1 %vm459_vm0, %v394_v37  ;;  %v416_v37 = vld [vmem:[%s3060_s29 + $0x7a8] sm:$0xff] }
  0xfd   : > { %1148 = vmatmul.mubr.f32.gmra.mrb[94].mxu0 %v265_v36  ;;  %1468 = vmatmul.mubr.f32.gmra.mrb[94].mxu1 %v393_v39  ;;  %v287_v36 = vld [vmem:[%s3060_s29 + $0x3a0] sm:$0xff] }
  0xfe   : > { %2835 = vmatprep.mubr.msk.f32.mxu0 %vm459_vm0, %v268_v38  ;;  %2899 = vmatprep.mubr.msk.f32.mxu1 %vm459_vm0, %v396_v41  ;;  %v290_v38 = vld [vmem:[%s3060_s29 + $0x3b8] sm:$0xff]  ;;  %v415_v39 = vld [vmem:[%s3060_s29 + $0x7a0] sm:$0xff] }
 0x101   : > { %1153 = vmatmul.mubr.f32.gmra.mrb[96].mxu0 %v267_v40  ;;  %1473 = vmatmul.mubr.f32.gmra.mrb[96].mxu1 %v395_v43 }
 0x102   : > { %2836 = vmatprep.mubr.msk.f32.mxu0 %vm459_vm0, %v270_v42  ;;  %2900 = vmatprep.mubr.msk.f32.mxu1 %vm459_vm0, %v398_v45  ;;  %v418_v45 = vld [vmem:[%s3060_s29 + $0x7b8] sm:$0xff] }
 0x105   : > { %1158 = vmatmul.mubr.f32.gmra.mrb[98].mxu0 %v269_v44  ;;  %1478 = vmatmul.mubr.f32.gmra.mrb[98].mxu1 %v397_v47  ;;  %v289_v44 = vld [vmem:[%s3060_s29 + $0x3b0] sm:$0xff] }
 0x106   : > { %2837 = vmatprep.mubr.msk.f32.mxu0 %vm459_vm0, %v272_v46  ;;  %2901 = vmatprep.mubr.msk.f32.mxu1 %vm459_vm0, %v400_v49  ;;  %v292_v46 = vld [vmem:[%s3060_s29 + $0x3c8] sm:$0xff]  ;;  %v417_v47 = vld [vmem:[%s3060_s29 + $0x7b0] sm:$0xff] }
 0x109   : > { %1163 = vmatmul.mubr.f32.gmra.mrb[100].mxu0 %v271_v48  ;;  %1483 = vmatmul.mubr.f32.gmra.mrb[100].mxu1 %v399_v51 }
 0x10a   : > { %2838 = vmatprep.mubr.msk.f32.mxu0 %vm459_vm0, %v274_v50  ;;  %2902 = vmatprep.mubr.msk.f32.mxu1 %vm459_vm0, %v402_v53  ;;  %v420_v53 = vld [vmem:[%s3060_s29 + $0x7c8] sm:$0xff] }
 0x10d   : > { %1168 = vmatmul.mubr.f32.gmra.mrb[102].mxu0 %v273_v52  ;;  %1488 = vmatmul.mubr.f32.gmra.mrb[102].mxu1 %v401_v55  ;;  %v291_v52 = vld [vmem:[%s3060_s29 + $0x3c0] sm:$0xff] }
 0x10e   : > { %2839 = vmatprep.mubr.msk.f32.mxu0 %vm459_vm0, %v276_v54  ;;  %2903 = vmatprep.mubr.msk.f32.mxu1 %vm459_vm0, %v404_v57  ;;  %v294_v54 = vld [vmem:[%s3060_s29 + $0x3d8] sm:$0xff]  ;;  %v419_v55 = vld [vmem:[%s3060_s29 + $0x7c0] sm:$0xff] }
 0x111   : > { %1173 = vmatmul.mubr.f32.gmra.mrb[104].mxu0 %v275_v56  ;;  %1493 = vmatmul.mubr.f32.gmra.mrb[104].mxu1 %v403_v59 }
 0x112   : > { %2840 = vmatprep.mubr.msk.f32.mxu0 %vm459_vm0, %v278_v58  ;;  %2904 = vmatprep.mubr.msk.f32.mxu1 %vm459_vm0, %v406_v61  ;;  %v422_v61 = vld [vmem:[%s3060_s29 + $0x7d8] sm:$0xff] }
 0x114   : > { %v3464_v0 = vpop.f32.mrb[0].mxu0  ;;  %v3466_v1 = vpop.f32.mrb[0].mxu1 }
 0x115   : > { %v916_v2 = vpop.f32.mrb[1].mxu0  ;;  %1178 = vmatmul.mubr.f32.gmra.mrb[106].mxu0 %v277_v60  ;;  %v1236_v3 = vpop.f32.mrb[1].mxu1  ;;  %1498 = vmatmul.mubr.f32.gmra.mrb[106].mxu1 %v405_v63  ;;  %v293_v60 = vld [vmem:[%s3060_s29 + $0x3d0] sm:$0xff] }
 0x116   : > { %2841 = vmatprep.mubr.msk.f32.mxu0 %vm459_vm0, %v280_v62  ;;  %2905 = vmatprep.mubr.msk.f32.mxu1 %vm459_vm0, %v408_v5  ;;  %v296_v62 = vld [vmem:[%s3060_s29 + $0x3e8] sm:$0xff]  ;;  %v421_v63 = vld [vmem:[%s3060_s29 + $0x7d0] sm:$0xff] }
 0x118   : > { %v3474_v8 = vpop.f32.mrb[2].mxu0  ;;  %v3476_v9 = vpop.f32.mrb[2].mxu1 }
 0x119   : > { %v921_v10 = vpop.f32.mrb[3].mxu0  ;;  %1183 = vmatmul.mubr.f32.gmra.mrb[108].mxu0 %v279_v4  ;;  %v1241_v11 = vpop.f32.mrb[3].mxu1  ;;  %1503 = vmatmul.mubr.f32.gmra.mrb[108].mxu1 %v407_v7  ;;  %v424_v7 = vld [vmem:[%s3060_s29 + $0x7e8] sm:$0xff] }
 0x11a   : > { %2842 = vmatprep.mubr.msk.f32.mxu0 %vm459_vm0, %v282_v6  ;;  %2906 = vmatprep.mubr.msk.f32.mxu1 %vm459_vm0, %v410_v13  ;;  %v295_v6 = vld [vmem:[%s3060_s29 + $0x3e0] sm:$0xff]  ;;  %v298_v10 = vld [vmem:[%s3060_s29 + $0x3f8] sm:$0xff] }
 0x11b   : > { %v423_v11 = vld [vmem:[%s3060_s29 + $0x7e0] sm:$0xff] }
 0x11c   : > { %v3484_v16 = vpop.f32.mrb[4].mxu0  ;;  %v3486_v17 = vpop.f32.mrb[4].mxu1 }
 0x11d   : > { %v926_v18 = vpop.f32.mrb[5].mxu0  ;;  %1188 = vmatmul.mubr.f32.gmra.mrb[110].mxu0 %v281_v12  ;;  %v1246_v19 = vpop.f32.mrb[5].mxu1  ;;  %1508 = vmatmul.mubr.f32.gmra.mrb[110].mxu1 %v409_v15 }
 0x11e   : > { %2843 = vmatprep.mubr.msk.f32.mxu0 %vm459_vm0, %v284_v14  ;;  %2907 = vmatprep.mubr.msk.f32.mxu1 %vm459_vm0, %v412_v21  ;;  %v297_v18 = vld [vmem:[%s3060_s29 + $0x3f0] sm:$0xff]  ;;  %v426_v19 = vld [vmem:[%s3060_s29 + $0x7f8] sm:$0xff] }
 0x120   : > { %v3494_v24 = vpop.f32.mrb[6].mxu0  ;;  %v3496_v25 = vpop.f32.mrb[6].mxu1 }
 0x121   : > { %v931_v26 = vpop.f32.mrb[7].mxu0  ;;  %1193 = vmatmul.mubr.f32.gmra.mrb[112].mxu0 %v283_v20  ;;  %v1251_v27 = vpop.f32.mrb[7].mxu1  ;;  %1513 = vmatmul.mubr.f32.gmra.mrb[112].mxu1 %v411_v23  ;;  %v425_v20 = vld [vmem:[%s3060_s29 + $0x7f0] sm:$0xff] }
 0x122   : > { %2844 = vmatprep.mubr.msk.f32.mxu0 %vm459_vm0, %v286_v22  ;;  %2908 = vmatprep.mubr.msk.f32.mxu1 %vm459_vm0, %v414_v29 }
 0x124   : > { %v3504_v32 = vpop.f32.mrb[8].mxu0  ;;  %v3506_v33 = vpop.f32.mrb[8].mxu1 }
 0x125   : > { %v936_v34 = vpop.f32.mrb[9].mxu0  ;;  %1198 = vmatmul.mubr.f32.gmra.mrb[114].mxu0 %v285_v28  ;;  %v1256_v35 = vpop.f32.mrb[9].mxu1  ;;  %1518 = vmatmul.mubr.f32.gmra.mrb[114].mxu1 %v413_v31 }
 0x126   : > { %2845 = vmatprep.mubr.msk.f32.mxu0 %vm459_vm0, %v288_v30  ;;  %2909 = vmatprep.mubr.msk.f32.mxu1 %vm459_vm0, %v416_v37 }
 0x128   : > { %v3514_v40 = vpop.f32.mrb[10].mxu0  ;;  %v3516_v41 = vpop.f32.mrb[10].mxu1 }
 0x129   : > { %v941_v42 = vpop.f32.mrb[11].mxu0  ;;  %1203 = vmatmul.mubr.f32.gmra.mrb[116].mxu0 %v287_v36  ;;  %v1261_v43 = vpop.f32.mrb[11].mxu1  ;;  %1523 = vmatmul.mubr.f32.gmra.mrb[116].mxu1 %v415_v39 }
 0x12a   : > { %2846 = vmatprep.mubr.msk.f32.mxu0 %vm459_vm0, %v290_v38  ;;  %2910 = vmatprep.mubr.msk.f32.mxu1 %vm459_vm0, %v418_v45 }
 0x12c   : > { %v3524_v48 = vpop.f32.mrb[12].mxu0  ;;  %v3526_v49 = vpop.f32.mrb[12].mxu1 }
 0x12d   : > { %v946_v50 = vpop.f32.mrb[13].mxu0  ;;  %1208 = vmatmul.mubr.f32.gmra.mrb[118].mxu0 %v289_v44  ;;  %v1266_v51 = vpop.f32.mrb[13].mxu1  ;;  %1528 = vmatmul.mubr.f32.gmra.mrb[118].mxu1 %v417_v47 }
 0x12e   : > { %2847 = vmatprep.mubr.msk.f32.mxu0 %vm459_vm0, %v292_v46  ;;  %2911 = vmatprep.mubr.msk.f32.mxu1 %vm459_vm0, %v420_v53 }
 0x130   : > { %v3534_v56 = vpop.f32.mrb[14].mxu0  ;;  %v3536_v57 = vpop.f32.mrb[14].mxu1 }
 0x131   : > { %v951_v58 = vpop.f32.mrb[15].mxu0  ;;  %1213 = vmatmul.mubr.f32.gmra.mrb[120].mxu0 %v291_v52  ;;  %v1271_v59 = vpop.f32.mrb[15].mxu1  ;;  %1533 = vmatmul.mubr.f32.gmra.mrb[120].mxu1 %v419_v55 }
 0x132   : > { %2848 = vmatprep.mubr.msk.f32.mxu0 %vm459_vm0, %v294_v54  ;;  %2912 = vmatprep.mubr.msk.f32.mxu1 %vm459_vm0, %v422_v61 }
 0x134   : > { %v3544_v2 = vpop.f32.mrb[16].mxu0  ;;  %v3546_v3 = vpop.f32.mrb[16].mxu1 }
 0x135   : > { %v956_v4 = vpop.f32.mrb[17].mxu0  ;;  %1218 = vmatmul.mubr.f32.gmra.mrb[122].mxu0 %v293_v60  ;;  %v1276_v5 = vpop.f32.mrb[17].mxu1  ;;  %1538 = vmatmul.mubr.f32.gmra.mrb[122].mxu1 %v421_v63 }
 0x136   : > { %2849 = vmatprep.mubr.msk.f32.mxu0 %vm459_vm0, %v296_v62  ;;  %2913 = vmatprep.mubr.msk.f32.mxu1 %vm459_vm0, %v424_v7 }
 0x138   : > { %v3554_v12 = vpop.f32.mrb[18].mxu0  ;;  %v3556_v13 = vpop.f32.mrb[18].mxu1 }
 0x139   : > { %v961_v14 = vpop.f32.mrb[19].mxu0  ;;  %1223 = vmatmul.mubr.f32.gmra.mrb[124].mxu0 %v295_v6  ;;  %v1281_v15 = vpop.f32.mrb[19].mxu1  ;;  %1543 = vmatmul.mubr.f32.gmra.mrb[124].mxu1 %v423_v11 }
 0x13a   : > { %2850 = vmatprep.mubr.msk.f32.mxu0 %vm459_vm0, %v298_v10  ;;  %2914 = vmatprep.mubr.msk.f32.mxu1 %vm459_vm0, %v426_v19 }
 0x13c   : > { %v3563_v21 = vpop.f32.mrb[20].mxu0  ;;  %v3565_v22 = vpop.f32.mrb[20].mxu1 }
 0x13d   : > { %v966_v23 = vpop.f32.mrb[21].mxu0  ;;  %1228 = vmatmul.mubr.f32.gmra.mrb[126].mxu0 %v297_v18  ;;  %v1286_v26 = vpop.f32.mrb[21].mxu1  ;;  %1548 = vmatmul.mubr.f32.gmra.mrb[126].mxu1 %v425_v20 }
 0x140   : > { %v3567_v27 = vpop.f32.mrb[22].mxu0  ;;  %v3569_v28 = vpop.f32.mrb[22].mxu1 }
 0x141   : > { %v971_v29 = vpop.f32.mrb[23].mxu0  ;;  %v1291_v30 = vpop.f32.mrb[23].mxu1 }
 0x144   : > { %v3571_v31 = vpop.f32.mrb[24].mxu0  ;;  %v3573_v34 = vpop.f32.mrb[24].mxu1 }
 0x145   : > { %v976_v35 = vpop.f32.mrb[25].mxu0  ;;  %v1296_v36 = vpop.f32.mrb[25].mxu1 }
 0x148   : > { %v3575_v37 = vpop.f32.mrb[26].mxu0  ;;  %v3577_v38 = vpop.f32.mrb[26].mxu1 }
 0x149   : > { %v981_v39 = vpop.f32.mrb[27].mxu0  ;;  %v1301_v42 = vpop.f32.mrb[27].mxu1 }
 0x14c   : > { %v3579_v43 = vpop.f32.mrb[28].mxu0  ;;  %v3581_v44 = vpop.f32.mrb[28].mxu1 }
 0x14d   : > { %v986_v45 = vpop.f32.mrb[29].mxu0  ;;  %v1306_v46 = vpop.f32.mrb[29].mxu1 }
 0x150   : > { %v3583_v47 = vpop.f32.mrb[30].mxu0  ;;  %v3585_v50 = vpop.f32.mrb[30].mxu1 }
 0x151   : > { %v991_v51 = vpop.f32.mrb[31].mxu0  ;;  %v1311_v52 = vpop.f32.mrb[31].mxu1 }
 0x154   : > { %v3587_v53 = vpop.f32.mrb[32].mxu0  ;;  %v3589_v54 = vpop.f32.mrb[32].mxu1 }
 0x155   : > { %v996_v55 = vpop.f32.mrb[33].mxu0  ;;  %v1316_v58 = vpop.f32.mrb[33].mxu1 }
 0x158   : > { %v3591_v59 = vpop.f32.mrb[34].mxu0  ;;  %v3593_v60 = vpop.f32.mrb[34].mxu1 }
 0x159   : > { %v1001_v61 = vpop.f32.mrb[35].mxu0  ;;  %v1321_v62 = vpop.f32.mrb[35].mxu1 }
 0x15c   : > { %v3595_v63 = vpop.f32.mrb[36].mxu0  ;;  %v3597_v4 = vpop.f32.mrb[36].mxu1 }
 0x15d   : > { %6575 = vst [vmem:[#allocation2_spill] sm:$0xff] %v3597_v4  ;;  %v1006_v5 = vpop.f32.mrb[37].mxu0  ;;  %v1326_v6 = vpop.f32.mrb[37].mxu1 }
 0x160   : > { %v3599_v7 = vpop.f32.mrb[38].mxu0  ;;  %v3601_v10 = vpop.f32.mrb[38].mxu1 }
 0x161   : > { %6576 = vst [vmem:[#allocation3_spill] sm:$0xff] %v3601_v10  ;;  %v1011_v11 = vpop.f32.mrb[39].mxu0  ;;  %v1331_v14 = vpop.f32.mrb[39].mxu1 }
 0x164   : > { %v3603_v15 = vpop.f32.mrb[40].mxu0  ;;  %v3605_v18 = vpop.f32.mrb[40].mxu1 }
 0x165   : > { %6577 = vst [vmem:[#allocation4_spill] sm:$0xff] %v3605_v18  ;;  %v1016_v19 = vpop.f32.mrb[41].mxu0  ;;  %v1336_v20 = vpop.f32.mrb[41].mxu1 }
 0x168   : > { %v3607_v23 = vpop.f32.mrb[42].mxu0  ;;  %v3609_v26 = vpop.f32.mrb[42].mxu1 }
 0x169   : > { %6578 = vst [vmem:[#allocation5_spill] sm:$0xff] %v3609_v26  ;;  %v1021_v29 = vpop.f32.mrb[43].mxu0  ;;  %v1341_v30 = vpop.f32.mrb[43].mxu1 }
 0x16c   : > { %v3611_v35 = vpop.f32.mrb[44].mxu0  ;;  %v3613_v36 = vpop.f32.mrb[44].mxu1 }
 0x16d   : > { %6579 = vst [vmem:[#allocation6_spill] sm:$0xff] %v3613_v36  ;;  %v1026_v39 = vpop.f32.mrb[45].mxu0  ;;  %v1346_v42 = vpop.f32.mrb[45].mxu1 }
 0x170   : > { %v3615_v45 = vpop.f32.mrb[46].mxu0  ;;  %v3617_v46 = vpop.f32.mrb[46].mxu1 }
 0x171   : > { %6580 = vst [vmem:[#allocation7_spill] sm:$0xff] %v3617_v46  ;;  %v1031_v51 = vpop.f32.mrb[47].mxu0  ;;  %v1351_v52 = vpop.f32.mrb[47].mxu1 }
 0x174   : > { %v3619_v55 = vpop.f32.mrb[48].mxu0  ;;  %v3621_v58 = vpop.f32.mrb[48].mxu1 }
 0x175   : > { %6581 = vst [vmem:[#allocation8_spill] sm:$0xff] %v3621_v58  ;;  %v1036_v61 = vpop.f32.mrb[49].mxu0  ;;  %v1356_v62 = vpop.f32.mrb[49].mxu1 }
 0x178   : > { %v3623_v5 = vpop.f32.mrb[50].mxu0  ;;  %v3625_v6 = vpop.f32.mrb[50].mxu1 }
 0x179   : > { %6582 = vst [vmem:[#allocation9_spill] sm:$0xff] %v3625_v6  ;;  %v1041_v11 = vpop.f32.mrb[51].mxu0  ;;  %v1361_v14 = vpop.f32.mrb[51].mxu1 }
 0x17c   : > { %v3627_v19 = vpop.f32.mrb[52].mxu0  ;;  %v3629_v20 = vpop.f32.mrb[52].mxu1 }
 0x17d   : > { %6583 = vst [vmem:[#allocation10_spill] sm:$0xff] %v3629_v20  ;;  %v1046_v29 = vpop.f32.mrb[53].mxu0  ;;  %v1366_v30 = vpop.f32.mrb[53].mxu1 }
 0x180   : > { %v3631_v39 = vpop.f32.mrb[54].mxu0  ;;  %v3633_v42 = vpop.f32.mrb[54].mxu1 }
 0x181   : > { %6584 = vst [vmem:[#allocation11_spill] sm:$0xff] %v3633_v42  ;;  %v1051_v51 = vpop.f32.mrb[55].mxu0  ;;  %v1371_v52 = vpop.f32.mrb[55].mxu1 }
 0x182   : > { %v3650_v51 = vld [vmem:[%s6325_s2] ss:$0 sm:$0xff] }
 0x183   : > { %v3704_v26 = vadd.f32 %v3650_v51, %v3524_v48 }
 0x184   : > { %v3635_v61 = vpop.f32.mrb[56].mxu0  ;;  %v3637_v62 = vpop.f32.mrb[56].mxu1 }
 0x185   : > { %6585 = vst [vmem:[#allocation12_spill] sm:$0xff] %v3637_v62  ;;  %v1056_v58 = vpop.f32.mrb[57].mxu0  ;;  %v1376_v6 = vpop.f32.mrb[57].mxu1  ;;  %6599 = vst [vmem:[#allocation24_spill] sm:$0xff] %v3704_v26 }
 0x186   : > { %v3654_v58 = vadd.f32 %v3650_v51, %v3474_v8  ;;  %v3671_v8 = vadd.f32 %v3650_v51, %v3494_v24 }
 0x188   : > { %v3639_v11 = vpop.f32.mrb[58].mxu0  ;;  %v3641_v14 = vpop.f32.mrb[58].mxu1  ;;  %6588 = vst [vmem:[#allocation15_spill] sm:$0xff] %v3654_v58  ;;  %6592 = vst [vmem:[#allocation19_spill] sm:$0xff] %v3671_v8  ;;  %v6600_v4 = vmax.f32 %v3671_v8, 0.0 }
 0x189   : > { %6586 = vst [vmem:[#allocation13_spill] sm:$0xff] %v3641_v14  ;;  %v1061_v46 = vpop.f32.mrb[59].mxu0  ;;  %v1381_v20 = vpop.f32.mrb[59].mxu1 }
 0x18a   : > { %v3662_v46 = vadd.f32 %v3650_v51, %v3464_v0 }
 0x18c   : > { %v3643_v29 = vpop.f32.mrb[60].mxu0  ;;  %v3645_v30 = vpop.f32.mrb[60].mxu1  ;;  %6590 = vst [vmem:[#allocation17_spill] sm:$0xff] %v3662_v46 }
 0x18d   : > { %6587 = vst [vmem:[#allocation14_spill] sm:$0xff] %v3645_v30  ;;  %v1066_v36 = vpop.f32.mrb[61].mxu0  ;;  %v1386_v42 = vpop.f32.mrb[61].mxu1  ;;  %v6328_v30 = vmax.f32 %v3654_v58, 0.0 }
 0x18e   : > { %v3666_v36 = vadd.f32 %v3650_v51, %v3484_v16  ;;  %v3681_v16 = vadd.f32 %v3650_v51, %v3504_v32  ;;  %v6597_v32 = vmax.f32 %v3662_v46, 0.0 }
 0x18f   : > { %v1683_v24 = vsel %vm1681_vm2, %v6328_v30, 0.0 }
 0x190   : > { %v3656_v6 = vpop.f32.mrb[62].mxu0  ;;  %v3658_v52 = vpop.f32.mrb[62].mxu1  ;;  %6591 = vst [vmem:[#allocation18_spill] sm:$0xff] %v3666_v36  ;;  %6594 = vst [vmem:[#allocation21_spill] sm:$0xff] %v3681_v16  ;;  %v6602_v48 = vmax.f32 %v3681_v16, 0.0  ;;  %v3732_v16 = vadd.f32 %v3650_v51, %v3554_v12 }
 0x191   : > { %6589 = vst [vmem:[#allocation16_spill] sm:$0xff] %v3658_v52  ;;  %v1071_v20 = vpop.f32.mrb[63].mxu0  ;;  %v1391_v42 = vpop.f32.mrb[63].mxu1 }
 0x192   : > { %6605 = vst [vmem:[#allocation27_spill] sm:$0xff] %v3732_v16 }
 0x194   : > { %v3673_v14 = vpop.f32.mrb[64].mxu0  ;;  %v3675_v62 = vpop.f32.mrb[64].mxu1 }
 0x195   : > { %6593 = vst [vmem:[#allocation20_spill] sm:$0xff] %v3675_v62  ;;  %v1076_v20 = vpop.f32.mrb[65].mxu0  ;;  %v1396_v42 = vpop.f32.mrb[65].mxu1  ;;  %v3689_v62 = vadd.f32 %v3650_v51, %v3514_v40 }
 0x196   : > { %v1682_v20 = vsel %vm1681_vm2, %v6597_v32, 0.0  ;;  %v6598_v42 = vmax.f32 %v3666_v36, 0.0  ;;  %v3712_v32 = vadd.f32 %v3650_v51, %v3534_v56 }
 0x197   : > { %6595 = vst [vmem:[#allocation22_spill] sm:$0xff] %v3689_v62  ;;  %v1684_v10 = vadd.f32 %v1683_v24, %v1682_v20  ;;  %v6604_v56 = vmax.f32 %v3689_v62, 0.0 }
 0x198   : > { %v3691_v52 = vpop.f32.mrb[66].mxu0  ;;  %v3693_v0 = vpop.f32.mrb[66].mxu1  ;;  %v1685_v58 = vsel %vm1681_vm2, %v6598_v42, 0.0  ;;  %6601 = vst [vmem:[#allocation25_spill] sm:$0xff] %v3712_v32  ;;  %v6608_v12 = vmax.f32 %v3712_v32, 0.0 }
 0x199   : > { %6596 = vst [vmem:[#allocation23_spill] sm:$0xff] %v3693_v0  ;;  %v1081_v40 = vpop.f32.mrb[67].mxu0  ;;  %v1401_v18 = vpop.f32.mrb[67].mxu1  ;;  %v1687_v0 = vsel %vm1681_vm2, %v6600_v4, 0.0  ;;  %v1686_v42 = vadd.f32 %v1685_v58, %v1684_v10  ;;  %v3724_v4 = vadd.f32 %v3650_v51, %v3544_v2  ;;  %v1691_v10 = vsel %vm1681_vm2, %v6604_v56, 0.0 }
 0x19a   : > { %v1689_v18 = vsel %vm1681_vm2, %v6602_v48, 0.0  ;;  %v6606_v2 = vmax.f32 %v3704_v26, 0.0  ;;  %v3752_v26 = vadd.f32 %v3650_v51, %v3567_v27  ;;  %v6612_v27 = vmax.f32 %v3732_v16, 0.0 }
 0x19b   : > { %6603 = vst [vmem:[#allocation26_spill] sm:$0xff] %v3724_v4  ;;  %v1688_v46 = vadd.f32 %v1687_v0, %v1686_v42  ;;  %v3744_v42 = vadd.f32 %v3650_v51, %v3563_v21  ;;  %v6610_v21 = vmax.f32 %v3724_v4, 0.0  ;;  %v3772_v4 = vadd.f32 %v3650_v51, %v3575_v37 }
 0x19c   : > { %v3714_v36 = vpop.f32.mrb[68].mxu0  ;;  %v3716_v30 = vpop.f32.mrb[68].mxu1  ;;  %6609 = vst [vmem:[#allocation29_spill] sm:$0xff] %v3752_v26  ;;  %v6616_v37 = vmax.f32 %v3752_v26, 0.0 }
 0x19d   : > { %v1086_v20 = vpop.f32.mrb[69].mxu0  ;;  %v1406_v40 = vpop.f32.mrb[69].mxu1  ;;  %v1690_v48 = vadd.f32 %v1689_v18, %v1688_v46  ;;  %6607 = vst [vmem:[#allocation28_spill] sm:$0xff] %v3744_v42  ;;  %v1695_v46 = vsel %vm1681_vm2, %v6608_v12, 0.0  ;;  %6613 = vst [vmem:[#allocation31_spill] sm:$0xff] %v3772_v4 }
 0x19e   : > { %v1693_v20 = vsel %vm1681_vm2, %v6606_v2, 0.0 }
 0x19f   : > { %v1692_v58 = vadd.f32 %v1691_v10, %v1690_v48  ;;  %v3764_v48 = vadd.f32 %v3650_v51, %v3571_v31  ;;  %v6614_v31 = vmax.f32 %v3744_v42, 0.0  ;;  %v3792_v42 = vadd.f32 %v3650_v51, %v3583_v47 }
 0x1a0   : > { %v3734_v8 = vpop.f32.mrb[70].mxu0  ;;  %v3736_v24 = vpop.f32.mrb[70].mxu1  ;;  %v6620_v47 = vmax.f32 %v3772_v4, 0.0 }
 0x1a1   : > { %v1091_v40 = vpop.f32.mrb[71].mxu0  ;;  %v1411_v56 = vpop.f32.mrb[71].mxu1  ;;  %v1694_v2 = vadd.f32 %v1693_v20, %v1692_v58  ;;  %6611 = vst [vmem:[#allocation30_spill] sm:$0xff] %v3764_v48  ;;  %v1699_v58 = vsel %vm1681_vm2, %v6612_v27, 0.0  ;;  %6617 = vst [vmem:[#allocation33_spill] sm:$0xff] %v3792_v42 }
 0x1a2   : > { %v1697_v40 = vsel %vm1681_vm2, %v6610_v21, 0.0 }
 0x1a3   : > { %v1696_v18 = vadd.f32 %v1695_v46, %v1694_v2  ;;  %v3784_v2 = vadd.f32 %v3650_v51, %v3579_v43  ;;  %v6618_v43 = vmax.f32 %v3764_v48, 0.0  ;;  %v3812_v48 = vadd.f32 %v3650_v51, %v3591_v59 }
 0x1a4   : > { %v3754_v62 = vpop.f32.mrb[72].mxu0  ;;  %v3756_v0 = vpop.f32.mrb[72].mxu1  ;;  %v6624_v59 = vmax.f32 %v3792_v42, 0.0 }
 0x1a5   : > { %v1096_v56 = vpop.f32.mrb[73].mxu0  ;;  %v1416_v12 = vpop.f32.mrb[73].mxu1  ;;  %v1698_v21 = vadd.f32 %v1697_v40, %v1696_v18  ;;  %6615 = vst [vmem:[#allocation32_spill] sm:$0xff] %v3784_v2  ;;  %v1703_v18 = vsel %vm1681_vm2, %v6616_v37, 0.0  ;;  %6621 = vst [vmem:[#allocation35_spill] sm:$0xff] %v3812_v48 }
 0x1a6   : > { %v1701_v56 = vsel %vm1681_vm2, %v6614_v31, 0.0 }
 0x1a7   : > { %v1700_v20 = vadd.f32 %v1699_v58, %v1698_v21  ;;  %v3804_v21 = vadd.f32 %v3650_v51, %v3587_v53  ;;  %v6622_v53 = vmax.f32 %v3784_v2, 0.0  ;;  %v3832_v2 = vadd.f32 %v3650_v51, %v3599_v7 }
 0x1a8   : > { %v3774_v32 = vpop.f32.mrb[74].mxu0  ;;  %v3776_v10 = vpop.f32.mrb[74].mxu1  ;;  %v6628_v7 = vmax.f32 %v3812_v48, 0.0 }
 0x1a9   : > { %v1101_v12 = vpop.f32.mrb[75].mxu0  ;;  %v1421_v27 = vpop.f32.mrb[75].mxu1  ;;  %v1702_v31 = vadd.f32 %v1701_v56, %v1700_v20  ;;  %6619 = vst [vmem:[#allocation34_spill] sm:$0xff] %v3804_v21  ;;  %v1707_v20 = vsel %vm1681_vm2, %v6620_v47, 0.0  ;;  %6625 = vst [vmem:[#allocation37_spill] sm:$0xff] %v3832_v2 }
 0x1aa   : > { %v1705_v12 = vsel %vm1681_vm2, %v6618_v43, 0.0 }
 0x1ab   : > { %v1704_v40 = vadd.f32 %v1703_v18, %v1702_v31  ;;  %v3824_v31 = vadd.f32 %v3650_v51, %v3595_v63  ;;  %v6626_v63 = vmax.f32 %v3804_v21, 0.0  ;;  %v3852_v21 = vadd.f32 %v3650_v51, %v3607_v23 }
 0x1ac   : > { %v3794_v16 = vpop.f32.mrb[76].mxu0  ;;  %v3796_v46 = vpop.f32.mrb[76].mxu1  ;;  %v6632_v23 = vmax.f32 %v3832_v2, 0.0 }
 0x1ad   : > { %v1106_v27 = vpop.f32.mrb[77].mxu0  ;;  %v1426_v37 = vpop.f32.mrb[77].mxu1  ;;  %v1706_v43 = vadd.f32 %v1705_v12, %v1704_v40  ;;  %6623 = vst [vmem:[#allocation36_spill] sm:$0xff] %v3824_v31  ;;  %v1711_v40 = vsel %vm1681_vm2, %v6624_v59, 0.0  ;;  %6629 = vst [vmem:[#allocation39_spill] sm:$0xff] %v3852_v21 }
 0x1ae   : > { %v1709_v27 = vsel %vm1681_vm2, %v6622_v53, 0.0 }
 0x1af   : > { %v1708_v56 = vadd.f32 %v1707_v20, %v1706_v43  ;;  %v3844_v43 = vadd.f32 %v3650_v51, %v3603_v15  ;;  %v6630_v15 = vmax.f32 %v3824_v31, 0.0  ;;  %v3872_v31 = vadd.f32 %v3650_v51, %v3615_v45 }
 0x1b0   : > { %v3814_v26 = vpop.f32.mrb[78].mxu0  ;;  %v3816_v58 = vpop.f32.mrb[78].mxu1  ;;  %v6636_v45 = vmax.f32 %v3852_v21, 0.0 }
 0x1b1   : > { %v1111_v37 = vpop.f32.mrb[79].mxu0  ;;  %v1431_v47 = vpop.f32.mrb[79].mxu1  ;;  %v1710_v53 = vadd.f32 %v1709_v27, %v1708_v56  ;;  %6627 = vst [vmem:[#allocation38_spill] sm:$0xff] %v3844_v43  ;;  %v1715_v56 = vsel %vm1681_vm2, %v6628_v7, 0.0  ;;  %6633 = vst [vmem:[#allocation41_spill] sm:$0xff] %v3872_v31 }
 0x1b2   : > { %v1713_v37 = vsel %vm1681_vm2, %v6626_v63, 0.0 }
 0x1b3   : > { %v1712_v12 = vadd.f32 %v1711_v40, %v1710_v53  ;;  %v3864_v53 = vadd.f32 %v3650_v51, %v3611_v35  ;;  %v6634_v35 = vmax.f32 %v3844_v43, 0.0  ;;  %v3892_v43 = vadd.f32 %v3650_v51, %v3623_v5 }
 0x1b4   : > { %v3834_v4 = vpop.f32.mrb[80].mxu0  ;;  %v3836_v18 = vpop.f32.mrb[80].mxu1  ;;  %v6640_v5 = vmax.f32 %v3872_v31, 0.0 }
 0x1b5   : > { %v1116_v47 = vpop.f32.mrb[81].mxu0  ;;  %v1436_v59 = vpop.f32.mrb[81].mxu1  ;;  %v1714_v63 = vadd.f32 %v1713_v37, %v1712_v12  ;;  %6631 = vst [vmem:[#allocation40_spill] sm:$0xff] %v3864_v53  ;;  %v1719_v12 = vsel %vm1681_vm2, %v6632_v23, 0.0  ;;  %6637 = vst [vmem:[#allocation43_spill] sm:$0xff] %v3892_v43 }
 0x1b6   : > { %v1717_v47 = vsel %vm1681_vm2, %v6630_v15, 0.0 }
 0x1b7   : > { %v1716_v27 = vadd.f32 %v1715_v56, %v1714_v63  ;;  %v3884_v63 = vadd.f32 %v3650_v51, %v3619_v55  ;;  %v6638_v55 = vmax.f32 %v3864_v53, 0.0  ;;  %v3912_v53 = vadd.f32 %v3650_v51, %v3631_v39 }
 0x1b8   : > { %v3854_v42 = vpop.f32.mrb[82].mxu0  ;;  %v3856_v20 = vpop.f32.mrb[82].mxu1  ;;  %v6644_v39 = vmax.f32 %v3892_v43, 0.0 }
 0x1b9   : > { %v1121_v59 = vpop.f32.mrb[83].mxu0  ;;  %v1441_v7 = vpop.f32.mrb[83].mxu1  ;;  %v1718_v15 = vadd.f32 %v1717_v47, %v1716_v27  ;;  %6635 = vst [vmem:[#allocation42_spill] sm:$0xff] %v3884_v63  ;;  %v1723_v27 = vsel %vm1681_vm2, %v6636_v45, 0.0  ;;  %6641 = vst [vmem:[#allocation45_spill] sm:$0xff] %v3912_v53 }
 0x1ba   : > { %v1721_v59 = vsel %vm1681_vm2, %v6634_v35, 0.0 }
 0x1bb   : > { %v1720_v37 = vadd.f32 %v1719_v12, %v1718_v15  ;;  %v3904_v15 = vadd.f32 %v3650_v51, %v3627_v19  ;;  %v6642_v19 = vmax.f32 %v3884_v63, 0.0  ;;  %v3932_v63 = vadd.f32 %v3650_v51, %v3639_v11 }
 0x1bc   : > { %v3874_v48 = vpop.f32.mrb[84].mxu0  ;;  %v3876_v40 = vpop.f32.mrb[84].mxu1  ;;  %v6648_v11 = vmax.f32 %v3912_v53, 0.0 }
 0x1bd   : > { %v1126_v7 = vpop.f32.mrb[85].mxu0  ;;  %v1446_v23 = vpop.f32.mrb[85].mxu1  ;;  %v1722_v35 = vadd.f32 %v1721_v59, %v1720_v37  ;;  %6639 = vst [vmem:[#allocation44_spill] sm:$0xff] %v3904_v15  ;;  %v1727_v37 = vsel %vm1681_vm2, %v6640_v5, 0.0  ;;  %6645 = vst [vmem:[#allocation47_spill] sm:$0xff] %v3932_v63 }
 0x1be   : > { %v1725_v7 = vsel %vm1681_vm2, %v6638_v55, 0.0 }
 0x1bf   : > { %v1724_v47 = vadd.f32 %v1723_v27, %v1722_v35  ;;  %v3924_v35 = vadd.f32 %v3650_v51, %v3635_v61  ;;  %v6646_v61 = vmax.f32 %v3904_v15, 0.0  ;;  %v3952_v15 = vadd.f32 %v3650_v51, %v3656_v6 }
 0x1c0   : > { %v3894_v2 = vpop.f32.mrb[86].mxu0  ;;  %v3896_v56 = vpop.f32.mrb[86].mxu1  ;;  %v6652_v6 = vmax.f32 %v3932_v63, 0.0 }
 0x1c1   : > { %v1131_v23 = vpop.f32.mrb[87].mxu0  ;;  %v1451_v45 = vpop.f32.mrb[87].mxu1  ;;  %v1726_v55 = vadd.f32 %v1725_v7, %v1724_v47  ;;  %6643 = vst [vmem:[#allocation46_spill] sm:$0xff] %v3924_v35  ;;  %v1731_v47 = vsel %vm1681_vm2, %v6644_v39, 0.0  ;;  %6649 = vst [vmem:[#allocation49_spill] sm:$0xff] %v3952_v15 }
 0x1c2   : > { %v1729_v23 = vsel %vm1681_vm2, %v6642_v19, 0.0 }
 0x1c3   : > { %v1728_v59 = vadd.f32 %v1727_v37, %v1726_v55  ;;  %v3944_v55 = vadd.f32 %v3650_v51, %v3643_v29  ;;  %v6650_v29 = vmax.f32 %v3924_v35, 0.0  ;;  %v3972_v35 = vadd.f32 %v3650_v51, %v3691_v52 }
 0x1c4   : > { %v3914_v21 = vpop.f32.mrb[88].mxu0  ;;  %v3916_v12 = vpop.f32.mrb[88].mxu1  ;;  %v6656_v52 = vmax.f32 %v3952_v15, 0.0 }
 0x1c5   : > { %v1136_v45 = vpop.f32.mrb[89].mxu0  ;;  %v1456_v5 = vpop.f32.mrb[89].mxu1  ;;  %v1730_v19 = vadd.f32 %v1729_v23, %v1728_v59  ;;  %6647 = vst [vmem:[#allocation48_spill] sm:$0xff] %v3944_v55  ;;  %v1735_v59 = vsel %vm1681_vm2, %v6648_v11, 0.0  ;;  %6653 = vst [vmem:[#allocation51_spill] sm:$0xff] %v3972_v35 }
 0x1c6   : > { %v1733_v45 = vsel %vm1681_vm2, %v6646_v61, 0.0 }
 0x1c7   : > { %v1732_v7 = vadd.f32 %v1731_v47, %v1730_v19  ;;  %v3964_v19 = vadd.f32 %v3650_v51, %v3673_v14  ;;  %v6654_v14 = vmax.f32 %v3944_v55, 0.0  ;;  %v3992_v55 = vadd.f32 %v3650_v51, %v3734_v8 }
 0x1c8   : > { %v3934_v31 = vpop.f32.mrb[90].mxu0  ;;  %v3936_v27 = vpop.f32.mrb[90].mxu1  ;;  %v6660_v8 = vmax.f32 %v3972_v35, 0.0 }
 0x1c9   : > { %v1141_v5 = vpop.f32.mrb[91].mxu0  ;;  %v1461_v39 = vpop.f32.mrb[91].mxu1  ;;  %v1734_v61 = vadd.f32 %v1733_v45, %v1732_v7  ;;  %6651 = vst [vmem:[#allocation50_spill] sm:$0xff] %v3964_v19  ;;  %v1739_v7 = vsel %vm1681_vm2, %v6652_v6, 0.0  ;;  %6657 = vst [vmem:[#allocation53_spill] sm:$0xff] %v3992_v55 }
 0x1ca   : > { %v1737_v5 = vsel %vm1681_vm2, %v6650_v29, 0.0 }
 0x1cb   : > { %v1736_v23 = vadd.f32 %v1735_v59, %v1734_v61  ;;  %v3984_v61 = vadd.f32 %v3650_v51, %v3714_v36  ;;  %v6658_v36 = vmax.f32 %v3964_v19, 0.0  ;;  %v4012_v19 = vadd.f32 %v3650_v51, %v3774_v32 }
 0x1cc   : > { %v3954_v43 = vpop.f32.mrb[92].mxu0  ;;  %v3956_v37 = vpop.f32.mrb[92].mxu1  ;;  %v6664_v32 = vmax.f32 %v3992_v55, 0.0 }
 0x1cd   : > { %v1146_v39 = vpop.f32.mrb[93].mxu0  ;;  %v1466_v11 = vpop.f32.mrb[93].mxu1  ;;  %v1738_v29 = vadd.f32 %v1737_v5, %v1736_v23  ;;  %6655 = vst [vmem:[#allocation52_spill] sm:$0xff] %v3984_v61  ;;  %v1743_v23 = vsel %vm1681_vm2, %v6656_v52, 0.0  ;;  %6661 = vst [vmem:[#allocation55_spill] sm:$0xff] %v4012_v19 }
 0x1ce   : > { %v1741_v39 = vsel %vm1681_vm2, %v6654_v14, 0.0 }
 0x1cf   : > { %v1740_v45 = vadd.f32 %v1739_v7, %v1738_v29  ;;  %v4004_v29 = vadd.f32 %v3650_v51, %v3754_v62  ;;  %v6662_v62 = vmax.f32 %v3984_v61, 0.0  ;;  %v4032_v61 = vadd.f32 %v3650_v51, %v3814_v26 }
 0x1d0   : > { %v3974_v53 = vpop.f32.mrb[94].mxu0  ;;  %v3976_v47 = vpop.f32.mrb[94].mxu1  ;;  %v6668_v26 = vmax.f32 %v4012_v19, 0.0 }
 0x1d1   : > { %v1151_v11 = vpop.f32.mrb[95].mxu0  ;;  %v1471_v6 = vpop.f32.mrb[95].mxu1  ;;  %v1742_v14 = vadd.f32 %v1741_v39, %v1740_v45  ;;  %6659 = vst [vmem:[#allocation54_spill] sm:$0xff] %v4004_v29  ;;  %v1747_v45 = vsel %vm1681_vm2, %v6660_v8, 0.0  ;;  %6665 = vst [vmem:[#allocation57_spill] sm:$0xff] %v4032_v61 }
 0x1d2   : > { %v1745_v11 = vsel %vm1681_vm2, %v6658_v36, 0.0 }
 0x1d3   : > { %v1744_v5 = vadd.f32 %v1743_v23, %v1742_v14  ;;  %v4024_v14 = vadd.f32 %v3650_v51, %v3794_v16  ;;  %v6666_v16 = vmax.f32 %v4004_v29, 0.0  ;;  %v4052_v29 = vadd.f32 %v3650_v51, %v3854_v42 }
 0x1d4   : > { %v3994_v63 = vpop.f32.mrb[96].mxu0  ;;  %v3996_v59 = vpop.f32.mrb[96].mxu1  ;;  %v6672_v42 = vmax.f32 %v4032_v61, 0.0 }
 0x1d5   : > { %v1156_v6 = vpop.f32.mrb[97].mxu0  ;;  %v1476_v52 = vpop.f32.mrb[97].mxu1  ;;  %v1746_v36 = vadd.f32 %v1745_v11, %v1744_v5  ;;  %6663 = vst [vmem:[#allocation56_spill] sm:$0xff] %v4024_v14  ;;  %v1751_v5 = vsel %vm1681_vm2, %v6664_v32, 0.0  ;;  %6669 = vst [vmem:[#allocation59_spill] sm:$0xff] %v4052_v29 }
 0x1d6   : > { %v1749_v6 = vsel %vm1681_vm2, %v6662_v62, 0.0 }
 0x1d7   : > { %v1748_v39 = vadd.f32 %v1747_v45, %v1746_v36  ;;  %v4044_v36 = vadd.f32 %v3650_v51, %v3834_v4  ;;  %v6670_v4 = vmax.f32 %v4024_v14, 0.0  ;;  %v4070_v14 = vadd.f32 %v3650_v51, %v3894_v2 }
 0x1d8   : > { %v4014_v15 = vpop.f32.mrb[98].mxu0  ;;  %v4016_v7 = vpop.f32.mrb[98].mxu1  ;;  %v6676_v2 = vmax.f32 %v4052_v29, 0.0 }
 0x1d9   : > { %v1161_v52 = vpop.f32.mrb[99].mxu0  ;;  %v1481_v8 = vpop.f32.mrb[99].mxu1  ;;  %v1750_v62 = vadd.f32 %v1749_v6, %v1748_v39  ;;  %6667 = vst [vmem:[#allocation58_spill] sm:$0xff] %v4044_v36  ;;  %v1755_v39 = vsel %vm1681_vm2, %v6668_v26, 0.0  ;;  %6673 = vst [vmem:[#allocation61_spill] sm:$0xff] %v4070_v14 }
 0x1da   : > { %v1753_v52 = vsel %vm1681_vm2, %v6666_v16, 0.0 }
 0x1db   : > { %v1752_v11 = vadd.f32 %v1751_v5, %v1750_v62  ;;  %v4062_v62 = vadd.f32 %v3650_v51, %v3874_v48  ;;  %v6674_v48 = vmax.f32 %v4044_v36, 0.0  ;;  %v4088_v36 = vadd.f32 %v3650_v51, %v3934_v31 }
 0x1dc   : > { %v4034_v35 = vpop.f32.mrb[100].mxu0  ;;  %v4036_v23 = vpop.f32.mrb[100].mxu1  ;;  %v6680_v31 = vmax.f32 %v4070_v14, 0.0 }
 0x1dd   : > { %v1166_v8 = vpop.f32.mrb[101].mxu0  ;;  %v1486_v32 = vpop.f32.mrb[101].mxu1  ;;  %v1754_v16 = vadd.f32 %v1753_v52, %v1752_v11  ;;  %6671 = vst [vmem:[#allocation60_spill] sm:$0xff] %v4062_v62  ;;  %v1759_v11 = vsel %vm1681_vm2, %v6672_v42, 0.0  ;;  %6677 = vst [vmem:[#allocation63_spill] sm:$0xff] %v4088_v36 }
 0x1de   : > { %v1757_v8 = vsel %vm1681_vm2, %v6670_v4, 0.0 }
 0x1df   : > { %v1756_v6 = vadd.f32 %v1755_v39, %v1754_v16  ;;  %v4080_v16 = vadd.f32 %v3650_v51, %v3914_v21  ;;  %v6678_v21 = vmax.f32 %v4062_v62, 0.0  ;;  %v4106_v62 = vadd.f32 %v3650_v51, %v3974_v53 }
 0x1e0   : > { %v1169_v55 = vpop.f32.mrb[102].mxu0  ;;  %v4054_v45 = vpop.f32.mrb[102].mxu1  ;;  %v6684_v53 = vmax.f32 %v4088_v36, 0.0 }
 0x1e1   : > { %v1171_v32 = vpop.f32.mrb[103].mxu0  ;;  %v1491_v26 = vpop.f32.mrb[103].mxu1  ;;  %v1758_v4 = vadd.f32 %v1757_v8, %v1756_v6  ;;  %6675 = vst [vmem:[#allocation62_spill] sm:$0xff] %v4080_v16  ;;  %v1763_v6 = vsel %vm1681_vm2, %v6676_v2, 0.0  ;;  %6681 = vst [vmem:[#allocation65_spill] sm:$0xff] %v4106_v62  ;;  %v4141_v36 = vadd.f32 %v3650_v51, %v1169_v55 }
 0x1e2   : > { %v1761_v32 = vsel %vm1681_vm2, %v6674_v48, 0.0 }
 0x1e3   : > { %v1760_v52 = vadd.f32 %v1759_v11, %v1758_v4  ;;  %v4098_v4 = vadd.f32 %v3650_v51, %v3954_v43  ;;  %v6682_v43 = vmax.f32 %v4080_v16, 0.0  ;;  %v4124_v16 = vadd.f32 %v3650_v51, %v4014_v15  ;;  %6690 = vst [vmem:[#allocation70_spill] sm:$0xff] %v4141_v36 }
 0x1e4   : > { %v1174_v19 = vpop.f32.mrb[104].mxu0  ;;  %v4072_v5 = vpop.f32.mrb[104].mxu1  ;;  %v6689_v15 = vmax.f32 %v4106_v62, 0.0 }
 0x1e5   : > { %v1176_v26 = vpop.f32.mrb[105].mxu0  ;;  %v1496_v42 = vpop.f32.mrb[105].mxu1  ;;  %v1762_v48 = vadd.f32 %v1761_v32, %v1760_v52  ;;  %6679 = vst [vmem:[#allocation64_spill] sm:$0xff] %v4098_v4  ;;  %v1767_v52 = vsel %vm1681_vm2, %v6680_v31, 0.0  ;;  %6685 = vst [vmem:[#allocation67_spill] sm:$0xff] %v4124_v16 }
 0x1e6   : > { %v1765_v26 = vsel %vm1681_vm2, %v6678_v21, 0.0 }
 0x1e7   : > { %v1764_v8 = vadd.f32 %v1763_v6, %v1762_v48  ;;  %v4116_v48 = vadd.f32 %v3650_v51, %v3994_v63  ;;  %v6687_v63 = vmax.f32 %v4098_v4, 0.0 }
 0x1e8   : > { %v1179_v61 = vpop.f32.mrb[106].mxu0  ;;  %v4090_v39 = vpop.f32.mrb[106].mxu1 }
 0x1e9   : > { %v1181_v42 = vpop.f32.mrb[107].mxu0  ;;  %v1501_v2 = vpop.f32.mrb[107].mxu1  ;;  %v1766_v21 = vadd.f32 %v1765_v26, %v1764_v8  ;;  %6683 = vst [vmem:[#allocation66_spill] sm:$0xff] %v4116_v48  ;;  %v1771_v8 = vsel %vm1681_vm2, %v6684_v53, 0.0 }
 0x1ea   : > { %v1769_v42 = vsel %vm1681_vm2, %v6682_v43, 0.0 }
 0x1eb   : > { %v1768_v32 = vadd.f32 %v1767_v52, %v1766_v21  ;;  %v6377_v52 = vmax.f32 %v4116_v48, 0.0  ;;  %v4134_v21 = vadd.f32 %v3650_v51, %v4034_v35 }
 0x1ec   : > { %v1184_v29 = vpop.f32.mrb[108].mxu0  ;;  %v4108_v11 = vpop.f32.mrb[108].mxu1 }
 0x1ed   : > { %v1186_v2 = vpop.f32.mrb[109].mxu0  ;;  %v1506_v31 = vpop.f32.mrb[109].mxu1  ;;  %v1770_v43 = vadd.f32 %v1769_v42, %v1768_v32  ;;  %6688 = vst [vmem:[#allocation69_spill] sm:$0xff] %v4134_v21  ;;  %v1775_v32 = vsel %vm1681_vm2, %v6689_v15, 0.0  ;;  %v6378_v42 = vmax.f32 %v4124_v16, 0.0  ;;  %v1777_v35 = vsel %vm1681_vm2, %v6377_v52, 0.0 }
 0x1ee   : > { %v1773_v2 = vsel %vm1681_vm2, %v6687_v63, 0.0 }
 0x1ef   : > { %v1772_v26 = vadd.f32 %v1771_v8, %v1770_v43  ;;  %v4150_v8 = vadd.f32 %v3650_v51, %v1174_v19  ;;  %v1779_v55 = vsel %vm1681_vm2, %v6378_v42, 0.0 }
 0x1f0   : > { %v1189_v14 = vpop.f32.mrb[110].mxu0  ;;  %v4126_v6 = vpop.f32.mrb[110].mxu1 }
 0x1f1   : > { %6686 = vst [vmem:[#allocation68_spill] sm:$0xff] %v4126_v6  ;;  %v1191_v31 = vpop.f32.mrb[111].mxu0  ;;  %v1511_v53 = vpop.f32.mrb[111].mxu1  ;;  %v1774_v4 = vadd.f32 %v1773_v2, %v1772_v26  ;;  %6691 = vst [vmem:[#allocation71_spill] sm:$0xff] %v4150_v8  ;;  %v6382_v26 = vmax.f32 %v4141_v36, 0.0  ;;  %v4157_v2 = vadd.f32 %v3650_v51, %v1179_v61 }
 0x1f2   : > { %v6381_v31 = vmax.f32 %v4134_v21, 0.0 }
 0x1f3   : > { %v1776_v15 = vadd.f32 %v1775_v32, %v1774_v4  ;;  %6692 = vst [vmem:[#allocation72_spill] sm:$0xff] %v4157_v2  ;;  %v4166_v4 = vadd.f32 %v3650_v51, %v1184_v29  ;;  %v1783_v61 = vsel %vm1681_vm2, %v6382_v26, 0.0 }
 0x1f4   : > { %v1194_v63 = vpop.f32.mrb[112].mxu0  ;;  %v4143_v6 = vpop.f32.mrb[112].mxu1  ;;  %v1781_v19 = vsel %vm1681_vm2, %v6381_v31, 0.0 }
 0x1f5   : > { %v1196_v43 = vpop.f32.mrb[113].mxu0  ;;  %v1516_v53 = vpop.f32.mrb[113].mxu1  ;;  %v1778_v48 = vadd.f32 %v1777_v35, %v1776_v15  ;;  %6693 = vst [vmem:[#allocation73_spill] sm:$0xff] %v4166_v4  ;;  %v6386_v35 = vmax.f32 %v4157_v2, 0.0  ;;  %v4173_v15 = vadd.f32 %v3650_v51, %v1189_v14 }
 0x1f6   : > { %v6385_v43 = vmax.f32 %v4150_v8, 0.0 }
 0x1f7   : > { %v1780_v42 = vadd.f32 %v1779_v55, %v1778_v48  ;;  %6694 = vst [vmem:[#allocation74_spill] sm:$0xff] %v4173_v15  ;;  %v4182_v48 = vadd.f32 %v3650_v51, %v1194_v63  ;;  %v1787_v14 = vsel %vm1681_vm2, %v6386_v35, 0.0 }
 0x1f8   : > { %v1199_v62 = vpop.f32.mrb[114].mxu0  ;;  %v4159_v52 = vpop.f32.mrb[114].mxu1  ;;  %v1785_v29 = vsel %vm1681_vm2, %v6385_v43, 0.0 }
 0x1f9   : > { %v1201_v32 = vpop.f32.mrb[115].mxu0  ;;  %v1521_v53 = vpop.f32.mrb[115].mxu1  ;;  %v1782_v21 = vadd.f32 %v1781_v19, %v1780_v42  ;;  %6695 = vst [vmem:[#allocation75_spill] sm:$0xff] %v4182_v48  ;;  %v6390_v42 = vmax.f32 %v4173_v15, 0.0  ;;  %v4189_v19 = vadd.f32 %v3650_v51, %v1199_v62 }
 0x1fa   : > { %v6389_v32 = vmax.f32 %v4166_v4, 0.0 }
 0x1fb   : > { %v1784_v26 = vadd.f32 %v1783_v61, %v1782_v21  ;;  %6696 = vst [vmem:[#allocation76_spill] sm:$0xff] %v4189_v19  ;;  %v1791_v62 = vsel %vm1681_vm2, %v6390_v42, 0.0 }
 0x1fc   : > { %v1204_v16 = vpop.f32.mrb[116].mxu0  ;;  %v4175_v31 = vpop.f32.mrb[116].mxu1  ;;  %v1789_v63 = vsel %vm1681_vm2, %v6389_v32, 0.0 }
 0x1fd   : > { %v1206_v55 = vpop.f32.mrb[117].mxu0  ;;  %v1526_v53 = vpop.f32.mrb[117].mxu1  ;;  %v1786_v8 = vadd.f32 %v1785_v29, %v1784_v26  ;;  %v4198_v21 = vadd.f32 %v3650_v51, %v1204_v16  ;;  %v6393_v26 = vmax.f32 %v4189_v19, 0.0 }
 0x1fe   : > { %v6392_v55 = vmax.f32 %v4182_v48, 0.0 }
 0x1ff   : > { %v1788_v35 = vadd.f32 %v1787_v14, %v1786_v8 }
 0x200   : > { %v1209_v36 = vpop.f32.mrb[118].mxu0  ;;  %v4191_v43 = vpop.f32.mrb[118].mxu1  ;;  %v1793_v16 = vsel %vm1681_vm2, %v6392_v55, 0.0 }
 0x201   : > { %v1211_v61 = vpop.f32.mrb[119].mxu0  ;;  %v1531_v53 = vpop.f32.mrb[119].mxu1  ;;  %v4205_v29 = vadd.f32 %v3650_v51, %v1209_v36  ;;  %v1790_v4 = vadd.f32 %v1789_v63, %v1788_v35  ;;  %v1795_v36 = vsel %vm1681_vm2, %v6393_v26, 0.0 }
 0x202   : > { %v6396_v61 = vmax.f32 %v4198_v21, 0.0 }
 0x203   : > { %6697 = vst [vmem:[#allocation77_spill] sm:$0xff] %v4205_v29  ;;  %v1792_v42 = vadd.f32 %v1791_v62, %v1790_v4  ;;  %v6397_v35 = vmax.f32 %v4205_v29, 0.0 }
 0x204   : > { %v1214_v2 = vpop.f32.mrb[120].mxu0  ;;  %v4207_v32 = vpop.f32.mrb[120].mxu1  ;;  %v1797_v55 = vsel %vm1681_vm2, %v6396_v61, 0.0 }
 0x205   : > { %6698 = vst [vmem:[#allocation78_spill] sm:$0xff] %v4207_v32  ;;  %v4214_v8 = vadd.f32 %v3650_v51, %v1214_v2  ;;  %v1216_v14 = vpop.f32.mrb[121].mxu0  ;;  %v1536_v53 = vpop.f32.mrb[121].mxu1  ;;  %v1794_v63 = vadd.f32 %v1793_v16, %v1792_v42  ;;  %v1799_v26 = vsel %vm1681_vm2, %v6397_v35, 0.0 }
 0x207   : > { %6699 = vst [vmem:[#allocation79_spill] sm:$0xff] %v4214_v8  ;;  %v6401_v2 = vmax.f32 %v4214_v8, 0.0  ;;  %v1796_v53 = vadd.f32 %v1795_v36, %v1794_v63  ;;  %v4243_v63 = vadd.f32 %v3650_v51, %v3466_v1 }
 0x208   : > { %v1219_v15 = vpop.f32.mrb[122].mxu0  ;;  %v4220_v32 = vpop.f32.mrb[122].mxu1 }
 0x209   : > { %v4227_v14 = vadd.f32 %v3650_v51, %v1219_v15  ;;  %v1221_v4 = vpop.f32.mrb[123].mxu0  ;;  %v1541_v62 = vpop.f32.mrb[123].mxu1  ;;  %v1798_v16 = vadd.f32 %v1797_v55, %v1796_v53  ;;  %v1801_v61 = vsel %vm1681_vm2, %v6401_v2, 0.0 }
 0x20b   : > { %v6400_v42 = vmax.f32 %v4227_v14, 0.0  ;;  %v1800_v36 = vadd.f32 %v1799_v26, %v1798_v16 }
 0x20c   : > { %v1224_v19 = vpop.f32.mrb[124].mxu0  ;;  %v4233_v48 = vpop.f32.mrb[124].mxu1 }
 0x20d   : > { %v4239_v15 = vadd.f32 %v3650_v51, %v1224_v19  ;;  %v1226_v4 = vpop.f32.mrb[125].mxu0  ;;  %v1546_v62 = vpop.f32.mrb[125].mxu1  ;;  %v1803_v55 = vsel %vm1681_vm2, %v6400_v42, 0.0  ;;  %v1802_v35 = vadd.f32 %v1801_v61, %v1800_v36  ;;  %v4253_v19 = vadd.f32 %v3650_v51, %v3476_v9 }
 0x20e   : > { %v6403_v42 = vmax.f32 %v4243_v63, 0.0  ;;  %v4264_v61 = vadd.f32 %v3650_v51, %v3486_v17 }
 0x20f   : > { %v6402_v53 = vmax.f32 %v4239_v15, 0.0  ;;  %v1804_v62 = vadd.f32 %v1803_v55, %v1802_v35  ;;  %v6404_v2 = vmax.f32 %v4253_v19, 0.0 }
 0x210   : > { %v1229_v8 = vpop.f32.mrb[126].mxu0  ;;  %v4249_v29 = vpop.f32.mrb[126].mxu1  ;;  %v1809_v55 = vsel %vm1681_vm2, %v6403_v42, 0.0  ;;  %v6405_v17 = vmax.f32 %v4264_v61, 0.0 }
 0x211   : > { %v1805_v26 = vsel %vm1681_vm2, %v6402_v53, 0.0  ;;  %v4259_v1 = vadd.f32 %v3650_v51, %v1229_v8  ;;  %v1231_v16 = vpop.f32.mrb[127].mxu0  ;;  %v1551_v4 = vpop.f32.mrb[127].mxu1  ;;  %v4270_v53 = vadd.f32 %v3650_v51, %v3496_v25  ;;  %v1811_v25 = vsel %vm1681_vm2, %v6404_v2, 0.0 }
 0x212   : > { %v1806_v9 = vadd.f32 %v1805_v26, %v1804_v62  ;;  %v4281_v26 = vadd.f32 %v3650_v51, %v3506_v33  ;;  %v4289_v62 = vadd.f32 %v3650_v51, %v3516_v41  ;;  %v4297_v33 = vadd.f32 %v3650_v51, %v3526_v49 }
 0x213   : > { %v6417_v36 = vmax.f32 %v4259_v1, 0.0  ;;  %v6406_v4 = vmax.f32 %v4270_v53, 0.0  ;;  %v4305_v41 = vadd.f32 %v3650_v51, %v3536_v57  ;;  %v4313_v49 = vadd.f32 %v3650_v51, %v3546_v3 }
 0x214   : > { %v6407_v42 = vmax.f32 %v4281_v26, 0.0  ;;  %v6408_v2 = vmax.f32 %v4289_v62, 0.0  ;;  %v4321_v57 = vadd.f32 %v3650_v51, %v3556_v13  ;;  %v4329_v3 = vadd.f32 %v3650_v51, %v3565_v22 }
 0x215   : > { %v1807_v8 = vsel %vm1681_vm2, %v6417_v36, 0.0  ;;  %v4337_v13 = vadd.f32 %v3650_v51, %v3569_v28  ;;  %v4345_v22 = vadd.f32 %v3650_v51, %v3573_v34  ;;  %v4353_v28 = vadd.f32 %v3650_v51, %v3577_v38 }
 0x216   : > { %v1808_v35 = vadd.f32 %v1807_v8, %v1806_v9  ;;  %v1813_v8 = vsel %vm1681_vm2, %v6405_v17, 0.0  ;;  %v6409_v17 = vmax.f32 %v4297_v33, 0.0  ;;  %v4361_v34 = vadd.f32 %v3650_v51, %v3581_v44 }
 0x217   : > { %v4369_v38 = vadd.f32 %v3650_v51, %v3585_v50  ;;  %v4377_v44 = vadd.f32 %v3650_v51, %v3589_v54  ;;  %v4385_v50 = vadd.f32 %v3650_v51, %v3593_v60  ;;  %v6704_v54 = vld [vmem:[#allocation2_spill] sm:$0xff]  ;;  %v6706_v60 = vld [vmem:[#allocation3_spill] sm:$0xff] }
 0x218   : > { %v1810_v16 = vadd.f32 %v1809_v55, %v1808_v35  ;;  %v1815_v55 = vsel %vm1681_vm2, %v6406_v4, 0.0  ;;  %v6410_v4 = vmax.f32 %v4305_v41, 0.0  ;;  %6700 = vst [vmem:[#allocation80_spill] sm:$0xff] %v4361_v34 }
 0x219   : > { %6701 = vst [vmem:[#allocation81_spill] sm:$0xff] %v4369_v38  ;;  %6702 = vst [vmem:[#allocation82_spill] sm:$0xff] %v4377_v44  ;;  %v6424_v36 = vmax.f32 %v4385_v50, 0.0 }
 0x21a   : > { %v1812_v9 = vadd.f32 %v1811_v25, %v1810_v16  ;;  %v1817_v25 = vsel %vm1681_vm2, %v6407_v42, 0.0  ;;  %v6411_v42 = vmax.f32 %v4313_v49, 0.0  ;;  %6703 = vst [vmem:[#allocation83_spill] sm:$0xff] %v4385_v50 }
 0x21c   : > { %v1814_v35 = vadd.f32 %v1813_v8, %v1812_v9  ;;  %v1819_v8 = vsel %vm1681_vm2, %v6408_v2, 0.0  ;;  %v6412_v2 = vmax.f32 %v4321_v57, 0.0 }
 0x21e   : > { %v1816_v16 = vadd.f32 %v1815_v55, %v1814_v35  ;;  %v1821_v55 = vsel %vm1681_vm2, %v6409_v17, 0.0  ;;  %v6413_v17 = vmax.f32 %v4329_v3, 0.0 }
 0x220   : > { %v1818_v9 = vadd.f32 %v1817_v25, %v1816_v16  ;;  %v1823_v25 = vsel %vm1681_vm2, %v6410_v4, 0.0  ;;  %v6414_v4 = vmax.f32 %v4337_v13, 0.0 }
 0x222   : > { %v1820_v35 = vadd.f32 %v1819_v8, %v1818_v9  ;;  %v1825_v8 = vsel %vm1681_vm2, %v6411_v42, 0.0  ;;  %v6415_v42 = vmax.f32 %v4345_v22, 0.0 }
 0x224   : > { %v1822_v16 = vadd.f32 %v1821_v55, %v1820_v35  ;;  %v1827_v55 = vsel %vm1681_vm2, %v6412_v2, 0.0  ;;  %v6416_v2 = vmax.f32 %v4353_v28, 0.0 }
 0x226   : > { %v1824_v9 = vadd.f32 %v1823_v25, %v1822_v16  ;;  %v1829_v25 = vsel %vm1681_vm2, %v6413_v17, 0.0  ;;  %v6418_v17 = vmax.f32 %v4361_v34, 0.0 }
 0x228   : > { %v1826_v35 = vadd.f32 %v1825_v8, %v1824_v9  ;;  %v1831_v8 = vsel %vm1681_vm2, %v6414_v4, 0.0  ;;  %v6420_v4 = vmax.f32 %v4369_v38, 0.0 }
 0x22a   : > { %v1828_v16 = vadd.f32 %v1827_v55, %v1826_v35  ;;  %v1833_v55 = vsel %vm1681_vm2, %v6415_v42, 0.0  ;;  %v6422_v42 = vmax.f32 %v4377_v44, 0.0 }
 0x22c   : > { %v1830_v9 = vadd.f32 %v1829_v25, %v1828_v16  ;;  %v1835_v25 = vsel %vm1681_vm2, %v6416_v2, 0.0  ;;  %v1839_v2 = vsel %vm1681_vm2, %v6420_v4, 0.0  ;;  %v1843_v4 = vsel %vm1681_vm2, %v6424_v36, 0.0 }
 0x22e   : > { %v1832_v35 = vadd.f32 %v1831_v8, %v1830_v9  ;;  %v1837_v8 = vsel %vm1681_vm2, %v6418_v17, 0.0  ;;  %v1841_v17 = vsel %vm1681_vm2, %v6422_v42, 0.0 }
 0x230   : > { %v1834_v16 = vadd.f32 %v1833_v55, %v1832_v35  ;;  %v4393_v35 = vadd.f32 %v3650_v51, %v6704_v54  ;;  %v6708_v54 = vld [vmem:[#allocation4_spill] sm:$0xff] }
 0x232   : > { %v1836_v9 = vadd.f32 %v1835_v25, %v1834_v16  ;;  %6705 = vst [vmem:[#allocation2_spill] sm:$0xff] %v4393_v35  ;;  %v4401_v16 = vadd.f32 %v3650_v51, %v6706_v60  ;;  %v6426_v34 = vmax.f32 %v4393_v35, 0.0  ;;  %v6710_v60 = vld [vmem:[#allocation5_spill] sm:$0xff] }
 0x234   : > { %v1838_v55 = vadd.f32 %v1837_v8, %v1836_v9  ;;  %6707 = vst [vmem:[#allocation3_spill] sm:$0xff] %v4401_v16  ;;  %v4409_v9 = vadd.f32 %v3650_v51, %v6708_v54  ;;  %v6428_v38 = vmax.f32 %v4401_v16, 0.0  ;;  %v1845_v42 = vsel %vm1681_vm2, %v6426_v34, 0.0  ;;  %v6712_v54 = vld [vmem:[#allocation6_spill] sm:$0xff] }
 0x236   : > { %v1840_v25 = vadd.f32 %v1839_v2, %v1838_v55  ;;  %6709 = vst [vmem:[#allocation4_spill] sm:$0xff] %v4409_v9  ;;  %v4417_v2 = vadd.f32 %v3650_v51, %v6710_v60  ;;  %v6430_v44 = vmax.f32 %v4409_v9, 0.0  ;;  %v1847_v36 = vsel %vm1681_vm2, %v6428_v38, 0.0  ;;  %v6714_v60 = vld [vmem:[#allocation7_spill] sm:$0xff] }
 0x238   : > { %v1842_v8 = vadd.f32 %v1841_v17, %v1840_v25  ;;  %6711 = vst [vmem:[#allocation5_spill] sm:$0xff] %v4417_v2  ;;  %v4425_v17 = vadd.f32 %v3650_v51, %v6712_v54  ;;  %v6432_v50 = vmax.f32 %v4417_v2, 0.0  ;;  %v1849_v34 = vsel %vm1681_vm2, %v6430_v44, 0.0  ;;  %v6716_v54 = vld [vmem:[#allocation8_spill] sm:$0xff] }
 0x23a   : > { %v1844_v55 = vadd.f32 %v1843_v4, %v1842_v8  ;;  %6713 = vst [vmem:[#allocation6_spill] sm:$0xff] %v4425_v17  ;;  %v4433_v4 = vadd.f32 %v3650_v51, %v6714_v60  ;;  %v6434_v35 = vmax.f32 %v4425_v17, 0.0  ;;  %v1851_v38 = vsel %vm1681_vm2, %v6432_v50, 0.0  ;;  %v6718_v60 = vld [vmem:[#allocation9_spill] sm:$0xff] }
 0x23c   : > { %v1846_v25 = vadd.f32 %v1845_v42, %v1844_v55  ;;  %6715 = vst [vmem:[#allocation7_spill] sm:$0xff] %v4433_v4  ;;  %v4441_v42 = vadd.f32 %v3650_v51, %v6716_v54  ;;  %v6436_v16 = vmax.f32 %v4433_v4, 0.0  ;;  %v1853_v44 = vsel %vm1681_vm2, %v6434_v35, 0.0  ;;  %v6720_v54 = vld [vmem:[#allocation10_spill] sm:$0xff] }
 0x23e   : > { %v1848_v8 = vadd.f32 %v1847_v36, %v1846_v25  ;;  %6717 = vst [vmem:[#allocation8_spill] sm:$0xff] %v4441_v42  ;;  %v4449_v36 = vadd.f32 %v3650_v51, %v6718_v60  ;;  %v6438_v9 = vmax.f32 %v4441_v42, 0.0  ;;  %v1855_v50 = vsel %vm1681_vm2, %v6436_v16, 0.0  ;;  %v6722_v60 = vld [vmem:[#allocation11_spill] sm:$0xff] }
 0x240   : > { %v1850_v55 = vadd.f32 %v1849_v34, %v1848_v8  ;;  %6719 = vst [vmem:[#allocation9_spill] sm:$0xff] %v4449_v36  ;;  %v4457_v34 = vadd.f32 %v3650_v51, %v6720_v54  ;;  %v6440_v2 = vmax.f32 %v4449_v36, 0.0  ;;  %v1857_v35 = vsel %vm1681_vm2, %v6438_v9, 0.0  ;;  %v6724_v54 = vld [vmem:[#allocation12_spill] sm:$0xff] }
 0x242   : > { %v1852_v25 = vadd.f32 %v1851_v38, %v1850_v55  ;;  %6721 = vst [vmem:[#allocation10_spill] sm:$0xff] %v4457_v34  ;;  %v4465_v38 = vadd.f32 %v3650_v51, %v6722_v60  ;;  %v6442_v17 = vmax.f32 %v4457_v34, 0.0  ;;  %v1859_v16 = vsel %vm1681_vm2, %v6440_v2, 0.0  ;;  %v6725_v60 = vld [vmem:[#allocation13_spill] sm:$0xff] }
 0x244   : > { %v1854_v8 = vadd.f32 %v1853_v44, %v1852_v25  ;;  %6723 = vst [vmem:[#allocation11_spill] sm:$0xff] %v4465_v38  ;;  %v4473_v44 = vadd.f32 %v3650_v51, %v6724_v54  ;;  %v6444_v4 = vmax.f32 %v4465_v38, 0.0  ;;  %v1861_v9 = vsel %vm1681_vm2, %v6442_v17, 0.0  ;;  %v6727_v54 = vld [vmem:[#allocation14_spill] sm:$0xff] }
 0x246   : > { %v1856_v55 = vadd.f32 %v1855_v50, %v1854_v8  ;;  %v4481_v50 = vadd.f32 %v3650_v51, %v6725_v60  ;;  %v6446_v42 = vmax.f32 %v4473_v44, 0.0  ;;  %v1863_v2 = vsel %vm1681_vm2, %v6444_v4, 0.0  ;;  %v6728_v60 = vld [vmem:[#allocation16_spill] sm:$0xff] }
 0x248   : > { %v1858_v25 = vadd.f32 %v1857_v35, %v1856_v55  ;;  %6726 = vst [vmem:[#allocation12_spill] sm:$0xff] %v4481_v50  ;;  %v4489_v35 = vadd.f32 %v3650_v51, %v6727_v54  ;;  %v6447_v36 = vmax.f32 %v4481_v50, 0.0  ;;  %v1865_v17 = vsel %vm1681_vm2, %v6446_v42, 0.0  ;;  %v6729_v54 = vld [vmem:[#allocation20_spill] sm:$0xff] }
 0x24a   : > { %v1860_v8 = vadd.f32 %v1859_v16, %v1858_v25  ;;  %v4497_v16 = vadd.f32 %v3650_v51, %v6728_v60  ;;  %v6449_v34 = vmax.f32 %v4489_v35, 0.0  ;;  %v1867_v4 = vsel %vm1681_vm2, %v6447_v36, 0.0 }
 0x24c   : > { %v1862_v55 = vadd.f32 %v1861_v9, %v1860_v8  ;;  %v4505_v9 = vadd.f32 %v3650_v51, %v6729_v54  ;;  %v6450_v38 = vmax.f32 %v4497_v16, 0.0  ;;  %v1869_v51 = vsel %vm1681_vm2, %v6449_v34, 0.0 }
 0x24e   : > { %v1864_v25 = vadd.f32 %v1863_v2, %v1862_v55  ;;  %v4514_v2 = vld [vmem:[%s6325_s2] ss:$0 sm:$0xff]  ;;  %v6730_v55 = vld [vmem:[#allocation23_spill] sm:$0xff]  ;;  %v1871_v36 = vsel %vm1681_vm2, %v6450_v38, 0.0 }
 0x24f   : > { %v4518_v60 = vadd.f32 %v4514_v2, %v6730_v55 }
 0x250   : > { %v1866_v8 = vadd.f32 %v1865_v17, %v1864_v25  ;;  %v6451_v17 = vmax.f32 %v4505_v9, 0.0  ;;  %v4526_v25 = vadd.f32 %v4514_v2, %v3716_v30  ;;  %v4542_v30 = vadd.f32 %v4514_v2, %v3756_v0 }
 0x251   : > { %v6452_v50 = vmax.f32 %v4518_v60, 0.0  ;;  %v4558_v0 = vadd.f32 %v4514_v2, %v3796_v46  ;;  %v4574_v46 = vadd.f32 %v4514_v2, %v3836_v18  ;;  %v4590_v18 = vadd.f32 %v4514_v2, %v3876_v40 }
 0x252   : > { %v1868_v42 = vadd.f32 %v1867_v4, %v1866_v8  ;;  %v4534_v4 = vadd.f32 %v4514_v2, %v3736_v24  ;;  %v1873_v55 = vsel %vm1681_vm2, %v6451_v17, 0.0  ;;  %v6453_v34 = vmax.f32 %v4526_v25, 0.0 }
 0x253   : > { %v4550_v24 = vadd.f32 %v4514_v2, %v3776_v10  ;;  %v6455_v17 = vmax.f32 %v4542_v30, 0.0  ;;  %v4566_v10 = vadd.f32 %v4514_v2, %v3816_v58  ;;  %v4582_v58 = vadd.f32 %v4514_v2, %v3856_v20 }
 0x254   : > { %v1870_v54 = vadd.f32 %v1869_v51, %v1868_v42  ;;  %v1875_v51 = vsel %vm1681_vm2, %v6452_v50, 0.0  ;;  %v6454_v38 = vmax.f32 %v4534_v4, 0.0  ;;  %v4598_v20 = vadd.f32 %v4514_v2, %v3896_v56 }
 0x255   : > { %v6456_v50 = vmax.f32 %v4550_v24, 0.0 }
 0x256   : > { %v1872_v8 = vadd.f32 %v1871_v36, %v1870_v54  ;;  %v1877_v54 = vsel %vm1681_vm2, %v6453_v34, 0.0  ;;  %v6457_v34 = vmax.f32 %v4558_v0, 0.0 }
 0x258   : > { %v1874_v42 = vadd.f32 %v1873_v55, %v1872_v8  ;;  %v1879_v55 = vsel %vm1681_vm2, %v6454_v38, 0.0  ;;  %v6458_v38 = vmax.f32 %v4566_v10, 0.0 }
 0x25a   : > { %v1876_v36 = vadd.f32 %v1875_v51, %v1874_v42  ;;  %v1881_v51 = vsel %vm1681_vm2, %v6455_v17, 0.0  ;;  %v6460_v17 = vmax.f32 %v4574_v46, 0.0 }
 0x25c   : > { %v1878_v8 = vadd.f32 %v1877_v54, %v1876_v36  ;;  %v1883_v54 = vsel %vm1681_vm2, %v6456_v50, 0.0  ;;  %v6459_v50 = vmax.f32 %v4582_v58, 0.0 }
 0x25e   : > { %v1880_v42 = vadd.f32 %v1879_v55, %v1878_v8  ;;  %v1885_v55 = vsel %vm1681_vm2, %v6457_v34, 0.0  ;;  %v6471_v34 = vmax.f32 %v4590_v18, 0.0 }
 0x260   : > { %v1882_v36 = vadd.f32 %v1881_v51, %v1880_v42  ;;  %v1887_v51 = vsel %vm1681_vm2, %v6458_v38, 0.0  ;;  %v4610_v38 = vadd.f32 %v4514_v2, %v3916_v12 }
 0x262   : > { %v1884_v8 = vadd.f32 %v1883_v54, %v1882_v36  ;;  %v1889_v54 = vsel %vm1681_vm2, %v6460_v17, 0.0 }
 0x264   : > { %v1886_v42 = vadd.f32 %v1885_v55, %v1884_v8  ;;  %v1891_v8 = vsel %vm1681_vm2, %v6459_v50, 0.0  ;;  %v6461_v55 = vmax.f32 %v4598_v20, 0.0  ;;  %v4621_v50 = vadd.f32 %v4514_v2, %v3936_v27 }
 0x265   : > { %v4637_v27 = vadd.f32 %v4514_v2, %v3976_v47  ;;  %v4653_v47 = vadd.f32 %v4514_v2, %v4016_v7  ;;  %v4669_v7 = vadd.f32 %v4514_v2, %v4054_v45  ;;  %v4685_v45 = vadd.f32 %v4514_v2, %v4090_v39  ;;  %v6731_v39 = vld [vmem:[#allocation68_spill] sm:$0xff] }
 0x266   : > { %v1888_v36 = vadd.f32 %v1887_v51, %v1886_v42  ;;  %v1893_v42 = vsel %vm1681_vm2, %v6471_v34, 0.0 }
 0x268   : > { %v1890_v40 = vadd.f32 %v1889_v54, %v1888_v36  ;;  %v1895_v36 = vsel %vm1681_vm2, %v6461_v55, 0.0  ;;  %v6462_v54 = vmax.f32 %v4610_v38, 0.0 }
 0x26a   : > { %v1892_v56 = vadd.f32 %v1891_v8, %v1890_v40  ;;  %v1897_v12 = vsel %vm1681_vm2, %v6462_v54, 0.0  ;;  %v6463_v40 = vmax.f32 %v4621_v50, 0.0  ;;  %v4629_v8 = vadd.f32 %v4514_v2, %v3956_v37 }
 0x26b   : > { %v6465_v54 = vmax.f32 %v4637_v27, 0.0  ;;  %v4645_v37 = vadd.f32 %v4514_v2, %v3996_v59  ;;  %v4661_v59 = vadd.f32 %v4514_v2, %v4036_v23  ;;  %v4677_v23 = vadd.f32 %v4514_v2, %v4072_v5 }
 0x26c   : > { %v1894_v51 = vadd.f32 %v1893_v42, %v1892_v56  ;;  %v1899_v42 = vsel %vm1681_vm2, %v6463_v40, 0.0  ;;  %v6464_v55 = vmax.f32 %v4629_v8, 0.0  ;;  %v4693_v5 = vadd.f32 %v4514_v2, %v4108_v11 }
 0x26d   : > { %v6466_v40 = vmax.f32 %v4645_v37, 0.0  ;;  %v4709_v11 = vadd.f32 %v4514_v2, %v4143_v6  ;;  %v4725_v6 = vadd.f32 %v4514_v2, %v4175_v31  ;;  %v6736_v31 = vld [vmem:[#allocation78_spill] sm:$0xff] }
 0x26e   : > { %v1896_v17 = vadd.f32 %v1895_v36, %v1894_v51  ;;  %v1901_v36 = vsel %vm1681_vm2, %v6464_v55, 0.0  ;;  %v6467_v55 = vmax.f32 %v4653_v47, 0.0 }
 0x26f   : > { %6732 = vst [vmem:[#allocation13_spill] sm:$0xff] %v4709_v11  ;;  %6734 = vst [vmem:[#allocation16_spill] sm:$0xff] %v4725_v6 }
 0x270   : > { %v1898_v56 = vadd.f32 %v1897_v12, %v1896_v17  ;;  %v1903_v12 = vsel %vm1681_vm2, %v6465_v54, 0.0  ;;  %v6468_v54 = vmax.f32 %v4661_v59, 0.0 }
 0x272   : > { %v1900_v51 = vadd.f32 %v1899_v42, %v1898_v56  ;;  %v1905_v42 = vsel %vm1681_vm2, %v6466_v40, 0.0  ;;  %v6469_v40 = vmax.f32 %v4669_v7, 0.0 }
 0x274   : > { %v1902_v17 = vadd.f32 %v1901_v36, %v1900_v51  ;;  %v1907_v36 = vsel %vm1681_vm2, %v6467_v55, 0.0  ;;  %v6470_v55 = vmax.f32 %v4677_v23, 0.0 }
 0x276   : > { %v1904_v56 = vadd.f32 %v1903_v12, %v1902_v17  ;;  %v1909_v12 = vsel %vm1681_vm2, %v6468_v54, 0.0  ;;  %v6472_v54 = vmax.f32 %v4685_v45, 0.0 }
 0x278   : > { %v1906_v51 = vadd.f32 %v1905_v42, %v1904_v56  ;;  %v1911_v42 = vsel %vm1681_vm2, %v6469_v40, 0.0  ;;  %v6473_v40 = vmax.f32 %v4693_v5, 0.0 }
 0x27a   : > { %v1908_v17 = vadd.f32 %v1907_v36, %v1906_v51  ;;  %v1913_v36 = vsel %vm1681_vm2, %v6470_v55, 0.0  ;;  %v1917_v55 = vsel %vm1681_vm2, %v6473_v40, 0.0 }
 0x27c   : > { %v1910_v56 = vadd.f32 %v1909_v12, %v1908_v17  ;;  %v1915_v12 = vsel %vm1681_vm2, %v6472_v54, 0.0  ;;  %v6475_v54 = vmax.f32 %v4709_v11, 0.0 }
 0x27e   : > { %v1912_v51 = vadd.f32 %v1911_v42, %v1910_v56  ;;  %v4701_v56 = vadd.f32 %v4514_v2, %v6731_v39  ;;  %v1921_v39 = vsel %vm1681_vm2, %v6475_v54, 0.0 }
 0x280   : > { %v1914_v17 = vadd.f32 %v1913_v36, %v1912_v51  ;;  %v6474_v34 = vmax.f32 %v4701_v56, 0.0 }
 0x282   : > { %v1916_v42 = vadd.f32 %v1915_v12, %v1914_v17  ;;  %v1919_v36 = vsel %vm1681_vm2, %v6474_v34, 0.0  ;;  %v4717_v17 = vadd.f32 %v4514_v2, %v4159_v52  ;;  %v6478_v34 = vmax.f32 %v4725_v6, 0.0 }
 0x283   : > { %v4733_v52 = vadd.f32 %v4514_v2, %v4191_v43  ;;  %v4749_v43 = vadd.f32 %v4514_v2, %v4220_v32 }
 0x284   : > { %v1918_v51 = vadd.f32 %v1917_v55, %v1916_v42  ;;  %6733 = vst [vmem:[#allocation14_spill] sm:$0xff] %v4717_v17  ;;  %v6476_v40 = vmax.f32 %v4717_v17, 0.0 }
 0x285   : > { %6735 = vst [vmem:[#allocation20_spill] sm:$0xff] %v4733_v52  ;;  %v6480_v54 = vmax.f32 %v4733_v52, 0.0  ;;  %6738 = vst [vmem:[#allocation68_spill] sm:$0xff] %v4749_v43 }
 0x286   : > { %v1920_v12 = vadd.f32 %v1919_v36, %v1918_v51  ;;  %v1923_v42 = vsel %vm1681_vm2, %v6476_v40, 0.0  ;;  %v1925_v36 = vsel %vm1681_vm2, %v6478_v34, 0.0  ;;  %v6483_v34 = vmax.f32 %v4749_v43, 0.0 }
 0x287   : > { %v1927_v40 = vsel %vm1681_vm2, %v6480_v54, 0.0 }
 0x288   : > { %v1922_v55 = vadd.f32 %v1921_v39, %v1920_v12  ;;  %v4741_v12 = vadd.f32 %v4514_v2, %v6736_v31  ;;  %v4761_v31 = vadd.f32 %v4514_v2, %v4249_v29  ;;  %v1931_v32 = vsel %vm1681_vm2, %v6483_v34, 0.0 }
 0x28a   : > { %v1924_v51 = vadd.f32 %v1923_v42, %v1922_v55  ;;  %6737 = vst [vmem:[#allocation23_spill] sm:$0xff] %v4741_v12  ;;  %v6479_v17 = vmax.f32 %v4741_v12, 0.0  ;;  %6740 = vst [vmem:[#allocation84_spill] sm:$0xff] %v4761_v31 }
 0x28c   : > { %v1926_v39 = vadd.f32 %v1925_v36, %v1924_v51  ;;  %v1929_v42 = vsel %vm1681_vm2, %v6479_v17, 0.0  ;;  %v4757_v51 = vadd.f32 %v4514_v2, %v4233_v48  ;;  %v6488_v17 = vmax.f32 %v4761_v31, 0.0  ;;  %v6762_v31 = vld [vmem:[#allocation25_spill] sm:$0xff] }
 0x28d   : > { %v6763_v11 = vmax.f32 %v6762_v31, 0.0 }
 0x28e   : > { %v1928_v55 = vadd.f32 %v1927_v40, %v1926_v39  ;;  %6739 = vst [vmem:[#allocation78_spill] sm:$0xff] %v4757_v51  ;;  %v6487_v40 = vmax.f32 %v4757_v51, 0.0 }
 0x290   : > { %v1930_v36 = vadd.f32 %v1929_v42, %v1928_v55  ;;  %v1933_v54 = vsel %vm1681_vm2, %v6487_v40, 0.0  ;;  %v1935_v55 = vsel %vm1681_vm2, %v6488_v17, 0.0 }
 0x292   : > { %v1932_v39 = vadd.f32 %v1931_v32, %v1930_v36  ;;  %v6741_v36 = vld [vmem:[#allocation17_spill] sm:$0xff] }
 0x293   : > { %v6742_v32 = vmax.f32 %v6741_v36, 0.0 }
 0x294   : > { %v1934_v48 = vadd.f32 %v1933_v54, %v1932_v39  ;;  %v6744_v54 = vld [vmem:[#allocation15_spill] sm:$0xff] }
 0x295   : > { %v6745_v39 = vmax.f32 %v6744_v54, 0.0 }
 0x296   : > { %v1936_v29 = vadd.f32 %v1935_v55, %v1934_v48  ;;  %v6747_v48 = vld [vmem:[#allocation18_spill] sm:$0xff] }
 0x297   : > { %v6748_v55 = vmax.f32 %v6747_v48, 0.0 }
 0x298   : > { %v1937_v2 = vrot.slane %v1936_v29, 4 }
 0x29a   : > { %v1938_v42 = vadd.f32 %v1937_v2, %v1936_v29 }
 0x29c   : > { %v1939_v43 = vrot.slane %v1938_v42, 2 }
 0x29e   : > { %v1940_v12 = vadd.f32 %v1939_v43, %v1938_v42  ;;  %v6750_v43 = vld [vmem:[#allocation19_spill] sm:$0xff]  ;;  %v6753_v42 = vld [vmem:[#allocation21_spill] sm:$0xff] }
 0x29f   : > { %v6754_v36 = vmax.f32 %v6753_v42, 0.0  ;;  %v6759_v42 = vld [vmem:[#allocation24_spill] sm:$0xff] }
 0x2a0   : > { %v1941_v34 = vrot.slane %v1940_v12, 1 }
 0x2a2   : > { %v1942_v52 = vadd.f32 %v1941_v34, %v1940_v12  ;;  %v6751_v34 = vmax.f32 %v6750_v43, 0.0 }
 0x2a4   : > { %v4774_v6 = vmul.f32 0.0009765625, %v1942_v52 }
 0x2a6   : > { %v4779_v51 = vsub.f32 %v6742_v32, %v4774_v6  ;;  %v4784_v40 = vsub.f32 %v6745_v39, %v4774_v6  ;;  %v4789_v29 = vsub.f32 %v6748_v55, %v4774_v6  ;;  %v4794_v52 = vsub.f32 %v6751_v34, %v4774_v6  ;;  %v6756_v39 = vld [vmem:[#allocation22_spill] sm:$0xff] }
 0x2a7   : > { %v4803_v32 = vsub.f32 %v6754_v36, %v4774_v6  ;;  %v6757_v48 = vmax.f32 %v6756_v39, 0.0  ;;  %v6760_v36 = vmax.f32 %v6759_v42, 0.0 }
 0x2a8   : > { %6743 = vst [vmem:[#allocation17_spill] sm:$0xff] %v4779_v51  ;;  %6746 = vst [vmem:[#allocation15_spill] sm:$0xff] %v4784_v40  ;;  %v2073_v12 = vmul.f32 %v4779_v51, %v4779_v51  ;;  %v2074_v2 = vmul.f32 %v4784_v40, %v4784_v40  ;;  %v2075_v54 = vmul.f32 %v4789_v29, %v4789_v29 }
 0x2a9   : > { %6749 = vst [vmem:[#allocation18_spill] sm:$0xff] %v4789_v29  ;;  %6752 = vst [vmem:[#allocation19_spill] sm:$0xff] %v4794_v52  ;;  %v4810_v55 = vsub.f32 %v6757_v48, %v4774_v6  ;;  %v2076_v43 = vmul.f32 %v4794_v52, %v4794_v52  ;;  %v4819_v51 = vsub.f32 %v6760_v36, %v4774_v6 }
 0x2aa   : > { %6755 = vst [vmem:[#allocation21_spill] sm:$0xff] %v4803_v32  ;;  %v2201_v34 = vsel %vm1681_vm2, %v2073_v12, 0.0  ;;  %v2202_v17 = vsel %vm1681_vm2, %v2074_v2, 0.0  ;;  %v2077_v29 = vmul.f32 %v4803_v32, %v4803_v32  ;;  %v2204_v39 = vsel %vm1681_vm2, %v2075_v54, 0.0 }
 0x2ab   : > { %6758 = vst [vmem:[#allocation22_spill] sm:$0xff] %v4810_v55  ;;  %v2203_v40 = vadd.f32 %v2202_v17, %v2201_v34  ;;  %6761 = vst [vmem:[#allocation24_spill] sm:$0xff] %v4819_v51  ;;  %v4827_v52 = vsub.f32 %v6763_v11, %v4774_v6  ;;  %v2078_v12 = vmul.f32 %v4810_v55, %v4810_v55  ;;  %v2206_v17 = vsel %vm1681_vm2, %v2076_v43, 0.0  ;;  %v6765_v34 = vld [vmem:[#allocation26_spill] sm:$0xff]  ;;  %v6768_v11 = vld [vmem:[#allocation27_spill] sm:$0xff] }
 0x2ac   : > { %v6766_v42 = vmax.f32 %v6765_v34, 0.0  ;;  %v2079_v54 = vmul.f32 %v4819_v51, %v4819_v51  ;;  %v6769_v31 = vmax.f32 %v6768_v11, 0.0  ;;  %v6771_v34 = vld [vmem:[#allocation28_spill] sm:$0xff]  ;;  %v6774_v11 = vld [vmem:[#allocation29_spill] sm:$0xff] }
 0x2ad   : > { %v2205_v48 = vadd.f32 %v2204_v39, %v2203_v40  ;;  %6764 = vst [vmem:[#allocation25_spill] sm:$0xff] %v4827_v52  ;;  %v2208_v40 = vsel %vm1681_vm2, %v2077_v29, 0.0  ;;  %v2080_v43 = vmul.f32 %v4827_v52, %v4827_v52 }
 0x2ae   : > { %v4835_v36 = vsub.f32 %v6766_v42, %v4774_v6  ;;  %v4843_v32 = vsub.f32 %v6769_v31, %v4774_v6  ;;  %v6772_v42 = vmax.f32 %v6771_v34, 0.0  ;;  %v6775_v31 = vmax.f32 %v6774_v11, 0.0  ;;  %v6777_v34 = vld [vmem:[#allocation30_spill] sm:$0xff]  ;;  %v6780_v11 = vld [vmem:[#allocation31_spill] sm:$0xff] }
 0x2af   : > { %v2207_v2 = vadd.f32 %v2206_v17, %v2205_v48  ;;  %v2210_v48 = vsel %vm1681_vm2, %v2078_v12, 0.0 }
 0x2b0   : > { %6767 = vst [vmem:[#allocation26_spill] sm:$0xff] %v4835_v36  ;;  %6770 = vst [vmem:[#allocation27_spill] sm:$0xff] %v4843_v32  ;;  %v4851_v55 = vsub.f32 %v6772_v42, %v4774_v6  ;;  %v2081_v29 = vmul.f32 %v4835_v36, %v4835_v36  ;;  %v4859_v51 = vsub.f32 %v6775_v31, %v4774_v6  ;;  %v6778_v42 = vmax.f32 %v6777_v34, 0.0  ;;  %v6783_v34 = vld [vmem:[#allocation32_spill] sm:$0xff] }
 0x2b1   : > { %v2209_v39 = vadd.f32 %v2208_v40, %v2207_v2  ;;  %v2212_v2 = vsel %vm1681_vm2, %v2079_v54, 0.0  ;;  %v2082_v12 = vmul.f32 %v4843_v32, %v4843_v32  ;;  %v6781_v31 = vmax.f32 %v6780_v11, 0.0  ;;  %v6786_v11 = vld [vmem:[#allocation33_spill] sm:$0xff] }
 0x2b2   : > { %6773 = vst [vmem:[#allocation28_spill] sm:$0xff] %v4851_v55  ;;  %6776 = vst [vmem:[#allocation29_spill] sm:$0xff] %v4859_v51  ;;  %v4867_v52 = vsub.f32 %v6778_v42, %v4774_v6  ;;  %v2083_v54 = vmul.f32 %v4851_v55, %v4851_v55  ;;  %v6784_v42 = vmax.f32 %v6783_v34, 0.0  ;;  %v6789_v34 = vld [vmem:[#allocation34_spill] sm:$0xff] }
 0x2b3   : > { %v2211_v17 = vadd.f32 %v2210_v48, %v2209_v39  ;;  %v2214_v39 = vsel %vm1681_vm2, %v2080_v43, 0.0  ;;  %v4875_v36 = vsub.f32 %v6781_v31, %v4774_v6  ;;  %v2084_v43 = vmul.f32 %v4859_v51, %v4859_v51 }
 0x2b4   : > { %6779 = vst [vmem:[#allocation30_spill] sm:$0xff] %v4867_v52  ;;  %v4883_v32 = vsub.f32 %v6784_v42, %v4774_v6  ;;  %v6787_v31 = vmax.f32 %v6786_v11, 0.0  ;;  %v6790_v42 = vmax.f32 %v6789_v34, 0.0  ;;  %v6792_v11 = vld [vmem:[#allocation35_spill] sm:$0xff]  ;;  %v6795_v34 = vld [vmem:[#allocation36_spill] sm:$0xff] }
 0x2b5   : > { %v2213_v40 = vadd.f32 %v2212_v2, %v2211_v17  ;;  %v2216_v17 = vsel %vm1681_vm2, %v2081_v29, 0.0  ;;  %6782 = vst [vmem:[#allocation31_spill] sm:$0xff] %v4875_v36  ;;  %v2085_v29 = vmul.f32 %v4867_v52, %v4867_v52 }
 0x2b6   : > { %6785 = vst [vmem:[#allocation32_spill] sm:$0xff] %v4883_v32  ;;  %v4891_v55 = vsub.f32 %v6787_v31, %v4774_v6  ;;  %v4899_v51 = vsub.f32 %v6790_v42, %v4774_v6  ;;  %v6793_v31 = vmax.f32 %v6792_v11, 0.0  ;;  %v6796_v42 = vmax.f32 %v6795_v34, 0.0  ;;  %v6798_v11 = vld [vmem:[#allocation37_spill] sm:$0xff]  ;;  %v6801_v34 = vld [vmem:[#allocation38_spill] sm:$0xff] }
 0x2b7   : > { %v2215_v48 = vadd.f32 %v2214_v39, %v2213_v40  ;;  %v2218_v40 = vsel %vm1681_vm2, %v2082_v12, 0.0  ;;  %v2086_v12 = vmul.f32 %v4875_v36, %v4875_v36 }
 0x2b8   : > { %6788 = vst [vmem:[#allocation33_spill] sm:$0xff] %v4891_v55  ;;  %6791 = vst [vmem:[#allocation34_spill] sm:$0xff] %v4899_v51  ;;  %v4907_v52 = vsub.f32 %v6793_v31, %v4774_v6  ;;  %v4915_v36 = vsub.f32 %v6796_v42, %v4774_v6  ;;  %v6799_v31 = vmax.f32 %v6798_v11, 0.0  ;;  %v6802_v42 = vmax.f32 %v6801_v34, 0.0  ;;  %v6804_v11 = vld [vmem:[#allocation39_spill] sm:$0xff]  ;;  %v6807_v34 = vld [vmem:[#allocation40_spill] sm:$0xff] }
 0x2b9   : > { %v2217_v2 = vadd.f32 %v2216_v17, %v2215_v48  ;;  %v2220_v48 = vsel %vm1681_vm2, %v2083_v54, 0.0  ;;  %v2087_v54 = vmul.f32 %v4883_v32, %v4883_v32 }
 0x2ba   : > { %6794 = vst [vmem:[#allocation35_spill] sm:$0xff] %v4907_v52  ;;  %6797 = vst [vmem:[#allocation36_spill] sm:$0xff] %v4915_v36  ;;  %v4923_v32 = vsub.f32 %v6799_v31, %v4774_v6  ;;  %v6805_v31 = vmax.f32 %v6804_v11, 0.0  ;;  %v6810_v11 = vld [vmem:[#allocation41_spill] sm:$0xff] }
 0x2bb   : > { %v2219_v39 = vadd.f32 %v2218_v40, %v2217_v2  ;;  %v2222_v2 = vsel %vm1681_vm2, %v2084_v43, 0.0  ;;  %v2088_v43 = vmul.f32 %v4891_v55, %v4891_v55  ;;  %v4931_v55 = vsub.f32 %v6802_v42, %v4774_v6 }
 0x2bc   : > { %6800 = vst [vmem:[#allocation37_spill] sm:$0xff] %v4923_v32  ;;  %v6808_v42 = vmax.f32 %v6807_v34, 0.0  ;;  %v6813_v34 = vld [vmem:[#allocation42_spill] sm:$0xff] }
 0x2bd   : > { %v2221_v17 = vadd.f32 %v2220_v48, %v2219_v39  ;;  %v2224_v39 = vsel %vm1681_vm2, %v2085_v29, 0.0  ;;  %v2089_v29 = vmul.f32 %v4899_v51, %v4899_v51  ;;  %6803 = vst [vmem:[#allocation38_spill] sm:$0xff] %v4931_v55  ;;  %v4939_v51 = vsub.f32 %v6805_v31, %v4774_v6 }
 0x2be   : > { %v6811_v31 = vmax.f32 %v6810_v11, 0.0  ;;  %v6816_v11 = vld [vmem:[#allocation43_spill] sm:$0xff] }
 0x2bf   : > { %v2223_v40 = vadd.f32 %v2222_v2, %v2221_v17  ;;  %v2226_v17 = vsel %vm1681_vm2, %v2086_v12, 0.0  ;;  %v2090_v12 = vmul.f32 %v4907_v52, %v4907_v52  ;;  %6806 = vst [vmem:[#allocation39_spill] sm:$0xff] %v4939_v51  ;;  %v4947_v52 = vsub.f32 %v6808_v42, %v4774_v6 }
 0x2c0   : > { %v6814_v42 = vmax.f32 %v6813_v34, 0.0  ;;  %v6819_v34 = vld [vmem:[#allocation44_spill] sm:$0xff] }
 0x2c1   : > { %v2225_v48 = vadd.f32 %v2224_v39, %v2223_v40  ;;  %v2228_v40 = vsel %vm1681_vm2, %v2087_v54, 0.0  ;;  %v2091_v54 = vmul.f32 %v4915_v36, %v4915_v36  ;;  %6809 = vst [vmem:[#allocation40_spill] sm:$0xff] %v4947_v52  ;;  %v4955_v36 = vsub.f32 %v6811_v31, %v4774_v6 }
 0x2c2   : > { %v6817_v31 = vmax.f32 %v6816_v11, 0.0  ;;  %v6822_v11 = vld [vmem:[#allocation45_spill] sm:$0xff] }
 0x2c3   : > { %v2227_v2 = vadd.f32 %v2226_v17, %v2225_v48  ;;  %v2230_v48 = vsel %vm1681_vm2, %v2088_v43, 0.0  ;;  %v2092_v43 = vmul.f32 %v4923_v32, %v4923_v32  ;;  %6812 = vst [vmem:[#allocation41_spill] sm:$0xff] %v4955_v36  ;;  %v4963_v32 = vsub.f32 %v6814_v42, %v4774_v6 }
 0x2c4   : > { %v6820_v42 = vmax.f32 %v6819_v34, 0.0  ;;  %v6825_v34 = vld [vmem:[#allocation46_spill] sm:$0xff] }
 0x2c5   : > { %v2229_v39 = vadd.f32 %v2228_v40, %v2227_v2  ;;  %v2232_v2 = vsel %vm1681_vm2, %v2089_v29, 0.0  ;;  %v2093_v29 = vmul.f32 %v4931_v55, %v4931_v55  ;;  %6815 = vst [vmem:[#allocation42_spill] sm:$0xff] %v4963_v32  ;;  %v4971_v55 = vsub.f32 %v6817_v31, %v4774_v6 }
 0x2c6   : > { %v6823_v31 = vmax.f32 %v6822_v11, 0.0  ;;  %v6828_v11 = vld [vmem:[#allocation47_spill] sm:$0xff] }
 0x2c7   : > { %v2231_v17 = vadd.f32 %v2230_v48, %v2229_v39  ;;  %v2234_v39 = vsel %vm1681_vm2, %v2090_v12, 0.0  ;;  %v2094_v12 = vmul.f32 %v4939_v51, %v4939_v51  ;;  %6818 = vst [vmem:[#allocation43_spill] sm:$0xff] %v4971_v55  ;;  %v4979_v51 = vsub.f32 %v6820_v42, %v4774_v6 }
 0x2c8   : > { %v6826_v42 = vmax.f32 %v6825_v34, 0.0  ;;  %v6831_v34 = vld [vmem:[#allocation48_spill] sm:$0xff] }
 0x2c9   : > { %v2233_v40 = vadd.f32 %v2232_v2, %v2231_v17  ;;  %v2236_v17 = vsel %vm1681_vm2, %v2091_v54, 0.0  ;;  %v2095_v54 = vmul.f32 %v4947_v52, %v4947_v52  ;;  %6821 = vst [vmem:[#allocation44_spill] sm:$0xff] %v4979_v51  ;;  %v4987_v52 = vsub.f32 %v6823_v31, %v4774_v6 }
 0x2ca   : > { %v6829_v31 = vmax.f32 %v6828_v11, 0.0  ;;  %v6834_v11 = vld [vmem:[#allocation49_spill] sm:$0xff] }
 0x2cb   : > { %v2235_v48 = vadd.f32 %v2234_v39, %v2233_v40  ;;  %v2238_v40 = vsel %vm1681_vm2, %v2092_v43, 0.0  ;;  %v2096_v43 = vmul.f32 %v4955_v36, %v4955_v36  ;;  %6824 = vst [vmem:[#allocation45_spill] sm:$0xff] %v4987_v52  ;;  %v4995_v36 = vsub.f32 %v6826_v42, %v4774_v6 }
 0x2cc   : > { %v6832_v42 = vmax.f32 %v6831_v34, 0.0  ;;  %v6837_v34 = vld [vmem:[#allocation50_spill] sm:$0xff] }
 0x2cd   : > { %v2237_v2 = vadd.f32 %v2236_v17, %v2235_v48  ;;  %v2240_v48 = vsel %vm1681_vm2, %v2093_v29, 0.0  ;;  %v2097_v29 = vmul.f32 %v4963_v32, %v4963_v32  ;;  %6827 = vst [vmem:[#allocation46_spill] sm:$0xff] %v4995_v36  ;;  %v5003_v32 = vsub.f32 %v6829_v31, %v4774_v6 }
 0x2ce   : > { %v6835_v31 = vmax.f32 %v6834_v11, 0.0  ;;  %v6840_v11 = vld [vmem:[#allocation51_spill] sm:$0xff] }
 0x2cf   : > { %v2239_v39 = vadd.f32 %v2238_v40, %v2237_v2  ;;  %v2242_v2 = vsel %vm1681_vm2, %v2094_v12, 0.0  ;;  %v2098_v12 = vmul.f32 %v4971_v55, %v4971_v55  ;;  %6830 = vst [vmem:[#allocation47_spill] sm:$0xff] %v5003_v32  ;;  %v5011_v55 = vsub.f32 %v6832_v42, %v4774_v6 }
 0x2d0   : > { %v6838_v42 = vmax.f32 %v6837_v34, 0.0  ;;  %v6843_v34 = vld [vmem:[#allocation52_spill] sm:$0xff] }
 0x2d1   : > { %v2241_v17 = vadd.f32 %v2240_v48, %v2239_v39  ;;  %v2244_v39 = vsel %vm1681_vm2, %v2095_v54, 0.0  ;;  %v2099_v54 = vmul.f32 %v4979_v51, %v4979_v51  ;;  %6833 = vst [vmem:[#allocation48_spill] sm:$0xff] %v5011_v55  ;;  %v5019_v51 = vsub.f32 %v6835_v31, %v4774_v6 }
 0x2d2   : > { %v6841_v31 = vmax.f32 %v6840_v11, 0.0  ;;  %v6846_v11 = vld [vmem:[#allocation53_spill] sm:$0xff] }
 0x2d3   : > { %v2243_v40 = vadd.f32 %v2242_v2, %v2241_v17  ;;  %v2246_v17 = vsel %vm1681_vm2, %v2096_v43, 0.0  ;;  %v2100_v43 = vmul.f32 %v4987_v52, %v4987_v52  ;;  %6836 = vst [vmem:[#allocation49_spill] sm:$0xff] %v5019_v51  ;;  %v5027_v52 = vsub.f32 %v6838_v42, %v4774_v6 }
 0x2d4   : > { %v6844_v42 = vmax.f32 %v6843_v34, 0.0  ;;  %v6849_v34 = vld [vmem:[#allocation54_spill] sm:$0xff] }
 0x2d5   : > { %v2245_v48 = vadd.f32 %v2244_v39, %v2243_v40  ;;  %v2248_v40 = vsel %vm1681_vm2, %v2097_v29, 0.0  ;;  %v2101_v29 = vmul.f32 %v4995_v36, %v4995_v36  ;;  %6839 = vst [vmem:[#allocation50_spill] sm:$0xff] %v5027_v52  ;;  %v5035_v36 = vsub.f32 %v6841_v31, %v4774_v6 }
 0x2d6   : > { %v6847_v31 = vmax.f32 %v6846_v11, 0.0  ;;  %v6852_v11 = vld [vmem:[#allocation55_spill] sm:$0xff] }
 0x2d7   : > { %v2247_v2 = vadd.f32 %v2246_v17, %v2245_v48  ;;  %v2250_v48 = vsel %vm1681_vm2, %v2098_v12, 0.0  ;;  %v2102_v12 = vmul.f32 %v5003_v32, %v5003_v32  ;;  %6842 = vst [vmem:[#allocation51_spill] sm:$0xff] %v5035_v36  ;;  %v5043_v32 = vsub.f32 %v6844_v42, %v4774_v6 }
 0x2d8   : > { %v6850_v42 = vmax.f32 %v6849_v34, 0.0  ;;  %v6855_v34 = vld [vmem:[#allocation56_spill] sm:$0xff] }
 0x2d9   : > { %v2249_v39 = vadd.f32 %v2248_v40, %v2247_v2  ;;  %v2252_v2 = vsel %vm1681_vm2, %v2099_v54, 0.0  ;;  %v2103_v54 = vmul.f32 %v5011_v55, %v5011_v55  ;;  %6845 = vst [vmem:[#allocation52_spill] sm:$0xff] %v5043_v32  ;;  %v5051_v55 = vsub.f32 %v6847_v31, %v4774_v6 }
 0x2da   : > { %v6853_v31 = vmax.f32 %v6852_v11, 0.0  ;;  %v6858_v11 = vld [vmem:[#allocation57_spill] sm:$0xff] }
 0x2db   : > { %v2251_v17 = vadd.f32 %v2250_v48, %v2249_v39  ;;  %v2254_v39 = vsel %vm1681_vm2, %v2100_v43, 0.0  ;;  %v2104_v43 = vmul.f32 %v5019_v51, %v5019_v51  ;;  %6848 = vst [vmem:[#allocation53_spill] sm:$0xff] %v5051_v55  ;;  %v5059_v51 = vsub.f32 %v6850_v42, %v4774_v6 }
 0x2dc   : > { %v6856_v42 = vmax.f32 %v6855_v34, 0.0  ;;  %v6861_v34 = vld [vmem:[#allocation58_spill] sm:$0xff] }
 0x2dd   : > { %v2253_v40 = vadd.f32 %v2252_v2, %v2251_v17  ;;  %v2256_v17 = vsel %vm1681_vm2, %v2101_v29, 0.0  ;;  %v2105_v29 = vmul.f32 %v5027_v52, %v5027_v52  ;;  %6851 = vst [vmem:[#allocation54_spill] sm:$0xff] %v5059_v51  ;;  %v5067_v52 = vsub.f32 %v6853_v31, %v4774_v6 }
 0x2de   : > { %v6859_v31 = vmax.f32 %v6858_v11, 0.0  ;;  %v6864_v11 = vld [vmem:[#allocation59_spill] sm:$0xff] }
 0x2df   : > { %v2255_v48 = vadd.f32 %v2254_v39, %v2253_v40  ;;  %v2258_v40 = vsel %vm1681_vm2, %v2102_v12, 0.0  ;;  %v2106_v12 = vmul.f32 %v5035_v36, %v5035_v36  ;;  %6854 = vst [vmem:[#allocation55_spill] sm:$0xff] %v5067_v52  ;;  %v5075_v36 = vsub.f32 %v6856_v42, %v4774_v6 }
 0x2e0   : > { %v6862_v42 = vmax.f32 %v6861_v34, 0.0  ;;  %v6867_v34 = vld [vmem:[#allocation60_spill] sm:$0xff] }
 0x2e1   : > { %v2257_v2 = vadd.f32 %v2256_v17, %v2255_v48  ;;  %v2260_v48 = vsel %vm1681_vm2, %v2103_v54, 0.0  ;;  %v2107_v54 = vmul.f32 %v5043_v32, %v5043_v32  ;;  %6857 = vst [vmem:[#allocation56_spill] sm:$0xff] %v5075_v36  ;;  %v5083_v32 = vsub.f32 %v6859_v31, %v4774_v6 }
 0x2e2   : > { %v6865_v31 = vmax.f32 %v6864_v11, 0.0  ;;  %v6870_v11 = vld [vmem:[#allocation61_spill] sm:$0xff] }
 0x2e3   : > { %v2259_v39 = vadd.f32 %v2258_v40, %v2257_v2  ;;  %v2262_v2 = vsel %vm1681_vm2, %v2104_v43, 0.0  ;;  %v2108_v43 = vmul.f32 %v5051_v55, %v5051_v55  ;;  %6860 = vst [vmem:[#allocation57_spill] sm:$0xff] %v5083_v32  ;;  %v5091_v55 = vsub.f32 %v6862_v42, %v4774_v6 }
 0x2e4   : > { %v6868_v42 = vmax.f32 %v6867_v34, 0.0  ;;  %v6873_v34 = vld [vmem:[#allocation62_spill] sm:$0xff] }
 0x2e5   : > { %v2261_v17 = vadd.f32 %v2260_v48, %v2259_v39  ;;  %v2264_v39 = vsel %vm1681_vm2, %v2105_v29, 0.0  ;;  %v2109_v29 = vmul.f32 %v5059_v51, %v5059_v51  ;;  %6863 = vst [vmem:[#allocation58_spill] sm:$0xff] %v5091_v55  ;;  %v5099_v51 = vsub.f32 %v6865_v31, %v4774_v6 }
 0x2e6   : > { %v6871_v31 = vmax.f32 %v6870_v11, 0.0  ;;  %v6876_v11 = vld [vmem:[#allocation63_spill] sm:$0xff] }
 0x2e7   : > { %v2263_v40 = vadd.f32 %v2262_v2, %v2261_v17  ;;  %v2266_v17 = vsel %vm1681_vm2, %v2106_v12, 0.0  ;;  %v2110_v12 = vmul.f32 %v5067_v52, %v5067_v52  ;;  %6866 = vst [vmem:[#allocation59_spill] sm:$0xff] %v5099_v51  ;;  %v5107_v52 = vsub.f32 %v6868_v42, %v4774_v6 }
 0x2e8   : > { %v6874_v42 = vmax.f32 %v6873_v34, 0.0  ;;  %v6879_v34 = vld [vmem:[#allocation64_spill] sm:$0xff] }
 0x2e9   : > { %v2265_v48 = vadd.f32 %v2264_v39, %v2263_v40  ;;  %v2268_v40 = vsel %vm1681_vm2, %v2107_v54, 0.0  ;;  %v2111_v54 = vmul.f32 %v5075_v36, %v5075_v36  ;;  %6869 = vst [vmem:[#allocation60_spill] sm:$0xff] %v5107_v52  ;;  %v5115_v36 = vsub.f32 %v6871_v31, %v4774_v6 }
 0x2ea   : > { %v6877_v31 = vmax.f32 %v6876_v11, 0.0  ;;  %v6882_v11 = vld [vmem:[#allocation65_spill] sm:$0xff] }
 0x2eb   : > { %v2267_v2 = vadd.f32 %v2266_v17, %v2265_v48  ;;  %v2270_v48 = vsel %vm1681_vm2, %v2108_v43, 0.0  ;;  %v2112_v43 = vmul.f32 %v5083_v32, %v5083_v32  ;;  %6872 = vst [vmem:[#allocation61_spill] sm:$0xff] %v5115_v36  ;;  %v5123_v32 = vsub.f32 %v6874_v42, %v4774_v6 }
 0x2ec   : > { %v6880_v42 = vmax.f32 %v6879_v34, 0.0  ;;  %v6885_v34 = vld [vmem:[#allocation66_spill] sm:$0xff] }
 0x2ed   : > { %v2269_v39 = vadd.f32 %v2268_v40, %v2267_v2  ;;  %v2272_v2 = vsel %vm1681_vm2, %v2109_v29, 0.0  ;;  %v2113_v29 = vmul.f32 %v5091_v55, %v5091_v55  ;;  %6875 = vst [vmem:[#allocation62_spill] sm:$0xff] %v5123_v32  ;;  %v5131_v55 = vsub.f32 %v6877_v31, %v4774_v6 }
 0x2ee   : > { %v6883_v31 = vmax.f32 %v6882_v11, 0.0  ;;  %v6888_v11 = vld [vmem:[#allocation67_spill] sm:$0xff] }
 0x2ef   : > { %v2271_v17 = vadd.f32 %v2270_v48, %v2269_v39  ;;  %v2274_v39 = vsel %vm1681_vm2, %v2110_v12, 0.0  ;;  %v2114_v12 = vmul.f32 %v5099_v51, %v5099_v51  ;;  %6878 = vst [vmem:[#allocation63_spill] sm:$0xff] %v5131_v55  ;;  %v5139_v51 = vsub.f32 %v6880_v42, %v4774_v6 }
 0x2f0   : > { %v6886_v42 = vmax.f32 %v6885_v34, 0.0  ;;  %v6891_v34 = vld [vmem:[#allocation69_spill] sm:$0xff] }
 0x2f1   : > { %v2273_v40 = vadd.f32 %v2272_v2, %v2271_v17  ;;  %v2276_v17 = vsel %vm1681_vm2, %v2111_v54, 0.0  ;;  %v2115_v54 = vmul.f32 %v5107_v52, %v5107_v52  ;;  %6881 = vst [vmem:[#allocation64_spill] sm:$0xff] %v5139_v51  ;;  %v5147_v52 = vsub.f32 %v6883_v31, %v4774_v6 }
 0x2f2   : > { %v6889_v31 = vmax.f32 %v6888_v11, 0.0  ;;  %v6894_v11 = vld [vmem:[#allocation70_spill] sm:$0xff] }
 0x2f3   : > { %v2275_v48 = vadd.f32 %v2274_v39, %v2273_v40  ;;  %v2278_v40 = vsel %vm1681_vm2, %v2112_v43, 0.0  ;;  %v2116_v43 = vmul.f32 %v5115_v36, %v5115_v36  ;;  %6884 = vst [vmem:[#allocation65_spill] sm:$0xff] %v5147_v52  ;;  %v5155_v36 = vsub.f32 %v6886_v42, %v4774_v6 }
 0x2f4   : > { %v6892_v42 = vmax.f32 %v6891_v34, 0.0  ;;  %v6897_v34 = vld [vmem:[#allocation71_spill] sm:$0xff] }
 0x2f5   : > { %v2277_v2 = vadd.f32 %v2276_v17, %v2275_v48  ;;  %v2280_v48 = vsel %vm1681_vm2, %v2113_v29, 0.0  ;;  %v2117_v29 = vmul.f32 %v5123_v32, %v5123_v32  ;;  %6887 = vst [vmem:[#allocation66_spill] sm:$0xff] %v5155_v36  ;;  %v5163_v32 = vsub.f32 %v6889_v31, %v4774_v6 }
 0x2f6   : > { %v6895_v31 = vmax.f32 %v6894_v11, 0.0  ;;  %v6900_v11 = vld [vmem:[#allocation72_spill] sm:$0xff] }
 0x2f7   : > { %v2279_v39 = vadd.f32 %v2278_v40, %v2277_v2  ;;  %v2282_v2 = vsel %vm1681_vm2, %v2114_v12, 0.0  ;;  %v2118_v12 = vmul.f32 %v5131_v55, %v5131_v55  ;;  %6890 = vst [vmem:[#allocation67_spill] sm:$0xff] %v5163_v32  ;;  %v5171_v55 = vsub.f32 %v6892_v42, %v4774_v6 }
 0x2f8   : > { %v6898_v42 = vmax.f32 %v6897_v34, 0.0  ;;  %v6902_v34 = vld [vmem:[#allocation73_spill] sm:$0xff] }
 0x2f9   : > { %v2281_v17 = vadd.f32 %v2280_v48, %v2279_v39  ;;  %v2284_v39 = vsel %vm1681_vm2, %v2115_v54, 0.0  ;;  %v2119_v54 = vmul.f32 %v5139_v51, %v5139_v51  ;;  %6893 = vst [vmem:[#allocation69_spill] sm:$0xff] %v5171_v55  ;;  %v5179_v51 = vsub.f32 %v6895_v31, %v4774_v6 }
 0x2fa   : > { %v6901_v31 = vmax.f32 %v6900_v11, 0.0  ;;  %v6905_v11 = vld [vmem:[#allocation74_spill] sm:$0xff] }
 0x2fb   : > { %v2283_v40 = vadd.f32 %v2282_v2, %v2281_v17  ;;  %v2286_v17 = vsel %vm1681_vm2, %v2116_v43, 0.0  ;;  %v2120_v43 = vmul.f32 %v5147_v52, %v5147_v52  ;;  %6896 = vst [vmem:[#allocation70_spill] sm:$0xff] %v5179_v51  ;;  %v5187_v52 = vsub.f32 %v6898_v42, %v4774_v6 }
 0x2fc   : > { %v6903_v42 = vmax.f32 %v6902_v34, 0.0  ;;  %v6908_v34 = vld [vmem:[#allocation75_spill] sm:$0xff] }
 0x2fd   : > { %v2285_v48 = vadd.f32 %v2284_v39, %v2283_v40  ;;  %v2288_v40 = vsel %vm1681_vm2, %v2117_v29, 0.0  ;;  %v2121_v29 = vmul.f32 %v5155_v36, %v5155_v36  ;;  %6899 = vst [vmem:[#allocation71_spill] sm:$0xff] %v5187_v52  ;;  %v5195_v36 = vsub.f32 %v6901_v31, %v4774_v6 }
 0x2fe   : > { %v6906_v31 = vmax.f32 %v6905_v11, 0.0  ;;  %v6910_v11 = vld [vmem:[#allocation76_spill] sm:$0xff] }
 0x2ff   : > { %v2287_v2 = vadd.f32 %v2286_v17, %v2285_v48  ;;  %v2290_v48 = vsel %vm1681_vm2, %v2118_v12, 0.0  ;;  %v2122_v12 = vmul.f32 %v5163_v32, %v5163_v32  ;;  %v5203_v32 = vsub.f32 %v6903_v42, %v4774_v6 }
 0x300   : > { %v6909_v42 = vmax.f32 %v6908_v34, 0.0  ;;  %v6912_v34 = vmax.f32 %v4198_v21, 0.0  ;;  %v6915_v21 = vld [vmem:[#allocation79_spill] sm:$0xff] }
 0x301   : > { %v2289_v39 = vadd.f32 %v2288_v40, %v2287_v2  ;;  %v2292_v2 = vsel %vm1681_vm2, %v2119_v54, 0.0  ;;  %v2123_v54 = vmul.f32 %v5171_v55, %v5171_v55  ;;  %6904 = vst [vmem:[#allocation72_spill] sm:$0xff] %v5203_v32  ;;  %v5211_v55 = vsub.f32 %v6906_v31, %v4774_v6 }
 0x302   : > { %v6911_v31 = vmax.f32 %v6910_v11, 0.0  ;;  %v6913_v11 = vld [vmem:[#allocation77_spill] sm:$0xff] }
 0x303   : > { %v2291_v17 = vadd.f32 %v2290_v48, %v2289_v39  ;;  %v2294_v39 = vsel %vm1681_vm2, %v2120_v43, 0.0  ;;  %v2124_v43 = vmul.f32 %v5179_v51, %v5179_v51  ;;  %6907 = vst [vmem:[#allocation73_spill] sm:$0xff] %v5211_v55  ;;  %v5219_v51 = vsub.f32 %v6909_v42, %v4774_v6 }
 0x304   : > { %v5235_v42 = vsub.f32 %v6912_v34, %v4774_v6  ;;  %v6916_v34 = vmax.f32 %v6915_v21, 0.0  ;;  %v6918_v21 = vmax.f32 %v4239_v15, 0.0  ;;  %v6920_v15 = vmax.f32 %v4243_v63, 0.0 }
 0x305   : > { %v2293_v40 = vadd.f32 %v2292_v2, %v2291_v17  ;;  %v2296_v17 = vsel %vm1681_vm2, %v2121_v29, 0.0  ;;  %v2125_v29 = vmul.f32 %v5187_v52, %v5187_v52  ;;  %v5227_v52 = vsub.f32 %v6911_v31, %v4774_v6 }
 0x306   : > { %v6914_v31 = vmax.f32 %v6913_v11, 0.0  ;;  %v6917_v11 = vmax.f32 %v4227_v14, 0.0  ;;  %v6919_v14 = vmax.f32 %v4259_v1, 0.0  ;;  %v6921_v1 = vmax.f32 %v4253_v19, 0.0 }
 0x307   : > { %v2295_v48 = vadd.f32 %v2294_v39, %v2293_v40  ;;  %v2298_v40 = vsel %vm1681_vm2, %v2122_v12, 0.0  ;;  %v2126_v12 = vmul.f32 %v5195_v36, %v5195_v36  ;;  %v6922_v63 = vmax.f32 %v4264_v61, 0.0 }
 0x308   : > { %v6923_v19 = vmax.f32 %v4270_v53, 0.0  ;;  %v6924_v61 = vmax.f32 %v4281_v26, 0.0  ;;  %v6925_v53 = vmax.f32 %v4289_v62, 0.0  ;;  %v6926_v26 = vmax.f32 %v4297_v33, 0.0 }
 0x309   : > { %v2297_v2 = vadd.f32 %v2296_v17, %v2295_v48  ;;  %v2300_v48 = vsel %vm1681_vm2, %v2123_v54, 0.0  ;;  %v2127_v54 = vmul.f32 %v5203_v32, %v5203_v32  ;;  %v5243_v32 = vsub.f32 %v6914_v31, %v4774_v6 }
 0x30a   : > { %v5259_v31 = vsub.f32 %v6917_v11, %v4774_v6  ;;  %v5275_v11 = vsub.f32 %v6919_v14, %v4774_v6  ;;  %v5291_v14 = vsub.f32 %v6921_v1, %v4774_v6  ;;  %v5307_v1 = vsub.f32 %v6923_v19, %v4774_v6 }
 0x30b   : > { %v2299_v39 = vadd.f32 %v2298_v40, %v2297_v2  ;;  %v2302_v2 = vsel %vm1681_vm2, %v2124_v43, 0.0  ;;  %v2128_v43 = vmul.f32 %v5211_v55, %v5211_v55  ;;  %v5251_v55 = vsub.f32 %v6916_v34, %v4774_v6 }
 0x30c   : > { %v5267_v34 = vsub.f32 %v6918_v21, %v4774_v6  ;;  %v5283_v21 = vsub.f32 %v6920_v15, %v4774_v6  ;;  %v5299_v15 = vsub.f32 %v6922_v63, %v4774_v6  ;;  %v5315_v63 = vsub.f32 %v6924_v61, %v4774_v6 }
 0x30d   : > { %v2301_v17 = vadd.f32 %v2300_v48, %v2299_v39  ;;  %v2304_v39 = vsel %vm1681_vm2, %v2125_v29, 0.0  ;;  %v2129_v29 = vmul.f32 %v5219_v51, %v5219_v51  ;;  %v5323_v19 = vsub.f32 %v6925_v53, %v4774_v6 }
 0x30e   : > { %v5331_v61 = vsub.f32 %v6926_v26, %v4774_v6  ;;  %v6927_v62 = vmax.f32 %v4305_v41, 0.0  ;;  %v6928_v33 = vmax.f32 %v4313_v49, 0.0  ;;  %v6929_v41 = vmax.f32 %v4321_v57, 0.0 }
 0x30f   : > { %v2303_v40 = vadd.f32 %v2302_v2, %v2301_v17  ;;  %v2306_v17 = vsel %vm1681_vm2, %v2126_v12, 0.0  ;;  %v2130_v12 = vmul.f32 %v5227_v52, %v5227_v52  ;;  %v6931_v49 = vmax.f32 %v4329_v3, 0.0 }
 0x310   : > { %v5339_v53 = vsub.f32 %v6927_v62, %v4774_v6  ;;  %v5347_v26 = vsub.f32 %v6928_v33, %v4774_v6  ;;  %v5355_v62 = vsub.f32 %v6929_v41, %v4774_v6  ;;  %v6933_v57 = vmax.f32 %v4337_v13, 0.0 }
 0x311   : > { %v2305_v48 = vadd.f32 %v2304_v39, %v2303_v40  ;;  %v2308_v40 = vsel %vm1681_vm2, %v2127_v54, 0.0  ;;  %v2131_v54 = vmul.f32 %v5235_v42, %v5235_v42  ;;  %v5363_v33 = vsub.f32 %v6931_v49, %v4774_v6 }
 0x312   : > { %6930 = vst [vmem:[#allocation74_spill] sm:$0xff] %v5355_v62  ;;  %v5371_v41 = vsub.f32 %v6933_v57, %v4774_v6  ;;  %v6935_v3 = vmax.f32 %v4345_v22, 0.0  ;;  %v6937_v13 = vmax.f32 %v4353_v28, 0.0  ;;  %v6939_v22 = vld [vmem:[#allocation80_spill] sm:$0xff]  ;;  %v6942_v28 = vld [vmem:[#allocation81_spill] sm:$0xff] }
 0x313   : > { %v2307_v2 = vadd.f32 %v2306_v17, %v2305_v48  ;;  %v2310_v48 = vsel %vm1681_vm2, %v2128_v43, 0.0  ;;  %v2132_v43 = vmul.f32 %v5243_v32, %v5243_v32  ;;  %6932 = vst [vmem:[#allocation75_spill] sm:$0xff] %v5363_v33 }
 0x314   : > { %6934 = vst [vmem:[#allocation76_spill] sm:$0xff] %v5371_v41  ;;  %v5379_v49 = vsub.f32 %v6935_v3, %v4774_v6  ;;  %v5387_v57 = vsub.f32 %v6937_v13, %v4774_v6  ;;  %v6940_v3 = vmax.f32 %v6939_v22, 0.0  ;;  %v6943_v13 = vmax.f32 %v6942_v28, 0.0  ;;  %v6945_v22 = vld [vmem:[#allocation82_spill] sm:$0xff]  ;;  %v6948_v28 = vld [vmem:[#allocation83_spill] sm:$0xff] }
 0x315   : > { %v2309_v39 = vadd.f32 %v2308_v40, %v2307_v2  ;;  %v2312_v2 = vsel %vm1681_vm2, %v2129_v29, 0.0  ;;  %v2133_v29 = vmul.f32 %v5251_v55, %v5251_v55 }
 0x316   : > { %6936 = vst [vmem:[#allocation77_spill] sm:$0xff] %v5379_v49  ;;  %6938 = vst [vmem:[#allocation79_spill] sm:$0xff] %v5387_v57 }
 0x317   : > { %v2311_v17 = vadd.f32 %v2310_v48, %v2309_v39  ;;  %v2314_v39 = vsel %vm1681_vm2, %v2130_v12, 0.0  ;;  %v2134_v12 = vmul.f32 %v5259_v31, %v5259_v31 }
 0x319   : > { %v2313_v40 = vadd.f32 %v2312_v2, %v2311_v17  ;;  %v2316_v17 = vsel %vm1681_vm2, %v2131_v54, 0.0  ;;  %v2135_v54 = vmul.f32 %v5267_v34, %v5267_v34 }
 0x31b   : > { %v2315_v48 = vadd.f32 %v2314_v39, %v2313_v40  ;;  %v2318_v40 = vsel %vm1681_vm2, %v2132_v43, 0.0  ;;  %v2136_v43 = vmul.f32 %v5275_v11, %v5275_v11 }
 0x31d   : > { %v2317_v2 = vadd.f32 %v2316_v17, %v2315_v48  ;;  %v2320_v48 = vsel %vm1681_vm2, %v2133_v29, 0.0  ;;  %v2137_v29 = vmul.f32 %v5283_v21, %v5283_v21 }
 0x31f   : > { %v2319_v39 = vadd.f32 %v2318_v40, %v2317_v2  ;;  %v2322_v2 = vsel %vm1681_vm2, %v2134_v12, 0.0  ;;  %v2138_v12 = vmul.f32 %v5291_v14, %v5291_v14 }
 0x321   : > { %v2321_v17 = vadd.f32 %v2320_v48, %v2319_v39  ;;  %v2324_v39 = vsel %vm1681_vm2, %v2135_v54, 0.0  ;;  %v2139_v54 = vmul.f32 %v5299_v15, %v5299_v15 }
 0x323   : > { %v2323_v40 = vadd.f32 %v2322_v2, %v2321_v17  ;;  %v2326_v17 = vsel %vm1681_vm2, %v2136_v43, 0.0  ;;  %v2140_v43 = vmul.f32 %v5307_v1, %v5307_v1 }
 0x325   : > { %v2325_v48 = vadd.f32 %v2324_v39, %v2323_v40  ;;  %v2328_v40 = vsel %vm1681_vm2, %v2137_v29, 0.0  ;;  %v2141_v29 = vmul.f32 %v5315_v63, %v5315_v63 }
 0x327   : > { %v2327_v2 = vadd.f32 %v2326_v17, %v2325_v48  ;;  %v2330_v48 = vsel %vm1681_vm2, %v2138_v12, 0.0  ;;  %v2142_v12 = vmul.f32 %v5323_v19, %v5323_v19 }
 0x329   : > { %v2329_v39 = vadd.f32 %v2328_v40, %v2327_v2  ;;  %v2332_v2 = vsel %vm1681_vm2, %v2139_v54, 0.0  ;;  %v2143_v54 = vmul.f32 %v5331_v61, %v5331_v61 }
 0x32b   : > { %v2331_v17 = vadd.f32 %v2330_v48, %v2329_v39  ;;  %v2334_v39 = vsel %vm1681_vm2, %v2140_v43, 0.0  ;;  %v2144_v43 = vmul.f32 %v5339_v53, %v5339_v53 }
 0x32d   : > { %v2333_v40 = vadd.f32 %v2332_v2, %v2331_v17  ;;  %v2336_v17 = vsel %vm1681_vm2, %v2141_v29, 0.0  ;;  %v2145_v29 = vmul.f32 %v5347_v26, %v5347_v26 }
 0x32f   : > { %v2335_v48 = vadd.f32 %v2334_v39, %v2333_v40  ;;  %v2338_v40 = vsel %vm1681_vm2, %v2142_v12, 0.0  ;;  %v2146_v12 = vmul.f32 %v5355_v62, %v5355_v62  ;;  %v5395_v62 = vsub.f32 %v6940_v3, %v4774_v6 }
 0x330   : > { %v6946_v3 = vmax.f32 %v6945_v22, 0.0  ;;  %v6951_v22 = vld [vmem:[#allocation2_spill] sm:$0xff] }
 0x331   : > { %v2337_v2 = vadd.f32 %v2336_v17, %v2335_v48  ;;  %v2340_v48 = vsel %vm1681_vm2, %v2143_v54, 0.0  ;;  %v2147_v54 = vmul.f32 %v5363_v33, %v5363_v33  ;;  %6941 = vst [vmem:[#allocation80_spill] sm:$0xff] %v5395_v62  ;;  %v5403_v33 = vsub.f32 %v6943_v13, %v4774_v6 }
 0x332   : > { %v6949_v13 = vmax.f32 %v6948_v28, 0.0  ;;  %v6954_v28 = vld [vmem:[#allocation3_spill] sm:$0xff] }
 0x333   : > { %v2339_v39 = vadd.f32 %v2338_v40, %v2337_v2  ;;  %v2342_v2 = vsel %vm1681_vm2, %v2144_v43, 0.0  ;;  %v2148_v43 = vmul.f32 %v5371_v41, %v5371_v41  ;;  %6944 = vst [vmem:[#allocation81_spill] sm:$0xff] %v5403_v33  ;;  %v5411_v41 = vsub.f32 %v6946_v3, %v4774_v6 }
 0x334   : > { %v6952_v3 = vmax.f32 %v6951_v22, 0.0  ;;  %v6957_v22 = vld [vmem:[#allocation4_spill] sm:$0xff] }
 0x335   : > { %v2341_v17 = vadd.f32 %v2340_v48, %v2339_v39  ;;  %v2344_v39 = vsel %vm1681_vm2, %v2145_v29, 0.0  ;;  %v2149_v29 = vmul.f32 %v5379_v49, %v5379_v49  ;;  %6947 = vst [vmem:[#allocation82_spill] sm:$0xff] %v5411_v41  ;;  %v5419_v49 = vsub.f32 %v6949_v13, %v4774_v6 }
 0x336   : > { %v6955_v13 = vmax.f32 %v6954_v28, 0.0  ;;  %v6960_v28 = vld [vmem:[#allocation5_spill] sm:$0xff] }
 0x337   : > { %v2343_v40 = vadd.f32 %v2342_v2, %v2341_v17  ;;  %v2346_v17 = vsel %vm1681_vm2, %v2146_v12, 0.0  ;;  %v2150_v12 = vmul.f32 %v5387_v57, %v5387_v57  ;;  %6950 = vst [vmem:[#allocation83_spill] sm:$0xff] %v5419_v49  ;;  %v5427_v57 = vsub.f32 %v6952_v3, %v4774_v6 }
 0x338   : > { %v6958_v3 = vmax.f32 %v6957_v22, 0.0  ;;  %v6963_v22 = vld [vmem:[#allocation6_spill] sm:$0xff] }
 0x339   : > { %v2345_v48 = vadd.f32 %v2344_v39, %v2343_v40  ;;  %v2348_v40 = vsel %vm1681_vm2, %v2147_v54, 0.0  ;;  %v2151_v54 = vmul.f32 %v5395_v62, %v5395_v62  ;;  %6953 = vst [vmem:[#allocation2_spill] sm:$0xff] %v5427_v57  ;;  %v5435_v62 = vsub.f32 %v6955_v13, %v4774_v6 }
 0x33a   : > { %v6961_v13 = vmax.f32 %v6960_v28, 0.0  ;;  %v6966_v28 = vld [vmem:[#allocation7_spill] sm:$0xff] }
 0x33b   : > { %v2347_v2 = vadd.f32 %v2346_v17, %v2345_v48  ;;  %v2350_v48 = vsel %vm1681_vm2, %v2148_v43, 0.0  ;;  %v2152_v43 = vmul.f32 %v5403_v33, %v5403_v33  ;;  %6956 = vst [vmem:[#allocation3_spill] sm:$0xff] %v5435_v62  ;;  %v5443_v33 = vsub.f32 %v6958_v3, %v4774_v6 }
 0x33c   : > { %v6964_v3 = vmax.f32 %v6963_v22, 0.0  ;;  %v6968_v22 = vld [vmem:[#allocation8_spill] sm:$0xff] }
 0x33d   : > { %v2349_v39 = vadd.f32 %v2348_v40, %v2347_v2  ;;  %v2352_v2 = vsel %vm1681_vm2, %v2149_v29, 0.0  ;;  %v2153_v29 = vmul.f32 %v5411_v41, %v5411_v41  ;;  %6959 = vst [vmem:[#allocation4_spill] sm:$0xff] %v5443_v33  ;;  %v5451_v41 = vsub.f32 %v6961_v13, %v4774_v6 }
 0x33e   : > { %v6967_v13 = vmax.f32 %v6966_v28, 0.0  ;;  %v6971_v28 = vld [vmem:[#allocation9_spill] sm:$0xff] }
 0x33f   : > { %v2351_v17 = vadd.f32 %v2350_v48, %v2349_v39  ;;  %v2354_v39 = vsel %vm1681_vm2, %v2150_v12, 0.0  ;;  %v2154_v12 = vmul.f32 %v5419_v49, %v5419_v49  ;;  %6962 = vst [vmem:[#allocation5_spill] sm:$0xff] %v5451_v41  ;;  %v5459_v49 = vsub.f32 %v6964_v3, %v4774_v6 }
 0x340   : > { %v6969_v3 = vmax.f32 %v6968_v22, 0.0  ;;  %v6973_v22 = vld [vmem:[#allocation10_spill] sm:$0xff] }
 0x341   : > { %v2353_v40 = vadd.f32 %v2352_v2, %v2351_v17  ;;  %v2356_v17 = vsel %vm1681_vm2, %v2151_v54, 0.0  ;;  %v2155_v54 = vmul.f32 %v5427_v57, %v5427_v57  ;;  %6965 = vst [vmem:[#allocation6_spill] sm:$0xff] %v5459_v49  ;;  %v5467_v57 = vsub.f32 %v6967_v13, %v4774_v6 }
 0x342   : > { %v6972_v13 = vmax.f32 %v6971_v28, 0.0  ;;  %v6975_v28 = vld [vmem:[#allocation11_spill] sm:$0xff] }
 0x343   : > { %v2355_v48 = vadd.f32 %v2354_v39, %v2353_v40  ;;  %v2358_v40 = vsel %vm1681_vm2, %v2152_v43, 0.0  ;;  %v2156_v43 = vmul.f32 %v5435_v62, %v5435_v62  ;;  %v5475_v62 = vsub.f32 %v6969_v3, %v4774_v6 }
 0x344   : > { %v6974_v3 = vmax.f32 %v6973_v22, 0.0  ;;  %v6977_v22 = vmax.f32 %v4473_v44, 0.0  ;;  %v6980_v44 = vmax.f32 %v4489_v35, 0.0  ;;  %v6982_v35 = vmax.f32 %v4505_v9, 0.0 }
 0x345   : > { %v2357_v2 = vadd.f32 %v2356_v17, %v2355_v48  ;;  %v2360_v48 = vsel %vm1681_vm2, %v2153_v29, 0.0  ;;  %v2157_v29 = vmul.f32 %v5443_v33, %v5443_v33  ;;  %6970 = vst [vmem:[#allocation7_spill] sm:$0xff] %v5475_v62  ;;  %v5483_v33 = vsub.f32 %v6972_v13, %v4774_v6 }
 0x346   : > { %v6976_v13 = vmax.f32 %v6975_v28, 0.0  ;;  %v6978_v28 = vld [vmem:[#allocation12_spill] sm:$0xff]  ;;  %v6984_v9 = vmax.f32 %v4526_v25, 0.0  ;;  %v6986_v25 = vmax.f32 %v4542_v30, 0.0  ;;  %v6988_v30 = vmax.f32 %v4558_v0, 0.0 }
 0x347   : > { %v2359_v39 = vadd.f32 %v2358_v40, %v2357_v2  ;;  %v2362_v2 = vsel %vm1681_vm2, %v2154_v12, 0.0  ;;  %v2158_v12 = vmul.f32 %v5451_v41, %v5451_v41  ;;  %v5491_v41 = vsub.f32 %v6974_v3, %v4774_v6 }
 0x348   : > { %v5507_v3 = vsub.f32 %v6977_v22, %v4774_v6  ;;  %v5523_v22 = vsub.f32 %v6980_v44, %v4774_v6  ;;  %v5539_v44 = vsub.f32 %v6982_v35, %v4774_v6  ;;  %v5555_v35 = vsub.f32 %v6984_v9, %v4774_v6 }
 0x349   : > { %v2361_v17 = vadd.f32 %v2360_v48, %v2359_v39  ;;  %v2364_v39 = vsel %vm1681_vm2, %v2155_v54, 0.0  ;;  %v2159_v54 = vmul.f32 %v5459_v49, %v5459_v49  ;;  %v5499_v49 = vsub.f32 %v6976_v13, %v4774_v6 }
 0x34a   : > { %v6979_v13 = vmax.f32 %v6978_v28, 0.0  ;;  %v6981_v28 = vmax.f32 %v4497_v16, 0.0  ;;  %v6983_v16 = vmax.f32 %v4518_v60, 0.0  ;;  %v6985_v60 = vmax.f32 %v4534_v4, 0.0 }
 0x34b   : > { %v2363_v40 = vadd.f32 %v2362_v2, %v2361_v17  ;;  %v2366_v17 = vsel %vm1681_vm2, %v2156_v43, 0.0  ;;  %v2160_v43 = vmul.f32 %v5467_v57, %v5467_v57  ;;  %v5571_v9 = vsub.f32 %v6986_v25, %v4774_v6 }
 0x34c   : > { %v6987_v4 = vmax.f32 %v4550_v24, 0.0  ;;  %v5587_v25 = vsub.f32 %v6988_v30, %v4774_v6  ;;  %v6989_v24 = vmax.f32 %v4566_v10, 0.0  ;;  %v6990_v0 = vmax.f32 %v4574_v46, 0.0 }
 0x34d   : > { %v2365_v48 = vadd.f32 %v2364_v39, %v2363_v40  ;;  %v2368_v40 = vsel %vm1681_vm2, %v2157_v29, 0.0  ;;  %v2161_v29 = vmul.f32 %v5475_v62, %v5475_v62  ;;  %v5515_v62 = vsub.f32 %v6979_v13, %v4774_v6 }
 0x34e   : > { %v5531_v13 = vsub.f32 %v6981_v28, %v4774_v6  ;;  %v5547_v28 = vsub.f32 %v6983_v16, %v4774_v6  ;;  %v5563_v16 = vsub.f32 %v6985_v60, %v4774_v6  ;;  %v5579_v60 = vsub.f32 %v6987_v4, %v4774_v6 }
 0x34f   : > { %v2367_v2 = vadd.f32 %v2366_v17, %v2365_v48  ;;  %v2370_v48 = vsel %vm1681_vm2, %v2158_v12, 0.0  ;;  %v2162_v12 = vmul.f32 %v5483_v33, %v5483_v33  ;;  %v5595_v4 = vsub.f32 %v6989_v24, %v4774_v6 }
 0x350   : > { %v5603_v30 = vsub.f32 %v6990_v0, %v4774_v6  ;;  %v6991_v10 = vmax.f32 %v4582_v58, 0.0  ;;  %v6992_v46 = vmax.f32 %v4590_v18, 0.0  ;;  %v6993_v58 = vmax.f32 %v4598_v20, 0.0 }
 0x351   : > { %v2369_v39 = vadd.f32 %v2368_v40, %v2367_v2  ;;  %v2372_v2 = vsel %vm1681_vm2, %v2159_v54, 0.0  ;;  %v2163_v54 = vmul.f32 %v5491_v41, %v5491_v41  ;;  %v6994_v18 = vmax.f32 %v4610_v38, 0.0 }
 0x352   : > { %v5611_v24 = vsub.f32 %v6991_v10, %v4774_v6  ;;  %v5619_v0 = vsub.f32 %v6992_v46, %v4774_v6  ;;  %v5627_v10 = vsub.f32 %v6993_v58, %v4774_v6  ;;  %v6995_v20 = vmax.f32 %v4621_v50, 0.0 }
 0x353   : > { %v2371_v17 = vadd.f32 %v2370_v48, %v2369_v39  ;;  %v2374_v39 = vsel %vm1681_vm2, %v2160_v43, 0.0  ;;  %v2164_v43 = vmul.f32 %v5499_v49, %v5499_v49  ;;  %v5635_v46 = vsub.f32 %v6994_v18, %v4774_v6 }
 0x354   : > { %v5643_v58 = vsub.f32 %v6995_v20, %v4774_v6  ;;  %v6996_v38 = vmax.f32 %v4629_v8, 0.0  ;;  %v6997_v50 = vmax.f32 %v4637_v27, 0.0  ;;  %v6998_v8 = vmax.f32 %v4645_v37, 0.0 }
 0x355   : > { %v2373_v40 = vadd.f32 %v2372_v2, %v2371_v17  ;;  %v2376_v17 = vsel %vm1681_vm2, %v2161_v29, 0.0  ;;  %v2165_v29 = vmul.f32 %v5507_v3, %v5507_v3  ;;  %v6999_v27 = vmax.f32 %v4653_v47, 0.0 }
 0x356   : > { %v5651_v18 = vsub.f32 %v6996_v38, %v4774_v6  ;;  %v5659_v20 = vsub.f32 %v6997_v50, %v4774_v6  ;;  %v5667_v38 = vsub.f32 %v6998_v8, %v4774_v6  ;;  %v7000_v37 = vmax.f32 %v4661_v59, 0.0 }
 0x357   : > { %v2375_v48 = vadd.f32 %v2374_v39, %v2373_v40  ;;  %v2378_v40 = vsel %vm1681_vm2, %v2162_v12, 0.0  ;;  %v2166_v12 = vmul.f32 %v5515_v62, %v5515_v62  ;;  %v5675_v50 = vsub.f32 %v6999_v27, %v4774_v6 }
 0x358   : > { %v5683_v8 = vsub.f32 %v7000_v37, %v4774_v6  ;;  %v7002_v47 = vmax.f32 %v4669_v7, 0.0  ;;  %v7004_v59 = vmax.f32 %v4677_v23, 0.0  ;;  %v7006_v7 = vmax.f32 %v4685_v45, 0.0 }
 0x359   : > { %v2377_v2 = vadd.f32 %v2376_v17, %v2375_v48  ;;  %v2380_v48 = vsel %vm1681_vm2, %v2163_v54, 0.0  ;;  %v2167_v54 = vmul.f32 %v5523_v22, %v5523_v22  ;;  %v7008_v23 = vmax.f32 %v4693_v5, 0.0  ;;  %v7012_v5 = vld [vmem:[#allocation13_spill] sm:$0xff] }
 0x35a   : > { %7001 = vst [vmem:[#allocation8_spill] sm:$0xff] %v5683_v8  ;;  %v5691_v27 = vsub.f32 %v7002_v47, %v4774_v6  ;;  %v5699_v37 = vsub.f32 %v7004_v59, %v4774_v6  ;;  %v5707_v47 = vsub.f32 %v7006_v7, %v4774_v6  ;;  %v7010_v45 = vmax.f32 %v4701_v56, 0.0  ;;  %v7015_v56 = vld [vmem:[#allocation14_spill] sm:$0xff] }
 0x35b   : > { %v2379_v39 = vadd.f32 %v2378_v40, %v2377_v2  ;;  %v2382_v2 = vsel %vm1681_vm2, %v2164_v43, 0.0  ;;  %v2168_v43 = vmul.f32 %v5531_v13, %v5531_v13  ;;  %v5715_v59 = vsub.f32 %v7008_v23, %v4774_v6 }
 0x35c   : > { %7003 = vst [vmem:[#allocation9_spill] sm:$0xff] %v5691_v27  ;;  %7005 = vst [vmem:[#allocation10_spill] sm:$0xff] %v5699_v37  ;;  %v5723_v7 = vsub.f32 %v7010_v45, %v4774_v6  ;;  %v7013_v23 = vmax.f32 %v7012_v5, 0.0  ;;  %v7016_v45 = vmax.f32 %v7015_v56, 0.0  ;;  %v7018_v5 = vld [vmem:[#allocation16_spill] sm:$0xff] }
 0x35d   : > { %v2381_v17 = vadd.f32 %v2380_v48, %v2379_v39  ;;  %v2384_v39 = vsel %vm1681_vm2, %v2165_v29, 0.0  ;;  %v2169_v29 = vmul.f32 %v5539_v44, %v5539_v44  ;;  %7007 = vst [vmem:[#allocation11_spill] sm:$0xff] %v5707_v47  ;;  %7009 = vst [vmem:[#allocation12_spill] sm:$0xff] %v5715_v59  ;;  %v7021_v56 = vld [vmem:[#allocation20_spill] sm:$0xff] }
 0x35e   : > { %7011 = vst [vmem:[#allocation85_spill] sm:$0xff] %v5723_v7 }
 0x35f   : > { %v2383_v40 = vadd.f32 %v2382_v2, %v2381_v17  ;;  %v2386_v17 = vsel %vm1681_vm2, %v2166_v12, 0.0  ;;  %v2170_v12 = vmul.f32 %v5547_v28, %v5547_v28 }
 0x361   : > { %v2385_v48 = vadd.f32 %v2384_v39, %v2383_v40  ;;  %v2388_v40 = vsel %vm1681_vm2, %v2167_v54, 0.0  ;;  %v2171_v54 = vmul.f32 %v5555_v35, %v5555_v35 }
 0x363   : > { %v2387_v2 = vadd.f32 %v2386_v17, %v2385_v48  ;;  %v2390_v48 = vsel %vm1681_vm2, %v2168_v43, 0.0  ;;  %v2172_v43 = vmul.f32 %v5563_v16, %v5563_v16 }
 0x365   : > { %v2389_v39 = vadd.f32 %v2388_v40, %v2387_v2  ;;  %v2392_v2 = vsel %vm1681_vm2, %v2169_v29, 0.0  ;;  %v2173_v29 = vmul.f32 %v5571_v9, %v5571_v9 }
 0x367   : > { %v2391_v17 = vadd.f32 %v2390_v48, %v2389_v39  ;;  %v2394_v39 = vsel %vm1681_vm2, %v2170_v12, 0.0  ;;  %v2174_v12 = vmul.f32 %v5579_v60, %v5579_v60 }
 0x369   : > { %v2393_v40 = vadd.f32 %v2392_v2, %v2391_v17  ;;  %v2396_v17 = vsel %vm1681_vm2, %v2171_v54, 0.0  ;;  %v2175_v54 = vmul.f32 %v5587_v25, %v5587_v25 }
 0x36b   : > { %v2395_v48 = vadd.f32 %v2394_v39, %v2393_v40  ;;  %v2398_v40 = vsel %vm1681_vm2, %v2172_v43, 0.0  ;;  %v2176_v43 = vmul.f32 %v5595_v4, %v5595_v4 }
 0x36d   : > { %v2397_v2 = vadd.f32 %v2396_v17, %v2395_v48  ;;  %v2400_v48 = vsel %vm1681_vm2, %v2173_v29, 0.0  ;;  %v2177_v29 = vmul.f32 %v5603_v30, %v5603_v30 }
 0x36f   : > { %v2399_v39 = vadd.f32 %v2398_v40, %v2397_v2  ;;  %v2402_v2 = vsel %vm1681_vm2, %v2174_v12, 0.0  ;;  %v2178_v12 = vmul.f32 %v5611_v24, %v5611_v24 }
 0x371   : > { %v2401_v17 = vadd.f32 %v2400_v48, %v2399_v39  ;;  %v2404_v39 = vsel %vm1681_vm2, %v2175_v54, 0.0  ;;  %v2179_v54 = vmul.f32 %v5619_v0, %v5619_v0 }
 0x373   : > { %v2403_v40 = vadd.f32 %v2402_v2, %v2401_v17  ;;  %v2406_v17 = vsel %vm1681_vm2, %v2176_v43, 0.0  ;;  %v2180_v43 = vmul.f32 %v5627_v10, %v5627_v10 }
 0x375   : > { %v2405_v48 = vadd.f32 %v2404_v39, %v2403_v40  ;;  %v2408_v40 = vsel %vm1681_vm2, %v2177_v29, 0.0  ;;  %v2181_v29 = vmul.f32 %v5635_v46, %v5635_v46 }
 0x377   : > { %v2407_v2 = vadd.f32 %v2406_v17, %v2405_v48  ;;  %v2410_v48 = vsel %vm1681_vm2, %v2178_v12, 0.0  ;;  %v2182_v12 = vmul.f32 %v5643_v58, %v5643_v58 }
 0x379   : > { %v2409_v39 = vadd.f32 %v2408_v40, %v2407_v2  ;;  %v2412_v2 = vsel %vm1681_vm2, %v2179_v54, 0.0  ;;  %v2183_v54 = vmul.f32 %v5651_v18, %v5651_v18 }
 0x37b   : > { %v2411_v17 = vadd.f32 %v2410_v48, %v2409_v39  ;;  %v2414_v39 = vsel %vm1681_vm2, %v2180_v43, 0.0  ;;  %v2184_v43 = vmul.f32 %v5659_v20, %v5659_v20 }
 0x37d   : > { %v2413_v40 = vadd.f32 %v2412_v2, %v2411_v17  ;;  %v2416_v17 = vsel %vm1681_vm2, %v2181_v29, 0.0  ;;  %v2185_v29 = vmul.f32 %v5667_v38, %v5667_v38 }
 0x37f   : > { %v2415_v48 = vadd.f32 %v2414_v39, %v2413_v40  ;;  %v2418_v40 = vsel %vm1681_vm2, %v2182_v12, 0.0  ;;  %v2186_v12 = vmul.f32 %v5675_v50, %v5675_v50 }
 0x381   : > { %v2417_v2 = vadd.f32 %v2416_v17, %v2415_v48  ;;  %v2420_v48 = vsel %vm1681_vm2, %v2183_v54, 0.0  ;;  %v2187_v54 = vmul.f32 %v5683_v8, %v5683_v8 }
 0x383   : > { %v2419_v39 = vadd.f32 %v2418_v40, %v2417_v2  ;;  %v2422_v2 = vsel %vm1681_vm2, %v2184_v43, 0.0  ;;  %v2188_v43 = vmul.f32 %v5691_v27, %v5691_v27  ;;  %v5731_v27 = vsub.f32 %v7013_v23, %v4774_v6 }
 0x384   : > { %v7019_v23 = vmax.f32 %v7018_v5, 0.0  ;;  %v7024_v5 = vld [vmem:[#allocation23_spill] sm:$0xff] }
 0x385   : > { %v2421_v17 = vadd.f32 %v2420_v48, %v2419_v39  ;;  %v2424_v39 = vsel %vm1681_vm2, %v2185_v29, 0.0  ;;  %v2189_v29 = vmul.f32 %v5699_v37, %v5699_v37  ;;  %7014 = vst [vmem:[#allocation13_spill] sm:$0xff] %v5731_v27  ;;  %v5739_v37 = vsub.f32 %v7016_v45, %v4774_v6 }
 0x386   : > { %v7022_v45 = vmax.f32 %v7021_v56, 0.0  ;;  %v7027_v56 = vld [vmem:[#allocation68_spill] sm:$0xff] }
 0x387   : > { %v2423_v40 = vadd.f32 %v2422_v2, %v2421_v17  ;;  %v2426_v17 = vsel %vm1681_vm2, %v2186_v12, 0.0  ;;  %v2190_v12 = vmul.f32 %v5707_v47, %v5707_v47  ;;  %7017 = vst [vmem:[#allocation14_spill] sm:$0xff] %v5739_v37  ;;  %v5747_v47 = vsub.f32 %v7019_v23, %v4774_v6 }
 0x388   : > { %v7025_v23 = vmax.f32 %v7024_v5, 0.0  ;;  %v7030_v5 = vld [vmem:[#allocation78_spill] sm:$0xff] }
 0x389   : > { %v2425_v48 = vadd.f32 %v2424_v39, %v2423_v40  ;;  %v2428_v40 = vsel %vm1681_vm2, %v2187_v54, 0.0  ;;  %v2191_v54 = vmul.f32 %v5715_v59, %v5715_v59  ;;  %7020 = vst [vmem:[#allocation16_spill] sm:$0xff] %v5747_v47  ;;  %v5755_v59 = vsub.f32 %v7022_v45, %v4774_v6 }
 0x38a   : > { %v7028_v45 = vmax.f32 %v7027_v56, 0.0  ;;  %v7033_v56 = vld [vmem:[#allocation84_spill] sm:$0xff] }
 0x38b   : > { %v2427_v2 = vadd.f32 %v2426_v17, %v2425_v48  ;;  %v2430_v48 = vsel %vm1681_vm2, %v2188_v43, 0.0  ;;  %v2192_v43 = vmul.f32 %v5723_v7, %v5723_v7  ;;  %7023 = vst [vmem:[#allocation20_spill] sm:$0xff] %v5755_v59  ;;  %v5763_v7 = vsub.f32 %v7025_v23, %v4774_v6 }
 0x38c   : > { %v7031_v23 = vmax.f32 %v7030_v5, 0.0 }
 0x38d   : > { %v2429_v39 = vadd.f32 %v2428_v40, %v2427_v2  ;;  %v2432_v2 = vsel %vm1681_vm2, %v2189_v29, 0.0  ;;  %v2193_v29 = vmul.f32 %v5731_v27, %v5731_v27  ;;  %7026 = vst [vmem:[#allocation23_spill] sm:$0xff] %v5763_v7  ;;  %v5771_v27 = vsub.f32 %v7028_v45, %v4774_v6 }
 0x38e   : > { %v7034_v45 = vmax.f32 %v7033_v56, 0.0 }
 0x38f   : > { %v2431_v17 = vadd.f32 %v2430_v48, %v2429_v39  ;;  %v2434_v39 = vsel %vm1681_vm2, %v2190_v12, 0.0  ;;  %v2194_v12 = vmul.f32 %v5739_v37, %v5739_v37  ;;  %7029 = vst [vmem:[#allocation68_spill] sm:$0xff] %v5771_v27  ;;  %v5779_v37 = vsub.f32 %v7031_v23, %v4774_v6 }
 0x391   : > { %v2433_v40 = vadd.f32 %v2432_v2, %v2431_v17  ;;  %v2436_v17 = vsel %vm1681_vm2, %v2191_v54, 0.0  ;;  %v2195_v54 = vmul.f32 %v5747_v47, %v5747_v47  ;;  %7032 = vst [vmem:[#allocation78_spill] sm:$0xff] %v5779_v37  ;;  %v5787_v47 = vsub.f32 %v7034_v45, %v4774_v6 }
 0x392   : > { %v2199_v5 = vmul.f32 %v5779_v37, %v5779_v37 }
 0x393   : > { %v2435_v48 = vadd.f32 %v2434_v39, %v2433_v40  ;;  %v2438_v40 = vsel %vm1681_vm2, %v2192_v43, 0.0  ;;  %v2196_v43 = vmul.f32 %v5755_v59, %v5755_v59  ;;  %7035 = vst [vmem:[#allocation84_spill] sm:$0xff] %v5787_v47 }
 0x395   : > { %v2437_v2 = vadd.f32 %v2436_v17, %v2435_v48  ;;  %v2440_v48 = vsel %vm1681_vm2, %v2193_v29, 0.0  ;;  %v2197_v29 = vmul.f32 %v5763_v7, %v5763_v7 }
 0x397   : > { %v2439_v39 = vadd.f32 %v2438_v40, %v2437_v2  ;;  %v2442_v2 = vsel %vm1681_vm2, %v2194_v12, 0.0  ;;  %v2198_v12 = vmul.f32 %v5771_v27, %v5771_v27  ;;  %v2448_v23 = vsel %vm1681_vm2, %v2197_v29, 0.0 }
 0x399   : > { %v2441_v17 = vadd.f32 %v2440_v48, %v2439_v39  ;;  %v2444_v39 = vsel %vm1681_vm2, %v2195_v54, 0.0  ;;  %v2200_v54 = vmul.f32 %v5787_v47, %v5787_v47 }
 0x39b   : > { %v2443_v40 = vadd.f32 %v2442_v2, %v2441_v17  ;;  %v2446_v17 = vsel %vm1681_vm2, %v2196_v43, 0.0  ;;  %v2454_v45 = vsel %vm1681_vm2, %v2200_v54, 0.0  ;;  %v7039_v54 = vld [vmem:[#allocation19_spill] sm:$0xff] }
 0x39d   : > { %v2445_v48 = vadd.f32 %v2444_v39, %v2443_v40  ;;  %v2450_v40 = vsel %vm1681_vm2, %v2198_v12, 0.0  ;;  %v2452_v39 = vsel %vm1681_vm2, %v2199_v5, 0.0  ;;  %v7037_v12 = vld [vmem:[#allocation15_spill] sm:$0xff] }
 0x39f   : > { %v2447_v2 = vadd.f32 %v2446_v17, %v2445_v48 }
 0x3a1   : > { %v2449_v7 = vadd.f32 %v2448_v23, %v2447_v2 }
 0x3a3   : > { %v2451_v6 = vadd.f32 %v2450_v40, %v2449_v7  ;;  %v7036_v7 = vld [vmem:[#allocation17_spill] sm:$0xff] }
 0x3a5   : > { %v2453_v56 = vadd.f32 %v2452_v39, %v2451_v6  ;;  %v7040_v6 = vld [vmem:[#allocation21_spill] sm:$0xff] }
 0x3a7   : > { %v2455_v43 = vadd.f32 %v2454_v45, %v2453_v56  ;;  %v7041_v56 = vld [vmem:[#allocation22_spill] sm:$0xff] }
 0x3a9   : > { %v2456_v48 = vrot.slane %v2455_v43, 4 }
 0x3ab   : > { %v2457_v17 = vadd.f32 %v2456_v48, %v2455_v43  ;;  %v7042_v43 = vld [vmem:[#allocation24_spill] sm:$0xff] }
 0x3ad   : > { %v2458_v27 = vrot.slane %v2457_v17, 2 }
 0x3af   : > { %v2459_v37 = vadd.f32 %v2458_v27, %v2457_v17  ;;  %v7043_v17 = vld [vmem:[#allocation25_spill] sm:$0xff] }
 0x3b1   : > { %v2460_v59 = vrot.slane %v2459_v37, 1 }
 0x3b3   : > { %v2461_v29 = vadd.f32 %v2460_v59, %v2459_v37  ;;  %v7038_v59 = vld [vmem:[#allocation18_spill] sm:$0xff] }
 0x3b5   : > { %v2462_v2 = vmul.f32 0.0009765625, %v2461_v29 }
 0x3b7   : > { %v2463_v23 = vadd.f32 1e-05, %v2462_v2  ;;  %v7044_v2 = vld [vmem:[#allocation26_spill] sm:$0xff] }
 0x3b9   : > { %2991 = vrsqrt.f32 %v2463_v23 }
 0x3c3   : > { %v5801_v47 = vpop.eup %2991 }
 0x3c4   : > { %v2465_v27 = vmul.f32 %v5801_v47, %v7036_v7  ;;  %v2466_v37 = vmul.f32 %v5801_v47, %v7037_v12  ;;  %v2467_v5 = vmul.f32 %v5801_v47, %v7038_v59  ;;  %v2468_v40 = vmul.f32 %v5801_v47, %v7039_v54  ;;  %v7045_v7 = vld [vmem:[#allocation27_spill] sm:$0xff]  ;;  %v7046_v59 = vld [vmem:[#allocation28_spill] sm:$0xff] }
 0x3c5   : > { %v2469_v39 = vmul.f32 %v5801_v47, %v7040_v6  ;;  %v2470_v45 = vmul.f32 %v5801_v47, %v7041_v56  ;;  %v2471_v48 = vmul.f32 %v5801_v47, %v7042_v43  ;;  %v2472_v29 = vmul.f32 %v5801_v47, %v7043_v17  ;;  %v7047_v6 = vld [vmem:[#allocation29_spill] sm:$0xff]  ;;  %v7048_v43 = vld [vmem:[#allocation30_spill] sm:$0xff] }
 0x3c6   : > { %v2473_v23 = vmul.f32 %v5801_v47, %v7044_v2  ;;  %v2474_v12 = vmul.f32 %v5801_v47, %v7045_v7  ;;  %v2475_v54 = vmul.f32 %v5801_v47, %v7046_v59  ;;  %v2476_v56 = vmul.f32 %v5801_v47, %v7047_v6  ;;  %2593 = vst.msk [vmem:[%s5806_s25] sm:$0xff] %vm1681_vm2, %v2465_v27  ;;  %v7049_v2 = vld [vmem:[#allocation31_spill] sm:$0xff]  ;;  %v7050_v59 = vld [vmem:[#allocation32_spill] sm:$0xff]  ;;  %v7051_v27 = vld [vmem:[#allocation33_spill] sm:$0xff] }
 0x3c7   : > { %2594 = vst.msk [vmem:[%s5806_s25 + $0x8] sm:$0xff] %vm1681_vm2, %v2466_v37  ;;  %2595 = vst.msk [vmem:[%s5806_s25 + $0x10] sm:$0xff] %vm1681_vm2, %v2467_v5  ;;  %v2477_v17 = vmul.f32 %v5801_v47, %v7048_v43  ;;  %v2478_v7 = vmul.f32 %v5801_v47, %v7049_v2  ;;  %v2479_v6 = vmul.f32 %v5801_v47, %v7050_v59  ;;  %v7052_v37 = vld [vmem:[#allocation34_spill] sm:$0xff]  ;;  %v7054_v2 = vld [vmem:[#allocation36_spill] sm:$0xff] }
 0x3c8   : > { %2596 = vst.msk [vmem:[%s5806_s25 + $0x18] sm:$0xff] %vm1681_vm2, %v2468_v40  ;;  %v2480_v8 = vmul.f32 %v5801_v47, %v7051_v27  ;;  %2597 = vst.msk [vmem:[%s5806_s25 + $0x20] sm:$0xff] %vm1681_vm2, %v2469_v39  ;;  %v2481_v5 = vmul.f32 %v5801_v47, %v7052_v37  ;;  %v7053_v40 = vld [vmem:[#allocation35_spill] sm:$0xff]  ;;  %v2483_v59 = vmul.f32 %v5801_v47, %v7054_v2  ;;  %v7055_v39 = vld [vmem:[#allocation37_spill] sm:$0xff] }
 0x3c9   : > { %2598 = vst.msk [vmem:[%s5806_s25 + $0x28] sm:$0xff] %vm1681_vm2, %v2470_v45  ;;  %2599 = vst.msk [vmem:[%s5806_s25 + $0x30] sm:$0xff] %vm1681_vm2, %v2471_v48  ;;  %v2482_v43 = vmul.f32 %v5801_v47, %v7053_v40  ;;  %v2484_v27 = vmul.f32 %v5801_v47, %v7055_v39  ;;  %v7056_v45 = vld [vmem:[#allocation38_spill] sm:$0xff]  ;;  %v7058_v40 = vld [vmem:[#allocation40_spill] sm:$0xff] }
 0x3ca   : > { %2600 = vst.msk [vmem:[%s5806_s25 + $0x38] sm:$0xff] %vm1681_vm2, %v2472_v29  ;;  %2601 = vst.msk [vmem:[%s5806_s25 + $0x40] sm:$0xff] %vm1681_vm2, %v2473_v23  ;;  %v2485_v48 = vmul.f32 %v5801_v47, %v7056_v45  ;;  %v7057_v29 = vld [vmem:[#allocation39_spill] sm:$0xff]  ;;  %v2487_v2 = vmul.f32 %v5801_v47, %v7058_v40  ;;  %v7059_v23 = vld [vmem:[#allocation41_spill] sm:$0xff] }
 0x3cb   : > { %2602 = vst.msk [vmem:[%s5806_s25 + $0x48] sm:$0xff] %vm1681_vm2, %v2474_v12  ;;  %2603 = vst.msk [vmem:[%s5806_s25 + $0x50] sm:$0xff] %vm1681_vm2, %v2475_v54  ;;  %v2486_v37 = vmul.f32 %v5801_v47, %v7057_v29  ;;  %v2488_v39 = vmul.f32 %v5801_v47, %v7059_v23  ;;  %v7060_v12 = vld [vmem:[#allocation42_spill] sm:$0xff]  ;;  %v7062_v29 = vld [vmem:[#allocation44_spill] sm:$0xff] }
 0x3cc   : > { %2604 = vst.msk [vmem:[%s5806_s25 + $0x58] sm:$0xff] %vm1681_vm2, %v2476_v56  ;;  %2605 = vst.msk [vmem:[%s5806_s25 + $0x60] sm:$0xff] %vm1681_vm2, %v2477_v17  ;;  %v2489_v54 = vmul.f32 %v5801_v47, %v7060_v12  ;;  %v7061_v56 = vld [vmem:[#allocation43_spill] sm:$0xff]  ;;  %v2491_v40 = vmul.f32 %v5801_v47, %v7062_v29  ;;  %v7063_v17 = vld [vmem:[#allocation45_spill] sm:$0xff] }
 0x3cd   : > { %2606 = vst.msk [vmem:[%s5806_s25 + $0x68] sm:$0xff] %vm1681_vm2, %v2478_v7  ;;  %2607 = vst.msk [vmem:[%s5806_s25 + $0x70] sm:$0xff] %vm1681_vm2, %v2479_v6  ;;  %v2490_v45 = vmul.f32 %v5801_v47, %v7061_v56  ;;  %v2492_v23 = vmul.f32 %v5801_v47, %v7063_v17  ;;  %v7065_v6 = vld [vmem:[#allocation47_spill] sm:$0xff]  ;;  %v7066_v56 = vld [vmem:[#allocation48_spill] sm:$0xff] }
 0x3ce   : > { %2608 = vst.msk [vmem:[%s5806_s25 + $0x78] sm:$0xff] %vm1681_vm2, %v2480_v8  ;;  %2609 = vst.msk [vmem:[%s5806_s25 + $0x80] sm:$0xff] %vm1681_vm2, %v2481_v5  ;;  %v7064_v8 = vld [vmem:[#allocation46_spill] sm:$0xff]  ;;  %v2494_v12 = vmul.f32 %v5801_v47, %v7065_v6  ;;  %v2495_v29 = vmul.f32 %v5801_v47, %v7066_v56  ;;  %v7067_v5 = vld [vmem:[#allocation49_spill] sm:$0xff] }
 0x3cf   : > { %2610 = vst.msk [vmem:[%s5806_s25 + $0x88] sm:$0xff] %vm1681_vm2, %v2482_v43  ;;  %2611 = vst.msk [vmem:[%s5806_s25 + $0x90] sm:$0xff] %vm1681_vm2, %v2483_v59  ;;  %v2493_v7 = vmul.f32 %v5801_v47, %v7064_v8  ;;  %v2496_v17 = vmul.f32 %v5801_v47, %v7067_v5  ;;  %v7068_v43 = vld [vmem:[#allocation50_spill] sm:$0xff]  ;;  %v7070_v6 = vld [vmem:[#allocation52_spill] sm:$0xff] }
 0x3d0   : > { %2612 = vst.msk [vmem:[%s5806_s25 + $0x98] sm:$0xff] %vm1681_vm2, %v2484_v27  ;;  %2613 = vst.msk [vmem:[%s5806_s25 + $0xa0] sm:$0xff] %vm1681_vm2, %v2485_v48  ;;  %v2497_v59 = vmul.f32 %v5801_v47, %v7068_v43  ;;  %v7069_v27 = vld [vmem:[#allocation51_spill] sm:$0xff]  ;;  %v2499_v56 = vmul.f32 %v5801_v47, %v7070_v6  ;;  %v7071_v48 = vld [vmem:[#allocation53_spill] sm:$0xff] }
 0x3d1   : > { %2614 = vst.msk [vmem:[%s5806_s25 + $0xa8] sm:$0xff] %vm1681_vm2, %v2486_v37  ;;  %2615 = vst.msk [vmem:[%s5806_s25 + $0xb0] sm:$0xff] %vm1681_vm2, %v2487_v2  ;;  %v2498_v8 = vmul.f32 %v5801_v47, %v7069_v27  ;;  %v2500_v5 = vmul.f32 %v5801_v47, %v7071_v48  ;;  %v7072_v37 = vld [vmem:[#allocation54_spill] sm:$0xff]  ;;  %v7074_v27 = vld [vmem:[#allocation56_spill] sm:$0xff] }
 0x3d2   : > { %2616 = vst.msk [vmem:[%s5806_s25 + $0xb8] sm:$0xff] %vm1681_vm2, %v2488_v39  ;;  %2617 = vst.msk [vmem:[%s5806_s25 + $0xc0] sm:$0xff] %vm1681_vm2, %v2489_v54  ;;  %v2501_v2 = vmul.f32 %v5801_v47, %v7072_v37  ;;  %v7073_v39 = vld [vmem:[#allocation55_spill] sm:$0xff]  ;;  %v2503_v6 = vmul.f32 %v5801_v47, %v7074_v27  ;;  %v7075_v54 = vld [vmem:[#allocation57_spill] sm:$0xff] }
 0x3d3   : > { %2618 = vst.msk [vmem:[%s5806_s25 + $0xc8] sm:$0xff] %vm1681_vm2, %v2490_v45  ;;  %2619 = vst.msk [vmem:[%s5806_s25 + $0xd0] sm:$0xff] %vm1681_vm2, %v2491_v40  ;;  %v2502_v43 = vmul.f32 %v5801_v47, %v7073_v39  ;;  %v2504_v48 = vmul.f32 %v5801_v47, %v7075_v54  ;;  %v7076_v45 = vld [vmem:[#allocation58_spill] sm:$0xff]  ;;  %v7078_v39 = vld [vmem:[#allocation60_spill] sm:$0xff] }
 0x3d4   : > { %2620 = vst.msk [vmem:[%s5806_s25 + $0xd8] sm:$0xff] %vm1681_vm2, %v2492_v23  ;;  %2621 = vst.msk [vmem:[%s5806_s25 + $0xe0] sm:$0xff] %vm1681_vm2, %v2493_v7  ;;  %v2505_v40 = vmul.f32 %v5801_v47, %v7076_v45  ;;  %v7077_v23 = vld [vmem:[#allocation59_spill] sm:$0xff]  ;;  %v2507_v27 = vmul.f32 %v5801_v47, %v7078_v39  ;;  %v7079_v7 = vld [vmem:[#allocation61_spill] sm:$0xff] }
 0x3d5   : > { %2622 = vst.msk [vmem:[%s5806_s25 + $0xe8] sm:$0xff] %vm1681_vm2, %v2494_v12  ;;  %2623 = vst.msk [vmem:[%s5806_s25 + $0xf0] sm:$0xff] %vm1681_vm2, %v2495_v29  ;;  %v2506_v37 = vmul.f32 %v5801_v47, %v7077_v23  ;;  %v2508_v54 = vmul.f32 %v5801_v47, %v7079_v7  ;;  %v7080_v12 = vld [vmem:[#allocation62_spill] sm:$0xff]  ;;  %v7082_v23 = vld [vmem:[#allocation64_spill] sm:$0xff] }
 0x3d6   : > { %2624 = vst.msk [vmem:[%s5806_s25 + $0xf8] sm:$0xff] %vm1681_vm2, %v2496_v17  ;;  %2625 = vst.msk [vmem:[%s5806_s25 + $0x100] sm:$0xff] %vm1681_vm2, %v2497_v59  ;;  %v2509_v29 = vmul.f32 %v5801_v47, %v7080_v12  ;;  %v7081_v17 = vld [vmem:[#allocation63_spill] sm:$0xff]  ;;  %v2511_v39 = vmul.f32 %v5801_v47, %v7082_v23  ;;  %v7083_v59 = vld [vmem:[#allocation65_spill] sm:$0xff] }
 0x3d7   : > { %2626 = vst.msk [vmem:[%s5806_s25 + $0x108] sm:$0xff] %vm1681_vm2, %v2498_v8  ;;  %2627 = vst.msk [vmem:[%s5806_s25 + $0x110] sm:$0xff] %vm1681_vm2, %v2499_v56  ;;  %v2510_v45 = vmul.f32 %v5801_v47, %v7081_v17  ;;  %v2512_v7 = vmul.f32 %v5801_v47, %v7083_v59  ;;  %v7084_v8 = vld [vmem:[#allocation66_spill] sm:$0xff]  ;;  %v7086_v17 = vld [vmem:[#allocation69_spill] sm:$0xff] }
 0x3d8   : > { %2628 = vst.msk [vmem:[%s5806_s25 + $0x118] sm:$0xff] %vm1681_vm2, %v2500_v5  ;;  %2629 = vst.msk [vmem:[%s5806_s25 + $0x120] sm:$0xff] %vm1681_vm2, %v2501_v2  ;;  %v2513_v56 = vmul.f32 %v5801_v47, %v7084_v8  ;;  %v7085_v5 = vld [vmem:[#allocation67_spill] sm:$0xff]  ;;  %v2515_v23 = vmul.f32 %v5801_v47, %v7086_v17  ;;  %v7087_v2 = vld [vmem:[#allocation70_spill] sm:$0xff] }
 0x3d9   : > { %2630 = vst.msk [vmem:[%s5806_s25 + $0x128] sm:$0xff] %vm1681_vm2, %v2502_v43  ;;  %2631 = vst.msk [vmem:[%s5806_s25 + $0x130] sm:$0xff] %vm1681_vm2, %v2503_v6  ;;  %v2514_v12 = vmul.f32 %v5801_v47, %v7085_v5  ;;  %v2516_v59 = vmul.f32 %v5801_v47, %v7087_v2  ;;  %v7088_v43 = vld [vmem:[#allocation71_spill] sm:$0xff]  ;;  %v7089_v8 = vld [vmem:[#allocation72_spill] sm:$0xff] }
 0x3da   : > { %2632 = vst.msk [vmem:[%s5806_s25 + $0x138] sm:$0xff] %vm1681_vm2, %v2504_v48  ;;  %2633 = vst.msk [vmem:[%s5806_s25 + $0x140] sm:$0xff] %vm1681_vm2, %v2505_v40  ;;  %v2517_v6 = vmul.f32 %v5801_v47, %v7088_v43  ;;  %v2518_v48 = vmul.f32 %v5801_v47, %v5195_v36  ;;  %v2519_v5 = vmul.f32 %v5801_v47, %v7089_v8  ;;  %v7090_v40 = vld [vmem:[#allocation73_spill] sm:$0xff]  ;;  %v7099_v8 = vld [vmem:[#allocation83_spill] sm:$0xff] }
 0x3db   : > { %2634 = vst.msk [vmem:[%s5806_s25 + $0x148] sm:$0xff] %vm1681_vm2, %v2506_v37  ;;  %2635 = vst.msk [vmem:[%s5806_s25 + $0x150] sm:$0xff] %vm1681_vm2, %v2507_v27  ;;  %v2520_v17 = vmul.f32 %v5801_v47, %v7090_v40  ;;  %v2521_v36 = vmul.f32 %v5801_v47, %v5219_v51  ;;  %v2522_v37 = vmul.f32 %v5801_v47, %v5227_v52  ;;  %v7100_v40 = vld [vmem:[#allocation2_spill] sm:$0xff] }
 0x3dc   : > { %2636 = vst.msk [vmem:[%s5806_s25 + $0x158] sm:$0xff] %vm1681_vm2, %v2508_v54  ;;  %2637 = vst.msk [vmem:[%s5806_s25 + $0x160] sm:$0xff] %vm1681_vm2, %v2509_v29  ;;  %v2523_v27 = vmul.f32 %v5801_v47, %v5235_v42  ;;  %v2524_v54 = vmul.f32 %v5801_v47, %v5243_v32  ;;  %v2525_v51 = vmul.f32 %v5801_v47, %v5251_v55  ;;  %v7092_v29 = vld [vmem:[#allocation75_spill] sm:$0xff] }
 0x3dd   : > { %2638 = vst.msk [vmem:[%s5806_s25 + $0x168] sm:$0xff] %vm1681_vm2, %v2510_v45  ;;  %2639 = vst.msk [vmem:[%s5806_s25 + $0x170] sm:$0xff] %vm1681_vm2, %v2511_v39  ;;  %v2526_v52 = vmul.f32 %v5801_v47, %v5259_v31  ;;  %v2527_v32 = vmul.f32 %v5801_v47, %v5267_v34  ;;  %v2528_v42 = vmul.f32 %v5801_v47, %v5275_v11  ;;  %v7093_v45 = vld [vmem:[#allocation76_spill] sm:$0xff] }
 0x3de   : > { %2640 = vst.msk [vmem:[%s5806_s25 + $0x178] sm:$0xff] %vm1681_vm2, %v2512_v7  ;;  %2641 = vst.msk [vmem:[%s5806_s25 + $0x180] sm:$0xff] %vm1681_vm2, %v2513_v56  ;;  %v2529_v55 = vmul.f32 %v5801_v47, %v5283_v21  ;;  %v2530_v31 = vmul.f32 %v5801_v47, %v5291_v14  ;;  %v2531_v34 = vmul.f32 %v5801_v47, %v5299_v15  ;;  %v7095_v56 = vld [vmem:[#allocation79_spill] sm:$0xff] }
 0x3df   : > { %2642 = vst.msk [vmem:[%s5806_s25 + $0x188] sm:$0xff] %vm1681_vm2, %v2514_v12  ;;  %2643 = vst.msk [vmem:[%s5806_s25 + $0x190] sm:$0xff] %vm1681_vm2, %v2515_v23  ;;  %v2532_v11 = vmul.f32 %v5801_v47, %v5307_v1  ;;  %v2533_v21 = vmul.f32 %v5801_v47, %v5315_v63  ;;  %v2534_v14 = vmul.f32 %v5801_v47, %v5323_v19  ;;  %v7091_v19 = vld [vmem:[#allocation74_spill] sm:$0xff]  ;;  %v7096_v23 = vld [vmem:[#allocation80_spill] sm:$0xff] }
 0x3e0   : > { %2644 = vst.msk [vmem:[%s5806_s25 + $0x198] sm:$0xff] %vm1681_vm2, %v2516_v59  ;;  %2645 = vst.msk [vmem:[%s5806_s25 + $0x1a0] sm:$0xff] %vm1681_vm2, %v2517_v6  ;;  %v2535_v15 = vmul.f32 %v5801_v47, %v5331_v61  ;;  %v2536_v1 = vmul.f32 %v5801_v47, %v5339_v53  ;;  %v2537_v63 = vmul.f32 %v5801_v47, %v5347_v26  ;;  %v7094_v26 = vld [vmem:[#allocation77_spill] sm:$0xff]  ;;  %v7098_v6 = vld [vmem:[#allocation82_spill] sm:$0xff] }
 0x3e1   : > { %2646 = vst.msk [vmem:[%s5806_s25 + $0x1a8] sm:$0xff] %vm1681_vm2, %v2518_v48  ;;  %2647 = vst.msk [vmem:[%s5806_s25 + $0x1b0] sm:$0xff] %vm1681_vm2, %v2519_v5  ;;  %v2538_v61 = vmul.f32 %v5801_v47, %v7091_v19  ;;  %v2539_v53 = vmul.f32 %v5801_v47, %v7092_v29  ;;  %v2540_v39 = vmul.f32 %v5801_v47, %v7093_v45  ;;  %v7097_v59 = vld [vmem:[#allocation81_spill] sm:$0xff] }
 0x3e2   : > { %2648 = vst.msk [vmem:[%s5806_s25 + $0x1b8] sm:$0xff] %vm1681_vm2, %v2520_v17  ;;  %2649 = vst.msk [vmem:[%s5806_s25 + $0x1c0] sm:$0xff] %vm1681_vm2, %v2521_v36  ;;  %v2541_v7 = vmul.f32 %v5801_v47, %v7094_v26  ;;  %v2542_v12 = vmul.f32 %v5801_v47, %v7095_v56  ;;  %v2543_v2 = vmul.f32 %v5801_v47, %v7096_v23  ;;  %v7101_v36 = vld [vmem:[#allocation3_spill] sm:$0xff] }
 0x3e3   : > { %2650 = vst.msk [vmem:[%s5806_s25 + $0x1c8] sm:$0xff] %vm1681_vm2, %v2522_v37  ;;  %2651 = vst.msk [vmem:[%s5806_s25 + $0x1d0] sm:$0xff] %vm1681_vm2, %v2523_v27  ;;  %v2544_v43 = vmul.f32 %v5801_v47, %v7097_v59  ;;  %v2545_v48 = vmul.f32 %v5801_v47, %v7098_v6  ;;  %v2546_v5 = vmul.f32 %v5801_v47, %v7099_v8  ;;  %v7102_v27 = vld [vmem:[#allocation4_spill] sm:$0xff] }
 0x3e4   : > { %2652 = vst.msk [vmem:[%s5806_s25 + $0x1d8] sm:$0xff] %vm1681_vm2, %v2524_v54  ;;  %2653 = vst.msk [vmem:[%s5806_s25 + $0x1e0] sm:$0xff] %vm1681_vm2, %v2525_v51  ;;  %v2547_v17 = vmul.f32 %v5801_v47, %v7100_v40  ;;  %v2548_v37 = vmul.f32 %v5801_v47, %v7101_v36  ;;  %v2549_v54 = vmul.f32 %v5801_v47, %v7102_v27  ;;  %v7103_v51 = vld [vmem:[#allocation5_spill] sm:$0xff] }
 0x3e5   : > { %2654 = vst.msk [vmem:[%s5806_s25 + $0x1e8] sm:$0xff] %vm1681_vm2, %v2526_v52  ;;  %2655 = vst.msk [vmem:[%s5806_s25 + $0x1f0] sm:$0xff] %vm1681_vm2, %v2527_v32  ;;  %v2550_v52 = vmul.f32 %v5801_v47, %v7103_v51  ;;  %v7104_v32 = vld [vmem:[#allocation6_spill] sm:$0xff] }
 0x3e6   : > { %2656 = vst.msk [vmem:[%s5806_s25 + $0x1f8] sm:$0xff] %vm1681_vm2, %v2528_v42  ;;  %2657 = vst.msk [vmem:[%s5806_s25 + $0x200] sm:$0xff] %vm1681_vm2, %v2529_v55  ;;  %v2551_v42 = vmul.f32 %v5801_v47, %v7104_v32  ;;  %v2552_v55 = vmul.f32 %v5801_v47, %v5467_v57  ;;  %v2555_v57 = vmul.f32 %v5801_v47, %v5491_v41 }
 0x3e7   : > { %2658 = vst.msk [vmem:[%s5806_s25 + $0x208] sm:$0xff] %vm1681_vm2, %v2530_v31  ;;  %2659 = vst.msk [vmem:[%s5806_s25 + $0x210] sm:$0xff] %vm1681_vm2, %v2531_v34  ;;  %v7105_v31 = vld [vmem:[#allocation7_spill] sm:$0xff]  ;;  %v2558_v41 = vmul.f32 %v5801_v47, %v5515_v62  ;;  %v2561_v62 = vmul.f32 %v5801_v47, %v5539_v44  ;;  %v2565_v44 = vmul.f32 %v5801_v47, %v5571_v9 }
 0x3e8   : > { %2660 = vst.msk [vmem:[%s5806_s25 + $0x218] sm:$0xff] %vm1681_vm2, %v2532_v11  ;;  %2661 = vst.msk [vmem:[%s5806_s25 + $0x220] sm:$0xff] %vm1681_vm2, %v2533_v21  ;;  %v2553_v34 = vmul.f32 %v5801_v47, %v7105_v31  ;;  %v2554_v11 = vmul.f32 %v5801_v47, %v5483_v33  ;;  %v2556_v21 = vmul.f32 %v5801_v47, %v5499_v49 }
 0x3e9   : > { %2662 = vst.msk [vmem:[%s5806_s25 + $0x228] sm:$0xff] %vm1681_vm2, %v2534_v14  ;;  %2663 = vst.msk [vmem:[%s5806_s25 + $0x230] sm:$0xff] %vm1681_vm2, %v2535_v15  ;;  %v2557_v33 = vmul.f32 %v5801_v47, %v5507_v3  ;;  %v2559_v49 = vmul.f32 %v5801_v47, %v5523_v22  ;;  %v2560_v14 = vmul.f32 %v5801_v47, %v5531_v13  ;;  %v7107_v15 = vld [vmem:[#allocation9_spill] sm:$0xff] }
 0x3ea   : > { %2664 = vst.msk [vmem:[%s5806_s25 + $0x238] sm:$0xff] %vm1681_vm2, %v2536_v1  ;;  %2665 = vst.msk [vmem:[%s5806_s25 + $0x240] sm:$0xff] %vm1681_vm2, %v2537_v63  ;;  %v2562_v3 = vmul.f32 %v5801_v47, %v5547_v28  ;;  %v2563_v22 = vmul.f32 %v5801_v47, %v5555_v35  ;;  %v2564_v13 = vmul.f32 %v5801_v47, %v5563_v16  ;;  %v7109_v63 = vld [vmem:[#allocation11_spill] sm:$0xff] }
 0x3eb   : > { %2666 = vst.msk [vmem:[%s5806_s25 + $0x248] sm:$0xff] %vm1681_vm2, %v2538_v61  ;;  %2667 = vst.msk [vmem:[%s5806_s25 + $0x250] sm:$0xff] %vm1681_vm2, %v2539_v53  ;;  %v2566_v28 = vmul.f32 %v5801_v47, %v5579_v60  ;;  %v2567_v35 = vmul.f32 %v5801_v47, %v5587_v25  ;;  %v2568_v16 = vmul.f32 %v5801_v47, %v5595_v4  ;;  %v7110_v61 = vld [vmem:[#allocation12_spill] sm:$0xff]  ;;  %v7111_v53 = vld [vmem:[#allocation85_spill] sm:$0xff] }
 0x3ec   : > { %2668 = vst.msk [vmem:[%s5806_s25 + $0x258] sm:$0xff] %vm1681_vm2, %v2540_v39  ;;  %2669 = vst.msk [vmem:[%s5806_s25 + $0x260] sm:$0xff] %vm1681_vm2, %v2541_v7  ;;  %v2569_v9 = vmul.f32 %v5801_v47, %v5603_v30  ;;  %v2570_v60 = vmul.f32 %v5801_v47, %v5611_v24  ;;  %v2571_v25 = vmul.f32 %v5801_v47, %v5619_v0  ;;  %v7112_v39 = vld [vmem:[#allocation13_spill] sm:$0xff]  ;;  %v7113_v7 = vld [vmem:[#allocation14_spill] sm:$0xff] }
 0x3ed   : > { %2670 = vst.msk [vmem:[%s5806_s25 + $0x268] sm:$0xff] %vm1681_vm2, %v2542_v12  ;;  %2671 = vst.msk [vmem:[%s5806_s25 + $0x270] sm:$0xff] %vm1681_vm2, %v2543_v2  ;;  %v2572_v4 = vmul.f32 %v5801_v47, %v5627_v10  ;;  %v2573_v30 = vmul.f32 %v5801_v47, %v5635_v46  ;;  %v2574_v24 = vmul.f32 %v5801_v47, %v5643_v58  ;;  %v7114_v12 = vld [vmem:[#allocation16_spill] sm:$0xff] }
 0x3ee   : > { %2672 = vst.msk [vmem:[%s5806_s25 + $0x278] sm:$0xff] %vm1681_vm2, %v2544_v43  ;;  %2673 = vst.msk [vmem:[%s5806_s25 + $0x280] sm:$0xff] %vm1681_vm2, %v2545_v48  ;;  %v2575_v0 = vmul.f32 %v5801_v47, %v5651_v18  ;;  %v2576_v10 = vmul.f32 %v5801_v47, %v5659_v20  ;;  %v2577_v46 = vmul.f32 %v5801_v47, %v5667_v38  ;;  %v7106_v18 = vld [vmem:[#allocation8_spill] sm:$0xff]  ;;  %v7108_v38 = vld [vmem:[#allocation10_spill] sm:$0xff] }
 0x3ef   : > { %2674 = vst.msk [vmem:[%s5806_s25 + $0x288] sm:$0xff] %vm1681_vm2, %v2546_v5  ;;  %2675 = vst.msk [vmem:[%s5806_s25 + $0x290] sm:$0xff] %vm1681_vm2, %v2547_v17  ;;  %v2578_v58 = vmul.f32 %v5801_v47, %v5675_v50  ;;  %v2579_v20 = vmul.f32 %v5801_v47, %v7106_v18  ;;  %v2580_v1 = vmul.f32 %v5801_v47, %v7107_v15  ;;  %v7115_v2 = vld [vmem:[#allocation20_spill] sm:$0xff]  ;;  %v7116_v43 = vld [vmem:[#allocation23_spill] sm:$0xff] }
 0x3f0   : > { %2676 = vst.msk [vmem:[%s5806_s25 + $0x298] sm:$0xff] %vm1681_vm2, %v2548_v37  ;;  %2677 = vst.msk [vmem:[%s5806_s25 + $0x2a0] sm:$0xff] %vm1681_vm2, %v2549_v54  ;;  %v2581_v50 = vmul.f32 %v5801_v47, %v7108_v38  ;;  %v2582_v19 = vmul.f32 %v5801_v47, %v7109_v63  ;;  %v2583_v29 = vmul.f32 %v5801_v47, %v7110_v61  ;;  %v7117_v48 = vld [vmem:[#allocation68_spill] sm:$0xff]  ;;  %v7118_v5 = vld [vmem:[#allocation78_spill] sm:$0xff] }
 0x3f1   : > { %2678 = vst.msk [vmem:[%s5806_s25 + $0x2a8] sm:$0xff] %vm1681_vm2, %v2550_v52  ;;  %2679 = vst.msk [vmem:[%s5806_s25 + $0x2b0] sm:$0xff] %vm1681_vm2, %v2551_v42  ;;  %v2584_v45 = vmul.f32 %v5801_v47, %v7111_v53  ;;  %v2585_v26 = vmul.f32 %v5801_v47, %v7112_v39  ;;  %v2586_v56 = vmul.f32 %v5801_v47, %v7113_v7  ;;  %v7119_v17 = vld [vmem:[#allocation84_spill] sm:$0xff] }
 0x3f2   : > { %2680 = vst.msk [vmem:[%s5806_s25 + $0x2b8] sm:$0xff] %vm1681_vm2, %v2552_v55  ;;  %2681 = vst.msk [vmem:[%s5806_s25 + $0x2c0] sm:$0xff] %vm1681_vm2, %v2553_v34  ;;  %v2587_v23 = vmul.f32 %v5801_v47, %v7114_v12  ;;  %v2588_v59 = vmul.f32 %v5801_v47, %v7115_v2  ;;  %v2589_v6 = vmul.f32 %v5801_v47, %v7116_v43 }
 0x3f3   : > { %2682 = vst.msk [vmem:[%s5806_s25 + $0x2c8] sm:$0xff] %vm1681_vm2, %v2554_v11  ;;  %2683 = vst.msk [vmem:[%s5806_s25 + $0x2d0] sm:$0xff] %vm1681_vm2, %v2555_v57  ;;  %v2590_v8 = vmul.f32 %v5801_v47, %v7117_v48  ;;  %v2591_v40 = vmul.f32 %v5801_v47, %v7118_v5  ;;  %v2592_v36 = vmul.f32 %v5801_v47, %v7119_v17 }
 0x3f4   : > { %2684 = vst.msk [vmem:[%s5806_s25 + $0x2d8] sm:$0xff] %vm1681_vm2, %v2556_v21  ;;  %2685 = vst.msk [vmem:[%s5806_s25 + $0x2e0] sm:$0xff] %vm1681_vm2, %v2557_v33 }
 0x3f5   : > { %2686 = vst.msk [vmem:[%s5806_s25 + $0x2e8] sm:$0xff] %vm1681_vm2, %v2558_v41  ;;  %2687 = vst.msk [vmem:[%s5806_s25 + $0x2f0] sm:$0xff] %vm1681_vm2, %v2559_v49 }
 0x3f6   : > { %2688 = vst.msk [vmem:[%s5806_s25 + $0x2f8] sm:$0xff] %vm1681_vm2, %v2560_v14  ;;  %2689 = vst.msk [vmem:[%s5806_s25 + $0x300] sm:$0xff] %vm1681_vm2, %v2561_v62 }
 0x3f7   : > { %2690 = vst.msk [vmem:[%s5806_s25 + $0x308] sm:$0xff] %vm1681_vm2, %v2562_v3  ;;  %2691 = vst.msk [vmem:[%s5806_s25 + $0x310] sm:$0xff] %vm1681_vm2, %v2563_v22 }
 0x3f8   : > { %2692 = vst.msk [vmem:[%s5806_s25 + $0x318] sm:$0xff] %vm1681_vm2, %v2564_v13  ;;  %2693 = vst.msk [vmem:[%s5806_s25 + $0x320] sm:$0xff] %vm1681_vm2, %v2565_v44 }
 0x3f9   : > { %2694 = vst.msk [vmem:[%s5806_s25 + $0x328] sm:$0xff] %vm1681_vm2, %v2566_v28  ;;  %2695 = vst.msk [vmem:[%s5806_s25 + $0x330] sm:$0xff] %vm1681_vm2, %v2567_v35 }
 0x3fa   : > { %2696 = vst.msk [vmem:[%s5806_s25 + $0x338] sm:$0xff] %vm1681_vm2, %v2568_v16  ;;  %2697 = vst.msk [vmem:[%s5806_s25 + $0x340] sm:$0xff] %vm1681_vm2, %v2569_v9 }
 0x3fb   : > { %2698 = vst.msk [vmem:[%s5806_s25 + $0x348] sm:$0xff] %vm1681_vm2, %v2570_v60  ;;  %2699 = vst.msk [vmem:[%s5806_s25 + $0x350] sm:$0xff] %vm1681_vm2, %v2571_v25 }
 0x3fc   : > { %2700 = vst.msk [vmem:[%s5806_s25 + $0x358] sm:$0xff] %vm1681_vm2, %v2572_v4  ;;  %2701 = vst.msk [vmem:[%s5806_s25 + $0x360] sm:$0xff] %vm1681_vm2, %v2573_v30 }
 0x3fd   : > { %2702 = vst.msk [vmem:[%s5806_s25 + $0x368] sm:$0xff] %vm1681_vm2, %v2574_v24  ;;  %2703 = vst.msk [vmem:[%s5806_s25 + $0x370] sm:$0xff] %vm1681_vm2, %v2575_v0 }
 0x3fe   : > { %2704 = vst.msk [vmem:[%s5806_s25 + $0x378] sm:$0xff] %vm1681_vm2, %v2576_v10  ;;  %2705 = vst.msk [vmem:[%s5806_s25 + $0x380] sm:$0xff] %vm1681_vm2, %v2577_v46 }
 0x3ff   : > { %2706 = vst.msk [vmem:[%s5806_s25 + $0x388] sm:$0xff] %vm1681_vm2, %v2578_v58  ;;  %2707 = vst.msk [vmem:[%s5806_s25 + $0x390] sm:$0xff] %vm1681_vm2, %v2579_v20 }
 0x400   : > { %2708 = vst.msk [vmem:[%s5806_s25 + $0x398] sm:$0xff] %vm1681_vm2, %v2580_v1  ;;  %2709 = vst.msk [vmem:[%s5806_s25 + $0x3a0] sm:$0xff] %vm1681_vm2, %v2581_v50 }
 0x401   : > { %2710 = vst.msk [vmem:[%s5806_s25 + $0x3a8] sm:$0xff] %vm1681_vm2, %v2582_v19  ;;  %2711 = vst.msk [vmem:[%s5806_s25 + $0x3b0] sm:$0xff] %vm1681_vm2, %v2583_v29 }
 0x402   : > { %2712 = vst.msk [vmem:[%s5806_s25 + $0x3b8] sm:$0xff] %vm1681_vm2, %v2584_v45  ;;  %2713 = vst.msk [vmem:[%s5806_s25 + $0x3c0] sm:$0xff] %vm1681_vm2, %v2585_v26 }
 0x403   : > { %2714 = vst.msk [vmem:[%s5806_s25 + $0x3c8] sm:$0xff] %vm1681_vm2, %v2586_v56  ;;  %2715 = vst.msk [vmem:[%s5806_s25 + $0x3d0] sm:$0xff] %vm1681_vm2, %v2587_v23 }
 0x404   : > { %2716 = vst.msk [vmem:[%s5806_s25 + $0x3d8] sm:$0xff] %vm1681_vm2, %v2588_v59  ;;  %2717 = vst.msk [vmem:[%s5806_s25 + $0x3e0] sm:$0xff] %vm1681_vm2, %v2589_v6 }
 0x405   : > { %2718 = vst.msk [vmem:[%s5806_s25 + $0x3e8] sm:$0xff] %vm1681_vm2, %v2590_v8  ;;  %2719 = vst.msk [vmem:[%s5806_s25 + $0x3f0] sm:$0xff] %vm1681_vm2, %v2591_v40 }
 0x406   : > { %2720 = vst.msk [vmem:[%s5806_s25 + $0x3f8] sm:$0xff] %vm1681_vm2, %v2592_v36 }
 0x407 PF: > { %s13_s12 = sadd.s32 1, %s3000_s12  }
 0x408   : > { %p10_p4 = scmp.ge.s32.totalorder %s13_s12, 4  }
 0x40a   :  { %12 = sbr.rel (!%p10_p4) target bundleno = 1 (0x1), region = 62 }

// kernel: encoder_forward.12
= control target key start
LH: loop header
LB: loop body
LE: loop exit
PB: predicated region body
PF: predicated region fallthrough
CT: control target
= control target key end

     0   :  { %s1072_s12 = smov 0   ;;  %s1869_s0 = inlined_call_operand.vmem [shape: f32[2,256,144], index: 0, kind: input, shape index: {}]   ;;  %s1870_s1 = inlined_call_operand.vmem [shape: f32[144,32], index: 1, kind: input, shape index: {}]   ;;  %s1871_s2 = inlined_call_operand.vmem [shape: f32[1,32], index: 2, kind: input, shape index: {}]   ;;  %s1872_s3 = inlined_call_operand.vmem [shape: f32[2,256,32], index: 3, kind: output, shape index: {}]  }
   0x1 LB: > { %s941_s13 = sadd.s32 4294967295, %s1049_s12   ;;  %p945_p0 = scmp.ge.s32.totalorder %s1049_s12, 1  ;;  %s1049_s12 = sphi %s1072_s12, %s13_s12  }
   0x2   : > { %p137_p1 = scmp.lt.s32.totalorder %s1049_s12, 3 }
   0x4   : > { %p138_p2 = pnand %p945_p0, %p137_p1 }
   0x5   : > { %v235_v0 = vld [vmem:[%s1870_s1] sm:$0xff] (!%p138_p2)  ;;  %v236_v1 = vld [vmem:[%s1870_s1 + $0x8] sm:$0xff] (!%p138_p2)  ;;  %v237_v2 = vld [vmem:[%s1870_s1 + $0x10] sm:$0xff] (!%p138_p2)  ;;  %p161_p3 = scmp.lt.s32.totalorder (!%p138_p2), %s941_s13, 1  ;;  %v1051_v3 = vmov (!%p138_p2), 0.0|0.0   ;;  %vm260_vm0 = vcmask (!%p138_p2), 130048  }
   0x6   : > { %141 = sbr.rel (%p138_p2) target bundleno = 483 (0x1e3), region = 32  ;;  %987 = vmatprep.subr.bf16.mxu0 (!%p138_p2), %v1051_v3  ;;  %v988_v4 = vpack.c.bf16 (!%p138_p2), %v236_v1, %v235_v0  ;;  %v238_v5 = vld [vmem:[%s1870_s1 + $0x18] sm:$0xff] (!%p138_p2)  ;;  %1014 = vmatprep.subr.bf16.mxu1 (!%p138_p2), %v1051_v3  ;;  %v239_v7 = vld [vmem:[%s1870_s1 + $0x20] sm:$0xff] (!%p138_p2)  ;;  %v240_v8 = vld [vmem:[%s1870_s1 + $0x28] sm:$0xff] (!%p138_p2)  ;;  %vm614_vm1 = vcmask (!%p138_p2), 261120  }
   0x7   : > { %v991_v6 = vpack.c.bf16 (!%p138_p2), %v238_v5, %v237_v2  ;;  %v994_v10 = vpack.c.bf16 (!%p138_p2), %v240_v8, %v239_v7  ;;  %v241_v11 = vld [vmem:[%s1870_s1 + $0x30] sm:$0xff] (!%p138_p2)  ;;  %v242_v12 = vld [vmem:[%s1870_s1 + $0x38] sm:$0xff] (!%p138_p2)  ;;  %v243_v15 = vld [vmem:[%s1870_s1 + $0x40] sm:$0xff] (!%p138_p2) }
   0x8   : > { %989 = vmatpush1.bf16.msra.mxu0 (!%p138_p2), %v988_v4  ;;  %1023 = vmatpush1.bf16.msra.mxu1 (!%p138_p2), %v988_v4  ;;  %v997_v13 = vpack.c.bf16 (!%p138_p2), %v242_v12, %v241_v11  ;;  %v244_v16 = vld [vmem:[%s1870_s1 + $0x48] sm:$0xff] (!%p138_p2)  ;;  %v245_v18 = vld [vmem:[%s1870_s1 + $0x50] sm:$0xff] (!%p138_p2)  ;;  %v246_v19 = vld [vmem:[%s1870_s1 + $0x58] sm:$0xff] (!%p138_p2) }
   0x9   : > { %990 = vmatprep.subr.bf16.mxu0 (!%p138_p2), %v1051_v3  ;;  %1015 = vmatprep.subr.bf16.mxu1 (!%p138_p2), %v1051_v3  ;;  %v1000_v17 = vpack.c.bf16 (!%p138_p2), %v244_v16, %v243_v15  ;;  %v1003_v20 = vpack.c.bf16 (!%p138_p2), %v246_v19, %v245_v18  ;;  %v247_v21 = vld [vmem:[%s1870_s1 + $0x60] sm:$0xff] (!%p138_p2)  ;;  %v248_v22 = vld [vmem:[%s1870_s1 + $0x68] sm:$0xff] (!%p138_p2)  ;;  %v249_v24 = vld [vmem:[%s1870_s1 + $0x70] sm:$0xff] (!%p138_p2) }
   0xa   : > { %v1006_v23 = vpack.c.bf16 (!%p138_p2), %v248_v22, %v247_v21  ;;  %v250_v25 = vld [vmem:[%s1870_s1 + $0x78] sm:$0xff] (!%p138_p2)  ;;  %v251_v27 = vld [vmem:[%s1870_s1 + $0x80] sm:$0xff] (!%p138_p2)  ;;  %v252_v28 = vld [vmem:[%s1870_s1 + $0x88] sm:$0xff] (!%p138_p2) }
   0xb   : > { %v1009_v26 = vpack.c.bf16 (!%p138_p2), %v250_v25, %v249_v24  ;;  %v1012_v29 = vpack.c.bf16 (!%p138_p2), %v252_v28, %v251_v27 }
   0xc   : > { %992 = vmatpush1.bf16.msra.mxu0 (!%p138_p2), %v991_v6  ;;  %1024 = vmatpush1.bf16.msra.mxu1 (!%p138_p2), %v991_v6 }
   0xd   : > { %s1904_s13 = smov (!%p161_p3, %s941_s13), 1  ;;  %993 = vmatprep.subr.bf16.mxu0 %v1051_v3  ;;  %1016 = vmatprep.subr.bf16.mxu1 %v1051_v3 }
   0xe   : > { %s985_s26 = sshll.u32 %s1904_s13, 9  ;;  %s986_s4 = sshll.u32 %s1904_s13, 8 }
   0xf   : > { %s1108_s29 = scalar_lea.vmem %s1869_s0, %s985_s26  ;;  %s1768_s7 = scalar_lea.vmem %s1872_s3, %s986_s4 }
  0x10   : > { %v172_v9 = vld [vmem:[%s1108_s29 + $0x8] sm:$0xff]  ;;  %995 = vmatpush1.bf16.msra.mxu0 %v994_v10  ;;  %1025 = vmatpush1.bf16.msra.mxu1 %v994_v10  ;;  %v171_v30 = vld [vmem:[%s1108_s29] sm:$0xff]  ;;  %v174_v31 = vld [vmem:[%s1108_s29 + $0x18] sm:$0xff] }
  0x11   : > { %951 = vmatprep.mubr.msk.f32.mxu0 %vm260_vm0, %v172_v9  ;;  %v204_v14 = vld [vmem:[%s1108_s29 + $0x108] sm:$0xff]  ;;  %996 = vmatprep.subr.bf16.mxu0 %v1051_v3  ;;  %v203_v32 = vld [vmem:[%s1108_s29 + $0x100] sm:$0xff]  ;;  %v206_v33 = vld [vmem:[%s1108_s29 + $0x118] sm:$0xff] }
  0x12   : > { %1017 = vmatprep.subr.bf16.mxu1 %v1051_v3  ;;  %967 = vmatprep.mubr.msk.f32.mxu1 %vm260_vm0, %v204_v14  ;;  %v173_v34 = vld [vmem:[%s1108_s29 + $0x10] sm:$0xff]  ;;  %v176_v35 = vld [vmem:[%s1108_s29 + $0x28] sm:$0xff]  ;;  %v175_v38 = vld [vmem:[%s1108_s29 + $0x20] sm:$0xff] }
  0x13   : > { %v205_v36 = vld [vmem:[%s1108_s29 + $0x110] sm:$0xff]  ;;  %v208_v37 = vld [vmem:[%s1108_s29 + $0x128] sm:$0xff]  ;;  %v178_v39 = vld [vmem:[%s1108_s29 + $0x38] sm:$0xff] }
  0x14   : > { %998 = vmatpush1.bf16.msra.mxu0 %v997_v13  ;;  %1026 = vmatpush1.bf16.msra.mxu1 %v997_v13  ;;  %v207_v40 = vld [vmem:[%s1108_s29 + $0x120] sm:$0xff]  ;;  %v210_v41 = vld [vmem:[%s1108_s29 + $0x138] sm:$0xff]  ;;  %v177_v42 = vld [vmem:[%s1108_s29 + $0x30] sm:$0xff] }
  0x15   : > { %999 = vmatprep.subr.bf16.mxu0 %v1051_v3  ;;  %1018 = vmatprep.subr.bf16.mxu1 %v1051_v3  ;;  %v180_v43 = vld [vmem:[%s1108_s29 + $0x48] sm:$0xff]  ;;  %v209_v44 = vld [vmem:[%s1108_s29 + $0x130] sm:$0xff]  ;;  %v179_v46 = vld [vmem:[%s1108_s29 + $0x40] sm:$0xff] }
  0x16   : > { %v212_v45 = vld [vmem:[%s1108_s29 + $0x148] sm:$0xff]  ;;  %v182_v47 = vld [vmem:[%s1108_s29 + $0x58] sm:$0xff]  ;;  %v211_v48 = vld [vmem:[%s1108_s29 + $0x140] sm:$0xff] }
  0x17   : > { %v214_v49 = vld [vmem:[%s1108_s29 + $0x158] sm:$0xff]  ;;  %v181_v50 = vld [vmem:[%s1108_s29 + $0x50] sm:$0xff]  ;;  %v184_v51 = vld [vmem:[%s1108_s29 + $0x68] sm:$0xff] }
  0x18   : > { %1001 = vmatpush1.bf16.msra.mxu0 %v1000_v17  ;;  %1027 = vmatpush1.bf16.msra.mxu1 %v1000_v17  ;;  %v213_v52 = vld [vmem:[%s1108_s29 + $0x150] sm:$0xff]  ;;  %v216_v53 = vld [vmem:[%s1108_s29 + $0x168] sm:$0xff]  ;;  %v183_v54 = vld [vmem:[%s1108_s29 + $0x60] sm:$0xff] }
  0x19   : > { %1002 = vmatprep.subr.bf16.mxu0 %v1051_v3  ;;  %1019 = vmatprep.subr.bf16.mxu1 %v1051_v3  ;;  %v186_v55 = vld [vmem:[%s1108_s29 + $0x78] sm:$0xff]  ;;  %v215_v56 = vld [vmem:[%s1108_s29 + $0x160] sm:$0xff]  ;;  %v185_v58 = vld [vmem:[%s1108_s29 + $0x70] sm:$0xff] }
  0x1a   : > { %v218_v57 = vld [vmem:[%s1108_s29 + $0x178] sm:$0xff]  ;;  %v188_v59 = vld [vmem:[%s1108_s29 + $0x88] sm:$0xff]  ;;  %v217_v60 = vld [vmem:[%s1108_s29 + $0x170] sm:$0xff] }
  0x1b   : > { %v220_v61 = vld [vmem:[%s1108_s29 + $0x188] sm:$0xff]  ;;  %v187_v62 = vld [vmem:[%s1108_s29 + $0x80] sm:$0xff]  ;;  %v190_v63 = vld [vmem:[%s1108_s29 + $0x98] sm:$0xff] }
  0x1c   : > { %1004 = vmatpush1.bf16.msra.mxu0 %v1003_v20  ;;  %1028 = vmatpush1.bf16.msra.mxu1 %v1003_v20  ;;  %v219_v0 = vld [vmem:[%s1108_s29 + $0x180] sm:$0xff]  ;;  %v222_v1 = vld [vmem:[%s1108_s29 + $0x198] sm:$0xff]  ;;  %v189_v2 = vld [vmem:[%s1108_s29 + $0x90] sm:$0xff] }
  0x1d   : > { %1005 = vmatprep.subr.bf16.mxu0 %v1051_v3  ;;  %1020 = vmatprep.subr.bf16.mxu1 %v1051_v3  ;;  %v221_v4 = vld [vmem:[%s1108_s29 + $0x190] sm:$0xff]  ;;  %v224_v5 = vld [vmem:[%s1108_s29 + $0x1a8] sm:$0xff]  ;;  %v191_v6 = vld [vmem:[%s1108_s29 + $0xa0] sm:$0xff] }
  0x1e   : > { %v194_v7 = vld [vmem:[%s1108_s29 + $0xb8] sm:$0xff]  ;;  %v223_v8 = vld [vmem:[%s1108_s29 + $0x1a0] sm:$0xff]  ;;  %v193_v10 = vld [vmem:[%s1108_s29 + $0xb0] sm:$0xff] }
  0x1f   : > { %v226_v9 = vld [vmem:[%s1108_s29 + $0x1b8] sm:$0xff]  ;;  %v196_v11 = vld [vmem:[%s1108_s29 + $0xc8] sm:$0xff]  ;;  %v225_v12 = vld [vmem:[%s1108_s29 + $0x1b0] sm:$0xff] }
  0x20   : > { %1007 = vmatpush1.bf16.msra.mxu0 %v1006_v23  ;;  %1029 = vmatpush1.bf16.msra.mxu1 %v1006_v23  ;;  %v228_v13 = vld [vmem:[%s1108_s29 + $0x1c8] sm:$0xff]  ;;  %v195_v14 = vld [vmem:[%s1108_s29 + $0xc0] sm:$0xff]  ;;  %v198_v15 = vld [vmem:[%s1108_s29 + $0xd8] sm:$0xff] }
  0x21   : > { %1008 = vmatprep.subr.bf16.mxu0 %v1051_v3  ;;  %1021 = vmatprep.subr.bf16.mxu1 %v1051_v3  ;;  %v227_v16 = vld [vmem:[%s1108_s29 + $0x1c0] sm:$0xff]  ;;  %v230_v17 = vld [vmem:[%s1108_s29 + $0x1d8] sm:$0xff]  ;;  %v197_v18 = vld [vmem:[%s1108_s29 + $0xd0] sm:$0xff] }
  0x22   : > { %v200_v19 = vld [vmem:[%s1108_s29 + $0xe8] sm:$0xff]  ;;  %v229_v20 = vld [vmem:[%s1108_s29 + $0x1d0] sm:$0xff]  ;;  %v199_v22 = vld [vmem:[%s1108_s29 + $0xe0] sm:$0xff] }
  0x23   : > { %v232_v21 = vld [vmem:[%s1108_s29 + $0x1e8] sm:$0xff]  ;;  %v202_v23 = vld [vmem:[%s1108_s29 + $0xf8] sm:$0xff]  ;;  %v231_v24 = vld [vmem:[%s1108_s29 + $0x1e0] sm:$0xff] }
  0x24   : > { %1010 = vmatpush1.bf16.msra.mxu0 %v1009_v26  ;;  %1030 = vmatpush1.bf16.msra.mxu1 %v1009_v26  ;;  %v234_v25 = vld [vmem:[%s1108_s29 + $0x1f8] sm:$0xff]  ;;  %v201_v26 = vld [vmem:[%s1108_s29 + $0xf0] sm:$0xff] }
  0x25   : > { %1011 = vmatprep.subr.bf16.mxu0 %v1051_v3  ;;  %1022 = vmatprep.subr.bf16.mxu1 %v1051_v3  ;;  %v192_v3 = vld [vmem:[%s1108_s29 + $0xa8] sm:$0xff]  ;;  %v233_v27 = vld [vmem:[%s1108_s29 + $0x1f0] sm:$0xff] }
  0x28   : > { %1013 = vmatpush1.bf16.msra.mxu0 %v1012_v29  ;;  %1031 = vmatpush1.bf16.msra.mxu1 %v1012_v29 }
  0x2b   : > { %422 = vmatmul.mubr.f32.vlgmr.msra.gmra.mrb[0].mxu0 %v171_v30  ;;  %502 = vmatmul.mubr.f32.vlgmr.msra.gmra.mrb[0].mxu1 %v203_v32 }
  0x2c   : > { %952 = vmatprep.mubr.msk.f32.mxu0 %vm260_vm0, %v174_v31  ;;  %968 = vmatprep.mubr.msk.f32.mxu1 %vm260_vm0, %v206_v33 }
  0x2f   : > { %427 = vmatmul.mubr.f32.gmra.mrb[2].mxu0 %v173_v34  ;;  %507 = vmatmul.mubr.f32.gmra.mrb[2].mxu1 %v205_v36 }
  0x30   : > { %953 = vmatprep.mubr.msk.f32.mxu0 %vm260_vm0, %v176_v35  ;;  %969 = vmatprep.mubr.msk.f32.mxu1 %vm260_vm0, %v208_v37 }
  0x33   : > { %432 = vmatmul.mubr.f32.gmra.mrb[4].mxu0 %v175_v38  ;;  %512 = vmatmul.mubr.f32.gmra.mrb[4].mxu1 %v207_v40 }
  0x34   : > { %954 = vmatprep.mubr.msk.f32.mxu0 %vm260_vm0, %v178_v39  ;;  %970 = vmatprep.mubr.msk.f32.mxu1 %vm260_vm0, %v210_v41 }
  0x37   : > { %437 = vmatmul.mubr.f32.gmra.mrb[6].mxu0 %v177_v42  ;;  %517 = vmatmul.mubr.f32.gmra.mrb[6].mxu1 %v209_v44 }
  0x38   : > { %955 = vmatprep.mubr.msk.f32.mxu0 %vm260_vm0, %v180_v43  ;;  %971 = vmatprep.mubr.msk.f32.mxu1 %vm260_vm0, %v212_v45 }
  0x3b   : > { %442 = vmatmul.mubr.f32.gmra.mrb[8].mxu0 %v179_v46  ;;  %522 = vmatmul.mubr.f32.gmra.mrb[8].mxu1 %v211_v48 }
  0x3c   : > { %956 = vmatprep.mubr.msk.f32.mxu0 %vm260_vm0, %v182_v47  ;;  %972 = vmatprep.mubr.msk.f32.mxu1 %vm260_vm0, %v214_v49 }
  0x3f   : > { %447 = vmatmul.mubr.f32.gmra.mrb[10].mxu0 %v181_v50  ;;  %527 = vmatmul.mubr.f32.gmra.mrb[10].mxu1 %v213_v52 }
  0x40   : > { %957 = vmatprep.mubr.msk.f32.mxu0 %vm260_vm0, %v184_v51  ;;  %973 = vmatprep.mubr.msk.f32.mxu1 %vm260_vm0, %v216_v53  ;;  %v1271_v51 = vld [vmem:[%s1871_s2] ss:$0 sm:$0xff] }
  0x43   : > { %452 = vmatmul.mubr.f32.gmra.mrb[12].mxu0 %v183_v54  ;;  %532 = vmatmul.mubr.f32.gmra.mrb[12].mxu1 %v215_v56 }
  0x44   : > { %958 = vmatprep.mubr.msk.f32.mxu0 %vm260_vm0, %v186_v55  ;;  %974 = vmatprep.mubr.msk.f32.mxu1 %vm260_vm0, %v218_v57 }
  0x47   : > { %457 = vmatmul.mubr.f32.gmra.mrb[14].mxu0 %v185_v58  ;;  %537 = vmatmul.mubr.f32.gmra.mrb[14].mxu1 %v217_v60 }
  0x48   : > { %959 = vmatprep.mubr.msk.f32.mxu0 %vm260_vm0, %v188_v59  ;;  %975 = vmatprep.mubr.msk.f32.mxu1 %vm260_vm0, %v220_v61 }
  0x4b   : > { %462 = vmatmul.mubr.f32.gmra.mrb[16].mxu0 %v187_v62  ;;  %542 = vmatmul.mubr.f32.gmra.mrb[16].mxu1 %v219_v0 }
  0x4c   : > { %960 = vmatprep.mubr.msk.f32.mxu0 %vm260_vm0, %v190_v63  ;;  %976 = vmatprep.mubr.msk.f32.mxu1 %vm260_vm0, %v222_v1 }
  0x4f   : > { %467 = vmatmul.mubr.f32.gmra.mrb[18].mxu0 %v189_v2  ;;  %547 = vmatmul.mubr.f32.gmra.mrb[18].mxu1 %v221_v4 }
  0x50   : > { %961 = vmatprep.mubr.msk.f32.mxu0 %vm260_vm0, %v192_v3  ;;  %977 = vmatprep.mubr.msk.f32.mxu1 %vm260_vm0, %v224_v5 }
  0x53   : > { %472 = vmatmul.mubr.f32.gmra.mrb[20].mxu0 %v191_v6  ;;  %552 = vmatmul.mubr.f32.gmra.mrb[20].mxu1 %v223_v8 }
  0x54   : > { %962 = vmatprep.mubr.msk.f32.mxu0 %vm260_vm0, %v194_v7  ;;  %978 = vmatprep.mubr.msk.f32.mxu1 %vm260_vm0, %v226_v9 }
  0x57   : > { %477 = vmatmul.mubr.f32.gmra.mrb[22].mxu0 %v193_v10  ;;  %557 = vmatmul.mubr.f32.gmra.mrb[22].mxu1 %v225_v12 }
  0x58   : > { %963 = vmatprep.mubr.msk.f32.mxu0 %vm260_vm0, %v196_v11  ;;  %979 = vmatprep.mubr.msk.f32.mxu1 %vm260_vm0, %v228_v13 }
  0x5b   : > { %482 = vmatmul.mubr.f32.gmra.mrb[24].mxu0 %v195_v14  ;;  %562 = vmatmul.mubr.f32.gmra.mrb[24].mxu1 %v227_v16 }
  0x5c   : > { %964 = vmatprep.mubr.msk.f32.mxu0 %vm260_vm0, %v198_v15  ;;  %980 = vmatprep.mubr.msk.f32.mxu1 %vm260_vm0, %v230_v17 }
  0x5f   : > { %487 = vmatmul.mubr.f32.gmra.mrb[26].mxu0 %v197_v18  ;;  %567 = vmatmul.mubr.f32.gmra.mrb[26].mxu1 %v229_v20 }
  0x60   : > { %965 = vmatprep.mubr.msk.f32.mxu0 %vm260_vm0, %v200_v19  ;;  %981 = vmatprep.mubr.msk.f32.mxu1 %vm260_vm0, %v232_v21 }
  0x63   : > { %492 = vmatmul.mubr.f32.gmra.mrb[28].mxu0 %v199_v22  ;;  %572 = vmatmul.mubr.f32.gmra.mrb[28].mxu1 %v231_v24 }
  0x64   : > { %966 = vmatprep.mubr.msk.f32.mxu0 %vm260_vm0, %v202_v23  ;;  %982 = vmatprep.mubr.msk.f32.mxu1 %vm260_vm0, %v234_v25 }
  0x67   : > { %497 = vmatmul.mubr.f32.gmra.mrb[30].mxu0 %v201_v26  ;;  %577 = vmatmul.mubr.f32.gmra.mrb[30].mxu1 %v233_v27 }
  0xfe   : > { %v423_v28 = vpop.f32.mrb[0].mxu0  ;;  %v1256_v30 = vpop.f32.mrb[0].mxu1 }
  0xff   : > { %v425_v29 = vpop.f32.mrb[1].mxu0  ;;  %v505_v31 = vpop.f32.mrb[1].mxu1  ;;  %v1277_v55 = vadd.f32 %v1271_v51, %v423_v28 }
 0x101   : > { %v582_v63 = vmax.f32 %v1277_v55, 0.0 }
 0x102   : > { %v428_v32 = vpop.f32.mrb[2].mxu0  ;;  %v1258_v34 = vpop.f32.mrb[2].mxu1 }
 0x103   : > { %v430_v33 = vpop.f32.mrb[3].mxu0  ;;  %v510_v35 = vpop.f32.mrb[3].mxu1  ;;  %v1274_v53 = vadd.f32 %v1271_v51, %v428_v32  ;;  %v615_v9 = vsel %vm614_vm1, %v582_v63, 0.0 }
 0x105   : > { %v583_v60 = vmax.f32 %v1274_v53, 0.0 }
 0x106   : > { %v433_v36 = vpop.f32.mrb[4].mxu0  ;;  %v1260_v38 = vpop.f32.mrb[4].mxu1 }
 0x107   : > { %v435_v37 = vpop.f32.mrb[5].mxu0  ;;  %v515_v39 = vpop.f32.mrb[5].mxu1  ;;  %v1280_v56 = vadd.f32 %v1271_v51, %v433_v36  ;;  %v616_v5 = vsel %vm614_vm1, %v583_v60, 0.0 }
 0x108   : > { %v617_v15 = vadd.f32 %v616_v5, %v615_v9 }
 0x109   : > { %v584_v0 = vmax.f32 %v1280_v56, 0.0 }
 0x10a   : > { %v438_v40 = vpop.f32.mrb[6].mxu0  ;;  %v1262_v42 = vpop.f32.mrb[6].mxu1 }
 0x10b   : > { %v440_v41 = vpop.f32.mrb[7].mxu0  ;;  %v520_v43 = vpop.f32.mrb[7].mxu1  ;;  %v1286_v61 = vadd.f32 %v1271_v51, %v438_v40  ;;  %v618_v10 = vsel %vm614_vm1, %v584_v0, 0.0 }
 0x10c   : > { %v619_v20 = vadd.f32 %v618_v10, %v617_v15 }
 0x10d   : > { %v585_v6 = vmax.f32 %v1286_v61, 0.0 }
 0x10e   : > { %v443_v44 = vpop.f32.mrb[8].mxu0  ;;  %v1264_v46 = vpop.f32.mrb[8].mxu1 }
 0x10f   : > { %v445_v45 = vpop.f32.mrb[9].mxu0  ;;  %v525_v47 = vpop.f32.mrb[9].mxu1  ;;  %v1291_v1 = vadd.f32 %v1271_v51, %v443_v44  ;;  %v620_v17 = vsel %vm614_vm1, %v585_v6, 0.0 }
 0x110   : > { %v621_v27 = vadd.f32 %v620_v17, %v619_v20 }
 0x111   : > { %v586_v11 = vmax.f32 %v1291_v1, 0.0 }
 0x112   : > { %v448_v48 = vpop.f32.mrb[10].mxu0  ;;  %v1266_v50 = vpop.f32.mrb[10].mxu1 }
 0x113   : > { %v450_v49 = vpop.f32.mrb[11].mxu0  ;;  %v530_v52 = vpop.f32.mrb[11].mxu1  ;;  %v1300_v7 = vadd.f32 %v1271_v51, %v448_v48  ;;  %v622_v22 = vsel %vm614_vm1, %v586_v11, 0.0 }
 0x114   : > { %v623_v33 = vadd.f32 %v622_v22, %v621_v27 }
 0x115   : > { %v587_v18 = vmax.f32 %v1300_v7, 0.0 }
 0x116   : > { %v453_v54 = vpop.f32.mrb[12].mxu0  ;;  %v1282_v58 = vpop.f32.mrb[12].mxu1 }
 0x117   : > { %v455_v57 = vpop.f32.mrb[13].mxu0  ;;  %v535_v59 = vpop.f32.mrb[13].mxu1  ;;  %v1310_v12 = vadd.f32 %v1271_v51, %v453_v54  ;;  %v624_v29 = vsel %vm614_vm1, %v587_v18, 0.0 }
 0x118   : > { %v625_v43 = vadd.f32 %v624_v29, %v623_v33 }
 0x119   : > { %v588_v23 = vmax.f32 %v1310_v12, 0.0 }
 0x11a   : > { %v458_v62 = vpop.f32.mrb[14].mxu0  ;;  %v1293_v3 = vpop.f32.mrb[14].mxu1 }
 0x11b   : > { %v460_v2 = vpop.f32.mrb[15].mxu0  ;;  %v540_v4 = vpop.f32.mrb[15].mxu1  ;;  %v1319_v19 = vadd.f32 %v1271_v51, %v458_v62  ;;  %v626_v36 = vsel %vm614_vm1, %v588_v23, 0.0 }
 0x11c   : > { %v627_v48 = vadd.f32 %v626_v36, %v625_v43 }
 0x11d   : > { %v589_v31 = vmax.f32 %v1319_v19, 0.0 }
 0x11e   : > { %v463_v8 = vpop.f32.mrb[16].mxu0  ;;  %v1312_v14 = vpop.f32.mrb[16].mxu1 }
 0x11f   : > { %v465_v13 = vpop.f32.mrb[17].mxu0  ;;  %v545_v16 = vpop.f32.mrb[17].mxu1  ;;  %v1326_v24 = vadd.f32 %v1271_v51, %v463_v8  ;;  %v628_v45 = vsel %vm614_vm1, %v589_v31, 0.0 }
 0x120   : > { %v629_v2 = vadd.f32 %v628_v45, %v627_v48 }
 0x121   : > { %v590_v37 = vmax.f32 %v1326_v24, 0.0 }
 0x122   : > { %v468_v21 = vpop.f32.mrb[18].mxu0  ;;  %v1328_v26 = vpop.f32.mrb[18].mxu1 }
 0x123   : > { %v470_v25 = vpop.f32.mrb[19].mxu0  ;;  %v550_v28 = vpop.f32.mrb[19].mxu1  ;;  %v1335_v32 = vadd.f32 %v1271_v51, %v468_v21  ;;  %v630_v52 = vsel %vm614_vm1, %v590_v37, 0.0 }
 0x124   : > { %v631_v9 = vadd.f32 %v630_v52, %v629_v2 }
 0x125   : > { %v1887_v47 = vmax.f32 %v1335_v32, 0.0  ;;  %v1888_v19 = vmax.f32 %v1335_v32, 0.0 }
 0x126   : > { %v473_v35 = vpop.f32.mrb[20].mxu0  ;;  %v1344_v41 = vpop.f32.mrb[20].mxu1 }
 0x127   : > { %v1342_v39 = vadd.f32 %v1271_v51, %v473_v35  ;;  %v475_v40 = vpop.f32.mrb[21].mxu0  ;;  %v555_v44 = vpop.f32.mrb[21].mxu1  ;;  %v632_v5 = vsel %vm614_vm1, %v1887_v47, 0.0 }
 0x128   : > { %v633_v20 = vadd.f32 %v632_v5, %v631_v9  ;;  %v1392_v9 = vadd.f32 %v1271_v51, %v1256_v30 }
 0x129   : > { %v1886_v54 = vmax.f32 %v1342_v39, 0.0  ;;  %v1889_v24 = vmax.f32 %v1342_v39, 0.0 }
 0x12a   : > { %v478_v49 = vpop.f32.mrb[22].mxu0  ;;  %v1357_v62 = vpop.f32.mrb[22].mxu1  ;;  %v1883_v30 = vmax.f32 %v1392_v9, 0.0 }
 0x12b   : > { %v1355_v57 = vadd.f32 %v1271_v51, %v478_v49  ;;  %v480_v59 = vpop.f32.mrb[23].mxu0  ;;  %v560_v4 = vpop.f32.mrb[23].mxu1  ;;  %v634_v13 = vsel %vm614_vm1, %v1886_v54, 0.0 }
 0x12c   : > { %v635_v27 = vadd.f32 %v634_v13, %v633_v20 }
 0x12d   : > { %v1884_v8 = vmax.f32 %v1355_v57, 0.0  ;;  %v1890_v32 = vmax.f32 %v1355_v57, 0.0 }
 0x12e   : > { %v483_v10 = vpop.f32.mrb[24].mxu0  ;;  %v1369_v17 = vpop.f32.mrb[24].mxu1 }
 0x12f   : > { %v1367_v15 = vadd.f32 %v1271_v51, %v483_v10  ;;  %v485_v16 = vpop.f32.mrb[25].mxu0  ;;  %v565_v21 = vpop.f32.mrb[25].mxu1  ;;  %v636_v22 = vsel %vm614_vm1, %v1884_v8, 0.0 }
 0x130   : > { %v637_v40 = vadd.f32 %v636_v22, %v635_v27  ;;  %v1397_v16 = vadd.f32 %v1271_v51, %v1258_v34 }
 0x131   : > { %v594_v25 = vmax.f32 %v1367_v15, 0.0 }
 0x132   : > { %v488_v28 = vpop.f32.mrb[26].mxu0  ;;  %v1381_v36 = vpop.f32.mrb[26].mxu1 }
 0x133   : > { %v638_v29 = vsel %vm614_vm1, %v594_v25, 0.0  ;;  %v1379_v33 = vadd.f32 %v1271_v51, %v488_v28  ;;  %v490_v35 = vpop.f32.mrb[27].mxu0  ;;  %v570_v43 = vpop.f32.mrb[27].mxu1 }
 0x134   : > { %v639_v45 = vadd.f32 %v638_v29, %v637_v40  ;;  %v1408_v35 = vadd.f32 %v1271_v51, %v1260_v38  ;;  %v1881_v40 = vmax.f32 %v1397_v16, 0.0  ;;  %v1414_v43 = vadd.f32 %v1271_v51, %v1262_v42 }
 0x135   : > { %v595_v44 = vmax.f32 %v1379_v33, 0.0 }
 0x136   : > { %v493_v48 = vpop.f32.mrb[28].mxu0  ;;  %v573_v2 = vpop.f32.mrb[28].mxu1  ;;  %v1880_v38 = vmax.f32 %v1408_v35, 0.0  ;;  %v648_v42 = vsel %vm614_vm1, %v1881_v40, 0.0 }
 0x137   : > { %v640_v49 = vsel %vm614_vm1, %v595_v44, 0.0  ;;  %v1388_v52 = vadd.f32 %v1271_v51, %v493_v48  ;;  %v495_v59 = vpop.f32.mrb[29].mxu0  ;;  %v575_v5 = vpop.f32.mrb[29].mxu1 }
 0x138   : > { %v641_v4 = vadd.f32 %v640_v49, %v639_v45  ;;  %v646_v49 = vsel %vm614_vm1, %v1883_v30, 0.0  ;;  %v1425_v59 = vadd.f32 %v1271_v51, %v1264_v46  ;;  %v1873_v5 = vmax.f32 %v1414_v43, 0.0 }
 0x139   : > { %v596_v10 = vmax.f32 %v1388_v52, 0.0  ;;  %v1441_v46 = vadd.f32 %v1271_v51, %v1282_v58  ;;  %v1457_v58 = vadd.f32 %v1271_v51, %v1312_v14  ;;  %v1473_v14 = vadd.f32 %v1271_v51, %v1344_v41 }
 0x13a   : > { %v498_v13 = vpop.f32.mrb[30].mxu0  ;;  %v578_v27 = vpop.f32.mrb[30].mxu1  ;;  %v1489_v41 = vadd.f32 %v1271_v51, %v1369_v17  ;;  %v574_v17 = vadd.f32 %v1271_v51, %v573_v2 }
 0x13b   : > { %v642_v20 = vsel %vm614_vm1, %v596_v10, 0.0  ;;  %v1403_v21 = vadd.f32 %v1271_v51, %v498_v13  ;;  %v500_v22 = vpop.f32.mrb[31].mxu0  ;;  %v580_v29 = vpop.f32.mrb[31].mxu1  ;;  %v1433_v13 = vadd.f32 %v1271_v51, %v1266_v50  ;;  %v1449_v50 = vadd.f32 %v1271_v51, %v1293_v3 }
 0x13c   : > { %v643_v28 = vadd.f32 %v642_v20, %v641_v4  ;;  %v650_v22 = vsel %vm614_vm1, %v1880_v38, 0.0  ;;  %v1465_v3 = vadd.f32 %v1271_v51, %v1328_v26  ;;  %v1481_v26 = vadd.f32 %v1271_v51, %v1357_v62 }
 0x13d   : > { %v597_v34 = vmax.f32 %v1403_v21, 0.0  ;;  %v569_v62 = vadd.f32 %v1271_v51, %v1381_v36 }
 0x13f   : > { %v644_v45 = vsel %vm614_vm1, %v597_v34, 0.0  ;;  %v611_v38 = vmax.f32 %v569_v62, 0.0 }
 0x140   : > { %v645_v48 = vadd.f32 %v644_v45, %v643_v28  ;;  %v1874_v28 = vmax.f32 %v1425_v59, 0.0  ;;  %v652_v45 = vsel %vm614_vm1, %v1873_v5, 0.0  ;;  %v1877_v5 = vmax.f32 %v1449_v50, 0.0 }
 0x141   : > { %v672_v30 = vsel %vm614_vm1, %v611_v38, 0.0 }
 0x142   : > { %v647_v4 = vadd.f32 %v646_v49, %v645_v48  ;;  %v1875_v48 = vmax.f32 %v1433_v13, 0.0 }
 0x144   : > { %v649_v20 = vadd.f32 %v648_v42, %v647_v4  ;;  %v654_v4 = vsel %vm614_vm1, %v1874_v28, 0.0  ;;  %v1876_v42 = vmax.f32 %v1441_v46, 0.0  ;;  %v1878_v28 = vmax.f32 %v1457_v58, 0.0 }
 0x146   : > { %v651_v29 = vadd.f32 %v650_v22, %v649_v20  ;;  %v656_v22 = vsel %vm614_vm1, %v1875_v48, 0.0  ;;  %v1879_v48 = vmax.f32 %v1465_v3, 0.0 }
 0x148   : > { %v653_v49 = vadd.f32 %v652_v45, %v651_v29  ;;  %v658_v45 = vsel %vm614_vm1, %v1876_v42, 0.0  ;;  %v1882_v42 = vmax.f32 %v1473_v14, 0.0 }
 0x14a   : > { %v655_v20 = vadd.f32 %v654_v4, %v653_v49  ;;  %v660_v4 = vsel %vm614_vm1, %v1877_v5, 0.0  ;;  %v1885_v5 = vmax.f32 %v1481_v26, 0.0 }
 0x14c   : > { %v657_v29 = vadd.f32 %v656_v22, %v655_v20  ;;  %v662_v22 = vsel %vm614_vm1, %v1878_v28, 0.0  ;;  %v610_v28 = vmax.f32 %v1489_v41, 0.0 }
 0x14e   : > { %v659_v49 = vadd.f32 %v658_v45, %v657_v29  ;;  %v664_v45 = vsel %vm614_vm1, %v1879_v48, 0.0  ;;  %v668_v48 = vsel %vm614_vm1, %v1885_v5, 0.0  ;;  %v670_v36 = vsel %vm614_vm1, %v610_v28, 0.0 }
 0x150   : > { %v661_v20 = vadd.f32 %v660_v4, %v659_v49  ;;  %v666_v4 = vsel %vm614_vm1, %v1882_v42, 0.0 }
 0x152   : > { %v663_v29 = vadd.f32 %v662_v22, %v661_v20  ;;  %v579_v20 = vadd.f32 %v1271_v51, %v578_v27 }
 0x154   : > { %v665_v49 = vadd.f32 %v664_v45, %v663_v29  ;;  %v612_v29 = vmax.f32 %v574_v17, 0.0  ;;  %v613_v45 = vmax.f32 %v579_v20, 0.0 }
 0x156   : > { %v667_v22 = vadd.f32 %v666_v4, %v665_v49  ;;  %v674_v2 = vsel %vm614_vm1, %v612_v29, 0.0  ;;  %v676_v51 = vsel %vm614_vm1, %v613_v45, 0.0 }
 0x158   : > { %v669_v40 = vadd.f32 %v668_v48, %v667_v22 }
 0x15a   : > { %v671_v42 = vadd.f32 %v670_v36, %v669_v40 }
 0x15c   : > { %v673_v8 = vadd.f32 %v672_v30, %v671_v42 }
 0x15e   : > { %v675_v27 = vadd.f32 %v674_v2, %v673_v8 }
 0x160   : > { %v677_v49 = vadd.f32 %v676_v51, %v675_v27 }
 0x162   : > { %v678_v4 = vrot.slane %v677_v49, 4 }
 0x164   : > { %v679_v5 = vadd.f32 %v678_v4, %v677_v49 }
 0x166   : > { %v680_v62 = vrot.slane %v679_v5, 2 }
 0x168   : > { %v681_v48 = vadd.f32 %v680_v62, %v679_v5 }
 0x16a   : > { %v682_v22 = vrot.slane %v681_v48, 1 }
 0x16c   : > { %v683_v54 = vadd.f32 %v682_v22, %v681_v48 }
 0x16e   : > { %v1512_v47 = vmul.f32 0.00390625, %v683_v54 }
 0x170   : > { %v1517_v40 = vsub.f32 %v594_v25, %v1512_v47  ;;  %v1522_v30 = vsub.f32 %v595_v44, %v1512_v47  ;;  %v1527_v8 = vsub.f32 %v596_v10, %v1512_v47  ;;  %v1532_v54 = vsub.f32 %v597_v34, %v1512_v47 }
 0x171   : > { %v1535_v5 = vsub.f32 %v611_v38, %v1512_v47  ;;  %v1538_v15 = vsub.f32 %v612_v29, %v1512_v47  ;;  %v1541_v25 = vsub.f32 %v613_v45, %v1512_v47  ;;  %v1546_v33 = vsub.f32 %v582_v63, %v1512_v47 }
 0x172   : > { %v1551_v44 = vsub.f32 %v583_v60, %v1512_v47  ;;  %v1556_v52 = vsub.f32 %v584_v0, %v1512_v47  ;;  %v1561_v10 = vsub.f32 %v585_v6, %v1512_v47  ;;  %v1570_v53 = vsub.f32 %v586_v11, %v1512_v47 }
 0x173   : > { %v718_v55 = vmul.f32 %v1546_v33, %v1546_v33  ;;  %v1577_v60 = vsub.f32 %v587_v18, %v1512_v47  ;;  %v1586_v1 = vsub.f32 %v588_v23, %v1512_v47  ;;  %v1594_v34 = vsub.f32 %v589_v31, %v1512_v47 }
 0x174   : > { %v719_v63 = vmul.f32 %v1551_v44, %v1551_v44  ;;  %v720_v56 = vmul.f32 %v1556_v52, %v1556_v52  ;;  %v721_v61 = vmul.f32 %v1561_v10, %v1561_v10  ;;  %v722_v11 = vmul.f32 %v1570_v53, %v1570_v53 }
 0x175   : > { %v750_v0 = vsel %vm614_vm1, %v718_v55, 0.0  ;;  %v723_v38 = vmul.f32 %v1577_v60, %v1577_v60  ;;  %v1602_v12 = vsub.f32 %v590_v37, %v1512_v47  ;;  %v724_v23 = vmul.f32 %v1586_v1, %v1586_v1 }
 0x176   : > { %v751_v6 = vsel %vm614_vm1, %v719_v63, 0.0  ;;  %v753_v7 = vsel %vm614_vm1, %v720_v56, 0.0  ;;  %v755_v42 = vsel %vm614_vm1, %v721_v61, 0.0  ;;  %v757_v20 = vsel %vm614_vm1, %v722_v11, 0.0 }
 0x177   : > { %v752_v21 = vadd.f32 %v751_v6, %v750_v0  ;;  %v1610_v31 = vsub.f32 %v1888_v19, %v1512_v47  ;;  %v725_v29 = vmul.f32 %v1594_v34, %v1594_v34  ;;  %v759_v45 = vsel %vm614_vm1, %v723_v38, 0.0 }
 0x178   : > { %v1618_v37 = vsub.f32 %v1889_v24, %v1512_v47  ;;  %v726_v51 = vmul.f32 %v1602_v12, %v1602_v12  ;;  %v761_v27 = vsel %vm614_vm1, %v724_v23, 0.0  ;;  %v1626_v4 = vsub.f32 %v1890_v32, %v1512_v47 }
 0x179   : > { %v754_v18 = vadd.f32 %v753_v7, %v752_v21  ;;  %v727_v62 = vmul.f32 %v1610_v31, %v1610_v31  ;;  %v763_v48 = vsel %vm614_vm1, %v725_v29, 0.0  ;;  %v730_v0 = vmul.f32 %v1517_v40, %v1517_v40 }
 0x17a   : > { %v728_v39 = vmul.f32 %v1618_v37, %v1618_v37  ;;  %v765_v55 = vsel %vm614_vm1, %v726_v51, 0.0  ;;  %v729_v56 = vmul.f32 %v1626_v4, %v1626_v4  ;;  %v731_v11 = vmul.f32 %v1522_v30, %v1522_v30 }
 0x17b   : > { %v756_v17 = vadd.f32 %v755_v42, %v754_v18  ;;  %v767_v61 = vsel %vm614_vm1, %v727_v62, 0.0  ;;  %v1891_v38 = vmax.f32 %v1392_v9, 0.0  ;;  %v773_v23 = vsel %vm614_vm1, %v730_v0, 0.0 }
 0x17c   : > { %v769_v6 = vsel %vm614_vm1, %v728_v39, 0.0  ;;  %v771_v7 = vsel %vm614_vm1, %v729_v56, 0.0  ;;  %v733_v29 = vmul.f32 %v1532_v54, %v1532_v54  ;;  %v1893_v9 = vmax.f32 %v1408_v35, 0.0 }
 0x17d   : > { %v758_v36 = vadd.f32 %v757_v20, %v756_v17  ;;  %v1646_v42 = vsub.f32 %v1891_v38, %v1512_v47  ;;  %v732_v17 = vmul.f32 %v1527_v8, %v1527_v8  ;;  %v1895_v35 = vmax.f32 %v1425_v59, 0.0 }
 0x17e   : > { %v1662_v24 = vsub.f32 %v1893_v9, %v1512_v47  ;;  %v1897_v59 = vmax.f32 %v1441_v46, 0.0  ;;  %v1899_v46 = vmax.f32 %v1457_v58, 0.0  ;;  %v1901_v58 = vmax.f32 %v1473_v14, 0.0 }
 0x17f   : > { %v760_v2 = vadd.f32 %v759_v45, %v758_v36  ;;  %v1892_v36 = vmax.f32 %v1397_v16, 0.0  ;;  %v775_v45 = vsel %vm614_vm1, %v731_v11, 0.0  ;;  %v734_v51 = vmul.f32 %v1646_v42, %v1646_v42 }
 0x180   : > { %v1894_v16 = vmax.f32 %v1414_v43, 0.0  ;;  %v1678_v39 = vsub.f32 %v1895_v35, %v1512_v47  ;;  %v1896_v43 = vmax.f32 %v1433_v13, 0.0  ;;  %v1898_v13 = vmax.f32 %v1449_v50, 0.0 }
 0x181   : > { %v762_v49 = vadd.f32 %v761_v27, %v760_v2  ;;  %v1654_v19 = vsub.f32 %v1892_v36, %v1512_v47  ;;  %v777_v27 = vsel %vm614_vm1, %v732_v17, 0.0  ;;  %v1710_v36 = vsub.f32 %v1899_v46, %v1512_v47 }
 0x182   : > { %v1670_v32 = vsub.f32 %v1894_v16, %v1512_v47  ;;  %v738_v11 = vmul.f32 %v1678_v39, %v1678_v39  ;;  %v1702_v38 = vsub.f32 %v1898_v13, %v1512_v47  ;;  %v1900_v50 = vmax.f32 %v1465_v3, 0.0 }
 0x183   : > { %v764_v22 = vadd.f32 %v763_v48, %v762_v49  ;;  %v735_v62 = vmul.f32 %v1654_v19, %v1654_v19  ;;  %v779_v48 = vsel %vm614_vm1, %v733_v29, 0.0  ;;  %v1726_v16 = vsub.f32 %v1901_v58, %v1512_v47 }
 0x184   : > { %v1718_v9 = vsub.f32 %v1900_v50, %v1512_v47  ;;  %v1902_v3 = vmax.f32 %v1481_v26, 0.0  ;;  %v1742_v14 = vsub.f32 %v610_v28, %v1512_v47  ;;  %v748_v13 = vmul.f32 %v1538_v15, %v1538_v15 }
 0x185   : > { %v766_v63 = vadd.f32 %v765_v55, %v764_v22  ;;  %v736_v55 = vmul.f32 %v1662_v24, %v1662_v24  ;;  %v783_v0 = vsel %vm614_vm1, %v735_v62, 0.0  ;;  %v742_v62 = vmul.f32 %v1710_v36, %v1710_v36 }
 0x186   : > { %v1734_v35 = vsub.f32 %v1902_v3, %v1512_v47 }
 0x187   : > { %v768_v57 = vadd.f32 %v767_v61, %v766_v63  ;;  %v781_v63 = vsel %vm614_vm1, %v734_v51, 0.0  ;;  %v1686_v61 = vsub.f32 %v1896_v43, %v1512_v47  ;;  %v741_v51 = vmul.f32 %v1702_v38, %v1702_v38 }
 0x188   : > { %v744_v43 = vmul.f32 %v1726_v16, %v1726_v16  ;;  %v745_v26 = vmul.f32 %v1734_v35, %v1734_v35 }
 0x189   : > { %v770_v21 = vadd.f32 %v769_v6, %v768_v57  ;;  %v737_v57 = vmul.f32 %v1670_v32, %v1670_v32  ;;  %v739_v17 = vmul.f32 %v1686_v61, %v1686_v61 }
 0x18a   : > { %v803_v28 = vsel %vm614_vm1, %v745_v26, 0.0 }
 0x18b   : > { %v772_v18 = vadd.f32 %v771_v7, %v770_v21  ;;  %v1694_v21 = vsub.f32 %v1897_v59, %v1512_v47  ;;  %v785_v7 = vsel %vm614_vm1, %v736_v55, 0.0  ;;  %v743_v55 = vmul.f32 %v1718_v9, %v1718_v9 }
 0x18c   : > { %v747_v47 = vmul.f32 %v1535_v5, %v1535_v5 }
 0x18d   : > { %v774_v20 = vadd.f32 %v773_v23, %v772_v18  ;;  %v787_v23 = vsel %vm614_vm1, %v737_v57, 0.0  ;;  %v740_v29 = vmul.f32 %v1694_v21, %v1694_v21  ;;  %v797_v57 = vsel %vm614_vm1, %v742_v62, 0.0 }
 0x18e   : > { %v807_v46 = vsel %vm614_vm1, %v747_v47, 0.0 }
 0x18f   : > { %v776_v2 = vadd.f32 %v775_v45, %v774_v20  ;;  %v789_v45 = vsel %vm614_vm1, %v738_v11, 0.0  ;;  %v746_v11 = vmul.f32 %v1742_v14, %v1742_v14 }
 0x191   : > { %v778_v49 = vadd.f32 %v777_v27, %v776_v2  ;;  %v791_v27 = vsel %vm614_vm1, %v739_v17, 0.0  ;;  %v805_v17 = vsel %vm614_vm1, %v746_v11, 0.0 }
 0x193   : > { %v780_v22 = vadd.f32 %v779_v48, %v778_v49  ;;  %v793_v48 = vsel %vm614_vm1, %v740_v29, 0.0 }
 0x195   : > { %v782_v56 = vadd.f32 %v781_v63, %v780_v22  ;;  %v795_v63 = vsel %vm614_vm1, %v741_v51, 0.0 }
 0x197   : > { %v784_v6 = vadd.f32 %v783_v0, %v782_v56 }
 0x199   : > { %v786_v18 = vadd.f32 %v785_v7, %v784_v6  ;;  %v799_v6 = vsel %vm614_vm1, %v743_v55, 0.0  ;;  %v801_v7 = vsel %vm614_vm1, %v744_v43, 0.0 }
 0x19b   : > { %v788_v20 = vadd.f32 %v787_v23, %v786_v18 }
 0x19d   : > { %v790_v2 = vadd.f32 %v789_v45, %v788_v20  ;;  %v749_v20 = vmul.f32 %v1541_v25, %v1541_v25  ;;  %v809_v45 = vsel %vm614_vm1, %v748_v13, 0.0 }
 0x19f   : > { %v792_v49 = vadd.f32 %v791_v27, %v790_v2  ;;  %v811_v50 = vsel %vm614_vm1, %v749_v20, 0.0 }
 0x1a1   : > { %v794_v22 = vadd.f32 %v793_v48, %v792_v49 }
 0x1a3   : > { %v796_v56 = vadd.f32 %v795_v63, %v794_v22 }
 0x1a5   : > { %v798_v0 = vadd.f32 %v797_v57, %v796_v56 }
 0x1a7   : > { %v800_v59 = vadd.f32 %v799_v6, %v798_v0 }
 0x1a9   : > { %v802_v41 = vadd.f32 %v801_v7, %v800_v59 }
 0x1ab   : > { %v804_v18 = vadd.f32 %v803_v28, %v802_v41 }
 0x1ad   : > { %v806_v23 = vadd.f32 %v805_v17, %v804_v18 }
 0x1af   : > { %v808_v29 = vadd.f32 %v807_v46, %v806_v23 }
 0x1b1   : > { %v810_v2 = vadd.f32 %v809_v45, %v808_v29 }
 0x1b3   : > { %v812_v51 = vadd.f32 %v811_v50, %v810_v2 }
 0x1b5   : > { %v813_v27 = vrot.slane %v812_v51, 4 }
 0x1b7   : > { %v814_v49 = vadd.f32 %v813_v27, %v812_v51 }
 0x1b9   : > { %v815_v58 = vrot.slane %v814_v49, 2 }
 0x1bb   : > { %v816_v62 = vadd.f32 %v815_v58, %v814_v49 }
 0x1bd   : > { %v817_v48 = vrot.slane %v816_v62, 1 }
 0x1bf   : > { %v818_v22 = vadd.f32 %v817_v48, %v816_v62 }
 0x1c1   : > { %v819_v3 = vmul.f32 0.00390625, %v818_v22 }
 0x1c3   : > { %v820_v55 = vadd.f32 1e-05, %v819_v3 }
 0x1c5   : > { %1041 = vrsqrt.f32 %v820_v55 }
 0x1cf   : > { %v1042_v63 = vpop.eup %1041 }
 0x1d0   : > { %v822_v56 = vmul.f32 %v1042_v63, %v1546_v33  ;;  %v823_v43 = vmul.f32 %v1042_v63, %v1551_v44  ;;  %v824_v57 = vmul.f32 %v1042_v63, %v1556_v52  ;;  %v825_v0 = vmul.f32 %v1042_v63, %v1561_v10 }
 0x1d1   : > { %v826_v26 = vmul.f32 %v1042_v63, %v1570_v53  ;;  %v827_v6 = vmul.f32 %v1042_v63, %v1577_v60  ;;  %v828_v59 = vmul.f32 %v1042_v63, %v1586_v1  ;;  %v829_v11 = vmul.f32 %v1042_v63, %v1594_v34 }
 0x1d2   : > { %v830_v33 = vmul.f32 %v1042_v63, %v1602_v12  ;;  %v831_v44 = vmul.f32 %v1042_v63, %v1610_v31  ;;  %v832_v52 = vmul.f32 %v1042_v63, %v1618_v37  ;;  %v833_v10 = vmul.f32 %v1042_v63, %v1626_v4  ;;  %854 = vst.msk [vmem:[%s1768_s7] sm:$0xff] %vm614_vm1, %v822_v56 }
 0x1d3   : > { %855 = vst.msk [vmem:[%s1768_s7 + $0x8] sm:$0xff] %vm614_vm1, %v823_v43  ;;  %856 = vst.msk [vmem:[%s1768_s7 + $0x10] sm:$0xff] %vm614_vm1, %v824_v57  ;;  %v834_v53 = vmul.f32 %v1042_v63, %v1517_v40  ;;  %v835_v60 = vmul.f32 %v1042_v63, %v1522_v30  ;;  %v836_v1 = vmul.f32 %v1042_v63, %v1527_v8 }
 0x1d4   : > { %857 = vst.msk [vmem:[%s1768_s7 + $0x18] sm:$0xff] %vm614_vm1, %v825_v0  ;;  %v837_v34 = vmul.f32 %v1042_v63, %v1532_v54  ;;  %858 = vst.msk [vmem:[%s1768_s7 + $0x20] sm:$0xff] %vm614_vm1, %v826_v26  ;;  %v838_v40 = vmul.f32 %v1042_v63, %v1646_v42  ;;  %v839_v30 = vmul.f32 %v1042_v63, %v1654_v19 }
 0x1d5   : > { %859 = vst.msk [vmem:[%s1768_s7 + $0x28] sm:$0xff] %vm614_vm1, %v827_v6  ;;  %860 = vst.msk [vmem:[%s1768_s7 + $0x30] sm:$0xff] %vm614_vm1, %v828_v59  ;;  %v840_v8 = vmul.f32 %v1042_v63, %v1662_v24  ;;  %v841_v54 = vmul.f32 %v1042_v63, %v1670_v32  ;;  %v842_v12 = vmul.f32 %v1042_v63, %v1678_v39 }
 0x1d6   : > { %861 = vst.msk [vmem:[%s1768_s7 + $0x38] sm:$0xff] %vm614_vm1, %v829_v11  ;;  %862 = vst.msk [vmem:[%s1768_s7 + $0x40] sm:$0xff] %vm614_vm1, %v830_v33  ;;  %v843_v31 = vmul.f32 %v1042_v63, %v1686_v61  ;;  %v844_v37 = vmul.f32 %v1042_v63, %v1694_v21  ;;  %v845_v4 = vmul.f32 %v1042_v63, %v1702_v38 }
 0x1d7   : > { %863 = vst.msk [vmem:[%s1768_s7 + $0x48] sm:$0xff] %vm614_vm1, %v831_v44  ;;  %864 = vst.msk [vmem:[%s1768_s7 + $0x50] sm:$0xff] %vm614_vm1, %v832_v52  ;;  %v846_v42 = vmul.f32 %v1042_v63, %v1710_v36  ;;  %v847_v19 = vmul.f32 %v1042_v63, %v1718_v9  ;;  %v848_v24 = vmul.f32 %v1042_v63, %v1726_v16 }
 0x1d8   : > { %865 = vst.msk [vmem:[%s1768_s7 + $0x58] sm:$0xff] %vm614_vm1, %v833_v10  ;;  %866 = vst.msk [vmem:[%s1768_s7 + $0x60] sm:$0xff] %vm614_vm1, %v834_v53  ;;  %v849_v32 = vmul.f32 %v1042_v63, %v1734_v35  ;;  %v850_v39 = vmul.f32 %v1042_v63, %v1742_v14  ;;  %v851_v61 = vmul.f32 %v1042_v63, %v1535_v5 }
 0x1d9   : > { %867 = vst.msk [vmem:[%s1768_s7 + $0x68] sm:$0xff] %vm614_vm1, %v835_v60  ;;  %868 = vst.msk [vmem:[%s1768_s7 + $0x70] sm:$0xff] %vm614_vm1, %v836_v1  ;;  %v852_v21 = vmul.f32 %v1042_v63, %v1538_v15  ;;  %v853_v38 = vmul.f32 %v1042_v63, %v1541_v25 }
 0x1da   : > { %869 = vst.msk [vmem:[%s1768_s7 + $0x78] sm:$0xff] %vm614_vm1, %v837_v34  ;;  %870 = vst.msk [vmem:[%s1768_s7 + $0x80] sm:$0xff] %vm614_vm1, %v838_v40 }
 0x1db   : > { %871 = vst.msk [vmem:[%s1768_s7 + $0x88] sm:$0xff] %vm614_vm1, %v839_v30  ;;  %872 = vst.msk [vmem:[%s1768_s7 + $0x90] sm:$0xff] %vm614_vm1, %v840_v8 }
 0x1dc   : > { %873 = vst.msk [vmem:[%s1768_s7 + $0x98] sm:$0xff] %vm614_vm1, %v841_v54  ;;  %874 = vst.msk [vmem:[%s1768_s7 + $0xa0] sm:$0xff] %vm614_vm1, %v842_v12 }
 0x1dd   : > { %875 = vst.msk [vmem:[%s1768_s7 + $0xa8] sm:$0xff] %vm614_vm1, %v843_v31  ;;  %876 = vst.msk [vmem:[%s1768_s7 + $0xb0] sm:$0xff] %vm614_vm1, %v844_v37 }
 0x1de   : > { %877 = vst.msk [vmem:[%s1768_s7 + $0xb8] sm:$0xff] %vm614_vm1, %v845_v4  ;;  %878 = vst.msk [vmem:[%s1768_s7 + $0xc0] sm:$0xff] %vm614_vm1, %v846_v42 }
 0x1df   : > { %879 = vst.msk [vmem:[%s1768_s7 + $0xc8] sm:$0xff] %vm614_vm1, %v847_v19  ;;  %880 = vst.msk [vmem:[%s1768_s7 + $0xd0] sm:$0xff] %vm614_vm1, %v848_v24 }
 0x1e0   : > { %881 = vst.msk [vmem:[%s1768_s7 + $0xd8] sm:$0xff] %vm614_vm1, %v849_v32  ;;  %882 = vst.msk [vmem:[%s1768_s7 + $0xe0] sm:$0xff] %vm614_vm1, %v850_v39 }
 0x1e1   : > { %883 = vst.msk [vmem:[%s1768_s7 + $0xe8] sm:$0xff] %vm614_vm1, %v851_v61  ;;  %884 = vst.msk [vmem:[%s1768_s7 + $0xf0] sm:$0xff] %vm614_vm1, %v852_v21 }
 0x1e2   : > { %885 = vst.msk [vmem:[%s1768_s7 + $0xf8] sm:$0xff] %vm614_vm1, %v853_v38 }
 0x1e3 PF: > { %s13_s12 = sadd.s32 1, %s1049_s12  }
 0x1e4   : > { %p10_p4 = scmp.ge.s32.totalorder %s13_s12, 4  }
 0x1e6   :  { %12 = sbr.rel (!%p10_p4) target bundleno = 1 (0x1), region = 62 }

// kernel: encoder_forward.13
= control target key start
LH: loop header
LB: loop body
LE: loop exit
PB: predicated region body
PF: predicated region fallthrough
CT: control target
= control target key end

     0   :  { %11 = vsyncpa [#allocation3], 0  ;;  %s1072_s0 = inlined_call_operand.vmem [shape: f32[2,8,8,32], index: 0, kind: input, shape index: {}]   ;;  %s1073_s1 = inlined_call_operand.vmem [shape: f32[2,8,8,32], index: 1, kind: input, shape index: {}]   ;;  %s1074_s2 = inlined_call_operand.vmem [shape: f32[2,8,8,32], index: 2, kind: input, shape index: {}]   ;;  %s1075_s3 = inlined_call_operand.vmem [shape: f32[2,8,8,32], index: 3, kind: input, shape index: {}]   ;;  %s1076_s4 = inlined_call_operand.vmem [shape: f32[2,8,8,32], index: 4, kind: output, shape index: {0}]   ;;  %s1077_s5 = inlined_call_operand.hbm [shape: s32[2,8,8,32], index: 5, kind: output, shape index: {1}]  }
   0x1   :  { %13 = vsyncpa [#allocation3 + $0x1], 0  ;;  %s760_s18 = smov 0   ;;  %s762_s19 = smov 0  }
   0x2   :  { %s764_s20 = smov 0   ;;  %s766_s21 = smov 0  }
   0x3 LB: > { %s781_s22 = sadd.s32 4294967295, %s725_s21   ;;  %s596_s23 = sadd.s32 4294967294, %s725_s21   ;;  %s725_s21 = sphi %s766_s21, %s1083_s21   ;;  %s721_s20 = sphi %s764_s20, %s1082_s20   ;;  %s717_s19 = sphi %s762_s19, %s1081_s19   ;;  %s713_s18 = sphi %s760_s18, %s1080_s18  }
   0x4   : > { %s785_s24 = sadd.s32 1, %s725_s21   ;;  %s156_s25 = sadd.s32 1, %s721_s20 }
   0x5   : > { %s153_s26 = ssub.s32 %s725_s21, %s785_s24  ;;  %p166_p0 = scmp.ne.s32.totalorder %s721_s20, %s717_s19 }
   0x6   : > { %p154_p1 = scmp.eq.s32.totalorder %s153_s26, 0  ;;  %p167_p2 = scmp.eq.s32.totalorder %s781_s22, 1 }
   0x7   : > { %p172_p3 = scmp.ne.s32.totalorder %s717_s19, %s713_s18  ;;  %p173_p4 = scmp.eq.s32.totalorder %s596_s23, 1 }
   0x8   : > { %s796_s27 = scalar_select %p154_p1, %s721_s20, %s156_s25  }
   0x9   : > { %p798_p5 = por %p167_p2, %p166_p0  ;;  %p802_p6 = por %p173_p4, %p172_p3 }
   0xa   : > { %p599_p7 = scmp.ge.s32.totalorder %s725_s21, 1  ;;  %p223_p8 = scmp.lt.s32.totalorder %s725_s21, 3 }
   0xc   : > { %p224_p9 = pnand %p599_p7, %p223_p8 }
   0xd   : > { %p271_p10 = scmp.lt.s32.totalorder (!%p224_p9), %s781_s22, 1  ;;  %v328_v0 = vlaneseq (!%p224_p9)  ;;  %s268_s6 = sand.u32 (!%p224_p9), 1, %s717_s19   ;;  %vm434_vm0 = vcmask (!%p224_p9), 261120  }
   0xe   : > { %227 = sbr.rel (%p224_p9) target bundleno = 65 (0x41), region = 36  ;;  %s855_s26 = sshll.u32 (!%p224_p9), %s268_s6, 6 }
   0xf   : > { %v329_v1 = vshrl.u32 (!%p224_p9), %v328_v0, 7  ;;  %s621_s12 = sshll.u32 (!%p224_p9), %s781_s22, 10  ;;  %s1031_s14 = scalar_lea.sflag (!%p224_p9), [#allocation3], %s268_s6 }
  0x11   : > { %v810_v2 = vmul.u32 (!%p224_p9), 2, %v329_v1 }
  0x13   : > { %v354_v3 = vadd.s32 (!%p224_p9), 1, %v810_v2  ;;  %v386_v4 = vadd.s32 (!%p224_p9), 16, %v810_v2  ;;  %v331_v5 = vadd.s32 (!%p224_p9), 32, %v810_v2  ;;  %v332_v6 = vadd.s32 (!%p224_p9), 64, %v810_v2 }
  0x14   : > { %v333_v10 = vadd.s32 (!%p224_p9), 96, %v810_v2  ;;  %v848_v11 = vadd.s32 (!%p224_p9), 128, %v810_v2  ;;  %v851_v12 = vadd.s32 (!%p224_p9), 160, %v810_v2 }
  0x15   : > { %s272_s30 = scalar_select %p271_p10, %s781_s22, 1  ;;  %v418_v14 = vadd.s32 1, %v386_v4  ;;  %v355_v16 = vadd.s32 1, %v331_v5  ;;  %v387_v17 = vadd.s32 16, %v331_v5  ;;  %v356_v23 = vadd.s32 1, %v332_v6 }
  0x16   : > { %v388_v45 = vadd.s32 16, %v332_v6  ;;  %v357_v48 = vadd.s32 1, %v333_v10  ;;  %v389_v49 = vadd.s32 16, %v333_v10  ;;  %v358_v62 = vadd.s32 1, %v848_v11 }
  0x17   : > { %s813_s7 = sshll.u32 %s272_s30, 6  ;;  %v419_v27 = vadd.s32 1, %v387_v17  ;;  %s890_s30 = scalar_lea.vmem [#allocation2], %s855_s26  ;;  %v390_v1 = vadd.s32 16, %v848_v11 }
  0x18   : > { %s819_s10 = scalar_lea.vmem %s1072_s0, %s813_s7  ;;  %s825_s13 = scalar_lea.vmem %s1073_s1, %s813_s7  ;;  %v420_v51 = vadd.s32 1, %v388_v45  ;;  %v421_v57 = vadd.s32 1, %v389_v49 }
  0x19   : > { %s835_s16 = scalar_lea.vmem %s1074_s2, %s813_s7  ;;  %s841_s25 = scalar_lea.vmem %s1075_s3, %s813_s7  ;;  %v296_v7 = vld [vmem:[%s819_s10] sm:$0xff]  ;;  %v297_v9 = vld [vmem:[%s819_s10 + $0x8] sm:$0xff]  ;;  %v298_v22 = vld [vmem:[%s819_s10 + $0x10] sm:$0xff] }
  0x1a   : > { %v304_v8 = vld [vmem:[%s825_s13] sm:$0xff]  ;;  %v305_v15 = vld [vmem:[%s825_s13 + $0x8] sm:$0xff]  ;;  %v306_v28 = vld [vmem:[%s825_s13 + $0x10] sm:$0xff]  ;;  %s473_s11 = sshll.u32 %s890_s30, 4  ;;  %s997_s11 = int_to_ptr.vmem [resolvable:$true] %s473_s11 }
  0x1b   : > { %v312_v13 = vld [vmem:[%s835_s16] sm:$0xff]  ;;  %vm338_vm1 = vcmp.gt.f32.partialorder %v304_v8, %v296_v7  ;;  %v313_v21 = vld [vmem:[%s835_s16 + $0x8] sm:$0xff]  ;;  %vm339_vm2 = vcmp.gt.f32.partialorder %v305_v15, %v297_v9  ;;  %v314_v29 = vld [vmem:[%s835_s16 + $0x10] sm:$0xff]  ;;  %vm340_vm5 = vcmp.gt.f32.partialorder %v306_v28, %v298_v22  ;;  %s663_s15 = scalar_lea.vmem %s997_s11, 1024 }
  0x1c   : > { %v860_v18 = vld [vmem:[%s841_s25] sm:$0xff]  ;;  %v346_v19 = vsel %vm338_vm1, %v304_v8, %v296_v7  ;;  %v362_v20 = vsel %vm338_vm1, %v354_v3, %v810_v2  ;;  %v866_v24 = vld [vmem:[%s841_s25 + $0x8] sm:$0xff]  ;;  %v347_v25 = vsel %vm339_vm2, %v305_v15, %v297_v9  ;;  %v363_v26 = vsel %vm339_vm2, %v355_v16, %v331_v5  ;;  %v299_v32 = vld [vmem:[%s819_s10 + $0x18] sm:$0xff]  ;;  %p664_p11 = scmp.ne.s32.totalorder %s997_s11, %s663_s15 }
  0x1d   : > { %vm370_vm3 = vcmp.gt.f32.partialorder %v312_v13, %v346_v19  ;;  %vm371_vm4 = vcmp.gt.f32.partialorder %v313_v21, %v347_v25  ;;  %v307_v33 = vld [vmem:[%s825_s13 + $0x18] sm:$0xff]  ;;  %v879_v36 = vld [vmem:[%s841_s25 + $0x10] sm:$0xff]  ;;  %v348_v37 = vsel %vm340_vm5, %v306_v28, %v298_v22  ;;  %v364_v39 = vsel %vm340_vm5, %v356_v23, %v332_v6  ;;  %v300_v41 = vld [vmem:[%s819_s10 + $0x20] sm:$0xff] }
  0x1e   : > { %v870_v30 = vsel %vm370_vm3, %v312_v13, %v346_v19  ;;  %v394_v31 = vsel %vm370_vm3, %v386_v4, %v362_v20  ;;  %v876_v34 = vsel %vm371_vm4, %v313_v21, %v347_v25  ;;  %v395_v35 = vsel %vm371_vm4, %v387_v17, %v363_v26  ;;  %v315_v40 = vld [vmem:[%s835_s16 + $0x18] sm:$0xff]  ;;  %v308_v42 = vld [vmem:[%s825_s13 + $0x20] sm:$0xff]  ;;  %v301_v53 = vld [vmem:[%s819_s10 + $0x28] sm:$0xff]  ;;  %p665_p12 = pnand %p664_p11, %p798_p5 }
  0x1f   : > { %vm402_vm6 = vcmp.gt.f32.partialorder %v860_v18, %v870_v30  ;;  %vm403_vm7 = vcmp.gt.f32.partialorder %v866_v24, %v876_v34  ;;  %vm372_vm8 = vcmp.gt.f32.partialorder %v314_v29, %v348_v37  ;;  %vm341_vm9 = vcmp.gt.f32.partialorder %v307_v33, %v299_v32  ;;  %v905_v46 = vld [vmem:[%s841_s25 + $0x18] sm:$0xff]  ;;  %v316_v52 = vld [vmem:[%s835_s16 + $0x20] sm:$0xff]  ;;  %v309_v54 = vld [vmem:[%s825_s13 + $0x28] sm:$0xff] }
  0x20   : > { %v426_v38 = vsel %vm402_vm6, %v418_v14, %v394_v31  ;;  %v427_v43 = vsel %vm403_vm7, %v419_v27, %v395_v35  ;;  %v898_v44 = vsel %vm372_vm8, %v314_v29, %v348_v37  ;;  %v349_v47 = vsel %vm341_vm9, %v307_v33, %v299_v32  ;;  %v920_v61 = vld [vmem:[%s841_s25 + $0x20] sm:$0xff]  ;;  %v317_v63 = vld [vmem:[%s835_s16 + $0x28] sm:$0xff]  ;;  %v302_v8 = vld [vmem:[%s819_s10 + $0x30] sm:$0xff]  ;;  %p666_p13 = pneg %p665_p12 }
  0x21   : > { %443 = vst.msk [vmem:[%s890_s30] sm:$0xff] %vm434_vm0, %v426_v38  ;;  %444 = vst.msk [vmem:[%s890_s30 + $0x8] sm:$0xff] %vm434_vm0, %v427_v43  ;;  %vm404_vm10 = vcmp.gt.f32.partialorder %v879_v36, %v898_v44  ;;  %v396_v50 = vsel %vm372_vm8, %v388_v45, %v364_v39  ;;  %vm373_vm11 = vcmp.gt.f32.partialorder %v315_v40, %v349_v47  ;;  %v937_v5 = vld [vmem:[%s841_s25 + $0x28] sm:$0xff]  ;;  %v359_v7 = vadd.s32 1, %v851_v12  ;;  %v310_v9 = vld [vmem:[%s825_s13 + $0x30] sm:$0xff] }
  0x22   : > { %vm342_vm12 = vcmp.gt.f32.partialorder %v308_v42, %v300_v41  ;;  %v365_v55 = vsel %vm341_vm9, %v357_v48, %v333_v10  ;;  %v911_v56 = vsel %vm373_vm11, %v315_v40, %v349_v47  ;;  %v428_v59 = vsel %vm404_vm10, %v420_v51, %v396_v50  ;;  %v318_v16 = vld [vmem:[%s835_s16 + $0x30] sm:$0xff]  ;;  %v303_v19 = vld [vmem:[%s819_s10 + $0x38] sm:$0xff]  ;;  %s965_s10 = scalar_lea.vmem %s1076_s4, %s813_s7 }
  0x23   : > { %v350_v58 = vsel %vm342_vm12, %v308_v42, %v300_v41  ;;  %v397_v60 = vsel %vm373_vm11, %v389_v49, %v365_v55  ;;  %vm405_vm13 = vcmp.gt.f32.partialorder %v905_v46, %v911_v56  ;;  %445 = vst.msk [vmem:[%s890_s30 + $0x10] sm:$0xff] %vm434_vm0, %v428_v59  ;;  %vm343_vm15 = vcmp.gt.f32.partialorder %v309_v54, %v301_v53  ;;  %v311_v20 = vld [vmem:[%s825_s13 + $0x38] sm:$0xff]  ;;  %v326_v25 = vld [vmem:[%s841_s25 + $0x30] sm:$0xff]  ;;  %s1013_s13 = scalar_lea.hbm %s1077_s5, %s621_s12 }
  0x24   : > { %v429_v0 = vsel %vm405_vm13, %v421_v57, %v397_v60  ;;  %vm374_vm14 = vcmp.gt.f32.partialorder %v316_v52, %v350_v58  ;;  %v366_v3 = vsel %vm342_vm12, %v358_v62, %v848_v11  ;;  %v351_v6 = vsel %vm343_vm15, %v309_v54, %v301_v53  ;;  %v319_v29 = vld [vmem:[%s835_s16 + $0x38] sm:$0xff]  ;;  %s727_s16 = smov [#allocation2]  }
  0x25   : > { %446 = vst.msk [vmem:[%s890_s30 + $0x18] sm:$0xff] %vm434_vm0, %v429_v0  ;;  %v934_v4 = vsel %vm374_vm14, %v316_v52, %v350_v58  ;;  %v398_v10 = vsel %vm374_vm14, %v390_v1, %v366_v3  ;;  %v422_v13 = vadd.s32 1, %v390_v1  ;;  %vm375_vm2 = vcmp.gt.f32.partialorder %v317_v63, %v351_v6  ;;  %v327_v39 = vld [vmem:[%s841_s25 + $0x38] sm:$0xff]  ;;  %s667_s17 = sshll.u32 %s727_s16, 4  ;;  %s668_s17 = int_to_ptr.vmem [resolvable:$false] %s667_s17 }
  0x26   : > { %vm406_vm1 = vcmp.gt.f32.partialorder %v920_v61, %v934_v4  ;;  %v367_v11 = vsel %vm343_vm15, %v359_v7, %v851_v12  ;;  %v383_v14 = vsel %vm375_vm2, %v317_v63, %v351_v6  ;;  %v391_v15 = vadd.s32 16, %v851_v12  ;;  %s669_s23 = scalar_lea.vmem %s668_s17, 2048  ;;  %p670_p0 = scmp.lt.s32.totalorder %s997_s11, %s668_s17 }
  0x27   : > { %v336_v17 = vadd.s32 192, %v810_v2  ;;  %v430_v21 = vsel %vm406_vm1, %v422_v13, %v398_v10  ;;  %vm407_vm3 = vcmp.gt.f32.partialorder %v937_v5, %v383_v14  ;;  %vm344_vm4 = vcmp.gt.f32.partialorder %v310_v9, %v302_v8  ;;  %p671_p1 = scmp.lt.s32.totalorder %s669_s23, %s663_s15 }
  0x28   : > { %v337_v22 = vadd.s32 224, %v810_v2  ;;  %447 = vst.msk [vmem:[%s890_s30 + $0x20] sm:$0xff] %vm434_vm0, %v430_v21  ;;  %v399_v12 = vsel %vm375_vm2, %v391_v15, %v367_v11  ;;  %v423_v23 = vadd.s32 1, %v391_v15  ;;  %v352_v26 = vsel %vm344_vm4, %v310_v9, %v302_v8 }
  0x29   : > { %v360_v27 = vadd.s32 1, %v336_v17  ;;  %vm376_vm5 = vcmp.gt.f32.partialorder %v318_v16, %v352_v26  ;;  %v392_v28 = vadd.s32 16, %v336_v17  ;;  %vm345_vm8 = vcmp.gt.f32.partialorder %v311_v20, %v303_v19  ;;  %p672_p2 = por %p671_p1, %p670_p0 }
  0x2a   : > { %v361_v31 = vadd.s32 1, %v337_v22  ;;  %v431_v2 = vsel %vm407_vm3, %v423_v23, %v399_v12  ;;  %v384_v33 = vsel %vm376_vm5, %v318_v16, %v352_v26  ;;  %v353_v35 = vsel %vm345_vm8, %v311_v20, %v303_v19 }
  0x2b   : > { %v368_v32 = vsel %vm344_vm4, %v360_v27, %v336_v17  ;;  %448 = vst.msk [vmem:[%s890_s30 + $0x28] sm:$0xff] %vm434_vm0, %v431_v2  ;;  %vm408_vm9 = vcmp.gt.f32.partialorder %v326_v25, %v384_v33  ;;  %v424_v38 = vadd.s32 1, %v392_v28  ;;  %vm377_vm11 = vcmp.gt.f32.partialorder %v319_v29, %v353_v35  ;;  %p673_p3 = pnand %p672_p2, %p666_p13 }
  0x2c   : > { %v400_v37 = vsel %vm376_vm5, %v392_v28, %v368_v32  ;;  %v369_v40 = vsel %vm345_vm8, %v361_v31, %v337_v22  ;;  %v393_v41 = vadd.s32 16, %v337_v22  ;;  %v410_v42 = vsel %vm402_vm6, %v860_v18, %v870_v30 }
  0x2d   : > { %v411_v43 = vsel %vm403_vm7, %v866_v24, %v876_v34  ;;  %v432_v45 = vsel %vm408_vm9, %v424_v38, %v400_v37  ;;  %v385_v47 = vsel %vm377_vm11, %v319_v29, %v353_v35  ;;  %435 = vst.msk [vmem:[%s965_s10] sm:$0xff] %vm434_vm0, %v410_v42  ;;  %v412_v18 = vsel %vm404_vm10, %v879_v36, %v898_v44 }
  0x2e   : > { %436 = vst.msk [vmem:[%s965_s10 + $0x8] sm:$0xff] %vm434_vm0, %v411_v43  ;;  %v413_v24 = vsel %vm405_vm13, %v905_v46, %v911_v56  ;;  %449 = vst.msk [vmem:[%s890_s30 + $0x30] sm:$0xff] %vm434_vm0, %v432_v45  ;;  %v401_v30 = vsel %vm377_vm11, %v393_v41, %v369_v40  ;;  %vm409_vm6 = vcmp.gt.f32.partialorder %v327_v39, %v385_v47  ;;  %v425_v34 = vadd.s32 1, %v393_v41 }
  0x2f   : > { %437 = vst.msk [vmem:[%s965_s10 + $0x10] sm:$0xff] %vm434_vm0, %v412_v18  ;;  %438 = vst.msk [vmem:[%s965_s10 + $0x18] sm:$0xff] %vm434_vm0, %v413_v24  ;;  %v414_v36 = vsel %vm406_vm1, %v920_v61, %v934_v4  ;;  %v415_v44 = vsel %vm407_vm3, %v937_v5, %v383_v14  ;;  %v416_v46 = vsel %vm408_vm9, %v326_v25, %v384_v33 }
  0x30   : > { %439 = vst.msk [vmem:[%s965_s10 + $0x20] sm:$0xff] %vm434_vm0, %v414_v36  ;;  %v417_v48 = vsel %vm409_vm6, %v327_v39, %v385_v47  ;;  %v433_v49 = vsel %vm409_vm6, %v425_v34, %v401_v30  ;;  %440 = vst.msk [vmem:[%s965_s10 + $0x28] sm:$0xff] %vm434_vm0, %v415_v44 }
  0x31   : > { %441 = vst.msk [vmem:[%s965_s10 + $0x30] sm:$0xff] %vm434_vm0, %v416_v46  ;;  %442 = vst.msk [vmem:[%s965_s10 + $0x38] sm:$0xff] %vm434_vm0, %v417_v48 }
  0x32   : > { %450 = vst.msk [vmem:[%s890_s30 + $0x38] sm:$0xff] %vm434_vm0, %v433_v49 }
  0x33   : > { %676 = shalt.err (!%p673_p3)
}
  0x34   : > { %s677_s6 = scalar_lea.hbm %s1013_s13, 1024  ;;  %s681_s30 = scalar_lea.hbm %s1077_s5, 2048 }
  0x35   : > { %p678_p4 = scmp.ne.s32.totalorder %s1013_s13, %s677_s6  ;;  %p682_p9 = scmp.lt.u32.totalorder %s1013_s13, %s1077_s5 }
  0x36   : > { %p683_p10 = scmp.lt.u32.totalorder %s681_s30, %s677_s6  ;;  %p685_p12 = scmp.lt.u32.totalorder %s677_s6, %s1013_s13 }
  0x37   : > { %p679_p7 = pnand %p678_p4, %p798_p5 }
  0x38   : > { %p684_p11 = por %p683_p10, %p682_p9 }
  0x39   : > { %p680_p8 = pneg %p679_p7 }
  0x3a   : > { %p686_p13 = por %p685_p12, %p684_p11 }
  0x3c   : > { %p687_p0 = pnand %p686_p13, %p680_p8 }
  0x3e   : > { %690 = shalt.err (!%p687_p0)
}
  0x3f   : > { %s728_s10 = smov 128   ;;  %s729_s12 = smov 8  }
  0x40   : > { %622 = dma.vmem_to_hbm [thread:$0]  (%p798_p5), %s997_s11, 1024, %s1013_s13, %s1031_s14, %s728_s10, %s728_s10, %s729_s12  }
  0x41 PF: > { %p628_p1 = scmp.ge.s32.totalorder %s725_s21, 2  ;;  %s496_s22 = sand.u32 1, %s713_s18  }
  0x42   : > { %s497_s7 = scalar_lea.sflag [#allocation3], %s496_s22 }
  0x43   : > { %p625_p2 = pnand %p628_p1, %p802_p6 }
  0x45   : > { %708 = dma.done.wait (!%p625_p2), %s497_s7, 1024  }
  0x46   : > { %710 = vsyncadd (!%p625_p2), %s497_s7, 4294966272  ;;  %p16_p3 = scmp.ge.s32.totalorder %s785_s24, 4   ;;  %s1080_s18 = smov %s717_s19 }
  0x47   : > { %s1081_s19 = smov %s721_s20  ;;  %s1082_s20 = smov %s796_s27 }
  0x48   : > { %s1083_s21 = smov %s785_s24  ;;  %18 = sbr.rel (!%p16_p3) target bundleno = 3 (0x3), region = 92 }
  0x4f   :  { %502 = vsyncpa [#allocation3], 1 }
  0x50   :  { %504 = vsyncpa [#allocation3 + $0x1], 1 }

// kernel: encoder_forward.14
= control target key start
LH: loop header
LB: loop body
LE: loop exit
PB: predicated region body
PF: predicated region fallthrough
CT: control target
= control target key end

     0   :  { %s818_s12 = smov 0   ;;  %s1008_s0 = inlined_call_operand.vmem [shape: f32[2,64,288], index: 0, kind: input, shape index: {}]   ;;  %s1009_s1 = inlined_call_operand.vmem [shape: f32[288,32], index: 1, kind: input, shape index: {}]   ;;  %s1010_s2 = inlined_call_operand.vmem [shape: f32[1,32], index: 2, kind: input, shape index: {}]   ;;  %s1011_s3 = inlined_call_operand.vmem [shape: f32[2,64,32], index: 3, kind: output, shape index: {}]  }
   0x1 LB: > { %s615_s13 = sadd.s32 4294967295, %s796_s12   ;;  %p619_p0 = scmp.ge.s32.totalorder %s796_s12, 1  ;;  %s796_s12 = sphi %s818_s12, %s13_s12  }
   0x2   : > { %p137_p1 = scmp.lt.s32.totalorder %s796_s12, 3 }
   0x4   : > { %p138_p2 = pnand %p619_p0, %p137_p1 }
   0x5   : > { %v211_v0 = vld [vmem:[%s1009_s1 + $0x80] sm:$0xff] (!%p138_p2)  ;;  %v212_v1 = vld [vmem:[%s1009_s1 + $0x88] sm:$0xff] (!%p138_p2)  ;;  %p161_p3 = scmp.lt.s32.totalorder (!%p138_p2), %s615_s13, 1  ;;  %v213_v5 = vld [vmem:[%s1009_s1 + $0x90] sm:$0xff] (!%p138_p2)  ;;  %vm238_vm0 = vcmask (!%p138_p2), 261120  }
   0x6   : > { %141 = sbr.rel (%p138_p2) target bundleno = 354 (0x162), region = 32  ;;  %v195_v2 = vld [vmem:[%s1009_s1] sm:$0xff] (!%p138_p2)  ;;  %v723_v3 = vpack.c.bf16 (!%p138_p2), %v212_v1, %v211_v0  ;;  %v196_v4 = vld [vmem:[%s1009_s1 + $0x8] sm:$0xff] (!%p138_p2)  ;;  %v214_v6 = vld [vmem:[%s1009_s1 + $0x98] sm:$0xff] (!%p138_p2) }
   0x7   : > { %v725_v7 = vpack.c.bf16 (!%p138_p2), %v196_v4, %v195_v2  ;;  %v727_v8 = vpack.c.bf16 (!%p138_p2), %v214_v6, %v213_v5  ;;  %v197_v9 = vld [vmem:[%s1009_s1 + $0x10] sm:$0xff] (!%p138_p2)  ;;  %v198_v10 = vld [vmem:[%s1009_s1 + $0x18] sm:$0xff] (!%p138_p2)  ;;  %v215_v11 = vld [vmem:[%s1009_s1 + $0xa0] sm:$0xff] (!%p138_p2) }
   0x8   : > { %724 = vmatprep.subr.bf16.mxu0 (!%p138_p2), %v723_v3  ;;  %763 = vmatprep.subr.bf16.mxu1 (!%p138_p2), %v723_v3  ;;  %v216_v12 = vld [vmem:[%s1009_s1 + $0xa8] sm:$0xff] (!%p138_p2)  ;;  %v729_v13 = vpack.c.bf16 (!%p138_p2), %v198_v10, %v197_v9  ;;  %v199_v15 = vld [vmem:[%s1009_s1 + $0x20] sm:$0xff] (!%p138_p2)  ;;  %v217_v17 = vld [vmem:[%s1009_s1 + $0xb0] sm:$0xff] (!%p138_p2) }
   0x9   : > { %726 = vmatpush3.bf16.msra.mxu0 (!%p138_p2), %v725_v7  ;;  %771 = vmatpush3.bf16.msra.mxu1 (!%p138_p2), %v725_v7  ;;  %v731_v14 = vpack.c.bf16 (!%p138_p2), %v216_v12, %v215_v11  ;;  %v200_v16 = vld [vmem:[%s1009_s1 + $0x28] sm:$0xff] (!%p138_p2)  ;;  %v218_v18 = vld [vmem:[%s1009_s1 + $0xb8] sm:$0xff] (!%p138_p2)  ;;  %v201_v21 = vld [vmem:[%s1009_s1 + $0x30] sm:$0xff] (!%p138_p2) }
   0xa   : > { %728 = vmatprep.subr.bf16.mxu0 (!%p138_p2), %v727_v8  ;;  %764 = vmatprep.subr.bf16.mxu1 (!%p138_p2), %v727_v8  ;;  %v733_v19 = vpack.c.bf16 (!%p138_p2), %v200_v16, %v199_v15  ;;  %v735_v20 = vpack.c.bf16 (!%p138_p2), %v218_v18, %v217_v17  ;;  %v202_v22 = vld [vmem:[%s1009_s1 + $0x38] sm:$0xff] (!%p138_p2)  ;;  %v219_v23 = vld [vmem:[%s1009_s1 + $0xc0] sm:$0xff] (!%p138_p2)  ;;  %v220_v24 = vld [vmem:[%s1009_s1 + $0xc8] sm:$0xff] (!%p138_p2) }
   0xb   : > { %v737_v27 = vpack.c.bf16 (!%p138_p2), %v202_v22, %v201_v21  ;;  %v739_v28 = vpack.c.bf16 (!%p138_p2), %v220_v24, %v219_v23  ;;  %v203_v29 = vld [vmem:[%s1009_s1 + $0x40] sm:$0xff] (!%p138_p2)  ;;  %v204_v30 = vld [vmem:[%s1009_s1 + $0x48] sm:$0xff] (!%p138_p2)  ;;  %v221_v31 = vld [vmem:[%s1009_s1 + $0xd0] sm:$0xff] (!%p138_p2) }
   0xc   : > { %v222_v32 = vld [vmem:[%s1009_s1 + $0xd8] sm:$0xff] (!%p138_p2)  ;;  %v741_v33 = vpack.c.bf16 (!%p138_p2), %v204_v30, %v203_v29  ;;  %v205_v35 = vld [vmem:[%s1009_s1 + $0x50] sm:$0xff] (!%p138_p2)  ;;  %v223_v37 = vld [vmem:[%s1009_s1 + $0xe0] sm:$0xff] (!%p138_p2) }
   0xd   : > { %s1013_s13 = smov (!%p161_p3, %s615_s13), 1  ;;  %730 = vmatpush3.bf16.msra.mxu0 %v729_v13  ;;  %772 = vmatpush3.bf16.msra.mxu1 %v729_v13  ;;  %v743_v34 = vpack.c.bf16 %v222_v32, %v221_v31  ;;  %v206_v36 = vld [vmem:[%s1009_s1 + $0x58] sm:$0xff]  ;;  %v224_v38 = vld [vmem:[%s1009_s1 + $0xe8] sm:$0xff]  ;;  %v207_v41 = vld [vmem:[%s1009_s1 + $0x60] sm:$0xff] }
   0xe   : > { %s779_s7 = smul.u32 192, %s1013_s13  ;;  %732 = vmatprep.subr.bf16.mxu0 %v731_v14  ;;  %765 = vmatprep.subr.bf16.mxu1 %v731_v14  ;;  %v745_v39 = vpack.c.bf16 %v206_v36, %v205_v35  ;;  %v747_v40 = vpack.c.bf16 %v224_v38, %v223_v37  ;;  %v208_v42 = vld [vmem:[%s1009_s1 + $0x68] sm:$0xff]  ;;  %v225_v43 = vld [vmem:[%s1009_s1 + $0xf0] sm:$0xff]  ;;  %v226_v44 = vld [vmem:[%s1009_s1 + $0xf8] sm:$0xff] }
   0xf   : > { %v749_v45 = vpack.c.bf16 %v208_v42, %v207_v41  ;;  %v751_v46 = vpack.c.bf16 %v226_v44, %v225_v43  ;;  %v209_v47 = vld [vmem:[%s1009_s1 + $0x70] sm:$0xff]  ;;  %v210_v48 = vld [vmem:[%s1009_s1 + $0x78] sm:$0xff]  ;;  %v227_v49 = vld [vmem:[%s1009_s1 + $0x100] sm:$0xff] }
  0x10   : > { %s874_s20 = scalar_lea.vmem %s1008_s0, %s779_s7  ;;  %v228_v50 = vld [vmem:[%s1009_s1 + $0x108] sm:$0xff]  ;;  %v753_v51 = vpack.c.bf16 %v210_v48, %v209_v47  ;;  %v229_v53 = vld [vmem:[%s1009_s1 + $0x110] sm:$0xff]  ;;  %v230_v54 = vld [vmem:[%s1009_s1 + $0x118] sm:$0xff] }
  0x11   : > { %v172_v25 = vld [vmem:[%s874_s20 + $0x8] sm:$0xff]  ;;  %v190_v26 = vld [vmem:[%s874_s20 + $0x98] sm:$0xff]  ;;  %734 = vmatpush3.bf16.msra.mxu0 %v733_v19  ;;  %773 = vmatpush3.bf16.msra.mxu1 %v733_v19  ;;  %v755_v52 = vpack.c.bf16 %v228_v50, %v227_v49  ;;  %v171_v55 = vld [vmem:[%s874_s20] sm:$0xff]  ;;  %v759_v58 = vpack.c.bf16 %v230_v54, %v229_v53 }
  0x12   : > { %327 = vmatprep.mubr.f32.mxu0 %v172_v25  ;;  %736 = vmatprep.subr.bf16.mxu0 %v735_v20  ;;  %v189_v56 = vld [vmem:[%s874_s20 + $0x90] sm:$0xff]  ;;  %v175_v57 = vld [vmem:[%s874_s20 + $0x20] sm:$0xff]  ;;  %v174_v60 = vld [vmem:[%s874_s20 + $0x18] sm:$0xff] }
  0x13   : > { %766 = vmatprep.subr.bf16.mxu1 %v735_v20  ;;  %357 = vmatprep.mubr.f32.mxu1 %v190_v26  ;;  %v193_v59 = vld [vmem:[%s874_s20 + $0xb0] sm:$0xff]  ;;  %v192_v61 = vld [vmem:[%s874_s20 + $0xa8] sm:$0xff]  ;;  %v178_v62 = vld [vmem:[%s874_s20 + $0x38] sm:$0xff] }
  0x14   : > { %v173_v63 = vld [vmem:[%s874_s20 + $0x10] sm:$0xff]  ;;  %v176_v1 = vld [vmem:[%s874_s20 + $0x28] sm:$0xff]  ;;  %v179_v3 = vld [vmem:[%s874_s20 + $0x40] sm:$0xff] }
  0x15   : > { %738 = vmatpush3.bf16.msra.mxu0 %v737_v27  ;;  %774 = vmatpush3.bf16.msra.mxu1 %v737_v27  ;;  %v177_v0 = vld [vmem:[%s874_s20 + $0x30] sm:$0xff]  ;;  %v180_v4 = vld [vmem:[%s874_s20 + $0x48] sm:$0xff]  ;;  %v182_v5 = vld [vmem:[%s874_s20 + $0x58] sm:$0xff] }
  0x16   : > { %740 = vmatprep.subr.bf16.mxu0 %v739_v28  ;;  %767 = vmatprep.subr.bf16.mxu1 %v739_v28  ;;  %v181_v2 = vld [vmem:[%s874_s20 + $0x50] sm:$0xff]  ;;  %v184_v6 = vld [vmem:[%s874_s20 + $0x68] sm:$0xff]  ;;  %v183_v8 = vld [vmem:[%s874_s20 + $0x60] sm:$0xff] }
  0x17   : > { %v185_v7 = vld [vmem:[%s874_s20 + $0x70] sm:$0xff]  ;;  %v188_v9 = vld [vmem:[%s874_s20 + $0x88] sm:$0xff]  ;;  %v187_v10 = vld [vmem:[%s874_s20 + $0x80] sm:$0xff] }
  0x18   : > { %v191_v11 = vld [vmem:[%s874_s20 + $0xa0] sm:$0xff]  ;;  %v186_v12 = vld [vmem:[%s874_s20 + $0x78] sm:$0xff] }
  0x19   : > { %742 = vmatpush3.bf16.msra.mxu0 %v741_v33  ;;  %775 = vmatpush3.bf16.msra.mxu1 %v741_v33  ;;  %v194_v13 = vld [vmem:[%s874_s20 + $0xb8] sm:$0xff]  ;;  %v623_v24 = vld [vmem:[%s1010_s2] ss:$0 sm:$0xff]  ;;  %s634_s20 = sshll.u32 %s1013_s13, 6 }
  0x1a   : > { %744 = vmatprep.subr.bf16.mxu0 %v743_v34  ;;  %768 = vmatprep.subr.bf16.mxu1 %v743_v34  ;;  %s170_s21 = scalar_lea.vmem %s1011_s3, %s634_s20 }
  0x1d   : > { %746 = vmatpush3.bf16.msra.mxu0 %v745_v39  ;;  %776 = vmatpush3.bf16.msra.mxu1 %v745_v39 }
  0x1e   : > { %748 = vmatprep.subr.bf16.mxu0 %v747_v40  ;;  %769 = vmatprep.subr.bf16.mxu1 %v747_v40 }
  0x21   : > { %750 = vmatpush3.bf16.msra.mxu0 %v749_v45  ;;  %777 = vmatpush3.bf16.msra.mxu1 %v749_v45 }
  0x22   : > { %752 = vmatprep.subr.bf16.mxu0 %v751_v46  ;;  %770 = vmatprep.subr.bf16.mxu1 %v751_v46 }
  0x25   : > { %754 = vmatpush3.bf16.msra.mxu0 %v753_v51  ;;  %778 = vmatpush3.bf16.msra.mxu1 %v753_v51 }
  0x26   : > { %756 = vmatprep.subr.bf16.mxu1 %v755_v52 }
  0x28   : > { %328 = vmatmul.mubr.f32.vlgmr.msra.gmra.mrb[0].mxu0 %v171_v55  ;;  %358 = vmatmul.mubr.f32.vlgmr.msra.gmra.mrb[0].mxu1 %v189_v56 }
  0x29   : > { %758 = vmatpush3.bf16.msra.mxu1 %v755_v52  ;;  %332 = vmatprep.mubr.f32.mxu0 %v175_v57 }
  0x2a   : > { %362 = vmatprep.mubr.f32.mxu1 %v193_v59  ;;  %760 = vmatprep.subr.bf16.mxu1 %v759_v58 }
  0x2c   : > { %333 = vmatmul.mubr.f32.gmra.mrb[2].mxu0 %v174_v60  ;;  %363 = vmatmul.mubr.f32.gmra.mrb[2].mxu1 %v192_v61 }
  0x2d   : > { %762 = vmatpush3.bf16.msra.mxu1 %v759_v58  ;;  %337 = vmatprep.mubr.f32.mxu0 %v178_v62 }
  0x2e   : > { %711 = vmatprep.mubr.msk.f32.mxu1 %vm238_vm0, %v173_v63 }
  0x30   : > { %338 = vmatmul.mubr.f32.gmra.mrb[4].mxu0 %v177_v0  ;;  %712 = vmatmul.mubr.msk.f32.vlgmr.msra.gmra.mrb[4].mxu1 %vm238_vm0, %v176_v1 }
  0x31   : > { %342 = vmatprep.mubr.f32.mxu0 %v181_v2  ;;  %714 = vmatprep.mubr.msk.f32.mxu1 %vm238_vm0, %v179_v3 }
  0x34   : > { %343 = vmatmul.mubr.f32.gmra.mrb[6].mxu0 %v180_v4  ;;  %715 = vmatmul.mubr.msk.f32.gmra.mrb[6].mxu1 %vm238_vm0, %v182_v5 }
  0x35   : > { %347 = vmatprep.mubr.f32.mxu0 %v184_v6  ;;  %717 = vmatprep.mubr.msk.f32.mxu1 %vm238_vm0, %v185_v7 }
  0x38   : > { %348 = vmatmul.mubr.f32.gmra.mrb[8].mxu0 %v183_v8  ;;  %718 = vmatmul.mubr.msk.f32.gmra.mrb[8].mxu1 %vm238_vm0, %v188_v9 }
  0x39   : > { %352 = vmatprep.mubr.f32.mxu0 %v187_v10  ;;  %720 = vmatprep.mubr.msk.f32.mxu1 %vm238_vm0, %v191_v11 }
  0x3c   : > { %353 = vmatmul.mubr.f32.gmra.mrb[10].mxu0 %v186_v12  ;;  %721 = vmatmul.mubr.msk.f32.gmra.mrb[10].mxu1 %vm238_vm0, %v194_v13 }
  0xfb   : > { %v667_v14 = vpop.f32.mrb[0].mxu0  ;;  %v685_v15 = vpop.f32.mrb[0].mxu1 }
  0xfc   : > { %v668_v16 = vpop.f32.mrb[1].mxu0  ;;  %v686_v17 = vpop.f32.mrb[1].mxu1 }
  0xfd   : > { %v669_v18 = vadd.f32 %v668_v16, %v667_v14  ;;  %v687_v19 = vadd.f32 %v686_v17, %v685_v15 }
  0xff   : > { %v670_v20 = vpop.f32.mrb[2].mxu0  ;;  %v688_v21 = vpop.f32.mrb[2].mxu1  ;;  %v330_v30 = vadd.f32 %v669_v18, %v623_v24  ;;  %v360_v63 = vadd.f32 %v687_v19, %v623_v24 }
 0x100   : > { %v671_v22 = vpop.f32.mrb[3].mxu0  ;;  %v689_v23 = vpop.f32.mrb[3].mxu1 }
 0x101   : > { %v672_v25 = vadd.f32 %v671_v22, %v670_v20  ;;  %v690_v26 = vadd.f32 %v689_v23, %v688_v21 }
 0x103   : > { %v673_v27 = vpop.f32.mrb[4].mxu0  ;;  %v335_v28 = vadd.f32 %v672_v25, %v623_v24  ;;  %v713_v29 = vpop.f32.mrb[4].mxu1  ;;  %v365_v58 = vadd.f32 %v690_v26, %v623_v24 }
 0x104   : > { %v674_v31 = vpop.f32.mrb[5].mxu0  ;;  %v434_v32 = vpop.f32.mrb[5].mxu1 }
 0x105   : > { %v440_v33 = vadd.f32 %v713_v29, %v335_v28  ;;  %v675_v34 = vadd.f32 %v674_v31, %v673_v27  ;;  %v435_v35 = vadd.f32 %v434_v32, %v330_v30 }
 0x107   : > { %v474_v36 = vmax.f32 %v440_v33, 0.0  ;;  %v473_v37 = vmax.f32 %v435_v35, 0.0  ;;  %v676_v38 = vpop.f32.mrb[6].mxu0  ;;  %v716_v39 = vpop.f32.mrb[6].mxu1  ;;  %v340_v40 = vadd.f32 %v675_v34, %v623_v24 }
 0x108   : > { %v677_v41 = vpop.f32.mrb[7].mxu0  ;;  %v444_v42 = vpop.f32.mrb[7].mxu1 }
 0x109   : > { %v482_v43 = vsel %vm238_vm0, %v474_v36, 0.0  ;;  %v481_v44 = vsel %vm238_vm0, %v473_v37, 0.0  ;;  %v678_v45 = vadd.f32 %v677_v41, %v676_v38  ;;  %v445_v46 = vadd.f32 %v444_v42, %v340_v40 }
 0x10a   : > { %v483_v47 = vadd.f32 %v482_v43, %v481_v44 }
 0x10b   : > { %v345_v48 = vadd.f32 %v678_v45, %v623_v24  ;;  %v475_v49 = vmax.f32 %v445_v46, 0.0  ;;  %v679_v50 = vpop.f32.mrb[8].mxu0  ;;  %v719_v51 = vpop.f32.mrb[8].mxu1 }
 0x10c   : > { %v680_v52 = vpop.f32.mrb[9].mxu0  ;;  %v454_v53 = vpop.f32.mrb[9].mxu1 }
 0x10d   : > { %v450_v54 = vadd.f32 %v716_v39, %v345_v48  ;;  %v484_v55 = vsel %vm238_vm0, %v475_v49, 0.0  ;;  %v681_v56 = vadd.f32 %v680_v52, %v679_v50 }
 0x10e   : > { %v485_v57 = vadd.f32 %v484_v55, %v483_v47 }
 0x10f   : > { %v476_v59 = vmax.f32 %v450_v54, 0.0  ;;  %v350_v60 = vadd.f32 %v681_v56, %v623_v24  ;;  %v682_v61 = vpop.f32.mrb[10].mxu0  ;;  %v722_v62 = vpop.f32.mrb[10].mxu1 }
 0x110   : > { %v470_v0 = vadd.f32 %v722_v62, %v365_v58  ;;  %v683_v1 = vpop.f32.mrb[11].mxu0  ;;  %v464_v2 = vpop.f32.mrb[11].mxu1 }
 0x111   : > { %v455_v3 = vadd.f32 %v454_v53, %v350_v60  ;;  %v486_v4 = vsel %vm238_vm0, %v476_v59, 0.0  ;;  %v684_v5 = vadd.f32 %v683_v1, %v682_v61  ;;  %v465_v6 = vadd.f32 %v464_v2, %v360_v63 }
 0x112   : > { %v487_v7 = vadd.f32 %v486_v4, %v485_v57  ;;  %v480_v15 = vmax.f32 %v470_v0, 0.0 }
 0x113   : > { %v477_v8 = vmax.f32 %v455_v3, 0.0  ;;  %v355_v9 = vadd.f32 %v684_v5, %v623_v24  ;;  %v479_v14 = vmax.f32 %v465_v6, 0.0 }
 0x114   : > { %v494_v20 = vsel %vm238_vm0, %v480_v15, 0.0 }
 0x115   : > { %v488_v10 = vsel %vm238_vm0, %v477_v8, 0.0  ;;  %v460_v11 = vadd.f32 %v719_v51, %v355_v9  ;;  %v492_v18 = vsel %vm238_vm0, %v479_v14, 0.0 }
 0x116   : > { %v489_v12 = vadd.f32 %v488_v10, %v487_v7 }
 0x117   : > { %v478_v13 = vmax.f32 %v460_v11, 0.0 }
 0x119   : > { %v490_v16 = vsel %vm238_vm0, %v478_v13, 0.0 }
 0x11a   : > { %v491_v17 = vadd.f32 %v490_v16, %v489_v12 }
 0x11c   : > { %v493_v19 = vadd.f32 %v492_v18, %v491_v17 }
 0x11e   : > { %v495_v21 = vadd.f32 %v494_v20, %v493_v19 }
 0x120   : > { %v496_v22 = vrot.slane %v495_v21, 4 }
 0x122   : > { %v497_v23 = vadd.f32 %v496_v22, %v495_v21 }
 0x124   : > { %v498_v25 = vrot.slane %v497_v23, 2 }
 0x126   : > { %v499_v24 = vadd.f32 %v498_v25, %v497_v23 }
 0x128   : > { %v500_v26 = vrot.slane %v499_v24, 1 }
 0x12a   : > { %v501_v27 = vadd.f32 %v500_v26, %v499_v24 }
 0x12c   : > { %v503_v28 = vmul.f32 0.015625, %v501_v27 }
 0x12e   : > { %v504_v29 = vsub.f32 %v473_v37, %v503_v28  ;;  %v505_v30 = vsub.f32 %v474_v36, %v503_v28  ;;  %v506_v31 = vsub.f32 %v475_v49, %v503_v28  ;;  %v507_v32 = vsub.f32 %v476_v59, %v503_v28 }
 0x12f   : > { %v508_v33 = vsub.f32 %v477_v8, %v503_v28  ;;  %v509_v34 = vsub.f32 %v478_v13, %v503_v28  ;;  %v510_v35 = vsub.f32 %v479_v14, %v503_v28  ;;  %v511_v38 = vsub.f32 %v480_v15, %v503_v28 }
 0x130   : > { %v512_v39 = vmul.f32 %v504_v29, %v504_v29  ;;  %v513_v40 = vmul.f32 %v505_v30, %v505_v30  ;;  %v514_v41 = vmul.f32 %v506_v31, %v506_v31  ;;  %v515_v42 = vmul.f32 %v507_v32, %v507_v32 }
 0x131   : > { %v516_v46 = vmul.f32 %v508_v33, %v508_v33  ;;  %v517_v36 = vmul.f32 %v509_v34, %v509_v34  ;;  %v518_v50 = vmul.f32 %v510_v35, %v510_v35  ;;  %v519_v53 = vmul.f32 %v511_v38, %v511_v38 }
 0x132   : > { %v520_v43 = vsel %vm238_vm0, %v512_v39, 0.0  ;;  %v521_v44 = vsel %vm238_vm0, %v513_v40, 0.0  ;;  %v523_v47 = vsel %vm238_vm0, %v514_v41, 0.0  ;;  %v525_v48 = vsel %vm238_vm0, %v515_v42, 0.0 }
 0x133   : > { %v522_v45 = vadd.f32 %v521_v44, %v520_v43  ;;  %v527_v51 = vsel %vm238_vm0, %v516_v46, 0.0  ;;  %v529_v54 = vsel %vm238_vm0, %v517_v36, 0.0  ;;  %v531_v56 = vsel %vm238_vm0, %v518_v50, 0.0 }
 0x134   : > { %v533_v58 = vsel %vm238_vm0, %v519_v53, 0.0 }
 0x135   : > { %v524_v37 = vadd.f32 %v523_v47, %v522_v45 }
 0x137   : > { %v526_v49 = vadd.f32 %v525_v48, %v524_v37 }
 0x139   : > { %v528_v52 = vadd.f32 %v527_v51, %v526_v49 }
 0x13b   : > { %v530_v55 = vadd.f32 %v529_v54, %v528_v52 }
 0x13d   : > { %v532_v57 = vadd.f32 %v531_v56, %v530_v55 }
 0x13f   : > { %v534_v59 = vadd.f32 %v533_v58, %v532_v57 }
 0x141   : > { %v535_v60 = vrot.slane %v534_v59, 4 }
 0x143   : > { %v536_v61 = vadd.f32 %v535_v60, %v534_v59 }
 0x145   : > { %v537_v62 = vrot.slane %v536_v61, 2 }
 0x147   : > { %v538_v63 = vadd.f32 %v537_v62, %v536_v61 }
 0x149   : > { %v539_v0 = vrot.slane %v538_v63, 1 }
 0x14b   : > { %v540_v1 = vadd.f32 %v539_v0, %v538_v63 }
 0x14d   : > { %v541_v2 = vmul.f32 0.015625, %v540_v1 }
 0x14f   : > { %v542_v3 = vadd.f32 1e-05, %v541_v2 }
 0x151   : > { %788 = vrsqrt.f32 %v542_v3 }
 0x15b   : > { %v789_v4 = vpop.eup %788 }
 0x15c   : > { %v544_v5 = vmul.f32 %v789_v4, %v504_v29  ;;  %v545_v6 = vmul.f32 %v789_v4, %v505_v30  ;;  %v546_v7 = vmul.f32 %v789_v4, %v506_v31  ;;  %v547_v8 = vmul.f32 %v789_v4, %v507_v32 }
 0x15d   : > { %v548_v9 = vmul.f32 %v789_v4, %v508_v33  ;;  %v549_v10 = vmul.f32 %v789_v4, %v509_v34  ;;  %v550_v11 = vmul.f32 %v789_v4, %v510_v35  ;;  %v551_v12 = vmul.f32 %v789_v4, %v511_v38 }
 0x15e   : > { %552 = vst.msk [vmem:[%s170_s21] sm:$0xff] %vm238_vm0, %v544_v5  ;;  %553 = vst.msk [vmem:[%s170_s21 + $0x8] sm:$0xff] %vm238_vm0, %v545_v6 }
 0x15f   : > { %554 = vst.msk [vmem:[%s170_s21 + $0x10] sm:$0xff] %vm238_vm0, %v546_v7  ;;  %555 = vst.msk [vmem:[%s170_s21 + $0x18] sm:$0xff] %vm238_vm0, %v547_v8 }
 0x160   : > { %556 = vst.msk [vmem:[%s170_s21 + $0x20] sm:$0xff] %vm238_vm0, %v548_v9  ;;  %557 = vst.msk [vmem:[%s170_s21 + $0x28] sm:$0xff] %vm238_vm0, %v549_v10 }
 0x161   : > { %558 = vst.msk [vmem:[%s170_s21 + $0x30] sm:$0xff] %vm238_vm0, %v550_v11  ;;  %559 = vst.msk [vmem:[%s170_s21 + $0x38] sm:$0xff] %vm238_vm0, %v551_v12 }
 0x162 PF: > { %s13_s12 = sadd.s32 1, %s796_s12  }
 0x163   : > { %p10_p4 = scmp.ge.s32.totalorder %s13_s12, 4  }
 0x165   :  { %12 = sbr.rel (!%p10_p4) target bundleno = 1 (0x1), region = 62 }

// kernel: encoder_forward.15
= control target key start
LH: loop header
LB: loop body
LE: loop exit
PB: predicated region body
PF: predicated region fallthrough
CT: control target
= control target key end

     0   :  { %11 = vsyncpa [#allocation3], 0  ;;  %s860_s0 = inlined_call_operand.vmem [shape: f32[2,4,4,32], index: 0, kind: input, shape index: {}]   ;;  %s861_s1 = inlined_call_operand.vmem [shape: f32[2,4,4,32], index: 1, kind: input, shape index: {}]   ;;  %s862_s2 = inlined_call_operand.vmem [shape: f32[2,4,4,32], index: 2, kind: input, shape index: {}]   ;;  %s863_s3 = inlined_call_operand.vmem [shape: f32[2,4,4,32], index: 3, kind: input, shape index: {}]   ;;  %s864_s4 = inlined_call_operand.vmem [shape: f32[2,4,4,32], index: 4, kind: output, shape index: {0}]   ;;  %s865_s5 = inlined_call_operand.hbm [shape: s32[2,4,4,32], index: 5, kind: output, shape index: {1}]  }
   0x1   :  { %13 = vsyncpa [#allocation3 + $0x1], 0  ;;  %s684_s18 = smov 0   ;;  %s686_s19 = smov 0  }
   0x2   :  { %s688_s20 = smov 0   ;;  %s690_s21 = smov 0  }
   0x3 LB: > { %s705_s22 = sadd.s32 4294967295, %s649_s21   ;;  %s520_s23 = sadd.s32 4294967294, %s649_s21   ;;  %s649_s21 = sphi %s690_s21, %s871_s21   ;;  %s645_s20 = sphi %s688_s20, %s870_s20   ;;  %s641_s19 = sphi %s686_s19, %s869_s19   ;;  %s637_s18 = sphi %s684_s18, %s868_s18  }
   0x4   : > { %s709_s24 = sadd.s32 1, %s649_s21   ;;  %s156_s25 = sadd.s32 1, %s645_s20 }
   0x5   : > { %s153_s26 = ssub.s32 %s649_s21, %s709_s24  ;;  %p166_p0 = scmp.ne.s32.totalorder %s645_s20, %s641_s19 }
   0x6   : > { %p154_p1 = scmp.eq.s32.totalorder %s153_s26, 0  ;;  %p167_p2 = scmp.eq.s32.totalorder %s705_s22, 1 }
   0x7   : > { %p172_p3 = scmp.ne.s32.totalorder %s641_s19, %s637_s18  ;;  %p173_p4 = scmp.eq.s32.totalorder %s520_s23, 1 }
   0x8   : > { %s720_s27 = scalar_select %p154_p1, %s645_s20, %s156_s25  }
   0x9   : > { %p722_p5 = por %p167_p2, %p166_p0  ;;  %p726_p6 = por %p173_p4, %p172_p3 }
   0xa   : > { %p523_p7 = scmp.ge.s32.totalorder %s649_s21, 1  ;;  %p223_p8 = scmp.lt.s32.totalorder %s649_s21, 3 }
   0xc   : > { %p224_p9 = pnand %p523_p7, %p223_p8 }
   0xd   : > { %p271_p10 = scmp.lt.s32.totalorder (!%p224_p9), %s705_s22, 1  ;;  %v312_v0 = vlaneseq (!%p224_p9)  ;;  %s268_s6 = sand.u32 (!%p224_p9), 1, %s641_s19   ;;  %vm366_vm1 = vcmask (!%p224_p9), 257024  }
   0xe   : > { %227 = sbr.rel (%p224_p9) target bundleno = 53 (0x35), region = 36  ;;  %s766_s26 = sshll.u32 (!%p224_p9), %s268_s6, 4 }
   0xf   : > { %v313_v1 = vshrl.u32 (!%p224_p9), %v312_v0, 7  ;;  %s545_s12 = sshll.u32 (!%p224_p9), %s705_s22, 8  ;;  %s819_s14 = scalar_lea.sflag (!%p224_p9), [#allocation3], %s268_s6 }
  0x11   : > { %v314_v2 = vmul.u32 (!%p224_p9), 2, %v313_v1 }
  0x13   : > { %v326_v3 = vadd.s32 (!%p224_p9), 1, %v314_v2  ;;  %v342_v4 = vadd.s32 (!%p224_p9), 8, %v314_v2  ;;  %v315_v5 = vadd.s32 (!%p224_p9), 16, %v314_v2  ;;  %v316_v6 = vadd.s32 (!%p224_p9), 32, %v314_v2 }
  0x14   : > { %v317_v41 = vadd.s32 (!%p224_p9), 48, %v314_v2 }
  0x15   : > { %s272_s30 = scalar_select %p271_p10, %s705_s22, 1  ;;  %v327_v12 = vadd.s32 1, %v315_v5  ;;  %v358_v15 = vadd.s32 1, %v342_v4  ;;  %v343_v18 = vadd.s32 8, %v315_v5  ;;  %v328_v21 = vadd.s32 1, %v316_v6 }
  0x16   : > { %v344_v37 = vadd.s32 8, %v316_v6  ;;  %v329_v46 = vadd.s32 1, %v317_v41  ;;  %v345_v47 = vadd.s32 8, %v317_v41 }
  0x17   : > { %s735_s7 = sshll.u32 %s272_s30, 4  ;;  %v359_v28 = vadd.s32 1, %v343_v18  ;;  %s781_s30 = scalar_lea.vmem [#allocation2], %s766_s26 }
  0x18   : > { %s741_s10 = scalar_lea.vmem %s860_s0, %s735_s7  ;;  %s747_s13 = scalar_lea.vmem %s861_s1, %s735_s7  ;;  %v360_v43 = vadd.s32 1, %v344_v37  ;;  %v361_v54 = vadd.s32 1, %v345_v47 }
  0x19   : > { %s753_s16 = scalar_lea.vmem %s862_s2, %s735_s7  ;;  %s759_s25 = scalar_lea.vmem %s863_s3, %s735_s7  ;;  %v296_v7 = vld [vmem:[%s741_s10] sm:$0xf]  ;;  %v297_v9 = vld [vmem:[%s741_s10 + $0x4] sm:$0xf]  ;;  %v298_v19 = vld [vmem:[%s741_s10 + $0x8] sm:$0xf] }
  0x1a   : > { %v300_v8 = vld [vmem:[%s747_s13] sm:$0xf]  ;;  %v301_v16 = vld [vmem:[%s747_s13 + $0x4] sm:$0xf]  ;;  %v302_v20 = vld [vmem:[%s747_s13 + $0x8] sm:$0xf] }
  0x1b   : > { %v304_v10 = vld [vmem:[%s753_s16] sm:$0xf]  ;;  %vm318_vm0 = vcmp.gt.f32.partialorder %v300_v8, %v296_v7  ;;  %v305_v17 = vld [vmem:[%s753_s16 + $0x4] sm:$0xf]  ;;  %vm319_vm3 = vcmp.gt.f32.partialorder %v301_v16, %v297_v9  ;;  %v306_v27 = vld [vmem:[%s753_s16 + $0x8] sm:$0xf]  ;;  %vm320_vm6 = vcmp.gt.f32.partialorder %v302_v20, %v298_v19 }
  0x1c   : > { %v308_v11 = vld [vmem:[%s759_s25] sm:$0xf]  ;;  %v322_v13 = vsel %vm318_vm0, %v300_v8, %v296_v7  ;;  %v330_v14 = vsel %vm318_vm0, %v326_v3, %v314_v2  ;;  %v309_v24 = vld [vmem:[%s759_s25 + $0x4] sm:$0xf]  ;;  %v323_v25 = vsel %vm319_vm3, %v301_v16, %v297_v9  ;;  %v331_v26 = vsel %vm319_vm3, %v327_v12, %v315_v5  ;;  %v299_v29 = vld [vmem:[%s741_s10 + $0xc] sm:$0xf]  ;;  %s295_s10 = scalar_lea.vmem %s864_s4, %s735_s7 }
  0x1d   : > { %vm334_vm2 = vcmp.gt.f32.partialorder %v304_v10, %v322_v13  ;;  %vm335_vm5 = vcmp.gt.f32.partialorder %v305_v17, %v323_v25  ;;  %v303_v30 = vld [vmem:[%s747_s13 + $0xc] sm:$0xf]  ;;  %v310_v34 = vld [vmem:[%s759_s25 + $0x8] sm:$0xf]  ;;  %v324_v35 = vsel %vm320_vm6, %v302_v20, %v298_v19  ;;  %v332_v36 = vsel %vm320_vm6, %v328_v21, %v316_v6  ;;  %s397_s11 = sshll.u32 %s781_s30, 4  ;;  %s811_s13 = scalar_lea.hbm %s865_s5, %s545_s12  ;;  %s801_s11 = int_to_ptr.vmem [resolvable:$true] %s397_s11 }
  0x1e   : > { %v338_v22 = vsel %vm334_vm2, %v304_v10, %v322_v13  ;;  %v346_v23 = vsel %vm334_vm2, %v342_v4, %v330_v14  ;;  %v339_v32 = vsel %vm335_vm5, %v305_v17, %v323_v25  ;;  %v347_v33 = vsel %vm335_vm5, %v343_v18, %v331_v26  ;;  %v307_v38 = vld [vmem:[%s753_s16 + $0xc] sm:$0xf]  ;;  %s587_s15 = scalar_lea.vmem %s801_s11, 256  ;;  %s651_s16 = smov [#allocation2]  }
  0x1f   : > { %vm350_vm4 = vcmp.gt.f32.partialorder %v308_v11, %v338_v22  ;;  %vm351_vm7 = vcmp.gt.f32.partialorder %v309_v24, %v339_v32  ;;  %vm336_vm8 = vcmp.gt.f32.partialorder %v306_v27, %v324_v35  ;;  %vm321_vm9 = vcmp.gt.f32.partialorder %v303_v30, %v299_v29  ;;  %v311_v44 = vld [vmem:[%s759_s25 + $0xc] sm:$0xf]  ;;  %p588_p11 = scmp.ne.s32.totalorder %s801_s11, %s587_s15  ;;  %s591_s17 = sshll.u32 %s651_s16, 4  ;;  %s592_s17 = int_to_ptr.vmem [resolvable:$false] %s591_s17 }
  0x20   : > { %v362_v31 = vsel %vm350_vm4, %v358_v15, %v346_v23  ;;  %v363_v39 = vsel %vm351_vm7, %v359_v28, %v347_v33  ;;  %v340_v40 = vsel %vm336_vm8, %v306_v27, %v324_v35  ;;  %v348_v42 = vsel %vm336_vm8, %v344_v37, %v332_v36  ;;  %s593_s23 = scalar_lea.vmem %s592_s17, 512  ;;  %p594_p0 = scmp.lt.s32.totalorder %s801_s11, %s592_s17 }
  0x21   : > { %371 = vst.msk [vmem:[%s781_s30] sm:$0xf] %vm366_vm1, %v362_v31  ;;  %372 = vst.msk [vmem:[%s781_s30 + $0x4] sm:$0xf] %vm366_vm1, %v363_v39  ;;  %vm352_vm10 = vcmp.gt.f32.partialorder %v310_v34, %v340_v40  ;;  %v325_v45 = vsel %vm321_vm9, %v303_v30, %v299_v29  ;;  %v354_v48 = vsel %vm350_vm4, %v308_v11, %v338_v22  ;;  %p589_p12 = pnand %p588_p11, %p722_p5  ;;  %p595_p1 = scmp.lt.s32.totalorder %s593_s23, %s587_s15 }
  0x22   : > { %vm337_vm11 = vcmp.gt.f32.partialorder %v307_v38, %v325_v45  ;;  %v364_v49 = vsel %vm352_vm10, %v360_v43, %v348_v42  ;;  %367 = vst.msk [vmem:[%s295_s10] sm:$0xf] %vm366_vm1, %v354_v48  ;;  %v355_v51 = vsel %vm351_vm7, %v309_v24, %v339_v32  ;;  %v356_v52 = vsel %vm352_vm10, %v310_v34, %v340_v40 }
  0x23   : > { %v341_v50 = vsel %vm337_vm11, %v307_v38, %v325_v45  ;;  %373 = vst.msk [vmem:[%s781_s30 + $0x8] sm:$0xf] %vm366_vm1, %v364_v49  ;;  %v333_v53 = vsel %vm321_vm9, %v329_v46, %v317_v41  ;;  %368 = vst.msk [vmem:[%s295_s10 + $0x4] sm:$0xf] %vm366_vm1, %v355_v51  ;;  %p590_p13 = pneg %p589_p12  ;;  %p596_p2 = por %p595_p1, %p594_p0 }
  0x24   : > { %vm353_vm12 = vcmp.gt.f32.partialorder %v311_v44, %v341_v50  ;;  %369 = vst.msk [vmem:[%s295_s10 + $0x8] sm:$0xf] %vm366_vm1, %v356_v52  ;;  %v349_v55 = vsel %vm337_vm11, %v345_v47, %v333_v53 }
  0x25   : > { %v357_v56 = vsel %vm353_vm12, %v311_v44, %v341_v50  ;;  %v365_v57 = vsel %vm353_vm12, %v361_v54, %v349_v55  ;;  %p597_p3 = pnand %p596_p2, %p590_p13 }
  0x26   : > { %370 = vst.msk [vmem:[%s295_s10 + $0xc] sm:$0xf] %vm366_vm1, %v357_v56  ;;  %374 = vst.msk [vmem:[%s781_s30 + $0xc] sm:$0xf] %vm366_vm1, %v365_v57 }
  0x27   : > { %600 = shalt.err (!%p597_p3)
}
  0x28   : > { %s601_s6 = scalar_lea.hbm %s811_s13, 256  ;;  %s605_s30 = scalar_lea.hbm %s865_s5, 512 }
  0x29   : > { %p602_p4 = scmp.ne.s32.totalorder %s811_s13, %s601_s6  ;;  %p606_p9 = scmp.lt.u32.totalorder %s811_s13, %s865_s5 }
  0x2a   : > { %p607_p10 = scmp.lt.u32.totalorder %s605_s30, %s601_s6  ;;  %p609_p12 = scmp.lt.u32.totalorder %s601_s6, %s811_s13 }
  0x2b   : > { %p603_p7 = pnand %p602_p4, %p722_p5 }
  0x2c   : > { %p608_p11 = por %p607_p10, %p606_p9 }
  0x2d   : > { %p604_p8 = pneg %p603_p7 }
  0x2e   : > { %p610_p13 = por %p609_p12, %p608_p11 }
  0x30   : > { %p611_p0 = pnand %p610_p13, %p604_p8 }
  0x32   : > { %614 = shalt.err (!%p611_p0)
}
  0x33   : > { %s652_s10 = smov 64   ;;  %s653_s12 = smov 4  }
  0x34   : > { %546 = dma.vmem_to_hbm [thread:$0]  (%p722_p5), %s801_s11, 256, %s811_s13, %s819_s14, %s652_s10, %s652_s10, %s653_s12  }
  0x35 PF: > { %p552_p1 = scmp.ge.s32.totalorder %s649_s21, 2  ;;  %s420_s22 = sand.u32 1, %s637_s18  }
  0x36   : > { %s421_s7 = scalar_lea.sflag [#allocation3], %s420_s22 }
  0x37   : > { %p549_p2 = pnand %p552_p1, %p726_p6 }
  0x39   : > { %632 = dma.done.wait (!%p549_p2), %s421_s7, 256  }
  0x3a   : > { %634 = vsyncadd (!%p549_p2), %s421_s7, 4294967040  ;;  %p16_p3 = scmp.ge.s32.totalorder %s709_s24, 4   ;;  %s868_s18 = smov %s641_s19 }
  0x3b   : > { %s869_s19 = smov %s645_s20  ;;  %s870_s20 = smov %s720_s27 }
  0x3c   : > { %s871_s21 = smov %s709_s24  ;;  %18 = sbr.rel (!%p16_p3) target bundleno = 3 (0x3), region = 92 }
  0x43   :  { %426 = vsyncpa [#allocation3], 1 }
  0x44   :  { %428 = vsyncpa [#allocation3 + $0x1], 1 }

// kernel: encoder_forward.17
= control target key start
LH: loop header
LB: loop body
LE: loop exit
PB: predicated region body
PF: predicated region fallthrough
CT: control target
= control target key end

     0   :  { %11 = vsyncpa [#allocation3], 0  ;;  %s776_s0 = inlined_call_operand.vmem [shape: f32[2,2,2,64], index: 0, kind: input, shape index: {}]   ;;  %s777_s1 = inlined_call_operand.vmem [shape: f32[2,2,2,64], index: 1, kind: input, shape index: {}]   ;;  %s778_s2 = inlined_call_operand.vmem [shape: f32[2,2,2,64], index: 2, kind: input, shape index: {}]   ;;  %s779_s3 = inlined_call_operand.vmem [shape: f32[2,2,2,64], index: 3, kind: input, shape index: {}]   ;;  %s780_s4 = inlined_call_operand.vmem [shape: f32[2,2,2,64], index: 4, kind: output, shape index: {0}]   ;;  %s781_s5 = inlined_call_operand.hbm [shape: s32[2,2,2,64], index: 5, kind: output, shape index: {1}]  }
   0x1   :  { %13 = vsyncpa [#allocation3 + $0x1], 0  ;;  %s646_s18 = smov 0   ;;  %s648_s19 = smov 0  }
   0x2   :  { %s650_s20 = smov 0   ;;  %s652_s21 = smov 0  }
   0x3 LB: > { %s667_s22 = sadd.s32 4294967295, %s611_s21   ;;  %s482_s23 = sadd.s32 4294967294, %s611_s21   ;;  %s611_s21 = sphi %s652_s21, %s787_s21   ;;  %s607_s20 = sphi %s650_s20, %s786_s20   ;;  %s603_s19 = sphi %s648_s19, %s785_s19   ;;  %s599_s18 = sphi %s646_s18, %s784_s18  }
   0x4   : > { %s671_s24 = sadd.s32 1, %s611_s21   ;;  %s156_s25 = sadd.s32 1, %s607_s20 }
   0x5   : > { %s153_s26 = ssub.s32 %s611_s21, %s671_s24  ;;  %p166_p0 = scmp.ne.s32.totalorder %s607_s20, %s603_s19 }
   0x6   : > { %p154_p1 = scmp.eq.s32.totalorder %s153_s26, 0  ;;  %p167_p2 = scmp.eq.s32.totalorder %s667_s22, 1 }
   0x7   : > { %p172_p3 = scmp.ne.s32.totalorder %s603_s19, %s599_s18  ;;  %p173_p4 = scmp.eq.s32.totalorder %s482_s23, 1 }
   0x8   : > { %s682_s27 = scalar_select %p154_p1, %s607_s20, %s156_s25  }
   0x9   : > { %p684_p5 = por %p167_p2, %p166_p0  ;;  %p688_p6 = por %p173_p4, %p172_p3 }
   0xa   : > { %p485_p7 = scmp.ge.s32.totalorder %s611_s21, 1  ;;  %p223_p8 = scmp.lt.s32.totalorder %s611_s21, 3 }
   0xc   : > { %p224_p9 = pnand %p485_p7, %p223_p8 }
   0xd   : > { %s268_s30 = sand.u32 (!%p224_p9), 1, %s603_s19   ;;  %p271_p10 = scmp.lt.s32.totalorder (!%p224_p9), %s667_s22, 1  ;;  %v304_v0 = vlaneseq (!%p224_p9)  ;;  %vm332_vm2 = vcmask (!%p224_p9), 517120  }
   0xe   : > { %227 = sbr.rel (%p224_p9) target bundleno = 51 (0x33), region = 36  ;;  %s486_s6 = sshll.u32 (!%p224_p9), %s268_s30, 2 }
   0xf   : > { %v305_v1 = vshrl.u32 (!%p224_p9), %v304_v0, 7  ;;  %s507_s10 = sshll.u32 (!%p224_p9), %s667_s22, 6  ;;  %s613_s16 = smov (!%p224_p9), [#allocation2]  }
  0x11   : > { %v306_v2 = vmul.u32 (!%p224_p9), 2, %v305_v1 }
  0x13   : > { %v312_v3 = vadd.s32 (!%p224_p9), 1, %v306_v2  ;;  %v320_v4 = vadd.s32 (!%p224_p9), 4, %v306_v2  ;;  %v307_v5 = vadd.s32 (!%p224_p9), 8, %v306_v2 }
  0x15   : > { %s272_s7 = scalar_select %p271_p10, %s667_s22, 1  ;;  %v313_v11 = vadd.s32 1, %v307_v5  ;;  %v328_v14 = vadd.s32 1, %v320_v4  ;;  %v321_v17 = vadd.s32 4, %v307_v5 }
  0x17   : > { %s699_s8 = sshll.u32 %s272_s7, 2  ;;  %s270_s7 = scalar_lea.vmem [#allocation2], %s486_s6  ;;  %v329_v23 = vadd.s32 1, %v321_v17 }
  0x18   : > { %s275_s11 = scalar_lea.vmem %s776_s0, %s699_s8  ;;  %s280_s14 = scalar_lea.vmem %s777_s1, %s699_s8 }
  0x19   : > { %s285_s17 = scalar_lea.vmem %s778_s2, %s699_s8  ;;  %s290_s26 = scalar_lea.vmem %s779_s3, %s699_s8  ;;  %v296_v6 = vld [vmem:[%s275_s11] sm:$0x3]  ;;  %v297_v8 = vld [vmem:[%s275_s11 + $0x2] sm:$0x3] }
  0x1a   : > { %v298_v7 = vld [vmem:[%s280_s14] sm:$0x3]  ;;  %v299_v15 = vld [vmem:[%s280_s14 + $0x2] sm:$0x3]  ;;  %s359_s9 = sshll.u32 %s270_s7, 4  ;;  %s295_s13 = scalar_lea.vmem %s780_s4, %s699_s8  ;;  %s722_s9 = int_to_ptr.vmem [resolvable:$true] %s359_s9 }
  0x1b   : > { %v300_v9 = vld [vmem:[%s285_s17] sm:$0x3]  ;;  %vm308_vm0 = vcmp.gt.f32.partialorder %v298_v7, %v296_v6  ;;  %v301_v16 = vld [vmem:[%s285_s17 + $0x2] sm:$0x3]  ;;  %vm309_vm3 = vcmp.gt.f32.partialorder %v299_v15, %v297_v8  ;;  %s727_s14 = scalar_lea.hbm %s781_s5, %s507_s10  ;;  %s735_s8 = scalar_lea.sflag [#allocation3], %s268_s30 }
  0x1c   : > { %v302_v10 = vld [vmem:[%s290_s26] sm:$0x3]  ;;  %v310_v12 = vsel %vm308_vm0, %v298_v7, %v296_v6  ;;  %v314_v13 = vsel %vm308_vm0, %v312_v3, %v306_v2  ;;  %v303_v20 = vld [vmem:[%s290_s26 + $0x2] sm:$0x3]  ;;  %v311_v21 = vsel %vm309_vm3, %v299_v15, %v297_v8  ;;  %v315_v22 = vsel %vm309_vm3, %v313_v11, %v307_v5  ;;  %s549_s15 = scalar_lea.vmem %s722_s9, 64  ;;  %s553_s17 = sshll.u32 %s613_s16, 4  ;;  %s554_s17 = int_to_ptr.vmem [resolvable:$false] %s553_s17 }
  0x1d   : > { %vm316_vm1 = vcmp.gt.f32.partialorder %v300_v9, %v310_v12  ;;  %vm317_vm5 = vcmp.gt.f32.partialorder %v301_v16, %v311_v21  ;;  %p550_p11 = scmp.ne.s32.totalorder %s722_s9, %s549_s15  ;;  %s555_s23 = scalar_lea.vmem %s554_s17, 128 }
  0x1e   : > { %v318_v18 = vsel %vm316_vm1, %v300_v9, %v310_v12  ;;  %v322_v19 = vsel %vm316_vm1, %v320_v4, %v314_v13  ;;  %v319_v25 = vsel %vm317_vm5, %v301_v16, %v311_v21  ;;  %v323_v26 = vsel %vm317_vm5, %v321_v17, %v315_v22  ;;  %p556_p0 = scmp.lt.s32.totalorder %s722_s9, %s554_s17  ;;  %p557_p1 = scmp.lt.s32.totalorder %s555_s23, %s549_s15 }
  0x1f   : > { %vm324_vm4 = vcmp.gt.f32.partialorder %v302_v10, %v318_v18  ;;  %vm325_vm6 = vcmp.gt.f32.partialorder %v303_v20, %v319_v25  ;;  %p551_p12 = pnand %p550_p11, %p684_p5 }
  0x20   : > { %v330_v24 = vsel %vm324_vm4, %v328_v14, %v322_v19  ;;  %v326_v27 = vsel %vm324_vm4, %v302_v10, %v318_v18  ;;  %v331_v28 = vsel %vm325_vm6, %v329_v23, %v323_v26  ;;  %v327_v29 = vsel %vm325_vm6, %v303_v20, %v319_v25  ;;  %p558_p2 = por %p557_p1, %p556_p0 }
  0x21   : > { %335 = vst.msk [vmem:[%s270_s7] sm:$0x3] %vm332_vm2, %v330_v24  ;;  %333 = vst.msk [vmem:[%s295_s13] sm:$0x3] %vm332_vm2, %v326_v27  ;;  %p552_p13 = pneg %p551_p12 }
  0x22   : > { %336 = vst.msk [vmem:[%s270_s7 + $0x2] sm:$0x3] %vm332_vm2, %v331_v28  ;;  %334 = vst.msk [vmem:[%s295_s13 + $0x2] sm:$0x3] %vm332_vm2, %v327_v29 }
  0x23   : > { %p559_p3 = pnand %p558_p2, %p552_p13 }
  0x25   : > { %562 = shalt.err (!%p559_p3)
}
  0x26   : > { %s563_s30 = scalar_lea.hbm %s727_s14, 64  ;;  %s567_s7 = scalar_lea.hbm %s781_s5, 128 }
  0x27   : > { %p564_p4 = scmp.ne.s32.totalorder %s727_s14, %s563_s30  ;;  %p568_p9 = scmp.lt.u32.totalorder %s727_s14, %s781_s5 }
  0x28   : > { %p569_p10 = scmp.lt.u32.totalorder %s567_s7, %s563_s30  ;;  %p571_p12 = scmp.lt.u32.totalorder %s563_s30, %s727_s14 }
  0x29   : > { %p565_p7 = pnand %p564_p4, %p684_p5 }
  0x2a   : > { %p570_p11 = por %p569_p10, %p568_p9 }
  0x2b   : > { %p566_p8 = pneg %p565_p7 }
  0x2c   : > { %p572_p13 = por %p571_p12, %p570_p11 }
  0x2e   : > { %p573_p0 = pnand %p572_p13, %p566_p8 }
  0x30   : > { %576 = shalt.err (!%p573_p0)
}
  0x31   : > { %s614_s12 = smov 32   ;;  %s615_s13 = smov 2  }
  0x32   : > { %508 = dma.vmem_to_hbm [thread:$0]  (%p684_p5), %s722_s9, 64, %s727_s14, %s735_s8, %s614_s12, %s614_s12, %s615_s13  }
  0x33 PF: > { %p514_p1 = scmp.ge.s32.totalorder %s611_s21, 2  ;;  %s382_s22 = sand.u32 1, %s599_s18  }
  0x34   : > { %s383_s6 = scalar_lea.sflag [#allocation3], %s382_s22 }
  0x35   : > { %p511_p2 = pnand %p514_p1, %p688_p6 }
  0x37   : > { %594 = dma.done.wait (!%p511_p2), %s383_s6, 64  }
  0x38   : > { %596 = vsyncadd (!%p511_p2), %s383_s6, 4294967232  ;;  %p16_p3 = scmp.ge.s32.totalorder %s671_s24, 4   ;;  %s784_s18 = smov %s603_s19 }
  0x39   : > { %s785_s19 = smov %s607_s20  ;;  %s786_s20 = smov %s682_s27 }
  0x3a   : > { %s787_s21 = smov %s671_s24  ;;  %18 = sbr.rel (!%p16_p3) target bundleno = 3 (0x3), region = 92 }
  0x41   :  { %388 = vsyncpa [#allocation3], 1 }
  0x42   :  { %390 = vsyncpa [#allocation3 + $0x1], 1 }

// kernel: encoder_forward.16
= control target key start
LH: loop header
LB: loop body
LE: loop exit
PB: predicated region body
PF: predicated region fallthrough
CT: control target
= control target key end

     0   :  { %s614_s12 = smov 0   ;;  %s762_s0 = inlined_call_operand.vmem [shape: f32[2,16,288], index: 0, kind: input, shape index: {}]   ;;  %s763_s1 = inlined_call_operand.vmem [shape: f32[288,64], index: 1, kind: input, shape index: {}]   ;;  %s764_s2 = inlined_call_operand.vmem [shape: f32[1,64], index: 2, kind: input, shape index: {}]   ;;  %s765_s3 = inlined_call_operand.vmem [shape: f32[2,16,64], index: 3, kind: output, shape index: {}]  }
   0x1 LB: > { %s466_s13 = sadd.s32 4294967295, %s592_s12   ;;  %p470_p0 = scmp.ge.s32.totalorder %s592_s12, 1  ;;  %s592_s12 = sphi %s614_s12, %s13_s12  }
   0x2   : > { %p137_p1 = scmp.lt.s32.totalorder %s592_s12, 3 }
   0x4   : > { %p138_p2 = pnand %p470_p0, %p137_p1 }
   0x5   : > { %v193_v0 = vld [vmem:[%s763_s1 + $0x80] sm:$0xff] (!%p138_p2)  ;;  %v194_v1 = vld [vmem:[%s763_s1 + $0x88] sm:$0xff] (!%p138_p2)  ;;  %p161_p3 = scmp.lt.s32.totalorder (!%p138_p2), %s466_s13, 1  ;;  %v195_v5 = vld [vmem:[%s763_s1 + $0x90] sm:$0xff] (!%p138_p2)  ;;  %vm220_vm0 = vcmask (!%p138_p2), 261120   ;;  %vm379_vm1 = vcmask (!%p138_p2), 523264  }
   0x6   : > { %141 = sbr.rel (%p138_p2) target bundleno = 319 (0x13f), region = 32  ;;  %v177_v2 = vld [vmem:[%s763_s1] sm:$0xff] (!%p138_p2)  ;;  %v535_v3 = vpack.c.bf16 (!%p138_p2), %v194_v1, %v193_v0  ;;  %v178_v4 = vld [vmem:[%s763_s1 + $0x8] sm:$0xff] (!%p138_p2)  ;;  %v196_v6 = vld [vmem:[%s763_s1 + $0x98] sm:$0xff] (!%p138_p2) }
   0x7   : > { %v537_v7 = vpack.c.bf16 (!%p138_p2), %v178_v4, %v177_v2  ;;  %v539_v8 = vpack.c.bf16 (!%p138_p2), %v196_v6, %v195_v5  ;;  %v179_v9 = vld [vmem:[%s763_s1 + $0x10] sm:$0xff] (!%p138_p2)  ;;  %v180_v10 = vld [vmem:[%s763_s1 + $0x18] sm:$0xff] (!%p138_p2)  ;;  %v197_v11 = vld [vmem:[%s763_s1 + $0xa0] sm:$0xff] (!%p138_p2) }
   0x8   : > { %536 = vmatprep.subr.bf16.mxu0 (!%p138_p2), %v535_v3  ;;  %v198_v12 = vld [vmem:[%s763_s1 + $0xa8] sm:$0xff] (!%p138_p2)  ;;  %v541_v13 = vpack.c.bf16 (!%p138_p2), %v180_v10, %v179_v9  ;;  %v181_v15 = vld [vmem:[%s763_s1 + $0x20] sm:$0xff] (!%p138_p2)  ;;  %v199_v17 = vld [vmem:[%s763_s1 + $0xb0] sm:$0xff] (!%p138_p2) }
   0x9   : > { %538 = vmatpush3.bf16.msra.mxu0 (!%p138_p2), %v537_v7  ;;  %v543_v14 = vpack.c.bf16 (!%p138_p2), %v198_v12, %v197_v11  ;;  %v182_v16 = vld [vmem:[%s763_s1 + $0x28] sm:$0xff] (!%p138_p2)  ;;  %v200_v18 = vld [vmem:[%s763_s1 + $0xb8] sm:$0xff] (!%p138_p2)  ;;  %v183_v21 = vld [vmem:[%s763_s1 + $0x30] sm:$0xff] (!%p138_p2) }
   0xa   : > { %540 = vmatprep.subr.bf16.mxu0 (!%p138_p2), %v539_v8  ;;  %v545_v19 = vpack.c.bf16 (!%p138_p2), %v182_v16, %v181_v15  ;;  %v547_v20 = vpack.c.bf16 (!%p138_p2), %v200_v18, %v199_v17  ;;  %v184_v22 = vld [vmem:[%s763_s1 + $0x38] sm:$0xff] (!%p138_p2)  ;;  %v201_v23 = vld [vmem:[%s763_s1 + $0xc0] sm:$0xff] (!%p138_p2)  ;;  %v202_v24 = vld [vmem:[%s763_s1 + $0xc8] sm:$0xff] (!%p138_p2) }
   0xb   : > { %v209_v25 = vld [vmem:[%s763_s1 + $0x100] sm:$0xff] (!%p138_p2)  ;;  %v210_v26 = vld [vmem:[%s763_s1 + $0x108] sm:$0xff] (!%p138_p2)  ;;  %v549_v29 = vpack.c.bf16 (!%p138_p2), %v184_v22, %v183_v21  ;;  %v211_v30 = vld [vmem:[%s763_s1 + $0x110] sm:$0xff] (!%p138_p2)  ;;  %v551_v32 = vpack.c.bf16 (!%p138_p2), %v202_v24, %v201_v23 }
   0xc   : > { %v567_v27 = vpack.c.bf16 (!%p138_p2), %v210_v26, %v209_v25  ;;  %v212_v31 = vld [vmem:[%s763_s1 + $0x118] sm:$0xff] (!%p138_p2)  ;;  %v185_v33 = vld [vmem:[%s763_s1 + $0x40] sm:$0xff] (!%p138_p2)  ;;  %v186_v34 = vld [vmem:[%s763_s1 + $0x48] sm:$0xff] (!%p138_p2) }
   0xd   : > { %s767_s13 = smov (!%p161_p3, %s466_s13), 1  ;;  %542 = vmatpush3.bf16.msra.mxu0 %v541_v13  ;;  %v571_v35 = vpack.c.bf16 %v212_v31, %v211_v30  ;;  %v203_v37 = vld [vmem:[%s763_s1 + $0xd0] sm:$0xff]  ;;  %v204_v38 = vld [vmem:[%s763_s1 + $0xd8] sm:$0xff]  ;;  %v553_v39 = vpack.c.bf16 %v186_v34, %v185_v33  ;;  %v205_v43 = vld [vmem:[%s763_s1 + $0xe0] sm:$0xff] }
   0xe   : > { %s575_s7 = smul.u32 48, %s767_s13  ;;  %544 = vmatprep.subr.bf16.mxu0 %v543_v14  ;;  %568 = vmatprep.subr.bf16.mxu1 %v567_v27  ;;  %v555_v40 = vpack.c.bf16 %v204_v38, %v203_v37  ;;  %v187_v41 = vld [vmem:[%s763_s1 + $0x50] sm:$0xff]  ;;  %v188_v42 = vld [vmem:[%s763_s1 + $0x58] sm:$0xff]  ;;  %v206_v44 = vld [vmem:[%s763_s1 + $0xe8] sm:$0xff] }
   0xf   : > { %570 = vmatpush3.bf16.msra.mxu1 %v567_v27  ;;  %v557_v46 = vpack.c.bf16 %v188_v42, %v187_v41  ;;  %v559_v47 = vpack.c.bf16 %v206_v44, %v205_v43  ;;  %v189_v48 = vld [vmem:[%s763_s1 + $0x60] sm:$0xff]  ;;  %v190_v49 = vld [vmem:[%s763_s1 + $0x68] sm:$0xff]  ;;  %v207_v50 = vld [vmem:[%s763_s1 + $0xf0] sm:$0xff] }
  0x10   : > { %s670_s20 = scalar_lea.vmem %s762_s0, %s575_s7  ;;  %572 = vmatprep.subr.bf16.mxu1 %v571_v35  ;;  %v208_v51 = vld [vmem:[%s763_s1 + $0xf8] sm:$0xff]  ;;  %v561_v52 = vpack.c.bf16 %v190_v49, %v189_v48  ;;  %v191_v54 = vld [vmem:[%s763_s1 + $0x70] sm:$0xff]  ;;  %v474_v0 = vld [vmem:[%s764_s2] ss:$0 sm:$0xff] }
  0x11   : > { %v172_v28 = vld [vmem:[%s670_s20 + $0x8] sm:$0xff]  ;;  %546 = vmatpush3.bf16.msra.mxu0 %v545_v19  ;;  %v173_v36 = vld [vmem:[%s670_s20 + $0x10] sm:$0xff]  ;;  %v563_v53 = vpack.c.bf16 %v208_v51, %v207_v50  ;;  %v192_v55 = vld [vmem:[%s763_s1 + $0x78] sm:$0xff] }
  0x12   : > { %291 = vmatprep.mubr.f32.mxu0 %v172_v28  ;;  %548 = vmatprep.subr.bf16.mxu0 %v547_v20  ;;  %v176_v45 = vld [vmem:[%s670_s20 + $0x28] sm:$0xff]  ;;  %v565_v56 = vpack.c.bf16 %v192_v55, %v191_v54  ;;  %v171_v57 = vld [vmem:[%s670_s20] sm:$0xff]  ;;  %v174_v59 = vld [vmem:[%s670_s20 + $0x18] sm:$0xff] }
  0x13   : > { %532 = vmatprep.mubr.msk.f32.mxu1 %vm220_vm0, %v173_v36  ;;  %574 = vmatpush3.bf16.msra.mxu1 %v571_v35  ;;  %v175_v58 = vld [vmem:[%s670_s20 + $0x20] sm:$0xff]  ;;  %s479_s20 = sshll.u32 %s767_s13, 4 }
  0x14   : > { %s170_s21 = scalar_lea.vmem %s765_s3, %s479_s20 }
  0x15   : > { %550 = vmatpush3.bf16.msra.mxu0 %v549_v29 }
  0x16   : > { %552 = vmatprep.subr.bf16.mxu0 %v551_v32  ;;  %533 = vmatmul.mubr.msk.f32.vlgmr.msra.gmra.mrb[0].mxu1 %vm220_vm0, %v176_v45 }
  0x19   : > { %554 = vmatpush3.bf16.msra.mxu0 %v553_v39 }
  0x1a   : > { %556 = vmatprep.subr.bf16.mxu0 %v555_v40 }
  0x1d   : > { %558 = vmatpush3.bf16.msra.mxu0 %v557_v46 }
  0x1e   : > { %560 = vmatprep.subr.bf16.mxu0 %v559_v47 }
  0x21   : > { %562 = vmatpush3.bf16.msra.mxu0 %v561_v52 }
  0x22   : > { %564 = vmatprep.subr.bf16.mxu0 %v563_v53 }
  0x25   : > { %566 = vmatpush3.bf16.msra.mxu0 %v565_v56 }
  0x28   : > { %292 = vmatmul.mubr.f32.vlgmr.msra.gmra.mrb[0].mxu0 %v171_v57 }
  0x29   : > { %296 = vmatprep.mubr.f32.mxu0 %v175_v58 }
  0x2c   : > { %297 = vmatmul.mubr.f32.gmra.mrb[2].mxu0 %v174_v59 }
  0xe9   : > { %v534_v60 = vpop.f32.mrb[0].mxu1 }
  0xea   : > { %v368_v61 = vpop.f32.mrb[1].mxu1 }
  0xfb   : > { %v512_v62 = vpop.f32.mrb[0].mxu0 }
  0xfc   : > { %v513_v63 = vpop.f32.mrb[1].mxu0 }
  0xfd   : > { %v514_v1 = vadd.f32 %v513_v63, %v512_v62 }
  0xff   : > { %v515_v2 = vpop.f32.mrb[2].mxu0  ;;  %v294_v3 = vadd.f32 %v514_v1, %v474_v0 }
 0x100   : > { %v516_v4 = vpop.f32.mrb[3].mxu0 }
 0x101   : > { %v517_v5 = vadd.f32 %v516_v4, %v515_v2  ;;  %v369_v6 = vadd.f32 %v368_v61, %v294_v3 }
 0x103   : > { %v299_v7 = vadd.f32 %v517_v5, %v474_v0  ;;  %v377_v9 = vmax.f32 %v369_v6, 0.0 }
 0x105   : > { %v374_v8 = vadd.f32 %v534_v60, %v299_v7  ;;  %v380_v11 = vsel %vm379_vm1, %v377_v9, 0.0 }
 0x107   : > { %v378_v10 = vmax.f32 %v374_v8, 0.0 }
 0x109   : > { %v381_v12 = vsel %vm379_vm1, %v378_v10, 0.0 }
 0x10a   : > { %v382_v13 = vadd.f32 %v381_v12, %v380_v11 }
 0x10c   : > { %v383_v14 = vrot.slane %v382_v13, 4 }
 0x10e   : > { %v384_v15 = vadd.f32 %v383_v14, %v382_v13 }
 0x110   : > { %v385_v16 = vrot.slane %v384_v15, 2 }
 0x112   : > { %v386_v17 = vadd.f32 %v385_v16, %v384_v15 }
 0x114   : > { %v387_v18 = vrot.slane %v386_v17, 1 }
 0x116   : > { %v388_v19 = vadd.f32 %v387_v18, %v386_v17 }
 0x118   : > { %v390_v20 = vmul.f32 0.0625, %v388_v19 }
 0x11a   : > { %v391_v21 = vsub.f32 %v377_v9, %v390_v20  ;;  %v392_v22 = vsub.f32 %v378_v10, %v390_v20 }
 0x11c   : > { %v393_v23 = vmul.f32 %v391_v21, %v391_v21  ;;  %v394_v24 = vmul.f32 %v392_v22, %v392_v22 }
 0x11e   : > { %v395_v25 = vsel %vm379_vm1, %v393_v23, 0.0  ;;  %v396_v26 = vsel %vm379_vm1, %v394_v24, 0.0 }
 0x11f   : > { %v397_v27 = vadd.f32 %v396_v26, %v395_v25 }
 0x121   : > { %v398_v28 = vrot.slane %v397_v27, 4 }
 0x123   : > { %v399_v29 = vadd.f32 %v398_v28, %v397_v27 }
 0x125   : > { %v400_v30 = vrot.slane %v399_v29, 2 }
 0x127   : > { %v401_v31 = vadd.f32 %v400_v30, %v399_v29 }
 0x129   : > { %v402_v32 = vrot.slane %v401_v31, 1 }
 0x12b   : > { %v403_v33 = vadd.f32 %v402_v32, %v401_v31 }
 0x12d   : > { %v404_v34 = vmul.f32 0.0625, %v403_v33 }
 0x12f   : > { %v405_v35 = vadd.f32 1e-05, %v404_v34 }
 0x131   : > { %584 = vrsqrt.f32 %v405_v35 }
 0x13b   : > { %v585_v36 = vpop.eup %584 }
 0x13c   : > { %v407_v37 = vmul.f32 %v585_v36, %v391_v21  ;;  %v408_v38 = vmul.f32 %v585_v36, %v392_v22 }
 0x13e   : > { %409 = vst.msk [vmem:[%s170_s21] sm:$0xff] %vm379_vm1, %v407_v37  ;;  %410 = vst.msk [vmem:[%s170_s21 + $0x8] sm:$0xff] %vm379_vm1, %v408_v38 }
 0x13f PF: > { %s13_s12 = sadd.s32 1, %s592_s12  }
 0x140   : > { %p10_p4 = scmp.ge.s32.totalorder %s13_s12, 4  }
 0x142   :  { %12 = sbr.rel (!%p10_p4) target bundleno = 1 (0x1), region = 62 }

// kernel: encoder_forward.18
= control target key start
LH: loop header
LB: loop body
LE: loop exit
PB: predicated region body
PF: predicated region fallthrough
CT: control target
= control target key end

     0   :  { %s781_s12 = smov 0   ;;  %s1039_s0 = inlined_call_operand.vmem [shape: f32[2,4,576], index: 0, kind: input, shape index: {}]   ;;  %s1040_s1 = inlined_call_operand.vmem [shape: f32[576,64], index: 1, kind: input, shape index: {}]   ;;  %s1041_s2 = inlined_call_operand.vmem [shape: f32[1,64], index: 2, kind: input, shape index: {}]   ;;  %s1042_s3 = inlined_call_operand.vmem [shape: f32[2,4,64], index: 3, kind: output, shape index: {}]  }
   0x1 LB: > { %s549_s13 = sadd.s32 4294967295, %s756_s12   ;;  %p553_p0 = scmp.ge.s32.totalorder %s756_s12, 1  ;;  %s756_s12 = sphi %s781_s12, %s13_s12  }
   0x2   : > { %p137_p1 = scmp.lt.s32.totalorder %s756_s12, 3 }
   0x4   : > { %p138_p2 = pnand %p553_p0, %p137_p1 }
   0x5   : > { %v188_v0 = vld [vmem:[%s1040_s1 + $0x80] sm:$0xff] (!%p138_p2)  ;;  %v189_v1 = vld [vmem:[%s1040_s1 + $0x88] sm:$0xff] (!%p138_p2)  ;;  %v190_v11 = vld [vmem:[%s1040_s1 + $0x90] sm:$0xff] (!%p138_p2)  ;;  %p845_p3 = scmp.lt.s32.totalorder (!%p138_p2), %s549_s13, 1  ;;  %vm759_vm0 = vmmov (!%p138_p2), 0   ;;  %vm258_vm1 = vcmask (!%p138_p2), 523264  }
   0x6   : > { %141 = sbr.rel (%p138_p2) target bundleno = 322 (0x142), region = 32  ;;  %v172_v2 = vld [vmem:[%s1040_s1] sm:$0xff] (!%p138_p2)  ;;  %v658_v3 = vpack.c.bf16 (!%p138_p2), %v189_v1, %v188_v0  ;;  %v173_v4 = vld [vmem:[%s1040_s1 + $0x8] sm:$0xff] (!%p138_p2)  ;;  %v191_v13 = vld [vmem:[%s1040_s1 + $0x98] sm:$0xff] (!%p138_p2)  ;;  %vm472_vm2 = vcmask (!%p138_p2), 519168  }
   0x7   : > { %v220_v5 = vld [vmem:[%s1040_s1 + $0x180] sm:$0xff] (!%p138_p2)  ;;  %v221_v6 = vld [vmem:[%s1040_s1 + $0x188] sm:$0xff] (!%p138_p2)  ;;  %v660_v7 = vpack.c.bf16 (!%p138_p2), %v173_v4, %v172_v2  ;;  %v174_v14 = vld [vmem:[%s1040_s1 + $0x10] sm:$0xff] (!%p138_p2)  ;;  %v662_v16 = vpack.c.bf16 (!%p138_p2), %v191_v13, %v190_v11 }
   0x8   : > { %v690_v8 = vpack.c.bf16 (!%p138_p2), %v221_v6, %v220_v5  ;;  %v204_v9 = vld [vmem:[%s1040_s1 + $0x100] sm:$0xff] (!%p138_p2)  ;;  %v205_v10 = vld [vmem:[%s1040_s1 + $0x108] sm:$0xff] (!%p138_p2)  ;;  %659 = vmatprep.subr.bf16.mxu0 (!%p138_p2), %v658_v3  ;;  %v175_v15 = vld [vmem:[%s1040_s1 + $0x18] sm:$0xff] (!%p138_p2) }
   0x9   : > { %v692_v12 = vpack.c.bf16 (!%p138_p2), %v205_v10, %v204_v9  ;;  %661 = vmatpush3.bf16.msra.mxu0 (!%p138_p2), %v660_v7  ;;  %v664_v17 = vpack.c.bf16 (!%p138_p2), %v175_v15, %v174_v14  ;;  %v222_v18 = vld [vmem:[%s1040_s1 + $0x190] sm:$0xff] (!%p138_p2)  ;;  %v223_v19 = vld [vmem:[%s1040_s1 + $0x198] sm:$0xff] (!%p138_p2)  ;;  %v192_v23 = vld [vmem:[%s1040_s1 + $0xa0] sm:$0xff] (!%p138_p2) }
   0xa   : > { %691 = vmatprep.subr.bf16.mxu1 (!%p138_p2), %v690_v8  ;;  %v206_v20 = vld [vmem:[%s1040_s1 + $0x110] sm:$0xff] (!%p138_p2)  ;;  %v694_v21 = vpack.c.bf16 (!%p138_p2), %v223_v19, %v222_v18  ;;  %v207_v22 = vld [vmem:[%s1040_s1 + $0x118] sm:$0xff] (!%p138_p2)  ;;  %v193_v24 = vld [vmem:[%s1040_s1 + $0xa8] sm:$0xff] (!%p138_p2)  ;;  %663 = vmatprep.subr.bf16.mxu0 (!%p138_p2), %v662_v16 }
   0xb   : > { %693 = vmatpush3.bf16.msra.mxu1 (!%p138_p2), %v692_v12  ;;  %v696_v25 = vpack.c.bf16 (!%p138_p2), %v207_v22, %v206_v20  ;;  %v666_v26 = vpack.c.bf16 (!%p138_p2), %v193_v24, %v192_v23  ;;  %v176_v27 = vld [vmem:[%s1040_s1 + $0x20] sm:$0xff] (!%p138_p2)  ;;  %v177_v28 = vld [vmem:[%s1040_s1 + $0x28] sm:$0xff] (!%p138_p2)  ;;  %v194_v35 = vld [vmem:[%s1040_s1 + $0xb0] sm:$0xff] (!%p138_p2) }
   0xc   : > { %v224_v29 = vld [vmem:[%s1040_s1 + $0x1a0] sm:$0xff] (!%p138_p2)  ;;  %695 = vmatprep.subr.bf16.mxu1 (!%p138_p2), %v694_v21  ;;  %v225_v30 = vld [vmem:[%s1040_s1 + $0x1a8] sm:$0xff] (!%p138_p2)  ;;  %v668_v33 = vpack.c.bf16 (!%p138_p2), %v177_v28, %v176_v27  ;;  %v195_v36 = vld [vmem:[%s1040_s1 + $0xb8] sm:$0xff] (!%p138_p2) }
   0xd   : > { %v208_v31 = vld [vmem:[%s1040_s1 + $0x120] sm:$0xff]  ;;  %v209_v32 = vld [vmem:[%s1040_s1 + $0x128] sm:$0xff]  ;;  %665 = vmatpush3.bf16.msra.mxu0 %v664_v17  ;;  %v698_v34 = vpack.c.bf16 %v225_v30, %v224_v29  ;;  %v178_v37 = vld [vmem:[%s1040_s1 + $0x30] sm:$0xff]  ;;  %v670_v39 = vpack.c.bf16 %v195_v36, %v194_v35  ;;  %s1045_s13 = smov (!%p845_p3, %s549_s13), 1 }
   0xe   : > { %667 = vmatprep.subr.bf16.mxu0 %v666_v26  ;;  %v700_v38 = vpack.c.bf16 %v209_v32, %v208_v31  ;;  %v179_v40 = vld [vmem:[%s1040_s1 + $0x38] sm:$0xff]  ;;  %v226_v41 = vld [vmem:[%s1040_s1 + $0x1b0] sm:$0xff]  ;;  %v196_v46 = vld [vmem:[%s1040_s1 + $0xc0] sm:$0xff]  ;;  %s734_s18 = smul.u32 20, %s1045_s13 }
   0xf   : > { %697 = vmatpush3.bf16.msra.mxu1 %v696_v25  ;;  %v227_v42 = vld [vmem:[%s1040_s1 + $0x1b8] sm:$0xff]  ;;  %v210_v44 = vld [vmem:[%s1040_s1 + $0x130] sm:$0xff]  ;;  %v197_v47 = vld [vmem:[%s1040_s1 + $0xc8] sm:$0xff]  ;;  %v672_v48 = vpack.c.bf16 %v179_v40, %v178_v37 }
  0x10   : > { %699 = vmatprep.subr.bf16.mxu1 %v698_v34  ;;  %v702_v43 = vpack.c.bf16 %v227_v42, %v226_v41  ;;  %v211_v45 = vld [vmem:[%s1040_s1 + $0x138] sm:$0xff]  ;;  %v228_v49 = vld [vmem:[%s1040_s1 + $0x1c0] sm:$0xff]  ;;  %v229_v50 = vld [vmem:[%s1040_s1 + $0x1c8] sm:$0xff]  ;;  %v674_v52 = vpack.c.bf16 %v197_v47, %v196_v46  ;;  %s946_s10 = scalar_lea.vmem %s1039_s0, %s734_s18 }
  0x11   : > { %669 = vmatpush3.bf16.msra.mxu0 %v668_v33  ;;  %v704_v51 = vpack.c.bf16 %v211_v45, %v210_v44  ;;  %v180_v53 = vld [vmem:[%s1040_s1 + $0x40] sm:$0xff]  ;;  %v181_v54 = vld [vmem:[%s1040_s1 + $0x48] sm:$0xff]  ;;  %v706_v56 = vpack.c.bf16 %v229_v50, %v228_v49  ;;  %v198_v58 = vld [vmem:[%s1040_s1 + $0xd0] sm:$0xff]  ;;  %v760_v45 = vmov 0.0  }
  0x12   : > { %671 = vmatprep.subr.bf16.mxu0 %v670_v39  ;;  %v212_v55 = vld [vmem:[%s1040_s1 + $0x140] sm:$0xff]  ;;  %v213_v57 = vld [vmem:[%s1040_s1 + $0x148] sm:$0xff]  ;;  %v199_v59 = vld [vmem:[%s1040_s1 + $0xd8] sm:$0xff]  ;;  %v676_v62 = vpack.c.bf16 %v181_v54, %v180_v53  ;;  %v758_v39 = vmov 0.0|0.0  }
  0x13   : > { %701 = vmatpush3.bf16.msra.mxu1 %v700_v38  ;;  %v230_v60 = vld [vmem:[%s1040_s1 + $0x1d0] sm:$0xff]  ;;  %v231_v61 = vld [vmem:[%s1040_s1 + $0x1d8] sm:$0xff]  ;;  %v708_v63 = vpack.c.bf16 %v213_v57, %v212_v55  ;;  %v678_v0 = vpack.c.bf16 %v199_v59, %v198_v58  ;;  %v200_v6 = vld [vmem:[%s1040_s1 + $0xe0] sm:$0xff] }
  0x14   : > { %703 = vmatprep.subr.bf16.mxu1 %v702_v43  ;;  %v182_v1 = vld [vmem:[%s1040_s1 + $0x50] sm:$0xff]  ;;  %v183_v2 = vld [vmem:[%s1040_s1 + $0x58] sm:$0xff]  ;;  %v710_v4 = vpack.c.bf16 %v231_v61, %v230_v60  ;;  %v201_v7 = vld [vmem:[%s1040_s1 + $0xe8] sm:$0xff] }
  0x15   : > { %673 = vmatpush3.bf16.msra.mxu0 %v672_v48  ;;  %v214_v3 = vld [vmem:[%s1040_s1 + $0x150] sm:$0xff]  ;;  %v215_v5 = vld [vmem:[%s1040_s1 + $0x158] sm:$0xff]  ;;  %v232_v8 = vld [vmem:[%s1040_s1 + $0x1e0] sm:$0xff]  ;;  %v680_v10 = vpack.c.bf16 %v183_v2, %v182_v1  ;;  %v682_v14 = vpack.c.bf16 %v201_v7, %v200_v6 }
  0x16   : > { %675 = vmatprep.subr.bf16.mxu0 %v674_v52  ;;  %v233_v9 = vld [vmem:[%s1040_s1 + $0x1e8] sm:$0xff]  ;;  %v184_v11 = vld [vmem:[%s1040_s1 + $0x60] sm:$0xff]  ;;  %v712_v13 = vpack.c.bf16 %v215_v5, %v214_v3  ;;  %v202_v20 = vld [vmem:[%s1040_s1 + $0xf0] sm:$0xff] }
  0x17   : > { %705 = vmatpush3.bf16.msra.mxu1 %v704_v51  ;;  %v169_v12 = vld [vmem:[%s946_s10] sm:$0xff]  ;;  %v185_v15 = vld [vmem:[%s1040_s1 + $0x68] sm:$0xff]  ;;  %v714_v19 = vpack.c.bf16 %v233_v9, %v232_v8  ;;  %v203_v21 = vld [vmem:[%s1040_s1 + $0xf8] sm:$0xff] }
  0x18   : > { %707 = vmatprep.subr.bf16.mxu1 %v706_v56  ;;  %v216_v16 = vld [vmem:[%s1040_s1 + $0x160] sm:$0xff]  ;;  %v217_v17 = vld [vmem:[%s1040_s1 + $0x168] sm:$0xff]  ;;  %v254_v18 = vcombine.high %v169_v12, %v169_v12  ;;  %v234_v23 = vld [vmem:[%s1040_s1 + $0x1f0] sm:$0xff]  ;;  %v684_v26 = vpack.c.bf16 %v185_v15, %v184_v11  ;;  %v686_v28 = vpack.c.bf16 %v203_v21, %v202_v20 }
  0x19   : > { %677 = vmatpush3.bf16.msra.mxu0 %v676_v62  ;;  %v170_v22 = vld [vmem:[%s946_s10 + $0x8] sm:$0xff]  ;;  %v235_v24 = vld [vmem:[%s1040_s1 + $0x1f8] sm:$0xff]  ;;  %v716_v27 = vpack.c.bf16 %v217_v17, %v216_v16  ;;  %v186_v29 = vld [vmem:[%s1040_s1 + $0x70] sm:$0xff] }
  0x1a   : > { %679 = vmatprep.subr.bf16.mxu0 %v678_v0  ;;  %325 = vmatprep.mubr.f32.mxu0 %v254_v18  ;;  %v255_v25 = vcombine.high %v170_v22, %v170_v22  ;;  %v187_v30 = vld [vmem:[%s1040_s1 + $0x78] sm:$0xff]  ;;  %v718_v31 = vpack.c.bf16 %v235_v24, %v234_v23  ;;  %v218_v32 = vld [vmem:[%s1040_s1 + $0x170] sm:$0xff]  ;;  %v236_v36 = vld [vmem:[%s1040_s1 + $0x200] sm:$0xff] }
  0x1b   : > { %709 = vmatpush3.bf16.msra.mxu1 %v708_v63  ;;  %v219_v33 = vld [vmem:[%s1040_s1 + $0x178] sm:$0xff]  ;;  %v688_v34 = vpack.c.bf16 %v187_v30, %v186_v29  ;;  %v237_v37 = vld [vmem:[%s1040_s1 + $0x208] sm:$0xff]  ;;  %v238_v40 = vld [vmem:[%s1040_s1 + $0x210] sm:$0xff] }
  0x1c   : > { %711 = vmatprep.subr.bf16.mxu1 %v710_v4  ;;  %395 = vmatprep.mubr.f32.mxu1 %v255_v25  ;;  %v720_v35 = vpack.c.bf16 %v219_v33, %v218_v32  ;;  %v723_v38 = vpack.c.bf16 %v237_v37, %v236_v36  ;;  %v239_v41 = vld [vmem:[%s1040_s1 + $0x218] sm:$0xff]  ;;  %v240_v43 = vld [vmem:[%s1040_s1 + $0x220] sm:$0xff]  ;;  %v241_v44 = vld [vmem:[%s1040_s1 + $0x228] sm:$0xff] }
  0x1d   : > { %681 = vmatpush3.bf16.msra.mxu0 %v680_v10  ;;  %v726_v42 = vpack.c.bf16 %v239_v41, %v238_v40  ;;  %v729_v46 = vpack.c.bf16 %v241_v44, %v240_v43  ;;  %v242_v47 = vld [vmem:[%s1040_s1 + $0x230] sm:$0xff]  ;;  %v243_v48 = vld [vmem:[%s1040_s1 + $0x238] sm:$0xff]  ;;  %v556_v52 = vld [vmem:[%s1041_s2] ss:$0 sm:$0xff] }
  0x1e   : > { %683 = vmatprep.subr.bf16.mxu0 %v682_v14  ;;  %v732_v49 = vpack.c.bf16 %v243_v48, %v242_v47  ;;  %v171_v50 = vld [vmem:[%s946_s10 + $0x10] sm:$0xf]  ;;  %s555_s10 = sshll.u32 %s1045_s13, 2 }
  0x1f   : > { %713 = vmatpush3.bf16.msra.mxu1 %v712_v13  ;;  %s168_s20 = scalar_lea.vmem %s1042_s3, %s555_s10 }
  0x20   : > { %715 = vmatprep.subr.bf16.mxu1 %v714_v19 }
  0x21   : > { %685 = vmatpush3.bf16.msra.mxu0 %v684_v26 }
  0x22   : > { %687 = vmatprep.subr.bf16.mxu0 %v686_v28 }
  0x23   : > { %717 = vmatpush3.bf16.msra.mxu1 %v716_v27 }
  0x24   : > { %719 = vmatprep.subr.bf16.mxu1 %v718_v31 }
  0x25   : > { %689 = vmatpush3.bf16.msra.mxu0 %v688_v34 }
  0x26   : > { %722 = vmatprep.subr.bf16.mxu0 %v758_v39 }
  0x27   : > { %721 = vmatpush3.bf16.msra.mxu1 %v720_v35 }
  0x28   : > { %326 = vmatmul.mubr.f32.vlgmr.msra.gmra.mrb[0].mxu0 %v169_v12 }
  0x29   : > { %724 = vmatpush3.bf16.msra.mxu0 %v723_v38  ;;  %655 = vmatprep.mubr.msk.f32.mxu0 %vm759_vm0, %v760_v45 }
  0x2a   : > { %396 = vmatmul.mubr.f32.vlgmr.msra.gmra.mrb[0].mxu1 %v170_v22  ;;  %725 = vmatprep.subr.bf16.mxu0 %v758_v39 }
  0x2d   : > { %727 = vmatpush3.bf16.msra.mxu0 %v726_v42 }
  0x2e   : > { %728 = vmatprep.subr.bf16.mxu0 %v758_v39 }
  0x31   : > { %730 = vmatpush3.bf16.msra.mxu0 %v729_v46 }
  0x32   : > { %731 = vmatprep.subr.bf16.mxu0 %v758_v39 }
  0x35   : > { %733 = vmatpush3.bf16.msra.mxu0 %v732_v49 }
  0x38   : > { %656 = vmatmul.mubr.msk.f32.vlgmr.msra.gmra.mrb[2].mxu0 %vm258_vm1, %v171_v50 }
  0xfb   : > { %v592_v51 = vpop.f32.mrb[0].mxu0 }
  0xfc   : > { %v593_v53 = vpop.f32.mrb[1].mxu0 }
  0xfd   : > { %v627_v54 = vpop.f32.mrb[0].mxu1  ;;  %v594_v55 = vadd.f32 %v593_v53, %v592_v51 }
  0xfe   : > { %v628_v56 = vpop.f32.mrb[1].mxu1 }
  0xff   : > { %v629_v57 = vadd.f32 %v628_v56, %v627_v54  ;;  %v328_v58 = vadd.f32 %v594_v55, %v556_v52 }
 0x101   : > { %v398_v59 = vadd.f32 %v629_v57, %v328_v58 }
 0x10b   : > { %v467_v60 = vpop.f32.mrb[2].mxu0 }
 0x10c   : > { %v468_v61 = vadd.f32 %v467_v60, %v398_v59  ;;  %v657_v62 = vpop.f32.mrb[3].mxu0 }
 0x10e   : > { %v471_v63 = vmax.f32 %v468_v61, 0.0 }
 0x110   : > { %v473_v0 = vsel %vm472_vm2, %v471_v63, 0.0 }
 0x111   : > { %v474_v1 = vrot.slane %v473_v0, 4 }
 0x113   : > { %v475_v2 = vadd.f32 %v474_v1, %v473_v0 }
 0x115   : > { %v476_v3 = vrot.slane %v475_v2, 2 }
 0x117   : > { %v477_v4 = vadd.f32 %v476_v3, %v475_v2 }
 0x119   : > { %v478_v5 = vrot.slane %v477_v4, 1 }
 0x11b   : > { %v479_v6 = vadd.f32 %v478_v5, %v477_v4 }
 0x11d   : > { %v481_v7 = vmul.f32 0.25, %v479_v6 }
 0x11f   : > { %v482_v8 = vsub.f32 %v471_v63, %v481_v7 }
 0x121   : > { %v483_v9 = vmul.f32 %v482_v8, %v482_v8 }
 0x123   : > { %v484_v10 = vsel %vm472_vm2, %v483_v9, 0.0 }
 0x124   : > { %v485_v11 = vrot.slane %v484_v10, 4 }
 0x126   : > { %v486_v12 = vadd.f32 %v485_v11, %v484_v10 }
 0x128   : > { %v487_v13 = vrot.slane %v486_v12, 2 }
 0x12a   : > { %v488_v14 = vadd.f32 %v487_v13, %v486_v12 }
 0x12c   : > { %v489_v15 = vrot.slane %v488_v14, 1 }
 0x12e   : > { %v490_v16 = vadd.f32 %v489_v15, %v488_v14 }
 0x130   : > { %v491_v17 = vmul.f32 0.25, %v490_v16 }
 0x132   : > { %v492_v18 = vadd.f32 1e-05, %v491_v17 }
 0x134   : > { %748 = vrsqrt.f32 %v492_v18 }
 0x13e   : > { %v749_v19 = vpop.eup %748 }
 0x13f   : > { %v494_v20 = vmul.f32 %v749_v19, %v482_v8 }
 0x141   : > { %495 = vst.msk [vmem:[%s168_s20] sm:$0xf] %vm472_vm2, %v494_v20 }
 0x142 PF: > { %s13_s12 = sadd.s32 1, %s756_s12  }
 0x143   : > { %p10_p4 = scmp.ge.s32.totalorder %s13_s12, 4  }
 0x145   :  { %12 = sbr.rel (!%p10_p4) target bundleno = 1 (0x1), region = 62 }

// kernel: encoder_forward.19
= control target key start
LH: loop header
LB: loop body
LE: loop exit
PB: predicated region body
PF: predicated region fallthrough
CT: control target
= control target key end

     0   :  { %8 = vsyncpa [#allocation3], 0  ;;  %s1222_s0 = inlined_call_operand.vmem [shape: f32[2,4,576], index: 0, kind: input, shape index: {}]   ;;  %s1223_s1 = inlined_call_operand.vmem [shape: f32[576,16], index: 1, kind: input, shape index: {}]   ;;  %s1224_s2 = inlined_call_operand.vmem [shape: f32[1,16], index: 2, kind: input, shape index: {}]   ;;  %s1225_s3 = inlined_call_operand.hbm [shape: f32[2,4,16], index: 3, kind: output, shape index: {}]  }
   0x1   :  { %10 = vsyncpa [#allocation3 + $0x1], 0  ;;  %s890_s12 = smov 0   ;;  %s892_s13 = smov 0  }
   0x2   :  { %s894_s14 = smov 0   ;;  %s896_s15 = smov 0  }
   0x3 LB: > { %s911_s16 = sadd.s32 4294967295, %s864_s15   ;;  %s569_s17 = sadd.s32 4294967294, %s864_s15   ;;  %s864_s15 = sphi %s896_s15, %s1231_s15   ;;  %s860_s14 = sphi %s894_s14, %s1230_s14   ;;  %s856_s13 = sphi %s892_s13, %s1229_s13   ;;  %s852_s12 = sphi %s890_s12, %s1228_s12  }
   0x4   : > { %s915_s18 = sadd.s32 1, %s864_s15   ;;  %s91_s19 = sadd.s32 1, %s860_s14 }
   0x5   : > { %s88_s20 = ssub.s32 %s864_s15, %s915_s18  ;;  %p101_p0 = scmp.ne.s32.totalorder %s860_s14, %s856_s13 }
   0x6   : > { %p89_p1 = scmp.eq.s32.totalorder %s88_s20, 0  ;;  %p102_p2 = scmp.eq.s32.totalorder %s911_s16, 1 }
   0x7   : > { %p107_p3 = scmp.ne.s32.totalorder %s856_s13, %s852_s12  ;;  %p108_p4 = scmp.eq.s32.totalorder %s569_s17, 1 }
   0x8   : > { %s926_s21 = scalar_select %p89_p1, %s860_s14, %s91_s19  }
   0x9   : > { %p928_p5 = por %p102_p2, %p101_p0  ;;  %p932_p6 = por %p108_p4, %p107_p3 }
   0xa   : > { %p572_p7 = scmp.ge.s32.totalorder %s864_s15, 1  ;;  %p140_p8 = scmp.lt.s32.totalorder %s864_s15, 3 }
   0xc   : > { %p141_p9 = pnand %p572_p7, %p140_p8 }
   0xd   : > { %v188_v0 = vld [vmem:[%s1223_s1 + $0x80] sm:$0xff] (!%p141_p9)  ;;  %v189_v1 = vld [vmem:[%s1223_s1 + $0x88] sm:$0xff] (!%p141_p9)  ;;  %v190_v11 = vld [vmem:[%s1223_s1 + $0x90] sm:$0xff] (!%p141_p9)  ;;  %p164_p10 = scmp.lt.s32.totalorder (!%p141_p9), %s911_s16, 1  ;;  %vm867_vm0 = vmmov (!%p141_p9), 0   ;;  %vm258_vm1 = vcmask (!%p141_p9), 523264  }
   0xe   : > { %144 = sbr.rel (%p141_p9) target bundleno = 343 (0x157), region = 32  ;;  %v172_v2 = vld [vmem:[%s1223_s1] sm:$0xff] (!%p141_p9)  ;;  %v679_v3 = vpack.c.bf16 (!%p141_p9), %v189_v1, %v188_v0  ;;  %v173_v4 = vld [vmem:[%s1223_s1 + $0x8] sm:$0xff] (!%p141_p9)  ;;  %v191_v13 = vld [vmem:[%s1223_s1 + $0x98] sm:$0xff] (!%p141_p9)  ;;  %vm472_vm2 = vcmask (!%p141_p9), 125952   ;;  %s578_s10 = sshll.u32 (!%p141_p9), %s911_s16, 6 }
   0xf   : > { %v220_v5 = vld [vmem:[%s1223_s1 + $0x180] sm:$0xff] (!%p141_p9)  ;;  %v221_v6 = vld [vmem:[%s1223_s1 + $0x188] sm:$0xff] (!%p141_p9)  ;;  %v681_v7 = vpack.c.bf16 (!%p141_p9), %v173_v4, %v172_v2  ;;  %v174_v14 = vld [vmem:[%s1223_s1 + $0x10] sm:$0xff] (!%p141_p9)  ;;  %v683_v16 = vpack.c.bf16 (!%p141_p9), %v191_v13, %v190_v11 }
  0x10   : > { %v711_v8 = vpack.c.bf16 (!%p141_p9), %v221_v6, %v220_v5  ;;  %v204_v9 = vld [vmem:[%s1223_s1 + $0x100] sm:$0xff] (!%p141_p9)  ;;  %v205_v10 = vld [vmem:[%s1223_s1 + $0x108] sm:$0xff] (!%p141_p9)  ;;  %680 = vmatprep.subr.bf16.mxu0 (!%p141_p9), %v679_v3  ;;  %v175_v15 = vld [vmem:[%s1223_s1 + $0x18] sm:$0xff] (!%p141_p9) }
  0x11   : > { %v713_v12 = vpack.c.bf16 (!%p141_p9), %v205_v10, %v204_v9  ;;  %682 = vmatpush3.bf16.msra.mxu0 (!%p141_p9), %v681_v7  ;;  %v685_v17 = vpack.c.bf16 (!%p141_p9), %v175_v15, %v174_v14  ;;  %v222_v18 = vld [vmem:[%s1223_s1 + $0x190] sm:$0xff] (!%p141_p9)  ;;  %v223_v19 = vld [vmem:[%s1223_s1 + $0x198] sm:$0xff] (!%p141_p9)  ;;  %v192_v23 = vld [vmem:[%s1223_s1 + $0xa0] sm:$0xff] (!%p141_p9) }
  0x12   : > { %712 = vmatprep.subr.bf16.mxu1 (!%p141_p9), %v711_v8  ;;  %v206_v20 = vld [vmem:[%s1223_s1 + $0x110] sm:$0xff] (!%p141_p9)  ;;  %v715_v21 = vpack.c.bf16 (!%p141_p9), %v223_v19, %v222_v18  ;;  %v207_v22 = vld [vmem:[%s1223_s1 + $0x118] sm:$0xff] (!%p141_p9)  ;;  %v193_v24 = vld [vmem:[%s1223_s1 + $0xa8] sm:$0xff] (!%p141_p9)  ;;  %684 = vmatprep.subr.bf16.mxu0 (!%p141_p9), %v683_v16 }
  0x13   : > { %714 = vmatpush3.bf16.msra.mxu1 (!%p141_p9), %v713_v12  ;;  %v717_v25 = vpack.c.bf16 (!%p141_p9), %v207_v22, %v206_v20  ;;  %v687_v26 = vpack.c.bf16 (!%p141_p9), %v193_v24, %v192_v23  ;;  %v176_v27 = vld [vmem:[%s1223_s1 + $0x20] sm:$0xff] (!%p141_p9)  ;;  %v177_v28 = vld [vmem:[%s1223_s1 + $0x28] sm:$0xff] (!%p141_p9)  ;;  %v194_v35 = vld [vmem:[%s1223_s1 + $0xb0] sm:$0xff] (!%p141_p9) }
  0x14   : > { %v224_v29 = vld [vmem:[%s1223_s1 + $0x1a0] sm:$0xff] (!%p141_p9)  ;;  %716 = vmatprep.subr.bf16.mxu1 (!%p141_p9), %v715_v21  ;;  %v225_v30 = vld [vmem:[%s1223_s1 + $0x1a8] sm:$0xff] (!%p141_p9)  ;;  %v689_v33 = vpack.c.bf16 (!%p141_p9), %v177_v28, %v176_v27  ;;  %v195_v36 = vld [vmem:[%s1223_s1 + $0xb8] sm:$0xff] (!%p141_p9) }
  0x15   : > { %v208_v31 = vld [vmem:[%s1223_s1 + $0x120] sm:$0xff]  ;;  %v209_v32 = vld [vmem:[%s1223_s1 + $0x128] sm:$0xff]  ;;  %686 = vmatpush3.bf16.msra.mxu0 %v685_v17  ;;  %v719_v34 = vpack.c.bf16 %v225_v30, %v224_v29  ;;  %v178_v37 = vld [vmem:[%s1223_s1 + $0x30] sm:$0xff]  ;;  %v691_v39 = vpack.c.bf16 %v195_v36, %v194_v35  ;;  %s1032_s30 = scalar_select %p164_p10, %s911_s16, 1 }
  0x16   : > { %688 = vmatprep.subr.bf16.mxu0 %v687_v26  ;;  %v721_v38 = vpack.c.bf16 %v209_v32, %v208_v31  ;;  %v179_v40 = vld [vmem:[%s1223_s1 + $0x38] sm:$0xff]  ;;  %v226_v41 = vld [vmem:[%s1223_s1 + $0x1b0] sm:$0xff]  ;;  %v196_v46 = vld [vmem:[%s1223_s1 + $0xc0] sm:$0xff]  ;;  %s869_s16 = smov [#allocation2]  }
  0x17   : > { %718 = vmatpush3.bf16.msra.mxu1 %v717_v25  ;;  %v227_v42 = vld [vmem:[%s1223_s1 + $0x1b8] sm:$0xff]  ;;  %v210_v44 = vld [vmem:[%s1223_s1 + $0x130] sm:$0xff]  ;;  %v197_v47 = vld [vmem:[%s1223_s1 + $0xc8] sm:$0xff]  ;;  %v693_v48 = vpack.c.bf16 %v179_v40, %v178_v37  ;;  %s755_s5 = smul.u32 20, %s1032_s30  ;;  %s1179_s30 = scalar_lea.hbm %s1225_s3, %s578_s10 }
  0x18   : > { %720 = vmatprep.subr.bf16.mxu1 %v719_v34  ;;  %v723_v43 = vpack.c.bf16 %v227_v42, %v226_v41  ;;  %v211_v45 = vld [vmem:[%s1223_s1 + $0x138] sm:$0xff]  ;;  %v228_v49 = vld [vmem:[%s1223_s1 + $0x1c0] sm:$0xff]  ;;  %v229_v50 = vld [vmem:[%s1223_s1 + $0x1c8] sm:$0xff]  ;;  %v695_v52 = vpack.c.bf16 %v197_v47, %v196_v46  ;;  %s806_s25 = sshll.u32 %s869_s16, 4  ;;  %s807_s25 = int_to_ptr.vmem [resolvable:$false] %s806_s25 }
  0x19   : > { %690 = vmatpush3.bf16.msra.mxu0 %v689_v33  ;;  %v725_v51 = vpack.c.bf16 %v211_v45, %v210_v44  ;;  %v180_v53 = vld [vmem:[%s1223_s1 + $0x40] sm:$0xff]  ;;  %v181_v54 = vld [vmem:[%s1223_s1 + $0x48] sm:$0xff]  ;;  %v727_v56 = vpack.c.bf16 %v229_v50, %v228_v49  ;;  %v198_v58 = vld [vmem:[%s1223_s1 + $0xd0] sm:$0xff]  ;;  %s1089_s7 = scalar_lea.vmem %s1222_s0, %s755_s5  ;;  %v868_v45 = vmov 0.0   ;;  %s808_s26 = scalar_lea.vmem %s807_s25, 128 }
  0x1a   : > { %692 = vmatprep.subr.bf16.mxu0 %v691_v39  ;;  %v212_v55 = vld [vmem:[%s1223_s1 + $0x140] sm:$0xff]  ;;  %v213_v57 = vld [vmem:[%s1223_s1 + $0x148] sm:$0xff]  ;;  %v199_v59 = vld [vmem:[%s1223_s1 + $0xd8] sm:$0xff]  ;;  %v697_v62 = vpack.c.bf16 %v181_v54, %v180_v53  ;;  %v866_v39 = vmov 0.0|0.0  }
  0x1b   : > { %722 = vmatpush3.bf16.msra.mxu1 %v721_v38  ;;  %v230_v60 = vld [vmem:[%s1223_s1 + $0x1d0] sm:$0xff]  ;;  %v231_v61 = vld [vmem:[%s1223_s1 + $0x1d8] sm:$0xff]  ;;  %v729_v63 = vpack.c.bf16 %v213_v57, %v212_v55  ;;  %v699_v0 = vpack.c.bf16 %v199_v59, %v198_v58  ;;  %v200_v6 = vld [vmem:[%s1223_s1 + $0xe0] sm:$0xff] }
  0x1c   : > { %724 = vmatprep.subr.bf16.mxu1 %v723_v43  ;;  %v182_v1 = vld [vmem:[%s1223_s1 + $0x50] sm:$0xff]  ;;  %v183_v2 = vld [vmem:[%s1223_s1 + $0x58] sm:$0xff]  ;;  %v731_v4 = vpack.c.bf16 %v231_v61, %v230_v60  ;;  %v201_v7 = vld [vmem:[%s1223_s1 + $0xe8] sm:$0xff] }
  0x1d   : > { %694 = vmatpush3.bf16.msra.mxu0 %v693_v48  ;;  %v214_v3 = vld [vmem:[%s1223_s1 + $0x150] sm:$0xff]  ;;  %v215_v5 = vld [vmem:[%s1223_s1 + $0x158] sm:$0xff]  ;;  %v232_v8 = vld [vmem:[%s1223_s1 + $0x1e0] sm:$0xff]  ;;  %v701_v10 = vpack.c.bf16 %v183_v2, %v182_v1  ;;  %v703_v14 = vpack.c.bf16 %v201_v7, %v200_v6 }
  0x1e   : > { %696 = vmatprep.subr.bf16.mxu0 %v695_v52  ;;  %v233_v9 = vld [vmem:[%s1223_s1 + $0x1e8] sm:$0xff]  ;;  %v184_v11 = vld [vmem:[%s1223_s1 + $0x60] sm:$0xff]  ;;  %v733_v13 = vpack.c.bf16 %v215_v5, %v214_v3  ;;  %v202_v20 = vld [vmem:[%s1223_s1 + $0xf0] sm:$0xff] }
  0x1f   : > { %726 = vmatpush3.bf16.msra.mxu1 %v725_v51  ;;  %v169_v12 = vld [vmem:[%s1089_s7] sm:$0xff]  ;;  %v185_v15 = vld [vmem:[%s1223_s1 + $0x68] sm:$0xff]  ;;  %v735_v19 = vpack.c.bf16 %v233_v9, %v232_v8  ;;  %v203_v21 = vld [vmem:[%s1223_s1 + $0xf8] sm:$0xff] }
  0x20   : > { %728 = vmatprep.subr.bf16.mxu1 %v727_v56  ;;  %v216_v16 = vld [vmem:[%s1223_s1 + $0x160] sm:$0xff]  ;;  %v217_v17 = vld [vmem:[%s1223_s1 + $0x168] sm:$0xff]  ;;  %v254_v18 = vcombine.high %v169_v12, %v169_v12  ;;  %v234_v23 = vld [vmem:[%s1223_s1 + $0x1f0] sm:$0xff]  ;;  %v705_v26 = vpack.c.bf16 %v185_v15, %v184_v11  ;;  %v707_v28 = vpack.c.bf16 %v203_v21, %v202_v20 }
  0x21   : > { %698 = vmatpush3.bf16.msra.mxu0 %v697_v62  ;;  %v170_v22 = vld [vmem:[%s1089_s7 + $0x8] sm:$0xff]  ;;  %v235_v24 = vld [vmem:[%s1223_s1 + $0x1f8] sm:$0xff]  ;;  %v737_v27 = vpack.c.bf16 %v217_v17, %v216_v16  ;;  %v186_v29 = vld [vmem:[%s1223_s1 + $0x70] sm:$0xff] }
  0x22   : > { %700 = vmatprep.subr.bf16.mxu0 %v699_v0  ;;  %325 = vmatprep.mubr.f32.mxu0 %v254_v18  ;;  %v255_v25 = vcombine.high %v170_v22, %v170_v22  ;;  %v187_v30 = vld [vmem:[%s1223_s1 + $0x78] sm:$0xff]  ;;  %v739_v31 = vpack.c.bf16 %v235_v24, %v234_v23  ;;  %v218_v32 = vld [vmem:[%s1223_s1 + $0x170] sm:$0xff]  ;;  %v236_v36 = vld [vmem:[%s1223_s1 + $0x200] sm:$0xff] }
  0x23   : > { %730 = vmatpush3.bf16.msra.mxu1 %v729_v63  ;;  %v219_v33 = vld [vmem:[%s1223_s1 + $0x178] sm:$0xff]  ;;  %v709_v34 = vpack.c.bf16 %v187_v30, %v186_v29  ;;  %v237_v37 = vld [vmem:[%s1223_s1 + $0x208] sm:$0xff]  ;;  %v238_v40 = vld [vmem:[%s1223_s1 + $0x210] sm:$0xff] }
  0x24   : > { %732 = vmatprep.subr.bf16.mxu1 %v731_v4  ;;  %395 = vmatprep.mubr.f32.mxu1 %v255_v25  ;;  %v741_v35 = vpack.c.bf16 %v219_v33, %v218_v32  ;;  %v744_v38 = vpack.c.bf16 %v237_v37, %v236_v36  ;;  %v239_v41 = vld [vmem:[%s1223_s1 + $0x218] sm:$0xff]  ;;  %v240_v43 = vld [vmem:[%s1223_s1 + $0x220] sm:$0xff]  ;;  %v241_v44 = vld [vmem:[%s1223_s1 + $0x228] sm:$0xff] }
  0x25   : > { %702 = vmatpush3.bf16.msra.mxu0 %v701_v10  ;;  %v747_v42 = vpack.c.bf16 %v239_v41, %v238_v40  ;;  %v750_v46 = vpack.c.bf16 %v241_v44, %v240_v43  ;;  %v242_v47 = vld [vmem:[%s1223_s1 + $0x230] sm:$0xff]  ;;  %v243_v48 = vld [vmem:[%s1223_s1 + $0x238] sm:$0xff]  ;;  %v575_v52 = vld [vmem:[%s1224_s2] ss:$0 sm:$0xff] }
  0x26   : > { %704 = vmatprep.subr.bf16.mxu0 %v703_v14  ;;  %v753_v49 = vpack.c.bf16 %v243_v48, %v242_v47  ;;  %v171_v50 = vld [vmem:[%s1089_s7 + $0x10] sm:$0xf]  ;;  %s161_s7 = sand.u32 1, %s856_s13  }
  0x27   : > { %734 = vmatpush3.bf16.msra.mxu1 %v733_v13  ;;  %s573_s9 = sshll.u32 %s161_s7, 2  ;;  %s497_s5 = scalar_lea.sflag [#allocation3], %s161_s7 }
  0x28   : > { %736 = vmatprep.subr.bf16.mxu1 %v735_v19  ;;  %s163_s11 = scalar_lea.vmem [#allocation2], %s573_s9 }
  0x29   : > { %706 = vmatpush3.bf16.msra.mxu0 %v705_v26  ;;  %s510_s17 = sshll.u32 %s163_s11, 4  ;;  %s1181_s17 = int_to_ptr.vmem [resolvable:$true] %s510_s17 }
  0x2a   : > { %708 = vmatprep.subr.bf16.mxu0 %v707_v28  ;;  %s802_s24 = scalar_lea.vmem %s1181_s17, 64  ;;  %p809_p0 = scmp.lt.s32.totalorder %s1181_s17, %s807_s25 }
  0x2b   : > { %738 = vmatpush3.bf16.msra.mxu1 %v737_v27  ;;  %p803_p11 = scmp.ne.s32.totalorder %s1181_s17, %s802_s24  ;;  %p810_p1 = scmp.lt.s32.totalorder %s808_s26, %s802_s24 }
  0x2c   : > { %740 = vmatprep.subr.bf16.mxu1 %v739_v31 }
  0x2d   : > { %710 = vmatpush3.bf16.msra.mxu0 %v709_v34  ;;  %p804_p12 = pnand %p803_p11, %p928_p5  ;;  %p811_p2 = por %p810_p1, %p809_p0 }
  0x2e   : > { %743 = vmatprep.subr.bf16.mxu0 %v866_v39 }
  0x2f   : > { %742 = vmatpush3.bf16.msra.mxu1 %v741_v35  ;;  %p805_p13 = pneg %p804_p12 }
  0x30   : > { %326 = vmatmul.mubr.f32.vlgmr.msra.gmra.mrb[0].mxu0 %v169_v12 }
  0x31   : > { %745 = vmatpush3.bf16.msra.mxu0 %v744_v38  ;;  %676 = vmatprep.mubr.msk.f32.mxu0 %vm867_vm0, %v868_v45  ;;  %p812_p3 = pnand %p811_p2, %p805_p13 }
  0x32   : > { %396 = vmatmul.mubr.f32.vlgmr.msra.gmra.mrb[0].mxu1 %v170_v22  ;;  %746 = vmatprep.subr.bf16.mxu0 %v866_v39 }
  0x35   : > { %748 = vmatpush3.bf16.msra.mxu0 %v747_v42 }
  0x36   : > { %749 = vmatprep.subr.bf16.mxu0 %v866_v39 }
  0x39   : > { %751 = vmatpush3.bf16.msra.mxu0 %v750_v46 }
  0x3a   : > { %752 = vmatprep.subr.bf16.mxu0 %v866_v39 }
  0x3d   : > { %754 = vmatpush3.bf16.msra.mxu0 %v753_v49 }
  0x40   : > { %677 = vmatmul.mubr.msk.f32.vlgmr.msra.gmra.mrb[2].mxu0 %vm258_vm1, %v171_v50 }
 0x103   : > { %v613_v51 = vpop.f32.mrb[0].mxu0 }
 0x104   : > { %v614_v53 = vpop.f32.mrb[1].mxu0 }
 0x105   : > { %v648_v54 = vpop.f32.mrb[0].mxu1  ;;  %v615_v55 = vadd.f32 %v614_v53, %v613_v51 }
 0x106   : > { %v649_v56 = vpop.f32.mrb[1].mxu1 }
 0x107   : > { %v650_v57 = vadd.f32 %v649_v56, %v648_v54  ;;  %v328_v58 = vadd.f32 %v615_v55, %v575_v52 }
 0x109   : > { %v398_v59 = vadd.f32 %v650_v57, %v328_v58 }
 0x113   : > { %v467_v60 = vpop.f32.mrb[2].mxu0 }
 0x114   : > { %v468_v61 = vadd.f32 %v467_v60, %v398_v59  ;;  %v678_v62 = vpop.f32.mrb[3].mxu0 }
 0x116   : > { %v471_v63 = vmax.f32 %v468_v61, 0.0 }
 0x118   : > { %v473_v0 = vsel %vm472_vm2, %v471_v63, 0.0 }
 0x119   : > { %v474_v1 = vrot.slane %v473_v0, 4 }
 0x11b   : > { %v475_v2 = vadd.f32 %v474_v1, %v473_v0 }
 0x11d   : > { %v476_v3 = vrot.slane %v475_v2, 2 }
 0x11f   : > { %v477_v4 = vadd.f32 %v476_v3, %v475_v2 }
 0x121   : > { %v478_v5 = vrot.slane %v477_v4, 1 }
 0x123   : > { %v479_v6 = vadd.f32 %v478_v5, %v477_v4 }
 0x125   : > { %v481_v7 = vmul.f32 0.25, %v479_v6 }
 0x127   : > { %v482_v8 = vsub.f32 %v471_v63, %v481_v7 }
 0x129   : > { %v483_v9 = vmul.f32 %v482_v8, %v482_v8 }
 0x12b   : > { %v484_v10 = vsel %vm472_vm2, %v483_v9, 0.0 }
 0x12c   : > { %v485_v11 = vrot.slane %v484_v10, 4 }
 0x12e   : > { %v486_v12 = vadd.f32 %v485_v11, %v484_v10 }
 0x130   : > { %v487_v13 = vrot.slane %v486_v12, 2 }
 0x132   : > { %v488_v14 = vadd.f32 %v487_v13, %v486_v12 }
 0x134   : > { %v489_v15 = vrot.slane %v488_v14, 1 }
 0x136   : > { %v490_v16 = vadd.f32 %v489_v15, %v488_v14 }
 0x138   : > { %v491_v17 = vmul.f32 0.25, %v490_v16 }
 0x13a   : > { %v492_v18 = vadd.f32 1e-05, %v491_v17 }
 0x13c   : > { %800 = vrsqrt.f32 %v492_v18 }
 0x146   : > { %v801_v19 = vpop.eup %800 }
 0x147   : > { %v494_v20 = vmul.f32 %v801_v19, %v482_v8 }
 0x149   : > { %495 = vst.msk [vmem:[%s163_s11] sm:$0xf] %vm472_vm2, %v494_v20 }
 0x14a   : > { %815 = shalt.err (!%p812_p3)
}
 0x14b   : > { %s816_s27 = scalar_lea.hbm %s1179_s30, 64  ;;  %s820_s4 = scalar_lea.hbm %s1225_s3, 128 }
 0x14c   : > { %p817_p4 = scmp.ne.s32.totalorder %s1179_s30, %s816_s27  ;;  %p821_p9 = scmp.lt.u32.totalorder %s1179_s30, %s1225_s3 }
 0x14d   : > { %p822_p10 = scmp.lt.u32.totalorder %s820_s4, %s816_s27  ;;  %p824_p12 = scmp.lt.u32.totalorder %s816_s27, %s1179_s30 }
 0x14e   : > { %p818_p7 = pnand %p817_p4, %p928_p5 }
 0x14f   : > { %p823_p11 = por %p822_p10, %p821_p9 }
 0x150   : > { %p819_p8 = pneg %p818_p7 }
 0x151   : > { %p825_p13 = por %p824_p12, %p823_p11 }
 0x153   : > { %p826_p0 = pnand %p825_p13, %p819_p8 }
 0x155   : > { %829 = shalt.err (!%p826_p0)
}
 0x156   : > { %756 = dma.vmem_to_hbm [thread:$0]  (%p928_p5), %s1181_s17, 64, %s1179_s30, %s497_s5  }
 0x157 PF: > { %p762_p1 = scmp.ge.s32.totalorder %s864_s15, 2  ;;  %s522_s7 = sand.u32 1, %s852_s12  }
 0x158   : > { %s523_s9 = scalar_lea.sflag [#allocation3], %s522_s7 }
 0x159   : > { %p759_p2 = pnand %p762_p1, %p932_p6 }
 0x15b   : > { %847 = dma.done.wait (!%p759_p2), %s523_s9, 64  }
 0x15c   : > { %849 = vsyncadd (!%p759_p2), %s523_s9, 4294967232  ;;  %p13_p3 = scmp.ge.s32.totalorder %s915_s18, 4   ;;  %s1228_s12 = smov %s856_s13 }
 0x15d   : > { %s1229_s13 = smov %s860_s14  ;;  %s1230_s14 = smov %s926_s21 }
 0x15e   : > { %s1231_s15 = smov %s915_s18  ;;  %15 = sbr.rel (!%p13_p3) target bundleno = 3 (0x3), region = 67 }
 0x165   :  { %528 = vsyncpa [#allocation3], 1 }
 0x166   :  { %530 = vsyncpa [#allocation3 + $0x1], 1 }

</bundles_post_ra>
